<compile_context>
chip_gen: v5e
topology: v5e:2x2
jax: 0.10.0
libtpu: 0.0.40
codegen_flags: <defaults>
</compile_context>

<pallas_src>
import jax
import jax.numpy as jnp
from jax.experimental import pallas as pl
from jax.experimental.pallas import tpu as pltpu

N_IN = 784       # 28*28, equals the full array dim -> legal block dim
N_OUT_PAD = 128  # 10 logits padded up to one full lane width
NEG_BIG = -1e30  # drives padded logits to ~ -inf before log_softmax (f32 only)


def mlp_kernel(x_ref, w1_ref, b1_ref, w2_ref, b2_ref, w3_ref, b3_ref, o_ref):
    # in-kernel f32 -> bf16 cast of the input tile (no host pre-pass)
    x = x_ref[...].astype(jnp.bfloat16)
    # fc1 + relu (bf16 operands, f32 MXU accumulate)
    h1 = jnp.dot(x, w1_ref[...], preferred_element_type=jnp.float32)
    h1 = jnp.maximum(h1 + b1_ref[...], 0.0).astype(jnp.bfloat16)
    # fc2 + relu
    h2 = jnp.dot(h1, w2_ref[...], preferred_element_type=jnp.float32)
    h2 = jnp.maximum(h2 + b2_ref[...], 0.0).astype(jnp.bfloat16)
    # fc3 (padded to 128 cols; padded cols carry bias -1e30 so exp() ~ 0)
    logits = jnp.dot(h2, w3_ref[...], preferred_element_type=jnp.float32) + b3_ref[...]
    # numerically stable log_softmax over the last axis (stays in f32)
    m = jnp.max(logits, axis=-1, keepdims=True)
    shifted = logits - m
    lse = jnp.log(jnp.sum(jnp.exp(shifted), axis=-1, keepdims=True))
    o_ref[...] = shifted - lse


def _default_tm_max():
    # v5e's 4x128x128 MXU already makes per-step compute dominate the ~0.35 us
    # pipeline overhead at tm=256; larger tiles only add scratch/vreg pressure.
    try:
        kind = jax.devices()[0].device_kind.lower()
    except Exception:
        kind = ""
    return 256 if "v5" in kind else 512


def mlp_forward(x, params, *, tm_max=None):
    w1, b1, w2, b2, w3, b3 = params
    # glue: flatten like torch's x.view(-1, 784) (layout-only, no data movement)
    x2d = x.reshape(-1, N_IN)
    B = x2d.shape[0]

    if tm_max is None:
        tm_max = _default_tm_max()
    # pick tm so there are at least 2 grid steps when B allows it (keeps both
    # v7x TensorCores busy under dimension_semantics=("parallel",)), rounded
    # to the 8-row sublane granule
    half = ((pl.cdiv(B, 2) + 7) // 8) * 8
    tm = max(8, min(tm_max, half))
    b_pad = pl.cdiv(B, tm) * tm

    # only pad the batch when it doesn't divide the tile (no-op for the common
    # case of large, tile-aligned batches); no K padding, no host-side cast
    xp = x2d if b_pad == B else jnp.pad(x2d, ((0, b_pad - B), (0, 0)))

    # weights/biases: constant index_map -> DMA'd from HBM once, resident in VMEM
    const = lambda i: (0, 0)

    out_padded = pl.pallas_call(
        mlp_kernel,
        out_shape=jax.ShapeDtypeStruct((b_pad, N_OUT_PAD), jnp.float32),
        grid=(b_pad // tm,),
        in_specs=[
            pl.BlockSpec((tm, N_IN), lambda i: (i, 0)),   # x tile (f32)
            pl.BlockSpec((N_IN, 1024), const),            # w1 (resident, bf16)
            pl.BlockSpec((1, 1024), const),               # b1 (f32)
            pl.BlockSpec((1024, 1024), const),            # w2 (bf16)
            pl.BlockSpec((1, 1024), const),               # b2 (f32)
            pl.BlockSpec((1024, N_OUT_PAD), const),       # w3 (bf16, N-padded)
            pl.BlockSpec((1, N_OUT_PAD), const),          # b3 (f32, -1e30 pad)
        ],
        out_specs=pl.BlockSpec((tm, N_OUT_PAD), lambda i: (i, 0)),
        compiler_params=pltpu.CompilerParams(
            dimension_semantics=("parallel",),
            vmem_limit_bytes=40 * 1024 * 1024,
        ),
    )(xp, w1, b1, w2, b2, w3, b3)

    # strip batch padding and the 118 padded logit columns
    return out_padded[:B, :10]


def init_params(key):
    # Deterministic synthetic init (uniform, Linear-style bound = 1/sqrt(fan_in)).
    def linear(key, fan_in, fan_out):
        kw, kb = jax.random.split(key)
        bound = 1.0 / jnp.sqrt(fan_in)
        w = jax.random.uniform(kw, (fan_in, fan_out), jnp.float32, -bound, bound)
        b = jax.random.uniform(kb, (1, fan_out), jnp.float32, -bound, bound)
        return w, b

    k1, k2, k3 = jax.random.split(key, 3)
    w1, b1 = linear(k1, N_IN, 1024)
    w2, b2 = linear(k2, 1024, 1024)
    w3, b3 = linear(k3, 1024, 10)

    # MXU-native [in, out] bf16 weights; fc3 N-padded to 128 (zero cols, -1e30 bias)
    w1p = w1.astype(jnp.bfloat16)
    w2p = w2.astype(jnp.bfloat16)
    w3p = jnp.zeros((1024, N_OUT_PAD), jnp.float32).at[:, :10].set(w3).astype(jnp.bfloat16)
    b3p = jnp.full((1, N_OUT_PAD), NEG_BIG, jnp.float32).at[:, :10].set(b3)
    return (w1p, b1, w2p, b2, w3p, b3p)


def mlp_reference(x, params):
    # Pure-JAX reference using the same (bf16-stored) weights and the same
    # bf16 operand casts as the kernel, accumulated in f32.
    w1, b1, w2, b2, w3, b3 = params
    x2d = x.reshape(-1, N_IN).astype(jnp.bfloat16).astype(jnp.float32)
    w1f = w1.astype(jnp.float32)
    w2f = w2.astype(jnp.float32)
    w3f = w3[:, :10].astype(jnp.float32)
    b3f = b3[:, :10]
    h1 = jnp.maximum(x2d @ w1f + b1, 0.0).astype(jnp.bfloat16).astype(jnp.float32)
    h2 = jnp.maximum(h1 @ w2f + b2, 0.0).astype(jnp.bfloat16).astype(jnp.float32)
    logits = h2 @ w3f + b3f
    return jax.nn.log_softmax(logits, axis=1)


if __name__ == "__main__":
    key = jax.random.PRNGKey(0)
    kx, kp = jax.random.split(key)
    # small MNIST-like input: batch=2, NCHW [2, 1, 28, 28]
    x = jax.random.normal(kx, (2, 1, 28, 28), jnp.float32)
    params = init_params(kp)

    fwd = jax.jit(mlp_forward)
    out = fwd(x, params)
    out = jax.block_until_ready(out)

    ref = mlp_reference(x, params)
    assert out.shape == (2, 10)
    assert jnp.allclose(out, ref, atol=2e-3, rtol=2e-3), (
        f"max abs diff = {jnp.max(jnp.abs(out - ref))}")
    print("KERNEL_OK")
</pallas_src>

<mosaic_0001>
module attributes {stable_mosaic.version = 11 : i64} {
  func.func @mlp_kernel(%arg0: i32, %arg1: memref<8x784xf32, #tpu.memory_space<vmem>>, %arg2: memref<784x1024xbf16, #tpu.memory_space<vmem>>, %arg3: memref<1x1024xf32, #tpu.memory_space<vmem>>, %arg4: memref<1024x1024xbf16, #tpu.memory_space<vmem>>, %arg5: memref<1x1024xf32, #tpu.memory_space<vmem>>, %arg6: memref<1024x128xbf16, #tpu.memory_space<vmem>>, %arg7: memref<1x128xf32, #tpu.memory_space<vmem>>, %arg8: memref<8x128xf32, #tpu.memory_space<vmem>>) attributes {dimension_semantics = [#tpu.dimension_semantics<parallel>], iteration_bounds = array<i64: 1>, scalar_prefetch = 0 : i64, scratch_operands = 0 : i64, tpu.core_type = #tpu.core_type<tc>, window_params = [{transform_indices = @transform_0, window_bounds = array<i64: 8, 784>}, {pipeline_mode = #tpu.pipeline_mode<synchronous>, transform_indices = @transform_1, window_bounds = array<i64: 784, 1024>}, {pipeline_mode = #tpu.pipeline_mode<synchronous>, transform_indices = @transform_2, window_bounds = array<i64: 1, 1024>}, {pipeline_mode = #tpu.pipeline_mode<synchronous>, transform_indices = @transform_3, window_bounds = array<i64: 1024, 1024>}, {pipeline_mode = #tpu.pipeline_mode<synchronous>, transform_indices = @transform_4, window_bounds = array<i64: 1, 1024>}, {pipeline_mode = #tpu.pipeline_mode<synchronous>, transform_indices = @transform_5, window_bounds = array<i64: 1024, 128>}, {pipeline_mode = #tpu.pipeline_mode<synchronous>, transform_indices = @transform_6, window_bounds = array<i64: 1, 128>}, {transform_indices = @transform_7, window_bounds = array<i64: 8, 128>}]} {
    %c0 = arith.constant 0 : index
    %c0_0 = arith.constant 0 : index
    %0 = vector.load %arg1[%c0, %c0_0] : memref<8x784xf32, #tpu.memory_space<vmem>>, vector<8x784xf32>
    %1 = arith.truncf %0 : vector<8x784xf32> to vector<8x784xbf16>
    %c0_1 = arith.constant 0 : index
    %c0_2 = arith.constant 0 : index
    %2 = vector.load %arg2[%c0_1, %c0_2] : memref<784x1024xbf16, #tpu.memory_space<vmem>>, vector<784x1024xbf16>
    %cst = arith.constant dense<0.000000e+00> : vector<8x1024xf32>
    %3 = tpu.matmul %1, %2, %cst {dimension_numbers = #tpu.dot_dimension_numbers<[1], [0], [0], [1], [0, 0, 1, 1], [], []>} : vector<8x784xbf16>, vector<784x1024xbf16>, vector<8x1024xf32> -> vector<8x1024xf32>
    %c0_3 = arith.constant 0 : index
    %c0_4 = arith.constant 0 : index
    %4 = vector.load %arg3[%c0_3, %c0_4] : memref<1x1024xf32, #tpu.memory_space<vmem>>, vector<1x1024xf32>
    %5 = vector.broadcast %4 : vector<1x1024xf32> to vector<8x1024xf32>
    %6 = arith.addf %3, %5 : vector<8x1024xf32>
    %cst_5 = arith.constant 0.000000e+00 : f32
    %7 = vector.broadcast %cst_5 : f32 to vector<8x1024xf32>
    %8 = arith.maximumf %6, %7 : vector<8x1024xf32>
    %9 = arith.truncf %8 : vector<8x1024xf32> to vector<8x1024xbf16>
    %c0_6 = arith.constant 0 : index
    %c0_7 = arith.constant 0 : index
    %10 = vector.load %arg4[%c0_6, %c0_7] : memref<1024x1024xbf16, #tpu.memory_space<vmem>>, vector<1024x1024xbf16>
    %cst_8 = arith.constant dense<0.000000e+00> : vector<8x1024xf32>
    %11 = tpu.matmul %9, %10, %cst_8 {dimension_numbers = #tpu.dot_dimension_numbers<[1], [0], [0], [1], [0, 0, 1, 1], [], []>} : vector<8x1024xbf16>, vector<1024x1024xbf16>, vector<8x1024xf32> -> vector<8x1024xf32>
    %c0_9 = arith.constant 0 : index
    %c0_10 = arith.constant 0 : index
    %12 = vector.load %arg5[%c0_9, %c0_10] : memref<1x1024xf32, #tpu.memory_space<vmem>>, vector<1x1024xf32>
    %13 = vector.broadcast %12 : vector<1x1024xf32> to vector<8x1024xf32>
    %14 = arith.addf %11, %13 : vector<8x1024xf32>
    %cst_11 = arith.constant 0.000000e+00 : f32
    %15 = vector.broadcast %cst_11 : f32 to vector<8x1024xf32>
    %16 = arith.maximumf %14, %15 : vector<8x1024xf32>
    %17 = arith.truncf %16 : vector<8x1024xf32> to vector<8x1024xbf16>
    %c0_12 = arith.constant 0 : index
    %c0_13 = arith.constant 0 : index
    %18 = vector.load %arg6[%c0_12, %c0_13] : memref<1024x128xbf16, #tpu.memory_space<vmem>>, vector<1024x128xbf16>
    %cst_14 = arith.constant dense<0.000000e+00> : vector<8x128xf32>
    %19 = tpu.matmul %17, %18, %cst_14 {dimension_numbers = #tpu.dot_dimension_numbers<[1], [0], [0], [1], [0, 0, 1, 1], [], []>} : vector<8x1024xbf16>, vector<1024x128xbf16>, vector<8x128xf32> -> vector<8x128xf32>
    %c0_15 = arith.constant 0 : index
    %c0_16 = arith.constant 0 : index
    %20 = vector.load %arg7[%c0_15, %c0_16] : memref<1x128xf32, #tpu.memory_space<vmem>>, vector<1x128xf32>
    %21 = vector.broadcast %20 : vector<1x128xf32> to vector<8x128xf32>
    %22 = arith.addf %19, %21 : vector<8x128xf32>
    %cst_17 = arith.constant dense<0xFF800000> : vector<8xf32>
    %23 = vector.multi_reduction <maximumf>, %22, %cst_17 [1] : vector<8x128xf32> to vector<8xf32>
    %24 = vector.shape_cast %23 : vector<8xf32> to vector<8x1xf32>
    %25 = vector.broadcast %24 : vector<8x1xf32> to vector<8x128xf32>
    %26 = arith.subf %22, %25 : vector<8x128xf32>
    %27 = math.exp %26 : vector<8x128xf32>
    %cst_18 = arith.constant dense<0.000000e+00> : vector<8xf32>
    %28 = vector.multi_reduction <add>, %27, %cst_18 [1] : vector<8x128xf32> to vector<8xf32>
    %29 = vector.shape_cast %28 : vector<8xf32> to vector<8x1xf32>
    %30 = math.log %29 : vector<8x1xf32>
    %31 = vector.broadcast %30 : vector<8x1xf32> to vector<8x128xf32>
    %32 = arith.subf %26, %31 : vector<8x128xf32>
    %c0_19 = arith.constant 0 : index
    %c0_20 = arith.constant 0 : index
    %33 = vector.load %arg8[%c0_19, %c0_20] : memref<8x128xf32, #tpu.memory_space<vmem>>, vector<8x128xf32>
    tpu.vector_store %arg8[%c0_19, %c0_20], %32 {strides = array<i32>} : memref<8x128xf32, #tpu.memory_space<vmem>>, vector<8x128xf32>,
    return
  }
  func.func @transform_0(%arg0: i32) -> (i32, i32) {
    %c0_i32 = arith.constant 0 : i32
    %c0_i32_0 = arith.constant 0 : i32
    return %arg0, %c0_i32 : i32, i32
  }
  func.func @transform_1(%arg0: i32) -> (i32, i32) {
    %c0_i32 = arith.constant 0 : i32
    %c0_i32_0 = arith.constant 0 : i32
    %c0_i32_1 = arith.constant 0 : i32
    return %c0_i32, %c0_i32_0 : i32, i32
  }
  func.func @transform_2(%arg0: i32) -> (i32, i32) {
    %c0_i32 = arith.constant 0 : i32
    %c0_i32_0 = arith.constant 0 : i32
    %c0_i32_1 = arith.constant 0 : i32
    return %c0_i32, %c0_i32_0 : i32, i32
  }
  func.func @transform_3(%arg0: i32) -> (i32, i32) {
    %c0_i32 = arith.constant 0 : i32
    %c0_i32_0 = arith.constant 0 : i32
    %c0_i32_1 = arith.constant 0 : i32
    return %c0_i32, %c0_i32_0 : i32, i32
  }
  func.func @transform_4(%arg0: i32) -> (i32, i32) {
    %c0_i32 = arith.constant 0 : i32
    %c0_i32_0 = arith.constant 0 : i32
    %c0_i32_1 = arith.constant 0 : i32
    return %c0_i32, %c0_i32_0 : i32, i32
  }
  func.func @transform_5(%arg0: i32) -> (i32, i32) {
    %c0_i32 = arith.constant 0 : i32
    %c0_i32_0 = arith.constant 0 : i32
    %c0_i32_1 = arith.constant 0 : i32
    return %c0_i32, %c0_i32_0 : i32, i32
  }
  func.func @transform_6(%arg0: i32) -> (i32, i32) {
    %c0_i32 = arith.constant 0 : i32
    %c0_i32_0 = arith.constant 0 : i32
    %c0_i32_1 = arith.constant 0 : i32
    return %c0_i32, %c0_i32_0 : i32, i32
  }
  func.func @transform_7(%arg0: i32) -> (i32, i32) {
    %c0_i32 = arith.constant 0 : i32
    %c0_i32_0 = arith.constant 0 : i32
    return %arg0, %c0_i32 : i32, i32
  }
}

</mosaic_0001>

<bundles_post_ra>
// kernel: mlp_forward.1
= control target key start
LH: loop header
LB: loop body
LE: loop exit
PB: predicated region body
PF: predicated region fallthrough
CT: control target
= control target key end

     0   :  { %12 = vsyncpa [#allocation3], 0  ;;  %s13298_s0 = inlined_call_operand.vmem [shape: f32[8,784], index: 0, kind: input, shape index: {}]   ;;  %s13299_s1 = inlined_call_operand.hbm [shape: bf16[784,1024], index: 1, kind: input, shape index: {}]   ;;  %s13300_s2 = inlined_call_operand.hbm [shape: f32[1,1024], index: 2, kind: input, shape index: {}]   ;;  %s13301_s3 = inlined_call_operand.hbm [shape: bf16[1024,1024], index: 3, kind: input, shape index: {}]   ;;  %s13302_s4 = inlined_call_operand.hbm [shape: f32[1,1024], index: 4, kind: input, shape index: {}]   ;;  %s13303_s5 = inlined_call_operand.hbm [shape: bf16[1024,128], index: 5, kind: input, shape index: {}]   ;;  %s13304_s6 = inlined_call_operand.hbm [shape: f32[1,128], index: 6, kind: input, shape index: {}]   ;;  %s13305_s7 = inlined_call_operand.vmem [shape: f32[8,128], index: 7, kind: output, shape index: {}]  }
   0x1   :  { %13 = vsyncpa [#allocation5], 0 }
   0x2   :  { %14 = vsyncpa [#allocation8], 0  ;;  %s36_s26 = sshll.u32 %s13300_s2, 4  ;;  %s37_s26 = int_to_ptr.hbm [resolvable:$true] %s36_s26 }
   0x3   :  { %15 = vsyncpa [#allocation11], 0  ;;  %s12844_s27 = smov [#allocation4]   ;;  %s60_s8 = sshll.u32 %s13302_s4, 4  ;;  %s61_s8 = int_to_ptr.hbm [resolvable:$true] %s60_s8 }
   0x4   :  { %s38_s28 = sshll.u32 %s12844_s27, 4  ;;  %s12845_s9 = smov [#allocation7]   ;;  %s39_s28 = int_to_ptr.vmem [resolvable:$true] %s38_s28 }
   0x5   :  { %41 = dma.hbm_to_vmem [thread:$0]  %s37_s26, 128, %s39_s28, [#allocation5]  }
   0x6   :  { %s62_s10 = sshll.u32 %s12845_s9, 4  ;;  %s22_s13 = sshll.u32 %s13299_s1, 4  ;;  %s63_s10 = int_to_ptr.vmem [resolvable:$true] %s62_s10  ;;  %s23_s13 = int_to_ptr.hbm [resolvable:$true] %s22_s13 }
   0x7   :  { %65 = dma.hbm_to_vmem [thread:$0]  %s61_s8, 128, %s63_s10, [#allocation8]  }
   0x8   :  { %s12846_s2 = smov [#allocation2]   ;;  %s46_s17 = sshll.u32 %s13301_s3, 4  ;;  %s47_s17 = int_to_ptr.hbm [resolvable:$true] %s46_s17 }
   0x9   :  { %s24_s14 = sshll.u32 %s12846_s2, 4  ;;  %s12847_s18 = smov 512   ;;  %s25_s14 = int_to_ptr.vmem [resolvable:$true] %s24_s14 }
   0xa   :  { %s12848_s4 = smov 32   ;;  %s12849_s19 = smov [#allocation6]  }
   0xb   :  { %30 = dma.hbm_to_vmem [thread:$0]  %s23_s13, 50176, %s25_s14, [#allocation3], %s12847_s18, %s12847_s18, %s12848_s4  }
   0xc   :  { %s48_s20 = sshll.u32 %s12849_s19, 4  ;;  %s70_s1 = sshll.u32 %s13303_s5, 4  ;;  %s49_s20 = int_to_ptr.vmem [resolvable:$true] %s48_s20  ;;  %s71_s1 = int_to_ptr.hbm [resolvable:$true] %s70_s1 }
   0xd   :  { %54 = dma.hbm_to_vmem [thread:$0]  %s47_s17, 65536, %s49_s20, [#allocation5], %s12847_s18, %s12847_s18, %s12848_s4  }
   0xe   :  { %s12850_s23 = smov [#allocation9]   ;;  %s84_s3 = sshll.u32 %s13304_s6, 4  ;;  %s85_s3 = int_to_ptr.hbm [resolvable:$true] %s84_s3 }
   0xf   :  { %s72_s24 = sshll.u32 %s12850_s23, 4  ;;  %s12851_s27 = smov 64   ;;  %s73_s24 = int_to_ptr.vmem [resolvable:$true] %s72_s24 }
  0x10   :  { %s12852_s28 = smov 4   ;;  %s12853_s29 = smov [#allocation10]  }
  0x11   :  { %78 = dma.hbm_to_vmem [thread:$0]  %s71_s1, 8192, %s73_s24, [#allocation8], %s12851_s27, %s12851_s27, %s12852_s28  }
  0x12   :  { %s86_s30 = sshll.u32 %s12853_s29, 4  ;;  %s87_s30 = int_to_ptr.vmem [resolvable:$true] %s86_s30 }
  0x13   :  { %89 = dma.hbm_to_vmem [thread:$0]  %s85_s3, 16, %s87_s30, [#allocation11]  }
  0x14   :  { %12836 = dma.done.wait [#allocation3], 50176  }
  0x15   :  { %12837 = vsyncadd [#allocation3], 4294917120 }
  0x16   :  { %12838 = dma.done.wait [#allocation5], 65664  }
  0x17   :  { %12839 = vsyncadd [#allocation5], 4294901632 }
  0x18   :  { %12840 = dma.done.wait [#allocation8], 8320  }
  0x19   :  { %12841 = vsyncadd [#allocation8], 4294958976 }
  0x1a   :  { %12842 = dma.done.wait [#allocation11], 16  }
  0x1b   :  { %12843 = vsyncadd [#allocation11], 4294967280  ;;  %v8050_v0 = vld [vmem:[#allocation2 + $0x1c0] sm:$0xf]  ;;  %vm2499_vm0 = vcmask 130048  }
  0x1c   :  { %v11764_v1 = vld [vmem:[#allocation2 + $0x1dc] sm:$0xf0] }
  0x1d   :  { %v8306_v2 = vld [vmem:[#allocation2 + $0x3c0] sm:$0xf]  ;;  %v8051_v3 = vor.u32 %v11764_v1, %v8050_v0 }
  0x1e   :  { %v11828_v4 = vld [vmem:[#allocation2 + $0x3dc] sm:$0xf0] }
  0x1f   :  { %v8562_v5 = vld [vmem:[#allocation2 + $0x5c0] sm:$0xf]  ;;  %v8307_v7 = vor.u32 %v11828_v4, %v8306_v2  ;;  %2503 = vmatpush.bf16.msra.mxu0 %v8051_v3 }
  0x20   :  { %v11892_v6 = vld [vmem:[#allocation2 + $0x5dc] sm:$0xf0] }
  0x21   :  { %v8563_v8 = vor.u32 %v11892_v6, %v8562_v5  ;;  %v8818_v9 = vld [vmem:[#allocation2 + $0x7c0] sm:$0xf]  ;;  %2516 = vmatpush.bf16.msra.mxu1 %v8307_v7 }
  0x22   :  { %v11956_v10 = vld [vmem:[#allocation2 + $0x7dc] sm:$0xf0] }
  0x23   :  { %v8018_v11 = vld [vmem:[#allocation2 + $0x180] sm:$0xf]  ;;  %v8819_v12 = vor.u32 %v11956_v10, %v8818_v9  ;;  %2529 = vmatpush.bf16.msra.mxu2 %v8563_v8 }
  0x24   :  { %v11756_v13 = vld [vmem:[#allocation2 + $0x19c] sm:$0xf0] }
  0x25   :  { %v8274_v14 = vld [vmem:[#allocation2 + $0x380] sm:$0xf]  ;;  %v8019_v16 = vor.u32 %v11756_v13, %v8018_v11  ;;  %2542 = vmatpush.bf16.msra.mxu3 %v8819_v12 }
  0x26   :  { %v11820_v15 = vld [vmem:[#allocation2 + $0x39c] sm:$0xf0] }
  0x27   :  { %v8275_v17 = vor.u32 %v11820_v15, %v8274_v14  ;;  %v8530_v18 = vld [vmem:[#allocation2 + $0x580] sm:$0xf]  ;;  %2504 = vmatpush.bf16.msra.mxu0 %v8019_v16 }
  0x28   :  { %v11884_v19 = vld [vmem:[#allocation2 + $0x59c] sm:$0xf0] }
  0x29   :  { %v8786_v20 = vld [vmem:[#allocation2 + $0x780] sm:$0xf]  ;;  %v8531_v21 = vor.u32 %v11884_v19, %v8530_v18  ;;  %2517 = vmatpush.bf16.msra.mxu1 %v8275_v17 }
  0x2a   :  { %v11948_v22 = vld [vmem:[#allocation2 + $0x79c] sm:$0xf0] }
  0x2b   :  { %v7986_v23 = vld [vmem:[#allocation2 + $0x140] sm:$0xf]  ;;  %v8787_v25 = vor.u32 %v11948_v22, %v8786_v20  ;;  %2530 = vmatpush.bf16.msra.mxu2 %v8531_v21 }
  0x2c   :  { %v11748_v24 = vld [vmem:[#allocation2 + $0x15c] sm:$0xf0] }
  0x2d   :  { %v8242_v26 = vld [vmem:[#allocation2 + $0x340] sm:$0xf]  ;;  %v7987_v29 = vor.u32 %v11748_v24, %v7986_v23  ;;  %2543 = vmatpush.bf16.msra.mxu3 %v8787_v25 }
  0x2e   :  { %v11812_v27 = vld [vmem:[#allocation2 + $0x35c] sm:$0xf0] }
  0x2f   :  { %v8498_v28 = vld [vmem:[#allocation2 + $0x540] sm:$0xf]  ;;  %v8243_v33 = vor.u32 %v11812_v27, %v8242_v26  ;;  %2505 = vmatpush.bf16.msra.mxu0 %v7987_v29 }
  0x30   :  { %v11876_v30 = vld [vmem:[#allocation2 + $0x55c] sm:$0xf0] }
  0x31   :  { %v8754_v31 = vld [vmem:[#allocation2 + $0x740] sm:$0xf]  ;;  %v8499_v34 = vor.u32 %v11876_v30, %v8498_v28  ;;  %2518 = vmatpush.bf16.msra.mxu1 %v8243_v33  ;;  %v11760_v33 = vld [vmem:[#allocation2 + $0x1c4] sm:$0xf] }
  0x32   :  { %v11940_v32 = vld [vmem:[#allocation2 + $0x75c] sm:$0xf0] }
  0x33   :  { %v7954_v35 = vld [vmem:[#allocation2 + $0x100] sm:$0xf]  ;;  %v8755_v38 = vor.u32 %v11940_v32, %v8754_v31  ;;  %2531 = vmatpush.bf16.msra.mxu2 %v8499_v34  ;;  %v8052_v34 = vld [vmem:[#allocation2 + $0x1e0] sm:$0xf0] }
  0x34   :  { %v11740_v36 = vld [vmem:[#allocation2 + $0x11c] sm:$0xf0] }
  0x35   :  { %v8210_v37 = vld [vmem:[#allocation2 + $0x300] sm:$0xf]  ;;  %v7955_v44 = vor.u32 %v11740_v36, %v7954_v35  ;;  %2544 = vmatpush.bf16.msra.mxu3 %v8755_v38  ;;  %v117_v35 = vld [vmem:[%s13298_s0 + $0x10] sm:$0xff] }
  0x36   :  { %v11804_v39 = vld [vmem:[#allocation2 + $0x31c] sm:$0xf0] }
  0x37   :  { %v8466_v40 = vld [vmem:[#allocation2 + $0x500] sm:$0xf]  ;;  %v8211_v45 = vor.u32 %v11804_v39, %v8210_v37  ;;  %2506 = vmatpush.bf16.msra.mxu0 %v7955_v44  ;;  %v8308_v44 = vld [vmem:[#allocation2 + $0x3e0] sm:$0xf0] }
  0x38   :  { %v11868_v41 = vld [vmem:[#allocation2 + $0x51c] sm:$0xf0] }
  0x39   :  { %v8722_v42 = vld [vmem:[#allocation2 + $0x700] sm:$0xf]  ;;  %v8467_v46 = vor.u32 %v11868_v41, %v8466_v40  ;;  %2519 = vmatpush.bf16.msra.mxu1 %v8211_v45  ;;  %v118_v45 = vld [vmem:[%s13298_s0 + $0x18] sm:$0xff] }
  0x3a   :  { %v11932_v43 = vld [vmem:[#allocation2 + $0x71c] sm:$0xf0] }
  0x3b   :  { %v7922_v47 = vld [vmem:[#allocation2 + $0xc0] sm:$0xf]  ;;  %v8723_v50 = vor.u32 %v11932_v43, %v8722_v42  ;;  %2532 = vmatpush.bf16.msra.mxu2 %v8467_v46  ;;  %v11824_v43 = vld [vmem:[#allocation2 + $0x3c4] sm:$0xf] }
  0x3c   :  { %v11732_v48 = vld [vmem:[#allocation2 + $0xdc] sm:$0xf0] }
  0x3d   :  { %v8178_v49 = vld [vmem:[#allocation2 + $0x2c0] sm:$0xf]  ;;  %v7923_v56 = vor.u32 %v11732_v48, %v7922_v47  ;;  %2545 = vmatpush.bf16.msra.mxu3 %v8723_v50  ;;  %v8055_v47 = vor.u32 %v11760_v33, %v8052_v34 }
  0x3e   :  { %v11796_v51 = vld [vmem:[#allocation2 + $0x2dc] sm:$0xf0] }
  0x3f   :  { %v8434_v52 = vld [vmem:[#allocation2 + $0x4c0] sm:$0xf]  ;;  %v8179_v57 = vor.u32 %v11796_v51, %v8178_v49  ;;  %2507 = vmatpush.bf16.msra.mxu0 %v7923_v56  ;;  %v12921_v51 = vpack.c.bf16 %v117_v35, %v117_v35  ;;  %v11792_v35 = vld [vmem:[#allocation2 + $0x2c4] sm:$0xf] }
  0x40   :  { %v11860_v53 = vld [vmem:[#allocation2 + $0x4dc] sm:$0xf0] }
  0x41   :  { %v8690_v54 = vld [vmem:[#allocation2 + $0x6c0] sm:$0xf]  ;;  %v8435_v58 = vor.u32 %v11860_v53, %v8434_v52  ;;  %2520 = vmatpush.bf16.msra.mxu1 %v8179_v57  ;;  %v11752_v53 = vld [vmem:[#allocation2 + $0x184] sm:$0xf]  ;;  %v12925_v57 = vpack.c.bf16 %v118_v45, %v118_v45 }
  0x42   :  { %v11924_v55 = vld [vmem:[#allocation2 + $0x6dc] sm:$0xf0] }
  0x43   :  { %v7890_v59 = vld [vmem:[#allocation2 + $0x80] sm:$0xf]  ;;  %v8691_v62 = vor.u32 %v11924_v55, %v8690_v54  ;;  %2533 = vmatpush.bf16.msra.mxu2 %v8435_v58  ;;  %v8020_v54 = vld [vmem:[#allocation2 + $0x1a0] sm:$0xf0]  ;;  %v116_v58 = vld [vmem:[%s13298_s0 + $0x8] sm:$0xff] }
  0x44   :  { %v11724_v60 = vld [vmem:[#allocation2 + $0x9c] sm:$0xf0] }
  0x45   :  { %v8146_v61 = vld [vmem:[#allocation2 + $0x280] sm:$0xf]  ;;  %v7891_v4 = vor.u32 %v11724_v60, %v7890_v59  ;;  %2546 = vmatpush.bf16.msra.mxu3 %v8691_v62  ;;  %v8311_v59 = vor.u32 %v11824_v43, %v8308_v44  ;;  %v8276_v62 = vld [vmem:[#allocation2 + $0x3a0] sm:$0xf0] }
  0x46   :  { %v11788_v63 = vld [vmem:[#allocation2 + $0x29c] sm:$0xf0]  ;;  %v11720_v43 = vld [vmem:[#allocation2 + $0x84] sm:$0xf] }
  0x47   :  { %v8402_v0 = vld [vmem:[#allocation2 + $0x480] sm:$0xf]  ;;  %v8147_v5 = vor.u32 %v11788_v63, %v8146_v61  ;;  %2508 = vmatpush.bf16.msra.mxu0 %v7891_v4  ;;  %v11816_v61 = vld [vmem:[#allocation2 + $0x384] sm:$0xf] }
  0x48   :  { %v11852_v1 = vld [vmem:[#allocation2 + $0x49c] sm:$0xf0]  ;;  %v7892_v44 = vld [vmem:[#allocation2 + $0xa0] sm:$0xf0] }
  0x49   :  { %v8658_v2 = vld [vmem:[#allocation2 + $0x680] sm:$0xf]  ;;  %v8403_v6 = vor.u32 %v11852_v1, %v8402_v0  ;;  %2521 = vmatpush.bf16.msra.mxu1 %v8147_v5  ;;  %v8023_v0 = vor.u32 %v11752_v53, %v8020_v54  ;;  %v11744_v5 = vld [vmem:[#allocation2 + $0x144] sm:$0xf] }
  0x4a   :  { %v11916_v3 = vld [vmem:[#allocation2 + $0x69c] sm:$0xf0] }
  0x4b   :  { %v7858_v7 = vld [vmem:[#allocation2 + $0x40] sm:$0xf]  ;;  %v8659_v10 = vor.u32 %v11916_v3, %v8658_v2  ;;  %2534 = vmatpush.bf16.msra.mxu2 %v8403_v6  ;;  %v7988_v6 = vld [vmem:[#allocation2 + $0x160] sm:$0xf0] }
  0x4c   :  { %v11716_v8 = vld [vmem:[#allocation2 + $0x5c] sm:$0xf0] }
  0x4d   :  { %v8114_v9 = vld [vmem:[#allocation2 + $0x240] sm:$0xf]  ;;  %v7859_v16 = vor.u32 %v11716_v8, %v7858_v7  ;;  %2547 = vmatpush.bf16.msra.mxu3 %v8659_v10  ;;  %v12932_v7 = vpack.c.bf16 %v116_v58, %v116_v58  ;;  %v8279_v8 = vor.u32 %v11816_v61, %v8276_v62  ;;  %v11808_v10 = vld [vmem:[#allocation2 + $0x344] sm:$0xf] }
  0x4e   :  { %v11780_v11 = vld [vmem:[#allocation2 + $0x25c] sm:$0xf0] }
  0x4f   :  { %v8370_v12 = vld [vmem:[#allocation2 + $0x440] sm:$0xf]  ;;  %v8115_v20 = vor.u32 %v11780_v11, %v8114_v9  ;;  %2509 = vmatpush.bf16.msra.mxu0 %v7859_v16  ;;  %v8244_v11 = vld [vmem:[#allocation2 + $0x360] sm:$0xf0] }
  0x50   :  { %v11844_v13 = vld [vmem:[#allocation2 + $0x45c] sm:$0xf0] }
  0x51   :  { %v8626_v14 = vld [vmem:[#allocation2 + $0x640] sm:$0xf]  ;;  %v8371_v21 = vor.u32 %v11844_v13, %v8370_v12  ;;  %2522 = vmatpush.bf16.msra.mxu1 %v8115_v20  ;;  %v7991_v13 = vor.u32 %v11744_v5, %v7988_v6  ;;  %v8247_v20 = vor.u32 %v11808_v10, %v8244_v11  ;;  %v11888_v10 = vld [vmem:[#allocation2 + $0x5c4] sm:$0xf] }
  0x52   :  { %v11908_v15 = vld [vmem:[#allocation2 + $0x65c] sm:$0xf0]  ;;  %v8564_v11 = vld [vmem:[#allocation2 + $0x5e0] sm:$0xf0] }
  0x53   :  { %v7826_v17 = vld [vmem:[#allocation2] sm:$0xf]  ;;  %v8627_v25 = vor.u32 %v11908_v15, %v8626_v14  ;;  %2535 = vmatpush.bf16.msra.mxu2 %v8371_v21 }
  0x54   :  { %v11708_v18 = vld [vmem:[#allocation2 + $0x1c] sm:$0xf0] }
  0x55   :  { %v8082_v19 = vld [vmem:[#allocation2 + $0x200] sm:$0xf]  ;;  %v7827_v32 = vor.u32 %v11708_v18, %v7826_v17  ;;  %2548 = vmatpush.bf16.msra.mxu3 %v8627_v25  ;;  %v11736_v18 = vld [vmem:[#allocation2 + $0x104] sm:$0xf] }
  0x56   :  { %v11772_v22 = vld [vmem:[#allocation2 + $0x21c] sm:$0xf0] }
  0x57   :  { %v8338_v23 = vld [vmem:[#allocation2 + $0x400] sm:$0xf]  ;;  %v8083_v36 = vor.u32 %v11772_v22, %v8082_v19  ;;  %2510 = vmatpush.bf16.msra.mxu0 %v7827_v32  ;;  %v7956_v19 = vld [vmem:[#allocation2 + $0x120] sm:$0xf0]  ;;  %v121_v32 = vld [vmem:[%s13298_s0 + $0x30] sm:$0xff] }
  0x58   :  { %v11836_v24 = vld [vmem:[#allocation2 + $0x41c] sm:$0xf0]  ;;  %v11800_v22 = vld [vmem:[#allocation2 + $0x304] sm:$0xf]  ;;  %v7959_v25 = vor.u32 %v11736_v18, %v7956_v19  ;;  %v12939_v45 = vpack.c.bf16 %v121_v32, %v121_v32 }
  0x59   :  { %v8594_v26 = vld [vmem:[#allocation2 + $0x600] sm:$0xf]  ;;  %v8339_v37 = vor.u32 %v11836_v24, %v8338_v23  ;;  %2523 = vmatpush.bf16.msra.mxu1 %v8083_v36  ;;  %v8212_v23 = vld [vmem:[#allocation2 + $0x320] sm:$0xf0] }
  0x5a   :  { %v11900_v27 = vld [vmem:[#allocation2 + $0x61c] sm:$0xf0]  ;;  %v8215_v33 = vor.u32 %v11800_v22, %v8212_v23  ;;  %v8180_v36 = vld [vmem:[#allocation2 + $0x2e0] sm:$0xf0]  ;;  %v120_v23 = vld [vmem:[%s13298_s0 + $0x28] sm:$0xff] }
  0x5b   :  { %v9074_v28 = vld [vmem:[#allocation2 + $0x9c0] sm:$0xf]  ;;  %v8595_v41 = vor.u32 %v11900_v27, %v8594_v26  ;;  %2536 = vmatpush.bf16.msra.mxu2 %v8339_v37  ;;  %v8084_v22 = vld [vmem:[#allocation2 + $0x220] sm:$0xf0] }
  0x5c   :  { %v12020_v29 = vld [vmem:[#allocation2 + $0x9dc] sm:$0xf0]  ;;  %2524 = vmatmul.bf16.vlgmr.msra.gmra.mxu1 %v12932_v7  ;;  %v11944_v32 = vld [vmem:[#allocation2 + $0x784] sm:$0xf] }
  0x5d   :  { %v9330_v30 = vld [vmem:[#allocation2 + $0xbc0] sm:$0xf]  ;;  %v9075_v42 = vor.u32 %v12020_v29, %v9074_v28  ;;  %2549 = vmatpush.bf16.msra.mxu3 %v8595_v41 }
  0x5e   :  { %v12084_v31 = vld [vmem:[#allocation2 + $0xbdc] sm:$0xf0]  ;;  %2537 = vmatmul.bf16.vlgmr.msra.gmra.mxu2 %v12921_v51 }
  0x5f   :  { %v9362_v38 = vld [vmem:[#allocation2 + $0xc00] sm:$0xf]  ;;  %v9331_v46 = vor.u32 %v12084_v31, %v9330_v30  ;;  %2555 = vmatpush.bf16.msrb.mxu0 %v9075_v42  ;;  %v11728_v30 = vld [vmem:[#allocation2 + $0xc4] sm:$0xf] }
  0x60   :  { %v12092_v39 = vld [vmem:[#allocation2 + $0xc1c] sm:$0xf0]  ;;  %2550 = vmatmul.bf16.vlgmr.msra.gmra.mxu3 %v12925_v57  ;;  %v7924_v31 = vld [vmem:[#allocation2 + $0xe0] sm:$0xf0] }
  0x61   :  { %v115_v40 = vld [vmem:[%s13298_s0] sm:$0xff]  ;;  %v9363_v56 = vor.u32 %v12092_v39, %v9362_v38  ;;  %2568 = vmatpush.bf16.msrb.mxu1 %v9331_v46  ;;  %2594 = vmatpush.bf16.msrb.mxu3 %v8055_v47  ;;  %v7927_v38 = vor.u32 %v11728_v30, %v7924_v31  ;;  %v8183_v46 = vor.u32 %v11792_v35, %v8180_v36 }
  0x62   :  { %v9042_v48 = vld [vmem:[#allocation2 + $0x980] sm:$0xf]  ;;  %v12923_v55 = vpack.c.bf16 %v115_v40, %v115_v40  ;;  %v8532_v31 = vld [vmem:[#allocation2 + $0x5a0] sm:$0xf0]  ;;  %v12951_v35 = vpack.c.bf16 %v120_v23, %v120_v23 }
  0x63   :  { %v12012_v49 = vld [vmem:[#allocation2 + $0x99c] sm:$0xf0]  ;;  %2588 = vmatpush.bf16.msrb.mxu2 %v9363_v56  ;;  %v12008_v36 = vld [vmem:[#allocation2 + $0x984] sm:$0xf] }
  0x64   :  { %v9298_v50 = vld [vmem:[#allocation2 + $0xb80] sm:$0xf]  ;;  %v9043_v60 = vor.u32 %v12012_v49, %v9042_v48  ;;  %2511 = vmatmul.bf16.vlgmr.msra.gmra.mxu0 %v12923_v55  ;;  %v11784_v48 = vld [vmem:[#allocation2 + $0x284] sm:$0xf] }
  0x65   :  { %v12076_v52 = vld [vmem:[#allocation2 + $0xb9c] sm:$0xf0]  ;;  %2595 = vmatpush.bf16.msrb.mxu3 %v8023_v0  ;;  %v8148_v49 = vld [vmem:[#allocation2 + $0x2a0] sm:$0xf0] }
  0x66   :  { %v9299_v63 = vor.u32 %v12076_v52, %v9298_v50  ;;  %v9010_v1 = vld [vmem:[#allocation2 + $0x940] sm:$0xf]  ;;  %2556 = vmatpush.bf16.msrb.mxu0 %v9043_v60  ;;  %v7895_v52 = vor.u32 %v11720_v43, %v7892_v44  ;;  %v7860_v60 = vld [vmem:[#allocation2 + $0x60] sm:$0xf0]  ;;  %v8151_v61 = vor.u32 %v11784_v48, %v8148_v49 }
  0x67   :  { %v12004_v2 = vld [vmem:[#allocation2 + $0x95c] sm:$0xf0]  ;;  %2607 = vmatpush.bf16.msra.mxu2 %v8311_v59  ;;  %v11712_v59 = vld [vmem:[#allocation2 + $0x44] sm:$0xf] }
  0x68   :  { %v9266_v3 = vld [vmem:[#allocation2 + $0xb40] sm:$0xf]  ;;  %v9011_v9 = vor.u32 %v12004_v2, %v9010_v1  ;;  %2569 = vmatpush.bf16.msrb.mxu1 %v9299_v63  ;;  %v11776_v63 = vld [vmem:[#allocation2 + $0x244] sm:$0xf] }
  0x69   :  { %v12068_v4 = vld [vmem:[#allocation2 + $0xb5c] sm:$0xf0]  ;;  %2596 = vmatpush.bf16.msrb.mxu3 %v7991_v13  ;;  %v8116_v0 = vld [vmem:[#allocation2 + $0x260] sm:$0xf0] }
  0x6a   :  { %v9267_v12 = vor.u32 %v12068_v4, %v9266_v3  ;;  %v8978_v14 = vld [vmem:[#allocation2 + $0x900] sm:$0xf]  ;;  %2557 = vmatpush.bf16.msrb.mxu0 %v9011_v9  ;;  %v7863_v3 = vor.u32 %v11712_v59, %v7860_v60  ;;  %v7828_v9 = vld [vmem:[#allocation2 + $0x20] sm:$0xf0] }
  0x6b   :  { %v11996_v15 = vld [vmem:[#allocation2 + $0x91c] sm:$0xf0]  ;;  %2608 = vmatpush.bf16.msra.mxu2 %v8279_v8  ;;  %v11704_v8 = vld [vmem:[#allocation2 + $0x4] sm:$0xf] }
  0x6c   :  { %v9234_v16 = vld [vmem:[#allocation2 + $0xb00] sm:$0xf]  ;;  %v8979_v21 = vor.u32 %v11996_v15, %v8978_v14  ;;  %2570 = vmatpush.bf16.msrb.mxu1 %v9267_v12  ;;  %v11952_v12 = vld [vmem:[#allocation2 + $0x7c4] sm:$0xf]  ;;  %v8119_v14 = vor.u32 %v11776_v63, %v8116_v0 }
  0x6d   :  { %v12060_v17 = vld [vmem:[#allocation2 + $0xb1c] sm:$0xf0]  ;;  %2597 = vmatpush.bf16.msrb.mxu3 %v7959_v25  ;;  %v8820_v13 = vld [vmem:[#allocation2 + $0x7e0] sm:$0xf0] }
  0x6e   :  { %v9235_v24 = vor.u32 %v12060_v17, %v9234_v16  ;;  %v8946_v26 = vld [vmem:[#allocation2 + $0x8c0] sm:$0xf]  ;;  %2558 = vmatpush.bf16.msrb.mxu0 %v8979_v21  ;;  %9392 = vmatmul.msk.bf16.vlgmr.msrb.gmra.mxu2 %vm2499_vm0, %v12939_v45  ;;  %v12016_v16 = vld [vmem:[#allocation2 + $0x9c4] sm:$0xf]  ;;  %v8823_v25 = vor.u32 %v11952_v12, %v8820_v13 }
  0x6f   :  { %v11988_v27 = vld [vmem:[#allocation2 + $0x8dc] sm:$0xf0]  ;;  %2609 = vmatpush.bf16.msra.mxu2 %v8247_v20  ;;  %v9076_v17 = vld [vmem:[#allocation2 + $0x9e0] sm:$0xf0]  ;;  %v7831_v20 = vor.u32 %v11704_v8, %v7828_v9 }
  0x70   :  { %v9202_v28 = vld [vmem:[#allocation2 + $0xac0] sm:$0xf]  ;;  %v8947_v34 = vor.u32 %v11988_v27, %v8946_v26  ;;  %2571 = vmatpush.bf16.msrb.mxu1 %v9235_v24  ;;  %v11768_v21 = vld [vmem:[#allocation2 + $0x204] sm:$0xf]  ;;  %v8567_v24 = vor.u32 %v11888_v10, %v8564_v11 }
  0x71   :  { %v12052_v29 = vld [vmem:[#allocation2 + $0xadc] sm:$0xf0]  ;;  %2598 = vmatpush.bf16.msrb.mxu3 %v7927_v38  ;;  %v12080_v26 = vld [vmem:[#allocation2 + $0xbc4] sm:$0xf] }
  0x72   :  { %v9203_v37 = vor.u32 %v12052_v29, %v9202_v28  ;;  %v8914_v39 = vld [vmem:[#allocation2 + $0x880] sm:$0xf]  ;;  %2559 = vmatpush.bf16.msrb.mxu0 %v8947_v34  ;;  %v9332_v27 = vld [vmem:[#allocation2 + $0xbe0] sm:$0xf0]  ;;  %v9079_v29 = vor.u32 %v12016_v16, %v9076_v17  ;;  %v8087_v34 = vor.u32 %v11768_v21, %v8084_v22 }
  0x73   :  { %v11980_v40 = vld [vmem:[#allocation2 + $0x89c] sm:$0xf0]  ;;  %2610 = vmatpush.bf16.msra.mxu2 %v8215_v33  ;;  %v11880_v28 = vld [vmem:[#allocation2 + $0x584] sm:$0xf]  ;;  %v9335_v38 = vor.u32 %v12080_v26, %v9332_v27 }
  0x74   :  { %v9170_v41 = vld [vmem:[#allocation2 + $0xa80] sm:$0xf]  ;;  %v8915_v47 = vor.u32 %v11980_v40, %v8914_v39  ;;  %2572 = vmatpush.bf16.msrb.mxu1 %v9203_v37  ;;  %v8788_v33 = vld [vmem:[#allocation2 + $0x7a0] sm:$0xf0]  ;;  %v8535_v39 = vor.u32 %v11880_v28, %v8532_v31 }
  0x75   :  { %v12044_v42 = vld [vmem:[#allocation2 + $0xa9c] sm:$0xf0]  ;;  %2599 = vmatpush.bf16.msrb.mxu3 %v7895_v52  ;;  %v9044_v37 = vld [vmem:[#allocation2 + $0x9a0] sm:$0xf0]  ;;  %v8791_v40 = vor.u32 %v11944_v32, %v8788_v33 }
  0x76   :  { %v9171_v50 = vor.u32 %v12044_v42, %v9170_v41  ;;  %v8882_v53 = vld [vmem:[#allocation2 + $0x840] sm:$0xf]  ;;  %2560 = vmatpush.bf16.msrb.mxu0 %v8915_v47  ;;  %v12072_v41 = vld [vmem:[#allocation2 + $0xb84] sm:$0xf]  ;;  %v9047_v44 = vor.u32 %v12008_v36, %v9044_v37 }
  0x77   :  { %v11972_v54 = vld [vmem:[#allocation2 + $0x85c] sm:$0xf0]  ;;  %2611 = vmatpush.bf16.msra.mxu2 %v8183_v46  ;;  %v9300_v42 = vld [vmem:[#allocation2 + $0xba0] sm:$0xf0] }
  0x78   :  { %v9138_v56 = vld [vmem:[#allocation2 + $0xa40] sm:$0xf]  ;;  %v8883_v62 = vor.u32 %v11972_v54, %v8882_v53  ;;  %2573 = vmatpush.bf16.msrb.mxu1 %v9171_v50  ;;  %v11872_v43 = vld [vmem:[#allocation2 + $0x544] sm:$0xf]  ;;  %v9303_v52 = vor.u32 %v12072_v41, %v9300_v42 }
  0x79   :  { %v12036_v58 = vld [vmem:[#allocation2 + $0xa5c] sm:$0xf0]  ;;  %2600 = vmatpush.bf16.msrb.mxu3 %v7863_v3  ;;  %v8500_v46 = vld [vmem:[#allocation2 + $0x560] sm:$0xf0] }
  0x7a   :  { %v8850_v1 = vld [vmem:[#allocation2 + $0x800] sm:$0xf]  ;;  %v9139_v2 = vor.u32 %v12036_v58, %v9138_v56  ;;  %2561 = vmatpush.bf16.msrb.mxu0 %v8883_v62  ;;  %v11936_v47 = vld [vmem:[#allocation2 + $0x744] sm:$0xf]  ;;  %v8503_v53 = vor.u32 %v11872_v43, %v8500_v46 }
  0x7b   :  { %v11964_v4 = vld [vmem:[#allocation2 + $0x81c] sm:$0xf0]  ;;  %2612 = vmatpush.bf16.msra.mxu2 %v8151_v61  ;;  %v8756_v48 = vld [vmem:[#allocation2 + $0x760] sm:$0xf0] }
  0x7c   :  { %v9106_v5 = vld [vmem:[#allocation2 + $0xa00] sm:$0xf]  ;;  %v8851_v15 = vor.u32 %v11964_v4, %v8850_v1  ;;  %2574 = vmatpush.bf16.msrb.mxu1 %v9139_v2  ;;  %v12000_v49 = vld [vmem:[#allocation2 + $0x944] sm:$0xf]  ;;  %v8759_v54 = vor.u32 %v11936_v47, %v8756_v48 }
  0x7d   :  { %v12028_v6 = vld [vmem:[#allocation2 + $0xa1c] sm:$0xf0]  ;;  %2601 = vmatpush.bf16.msrb.mxu3 %v7831_v20  ;;  %v9012_v50 = vld [vmem:[#allocation2 + $0x960] sm:$0xf0] }
  0x7e   :  { %v119_v18 = vld [vmem:[%s13298_s0 + $0x20] sm:$0xff]  ;;  %v9107_v19 = vor.u32 %v12028_v6, %v9106_v5  ;;  %2562 = vmatpush.bf16.msrb.mxu0 %v8851_v15  ;;  %v9015_v60 = vor.u32 %v12000_v49, %v9012_v50 }
  0x7f   :  { %v12949_v30 = vpack.c.bf16 %v119_v18, %v119_v18  ;;  %2613 = vmatpush.bf16.msra.mxu2 %v8119_v14  ;;  %v12064_v56 = vld [vmem:[#allocation2 + $0xb44] sm:$0xf] }
  0x80   :  { %2575 = vmatpush.bf16.msrb.mxu1 %v9107_v19  ;;  %2602 = vmatmul.bf16.vlgmr.msrb.gmra.mxu3 %v12923_v55  ;;  %v9268_v58 = vld [vmem:[#allocation2 + $0xb60] sm:$0xf0] }
  0x81   :  { %2646 = vmatpush.bf16.msra.mxu3 %v9079_v29  ;;  %2563 = vmatmul.bf16.vlgmr.msrb.gmra.mxu0 %v12949_v30  ;;  %v11864_v59 = vld [vmem:[#allocation2 + $0x504] sm:$0xf]  ;;  %v9271_v2 = vor.u32 %v12064_v56, %v9268_v58  ;;  %v8058_v56 = vld [vmem:[#allocation2 + $0x1c8] sm:$0xf] }
  0x82   :  { %2620 = vmatpush.bf16.msra.mxu0 %v8567_v24  ;;  %v8468_v61 = vld [vmem:[#allocation2 + $0x520] sm:$0xf0]  ;;  %v11765_v58 = vld [vmem:[#allocation2 + $0x1e4] sm:$0xf0] }
  0x83   :  { %2614 = vmatpush.bf16.msra.mxu2 %v8087_v34  ;;  %2576 = vmatmul.bf16.vlgmr.msrb.gmra.mxu1 %v12951_v35  ;;  %v11928_v62 = vld [vmem:[#allocation2 + $0x704] sm:$0xf]  ;;  %v8471_v3 = vor.u32 %v11864_v59, %v8468_v61  ;;  %v8570_v59 = vld [vmem:[#allocation2 + $0x5c8] sm:$0xf] }
  0x84   :  { %2633 = vmatpush.bf16.msra.mxu1 %v8823_v25  ;;  %v8724_v63 = vld [vmem:[#allocation2 + $0x720] sm:$0xf0]  ;;  %v11893_v61 = vld [vmem:[#allocation2 + $0x5e4] sm:$0xf0] }
  0x85   :  { %2647 = vmatpush.bf16.msra.mxu3 %v9047_v44  ;;  %v11992_v0 = vld [vmem:[#allocation2 + $0x904] sm:$0xf]  ;;  %v8727_v4 = vor.u32 %v11928_v62, %v8724_v63 }
  0x86   :  { %2621 = vmatpush.bf16.msra.mxu0 %v8535_v39  ;;  %2615 = vmatmul.bf16.vlgmr.msra.gmra.mxu2 %v12932_v7  ;;  %v8980_v1 = vld [vmem:[#allocation2 + $0x920] sm:$0xf0] }
  0x87   :  { %2659 = vmatpush.bf16.msrb.mxu2 %v9335_v38  ;;  %v12056_v5 = vld [vmem:[#allocation2 + $0xb04] sm:$0xf]  ;;  %v8983_v9 = vor.u32 %v11992_v0, %v8980_v1 }
  0x88   :  { %2634 = vmatpush.bf16.msra.mxu1 %v8791_v40  ;;  %v9236_v6 = vld [vmem:[#allocation2 + $0xb20] sm:$0xf0] }
  0x89   :  { %v11856_v8 = vld [vmem:[#allocation2 + $0x4c4] sm:$0xf]  ;;  %2648 = vmatpush.bf16.msra.mxu3 %v9015_v60  ;;  %v9239_v15 = vor.u32 %v12056_v5, %v9236_v6  ;;  %v8059_v5 = vor.u32 %v11765_v58, %v8058_v56  ;;  %v8826_v6 = vld [vmem:[#allocation2 + $0x7c8] sm:$0xf] }
  0x8a   :  { %2622 = vmatpush.bf16.msra.mxu0 %v8503_v53  ;;  %v8436_v10 = vld [vmem:[#allocation2 + $0x4e0] sm:$0xf0]  ;;  %v11733_v56 = vld [vmem:[#allocation2 + $0xe4] sm:$0xf0] }
  0x8b   :  { %2660 = vmatpush.bf16.msrb.mxu2 %v9303_v52  ;;  %v11920_v11 = vld [vmem:[#allocation2 + $0x6c4] sm:$0xf]  ;;  %v8439_v16 = vor.u32 %v11856_v8, %v8436_v10  ;;  %v11957_v8 = vld [vmem:[#allocation2 + $0x7e4] sm:$0xf0] }
  0x8c   :  { %2635 = vmatpush.bf16.msra.mxu1 %v8759_v54  ;;  %v8692_v12 = vld [vmem:[#allocation2 + $0x6e0] sm:$0xf0]  ;;  %v8442_v58 = vld [vmem:[#allocation2 + $0x4c8] sm:$0xf] }
  0x8d   :  { %v11984_v13 = vld [vmem:[#allocation2 + $0x8c4] sm:$0xf]  ;;  %v8695_v17 = vor.u32 %v11920_v11, %v8692_v12  ;;  %2649 = vmatpush.bf16.msra.mxu3 %v8983_v9  ;;  %v8571_v9 = vor.u32 %v11893_v61, %v8570_v59  ;;  %v8314_v11 = vld [vmem:[#allocation2 + $0x3c8] sm:$0xf] }
  0x8e   :  { %v8948_v14 = vld [vmem:[#allocation2 + $0x8e0] sm:$0xf0]  ;;  %2623 = vmatpush.bf16.msra.mxu0 %v8471_v3  ;;  %v11829_v12 = vld [vmem:[#allocation2 + $0x3e4] sm:$0xf0] }
  0x8f   :  { %2661 = vmatpush.bf16.msrb.mxu2 %v9271_v2  ;;  %v12048_v18 = vld [vmem:[#allocation2 + $0xac4] sm:$0xf]  ;;  %v8951_v21 = vor.u32 %v11984_v13, %v8948_v14  ;;  %v8026_v13 = vld [vmem:[#allocation2 + $0x188] sm:$0xf] }
  0x90   :  { %2636 = vmatpush.bf16.msra.mxu1 %v8727_v4  ;;  %v9204_v19 = vld [vmem:[#allocation2 + $0xae0] sm:$0xf0]  ;;  %v11861_v59 = vld [vmem:[#allocation2 + $0x4e4] sm:$0xf0] }
  0x91   :  { %v11848_v20 = vld [vmem:[#allocation2 + $0x484] sm:$0xf]  ;;  %v9207_v27 = vor.u32 %v12048_v18, %v9204_v19  ;;  %2650 = vmatpush.bf16.msra.mxu3 %v8951_v21  ;;  %v8827_v18 = vor.u32 %v11957_v8, %v8826_v6  ;;  %v8315_v19 = vor.u32 %v11829_v12, %v8314_v11  ;;  %v11949_v21 = vld [vmem:[#allocation2 + $0x7a4] sm:$0xf0] }
  0x92   :  { %v8404_v22 = vld [vmem:[#allocation2 + $0x4a0] sm:$0xf0]  ;;  %2624 = vmatpush.bf16.msra.mxu0 %v8439_v16  ;;  %v8538_v16 = vld [vmem:[#allocation2 + $0x588] sm:$0xf] }
  0x93   :  { %v11912_v23 = vld [vmem:[#allocation2 + $0x684] sm:$0xf]  ;;  %2662 = vmatpush.bf16.msrb.mxu2 %v9239_v15  ;;  %v8407_v28 = vor.u32 %v11848_v20, %v8404_v22  ;;  %v11757_v15 = vld [vmem:[#allocation2 + $0x1a4] sm:$0xf0] }
  0x94   :  { %v8660_v24 = vld [vmem:[#allocation2 + $0x6a0] sm:$0xf0]  ;;  %2637 = vmatpush.bf16.msra.mxu1 %v8695_v17  ;;  %v11885_v17 = vld [vmem:[#allocation2 + $0x5a4] sm:$0xf0]  ;;  %v8027_v22 = vor.u32 %v11757_v15, %v8026_v13 }
  0x95   :  { %v11976_v25 = vld [vmem:[#allocation2 + $0x884] sm:$0xf]  ;;  %v8663_v29 = vor.u32 %v11912_v23, %v8660_v24  ;;  %v8794_v20 = vld [vmem:[#allocation2 + $0x788] sm:$0xf]  ;;  %v8539_v23 = vor.u32 %v11885_v17, %v8538_v16 }
  0x96   :  { %v8916_v26 = vld [vmem:[#allocation2 + $0x8a0] sm:$0xf0]  ;;  %2625 = vmatpush.bf16.msra.mxu0 %v8407_v28  ;;  %v8282_v24 = vld [vmem:[#allocation2 + $0x388] sm:$0xf] }
  0x97   :  { %v12040_v31 = vld [vmem:[#allocation2 + $0xa84] sm:$0xf]  ;;  %v8919_v34 = vor.u32 %v11976_v25, %v8916_v26  ;;  %2663 = vmatpush.bf16.msrb.mxu2 %v9207_v27  ;;  %v11821_v25 = vld [vmem:[#allocation2 + $0x3a4] sm:$0xf0] }
  0x98   :  { %v9172_v32 = vld [vmem:[#allocation2 + $0xaa0] sm:$0xf0]  ;;  %2638 = vmatpush.bf16.msra.mxu1 %v8663_v29  ;;  %v7994_v26 = vld [vmem:[#allocation2 + $0x148] sm:$0xf] }
  0x99   :  { %v11840_v33 = vld [vmem:[#allocation2 + $0x444] sm:$0xf]  ;;  %v9175_v41 = vor.u32 %v12040_v31, %v9172_v32  ;;  %2651 = vmatpush.bf16.msra.mxu3 %v8919_v34  ;;  %v11749_v27 = vld [vmem:[#allocation2 + $0x164] sm:$0xf0]  ;;  %v8795_v31 = vor.u32 %v11949_v21, %v8794_v20  ;;  %v8283_v32 = vor.u32 %v11821_v25, %v8282_v24 }
  0x9a   :  { %v8372_v36 = vld [vmem:[#allocation2 + $0x460] sm:$0xf0]  ;;  %v8506_v28 = vld [vmem:[#allocation2 + $0x548] sm:$0xf] }
  0x9b   :  { %v11904_v37 = vld [vmem:[#allocation2 + $0x644] sm:$0xf]  ;;  %v8375_v44 = vor.u32 %v11840_v33, %v8372_v36  ;;  %2664 = vmatpush.bf16.msrb.mxu2 %v9175_v41  ;;  %v11877_v29 = vld [vmem:[#allocation2 + $0x564] sm:$0xf0]  ;;  %v7995_v36 = vor.u32 %v11749_v27, %v7994_v26 }
  0x9c   :  { %v8628_v38 = vld [vmem:[#allocation2 + $0x660] sm:$0xf0]  ;;  %v8762_v33 = vld [vmem:[#allocation2 + $0x748] sm:$0xf] }
  0x9d   :  { %v11968_v39 = vld [vmem:[#allocation2 + $0x844] sm:$0xf]  ;;  %v8631_v46 = vor.u32 %v11904_v37, %v8628_v38  ;;  %2626 = vmatpush.bf16.msra.mxu0 %v8375_v44  ;;  %v11941_v34 = vld [vmem:[#allocation2 + $0x764] sm:$0xf0]  ;;  %v8507_v37 = vor.u32 %v11877_v29, %v8506_v28 }
  0x9e   :  { %v8884_v40 = vld [vmem:[#allocation2 + $0x860] sm:$0xf0]  ;;  %v8250_v38 = vld [vmem:[#allocation2 + $0x348] sm:$0xf]  ;;  %v8763_v44 = vor.u32 %v11941_v34, %v8762_v33 }
  0x9f   :  { %v12032_v42 = vld [vmem:[#allocation2 + $0xa44] sm:$0xf]  ;;  %v8887_v50 = vor.u32 %v11968_v39, %v8884_v40  ;;  %2639 = vmatpush.bf16.msra.mxu1 %v8631_v46  ;;  %v11813_v39 = vld [vmem:[#allocation2 + $0x364] sm:$0xf0] }
  0xa0   :  { %v9140_v43 = vld [vmem:[#allocation2 + $0xa60] sm:$0xf0]  ;;  %v7962_v40 = vld [vmem:[#allocation2 + $0x108] sm:$0xf]  ;;  %v8251_v46 = vor.u32 %v11813_v39, %v8250_v38 }
  0xa1   :  { %v11832_v47 = vld [vmem:[#allocation2 + $0x404] sm:$0xf]  ;;  %v9143_v60 = vor.u32 %v12032_v42, %v9140_v43  ;;  %2652 = vmatpush.bf16.msra.mxu3 %v8887_v50  ;;  %v11741_v41 = vld [vmem:[#allocation2 + $0x124] sm:$0xf0] }
  0xa2   :  { %v8340_v48 = vld [vmem:[#allocation2 + $0x420] sm:$0xf0]  ;;  %v8474_v42 = vld [vmem:[#allocation2 + $0x508] sm:$0xf] }
  0xa3   :  { %v11896_v49 = vld [vmem:[#allocation2 + $0x604] sm:$0xf]  ;;  %v8343_v0 = vor.u32 %v11832_v47, %v8340_v48  ;;  %2665 = vmatpush.bf16.msrb.mxu2 %v9143_v60  ;;  %v11869_v43 = vld [vmem:[#allocation2 + $0x524] sm:$0xf0] }
  0xa4   :  { %v8596_v52 = vld [vmem:[#allocation2 + $0x620] sm:$0xf0]  ;;  %v8730_v47 = vld [vmem:[#allocation2 + $0x708] sm:$0xf]  ;;  %v8475_v50 = vor.u32 %v11869_v43, %v8474_v42 }
  0xa5   :  { %v11960_v53 = vld [vmem:[#allocation2 + $0x804] sm:$0xf]  ;;  %v8599_v1 = vor.u32 %v11896_v49, %v8596_v52  ;;  %2627 = vmatpush.bf16.msra.mxu0 %v8343_v0  ;;  %v11933_v48 = vld [vmem:[#allocation2 + $0x724] sm:$0xf0]  ;;  %v7963_v49 = vor.u32 %v11741_v41, %v7962_v40 }
  0xa6   :  { %v8852_v54 = vld [vmem:[#allocation2 + $0x820] sm:$0xf0]  ;;  %v8218_v52 = vld [vmem:[#allocation2 + $0x308] sm:$0xf]  ;;  %v8731_v60 = vor.u32 %v11933_v48, %v8730_v47 }
  0xa7   :  { %v12088_v62 = vld [vmem:[#allocation2 + $0xc04] sm:$0xf]  ;;  %v8855_v4 = vor.u32 %v11960_v53, %v8852_v54  ;;  %2640 = vmatpush.bf16.msra.mxu1 %v8599_v1  ;;  %v11805_v53 = vld [vmem:[#allocation2 + $0x324] sm:$0xf0]  ;;  %v8443_v1 = vor.u32 %v11861_v59, %v8442_v58  ;;  %v8316_v59 = vld [vmem:[#allocation2 + $0x3e8] sm:$0xf0] }
  0xa8   :  { %v9364_v63 = vld [vmem:[#allocation2 + $0xc20] sm:$0xf0]  ;;  %2628 = vmatmul.bf16.vlgmr.msra.gmra.mxu0 %v12921_v51  ;;  %v7930_v54 = vld [vmem:[#allocation2 + $0xc8] sm:$0xf]  ;;  %v8219_v61 = vor.u32 %v11805_v53, %v8218_v52  ;;  %v11761_v53 = vld [vmem:[#allocation2 + $0x1cc] sm:$0xf] }
  0xa9   :  { %v12024_v2 = vld [vmem:[#allocation2 + $0xa04] sm:$0xf]  ;;  %v9367_v10 = vor.u32 %v12088_v62, %v9364_v63  ;;  %2653 = vmatpush.bf16.msra.mxu3 %v8855_v4  ;;  %2711 = vmatpush.bf16.msrb.mxu0 %v8571_v9  ;;  %v8698_v62 = vld [vmem:[#allocation2 + $0x6c8] sm:$0xf]  ;;  %v7931_v0 = vor.u32 %v11733_v56, %v7930_v54  ;;  %v8060_v54 = vld [vmem:[#allocation2 + $0x1e8] sm:$0xf0] }
  0xaa   :  { %v9108_v3 = vld [vmem:[#allocation2 + $0xa20] sm:$0xf0]  ;;  %2641 = vmatmul.bf16.vlgmr.msra.gmra.mxu1 %v12925_v57  ;;  %v11925_v63 = vld [vmem:[#allocation2 + $0x6e4] sm:$0xf0]  ;;  %v11825_v56 = vld [vmem:[#allocation2 + $0x3cc] sm:$0xf] }
  0xab   :  { %v9111_v14 = vor.u32 %v12024_v2, %v9108_v3  ;;  %2685 = vmatpush.bf16.msrb.mxu1 %v8059_v5  ;;  %v8186_v2 = vld [vmem:[#allocation2 + $0x2c8] sm:$0xf]  ;;  %v8699_v9 = vor.u32 %v11925_v63, %v8698_v62 }
  0xac   :  { %2654 = vmatmul.bf16.vlgmr.msra.gmra.mxu3 %v12949_v30  ;;  %v11797_v3 = vld [vmem:[#allocation2 + $0x2e4] sm:$0xf0] }
  0xad   :  { %2679 = vmatpush.bf16.msrb.mxu3 %v9367_v10  ;;  %2666 = vmatpush.bf16.msrb.mxu2 %v9111_v14  ;;  %v7898_v4 = vld [vmem:[#allocation2 + $0x88] sm:$0xf]  ;;  %v8187_v10 = vor.u32 %v11797_v3, %v8186_v2  ;;  %v8319_v3 = vor.u32 %v11825_v56, %v8316_v59 }
  0xae   :  { %2712 = vmatpush.bf16.msrb.mxu0 %v8539_v23  ;;  %v11725_v5 = vld [vmem:[#allocation2 + $0xa4] sm:$0xf0] }
  0xaf   :  { %2686 = vmatpush.bf16.msrb.mxu1 %v8027_v22  ;;  %v8410_v6 = vld [vmem:[#allocation2 + $0x488] sm:$0xf]  ;;  %v7899_v13 = vor.u32 %v11725_v5, %v7898_v4  ;;  %v11753_v5 = vld [vmem:[#allocation2 + $0x18c] sm:$0xf] }
  0xb0   :  { %2667 = vmatmul.bf16.vlgmr.msrb.gmra.mxu2 %v12951_v35  ;;  %v11853_v8 = vld [vmem:[#allocation2 + $0x4a4] sm:$0xf0] }
  0xb1   :  { %2724 = vmatpush.bf16.msra.mxu2 %v8827_v18  ;;  %2698 = vmatpush.bf16.msra.mxu3 %v8315_v19  ;;  %v8666_v11 = vld [vmem:[#allocation2 + $0x688] sm:$0xf]  ;;  %v8411_v14 = vor.u32 %v11853_v8, %v8410_v6  ;;  %v8028_v6 = vld [vmem:[#allocation2 + $0x1a8] sm:$0xf0] }
  0xb2   :  { %2713 = vmatpush.bf16.msrb.mxu0 %v8507_v37  ;;  %v11917_v12 = vld [vmem:[#allocation2 + $0x6a4] sm:$0xf0]  ;;  %v11817_v8 = vld [vmem:[#allocation2 + $0x38c] sm:$0xf] }
  0xb3   :  { %2687 = vmatpush.bf16.msrb.mxu1 %v7995_v36  ;;  %v8154_v15 = vld [vmem:[#allocation2 + $0x288] sm:$0xf]  ;;  %v8667_v21 = vor.u32 %v11917_v12, %v8666_v11 }
  0xb4   :  { %v11789_v16 = vld [vmem:[#allocation2 + $0x2a4] sm:$0xf0] }
  0xb5   :  { %2725 = vmatpush.bf16.msra.mxu2 %v8795_v31  ;;  %2699 = vmatpush.bf16.msra.mxu3 %v8283_v32  ;;  %v7866_v17 = vld [vmem:[#allocation2 + $0x48] sm:$0xf]  ;;  %v8155_v22 = vor.u32 %v11789_v16, %v8154_v15 }
  0xb6   :  { %2714 = vmatpush.bf16.msrb.mxu0 %v8475_v50  ;;  %v11717_v18 = vld [vmem:[#allocation2 + $0x64] sm:$0xf0] }
  0xb7   :  { %2688 = vmatpush.bf16.msrb.mxu1 %v7963_v49  ;;  %v8378_v19 = vld [vmem:[#allocation2 + $0x448] sm:$0xf]  ;;  %v7867_v26 = vor.u32 %v11717_v18, %v7866_v17  ;;  %v11745_v18 = vld [vmem:[#allocation2 + $0x14c] sm:$0xf] }
  0xb8   :  { %v11845_v20 = vld [vmem:[#allocation2 + $0x464] sm:$0xf0] }
  0xb9   :  { %2726 = vmatpush.bf16.msra.mxu2 %v8763_v44  ;;  %2700 = vmatpush.bf16.msra.mxu3 %v8251_v46  ;;  %v8122_v23 = vld [vmem:[#allocation2 + $0x248] sm:$0xf]  ;;  %v8379_v27 = vor.u32 %v11845_v20, %v8378_v19  ;;  %v7996_v19 = vld [vmem:[#allocation2 + $0x168] sm:$0xf0] }
  0xba   :  { %2715 = vmatpush.bf16.msrb.mxu0 %v8443_v1  ;;  %v8634_v24 = vld [vmem:[#allocation2 + $0x648] sm:$0xf]  ;;  %v11809_v20 = vld [vmem:[#allocation2 + $0x34c] sm:$0xf] }
  0xbb   :  { %2689 = vmatpush.bf16.msrb.mxu1 %v7931_v0  ;;  %v11909_v25 = vld [vmem:[#allocation2 + $0x664] sm:$0xf0]  ;;  %v8063_v0 = vor.u32 %v11761_v53, %v8060_v54 }
  0xbc   :  { %9393 = vmatmul.msk.bf16.vlgmr.msrb.gmra.mxu3 %vm2499_vm0, %v12939_v45  ;;  %v11781_v28 = vld [vmem:[#allocation2 + $0x264] sm:$0xf0]  ;;  %v8635_v36 = vor.u32 %v11909_v25, %v8634_v24  ;;  %v7999_v25 = vor.u32 %v11745_v18, %v7996_v19 }
  0xbd   :  { %2727 = vmatpush.bf16.msra.mxu2 %v8731_v60  ;;  %2701 = vmatpush.bf16.msra.mxu3 %v8219_v61  ;;  %v7834_v29 = vld [vmem:[#allocation2 + $0x8] sm:$0xf]  ;;  %v8123_v40 = vor.u32 %v11781_v28, %v8122_v23 }
  0xbe   :  { %2716 = vmatpush.bf16.msrb.mxu0 %v8411_v14  ;;  %v11709_v31 = vld [vmem:[#allocation2 + $0x24] sm:$0xf0] }
  0xbf   :  { %2690 = vmatpush.bf16.msrb.mxu1 %v7899_v13  ;;  %v8346_v32 = vld [vmem:[#allocation2 + $0x408] sm:$0xf]  ;;  %v7835_v44 = vor.u32 %v11709_v31, %v7834_v29  ;;  %v8031_v13 = vor.u32 %v11753_v5, %v8028_v6  ;;  %v11737_v31 = vld [vmem:[#allocation2 + $0x10c] sm:$0xf] }
  0xc0   :  { %v11837_v33 = vld [vmem:[#allocation2 + $0x424] sm:$0xf0] }
  0xc1   :  { %2728 = vmatpush.bf16.msra.mxu2 %v8699_v9  ;;  %2702 = vmatpush.bf16.msra.mxu3 %v8187_v10  ;;  %v9082_v34 = vld [vmem:[#allocation2 + $0x9c8] sm:$0xf]  ;;  %v8347_v46 = vor.u32 %v11837_v33, %v8346_v32  ;;  %v8284_v9 = vld [vmem:[#allocation2 + $0x3a8] sm:$0xf0] }
  0xc2   :  { %v12021_v37 = vld [vmem:[#allocation2 + $0x9e4] sm:$0xf0]  ;;  %2717 = vmatpush.bf16.msrb.mxu0 %v8379_v27  ;;  %v8287_v16 = vor.u32 %v11817_v8, %v8284_v9  ;;  %v7964_v32 = vld [vmem:[#allocation2 + $0x128] sm:$0xf0] }
  0xc3   :  { %v9370_v38 = vld [vmem:[#allocation2 + $0xc08] sm:$0xf]  ;;  %2691 = vmatpush.bf16.msrb.mxu1 %v7867_v26  ;;  %v9083_v50 = vor.u32 %v12021_v37, %v9082_v34  ;;  %v11801_v33 = vld [vmem:[#allocation2 + $0x30c] sm:$0xf] }
  0xc4   :  { %v12093_v39 = vld [vmem:[#allocation2 + $0xc24] sm:$0xf0]  ;;  %v8220_v34 = vld [vmem:[#allocation2 + $0x328] sm:$0xf0] }
  0xc5   :  { %2729 = vmatpush.bf16.msra.mxu2 %v8667_v21  ;;  %2703 = vmatpush.bf16.msra.mxu3 %v8155_v22  ;;  %v8090_v41 = vld [vmem:[#allocation2 + $0x208] sm:$0xf]  ;;  %v9371_v52 = vor.u32 %v12093_v39, %v9370_v38  ;;  %v8252_v21 = vld [vmem:[#allocation2 + $0x368] sm:$0xf0]  ;;  %v7967_v39 = vor.u32 %v11737_v31, %v7964_v32 }
  0xc6   :  { %v8602_v42 = vld [vmem:[#allocation2 + $0x608] sm:$0xf]  ;;  %2718 = vmatpush.bf16.msrb.mxu0 %v8347_v46  ;;  %v8255_v28 = vor.u32 %v11809_v20, %v8252_v21  ;;  %v7932_v46 = vld [vmem:[#allocation2 + $0xe8] sm:$0xf0] }
  0xc7   :  { %v11901_v43 = vld [vmem:[#allocation2 + $0x624] sm:$0xf0]  ;;  %2692 = vmatpush.bf16.msrb.mxu1 %v7835_v44  ;;  %v11729_v44 = vld [vmem:[#allocation2 + $0xcc] sm:$0xf] }
  0xc8   :  { %v11773_v47 = vld [vmem:[#allocation2 + $0x224] sm:$0xf0]  ;;  %v8603_v58 = vor.u32 %v11901_v43, %v8602_v42  ;;  %v8223_v42 = vor.u32 %v11801_v33, %v8220_v34  ;;  %v7935_v53 = vor.u32 %v11729_v44, %v7932_v46  ;;  %v11713_v9 = vld [vmem:[#allocation2 + $0x4c] sm:$0xf] }
  0xc9   :  { %v9338_v48 = vld [vmem:[#allocation2 + $0xbc8] sm:$0xf]  ;;  %2730 = vmatpush.bf16.msra.mxu2 %v8635_v36  ;;  %2704 = vmatpush.bf16.msra.mxu3 %v8123_v40  ;;  %v8091_v62 = vor.u32 %v11773_v47, %v8090_v41  ;;  %v11793_v47 = vld [vmem:[#allocation2 + $0x2cc] sm:$0xf] }
  0xca   :  { %v12085_v49 = vld [vmem:[#allocation2 + $0xbe4] sm:$0xf0]  ;;  %2770 = vmatpush.bf16.msra.mxu0 %v9371_v52  ;;  %2693 = vmatmul.bf16.vlgmr.msrb.gmra.mxu1 %v12923_v55  ;;  %v12017_v31 = vld [vmem:[#allocation2 + $0x9cc] sm:$0xf] }
  0xcb   :  { %v9050_v60 = vld [vmem:[#allocation2 + $0x988] sm:$0xf]  ;;  %v9339_v63 = vor.u32 %v12085_v49, %v9338_v48  ;;  %2737 = vmatpush.bf16.msra.mxu1 %v9083_v50  ;;  %2719 = vmatmul.bf16.vlgmr.msrb.gmra.mxu0 %v12921_v51  ;;  %v8188_v48 = vld [vmem:[#allocation2 + $0x2e8] sm:$0xf0] }
  0xcc   :  { %v12013_v61 = vld [vmem:[#allocation2 + $0x9a4] sm:$0xf0]  ;;  %v9084_v32 = vld [vmem:[#allocation2 + $0x9e8] sm:$0xf0] }
  0xcd   :  { %v9306_v1 = vld [vmem:[#allocation2 + $0xb88] sm:$0xf]  ;;  %v9051_v4 = vor.u32 %v12013_v61, %v9050_v60  ;;  %2731 = vmatpush.bf16.msra.mxu2 %v8603_v58  ;;  %2705 = vmatpush.bf16.msra.mxu3 %v8091_v62  ;;  %v8191_v58 = vor.u32 %v11793_v47, %v8188_v48  ;;  %v11721_v60 = vld [vmem:[#allocation2 + $0x8c] sm:$0xf] }
  0xce   :  { %v12077_v2 = vld [vmem:[#allocation2 + $0xba4] sm:$0xf0]  ;;  %2789 = vmatpush.bf16.msrb.mxu0 %v8319_v3  ;;  %v7900_v61 = vld [vmem:[#allocation2 + $0xa8] sm:$0xf0] }
  0xcf   :  { %v9018_v10 = vld [vmem:[#allocation2 + $0x948] sm:$0xf]  ;;  %v9307_v12 = vor.u32 %v12077_v2, %v9306_v1  ;;  %2738 = vmatpush.bf16.msra.mxu1 %v9051_v4  ;;  %v11785_v62 = vld [vmem:[#allocation2 + $0x28c] sm:$0xf]  ;;  %v7903_v3 = vor.u32 %v11721_v60, %v7900_v61 }
  0xd0   :  { %v12005_v11 = vld [vmem:[#allocation2 + $0x964] sm:$0xf0]  ;;  %2706 = vmatmul.bf16.vlgmr.msra.gmra.mxu3 %v12932_v7  ;;  %2732 = vmatmul.bf16.vlgmr.msra.gmra.mxu2 %v12925_v57  ;;  %v12081_v33 = vld [vmem:[#allocation2 + $0xbcc] sm:$0xf] }
  0xd1   :  { %2750 = vmatpush.bf16.msrb.mxu3 %v9339_v63  ;;  %2776 = vmatpush.bf16.msrb.mxu2 %v8063_v0  ;;  %v9274_v14 = vld [vmem:[#allocation2 + $0xb48] sm:$0xf]  ;;  %v9019_v17 = vor.u32 %v12005_v11, %v9018_v10  ;;  %v8156_v63 = vld [vmem:[#allocation2 + $0x2a8] sm:$0xf0] }
  0xd2   :  { %v12069_v15 = vld [vmem:[#allocation2 + $0xb64] sm:$0xf0]  ;;  %2790 = vmatpush.bf16.msrb.mxu0 %v8287_v16  ;;  %v8159_v6 = vor.u32 %v11785_v62, %v8156_v63  ;;  %v7868_v10 = vld [vmem:[#allocation2 + $0x68] sm:$0xf0] }
  0xd3   :  { %v8986_v22 = vld [vmem:[#allocation2 + $0x908] sm:$0xf]  ;;  %v9275_v24 = vor.u32 %v12069_v15, %v9274_v14  ;;  %2739 = vmatpush.bf16.msra.mxu1 %v9019_v17  ;;  %v11777_v11 = vld [vmem:[#allocation2 + $0x24c] sm:$0xf]  ;;  %v7871_v18 = vor.u32 %v11713_v9, %v7868_v10 }
  0xd4   :  { %v11997_v23 = vld [vmem:[#allocation2 + $0x924] sm:$0xf0]  ;;  %v11889_v15 = vld [vmem:[#allocation2 + $0x5cc] sm:$0xf] }
  0xd5   :  { %2751 = vmatpush.bf16.msrb.mxu3 %v9307_v12  ;;  %2777 = vmatpush.bf16.msrb.mxu2 %v8031_v13  ;;  %v9242_v26 = vld [vmem:[#allocation2 + $0xb08] sm:$0xf]  ;;  %v8987_v29 = vor.u32 %v11997_v23, %v8986_v22  ;;  %v8124_v12 = vld [vmem:[#allocation2 + $0x268] sm:$0xf0] }
  0xd6   :  { %v12061_v27 = vld [vmem:[#allocation2 + $0xb24] sm:$0xf0]  ;;  %2791 = vmatpush.bf16.msrb.mxu0 %v8255_v28  ;;  %v8572_v16 = vld [vmem:[#allocation2 + $0x5e8] sm:$0xf0]  ;;  %v8127_v21 = vor.u32 %v11777_v11, %v8124_v12 }
  0xd7   :  { %v8954_v36 = vld [vmem:[#allocation2 + $0x8c8] sm:$0xf]  ;;  %v9243_v38 = vor.u32 %v12061_v27, %v9242_v26  ;;  %2740 = vmatpush.bf16.msra.mxu1 %v8987_v29  ;;  %v11705_v23 = vld [vmem:[#allocation2 + $0xc] sm:$0xf]  ;;  %v8575_v26 = vor.u32 %v11889_v15, %v8572_v16 }
  0xd8   :  { %v11989_v37 = vld [vmem:[#allocation2 + $0x8e4] sm:$0xf0]  ;;  %v8092_v27 = vld [vmem:[#allocation2 + $0x228] sm:$0xf0] }
  0xd9   :  { %2752 = vmatpush.bf16.msrb.mxu3 %v9275_v24  ;;  %2778 = vmatpush.bf16.msrb.mxu2 %v7999_v25  ;;  %v9210_v40 = vld [vmem:[#allocation2 + $0xac8] sm:$0xf]  ;;  %v8955_v43 = vor.u32 %v11989_v37, %v8954_v36  ;;  %v7836_v24 = vld [vmem:[#allocation2 + $0x28] sm:$0xf0] }
  0xda   :  { %v12053_v41 = vld [vmem:[#allocation2 + $0xae4] sm:$0xf0]  ;;  %2792 = vmatpush.bf16.msrb.mxu0 %v8223_v42  ;;  %v11769_v25 = vld [vmem:[#allocation2 + $0x20c] sm:$0xf]  ;;  %v9087_v42 = vor.u32 %v12017_v31, %v9084_v32 }
  0xdb   :  { %v8922_v49 = vld [vmem:[#allocation2 + $0x888] sm:$0xf]  ;;  %v9211_v52 = vor.u32 %v12053_v41, %v9210_v40  ;;  %2741 = vmatpush.bf16.msra.mxu1 %v8955_v43  ;;  %9394 = vmatmul.msk.bf16.vlgmr.msra.gmra.mxu0 %vm2499_vm0, %v12939_v45  ;;  %v11953_v28 = vld [vmem:[#allocation2 + $0x7cc] sm:$0xf]  ;;  %v8095_v40 = vor.u32 %v11769_v25, %v8092_v27 }
  0xdc   :  { %v11981_v50 = vld [vmem:[#allocation2 + $0x8a4] sm:$0xf0]  ;;  %v8828_v29 = vld [vmem:[#allocation2 + $0x7e8] sm:$0xf0] }
  0xdd   :  { %2753 = vmatpush.bf16.msrb.mxu3 %v9243_v38  ;;  %2779 = vmatpush.bf16.msrb.mxu2 %v7967_v39  ;;  %v9178_v54 = vld [vmem:[#allocation2 + $0xa88] sm:$0xf]  ;;  %v8923_v59 = vor.u32 %v11981_v50, %v8922_v49  ;;  %v9340_v36 = vld [vmem:[#allocation2 + $0xbe8] sm:$0xf0]  ;;  %v7839_v39 = vor.u32 %v11705_v23, %v7836_v24  ;;  %v8831_v41 = vor.u32 %v11953_v28, %v8828_v29  ;;  %v2525_v28 = vpop.f32.mrf.mxu1 }
  0xde   :  { %v12045_v56 = vld [vmem:[#allocation2 + $0xaa4] sm:$0xf0]  ;;  %2793 = vmatpush.bf16.msrb.mxu0 %v8191_v58  ;;  %v11881_v37 = vld [vmem:[#allocation2 + $0x58c] sm:$0xf]  ;;  %v9343_v46 = vor.u32 %v12081_v33, %v9340_v36 }
  0xdf   :  { %v8890_v0 = vld [vmem:[#allocation2 + $0x848] sm:$0xf]  ;;  %v9179_v2 = vor.u32 %v12045_v56, %v9178_v54  ;;  %2742 = vmatpush.bf16.msra.mxu1 %v8923_v59  ;;  %v8540_v38 = vld [vmem:[#allocation2 + $0x5a8] sm:$0xf0]  ;;  %v12970_v56 = vld [vmem:[#allocation4] sm:$0xff] }
  0xe0   :  { %v11973_v1 = vld [vmem:[#allocation2 + $0x864] sm:$0xf0]  ;;  %v11945_v43 = vld [vmem:[#allocation2 + $0x78c] sm:$0xf]  ;;  %v8543_v47 = vor.u32 %v11881_v37, %v8540_v38 }
  0xe1   :  { %2754 = vmatpush.bf16.msrb.mxu3 %v9211_v52  ;;  %2780 = vmatpush.bf16.msrb.mxu2 %v7935_v53  ;;  %v9146_v4 = vld [vmem:[#allocation2 + $0xa48] sm:$0xf]  ;;  %v8891_v8 = vor.u32 %v11973_v1, %v8890_v0  ;;  %v8796_v44 = vld [vmem:[#allocation2 + $0x7a8] sm:$0xf0]  ;;  %v2538_v38 = vpop.f32.mrf.mxu2 }
  0xe2   :  { %v12037_v5 = vld [vmem:[#allocation2 + $0xa64] sm:$0xf0]  ;;  %2794 = vmatpush.bf16.msrb.mxu0 %v8159_v6  ;;  %v12009_v48 = vld [vmem:[#allocation2 + $0x98c] sm:$0xf]  ;;  %v8799_v58 = vor.u32 %v11945_v43, %v8796_v44  ;;  %v523_v6 = vperm.slane %v12970_v56, 0 }
  0xe3   :  { %v8858_v13 = vld [vmem:[#allocation2 + $0x808] sm:$0xf]  ;;  %v9147_v17 = vor.u32 %v12037_v5, %v9146_v4  ;;  %2743 = vmatpush.bf16.msra.mxu1 %v8891_v8  ;;  %v9052_v49 = vld [vmem:[#allocation2 + $0x9a8] sm:$0xf0] }
  0xe4   :  { %v11965_v14 = vld [vmem:[#allocation2 + $0x824] sm:$0xf0]  ;;  %v12073_v50 = vld [vmem:[#allocation2 + $0xb8c] sm:$0xf]  ;;  %v9055_v59 = vor.u32 %v12009_v48, %v9052_v49 }
  0xe5   :  { %2755 = vmatpush.bf16.msrb.mxu3 %v9179_v2  ;;  %2781 = vmatpush.bf16.msrb.mxu2 %v7903_v3  ;;  %v9114_v19 = vld [vmem:[#allocation2 + $0xa08] sm:$0xf]  ;;  %v8859_v22 = vor.u32 %v11965_v14, %v8858_v13  ;;  %v9308_v52 = vld [vmem:[#allocation2 + $0xba8] sm:$0xf0] }
  0xe6   :  { %v12029_v20 = vld [vmem:[#allocation2 + $0xa24] sm:$0xf0]  ;;  %2795 = vmatpush.bf16.msrb.mxu0 %v8127_v21  ;;  %v11873_v53 = vld [vmem:[#allocation2 + $0x54c] sm:$0xf]  ;;  %v9311_v63 = vor.u32 %v12073_v50, %v9308_v52 }
  0xe7   :  { %v9115_v34 = vor.u32 %v12029_v20, %v9114_v19  ;;  %2744 = vmatpush.bf16.msra.mxu1 %v8859_v22  ;;  %v8508_v54 = vld [vmem:[#allocation2 + $0x568] sm:$0xf0] }
  0xe8   :  { %v11937_v60 = vld [vmem:[#allocation2 + $0x74c] sm:$0xf]  ;;  %v8511_v0 = vor.u32 %v11873_v53, %v8508_v54 }
  0xe9   :  { %2756 = vmatpush.bf16.msrb.mxu3 %v9147_v17  ;;  %2782 = vmatpush.bf16.msrb.mxu2 %v7871_v18  ;;  %v8764_v61 = vld [vmem:[#allocation2 + $0x768] sm:$0xf0]  ;;  %v2512_v17 = vpop.f32.mrf.mxu0 }
  0xea   :  { %2745 = vmatmul.bf16.vlgmr.msra.gmra.mxu1 %v12949_v30  ;;  %2796 = vmatpush.bf16.msrb.mxu0 %v8095_v40  ;;  %v12001_v62 = vld [vmem:[#allocation2 + $0x94c] sm:$0xf]  ;;  %v8767_v8 = vor.u32 %v11937_v60, %v8764_v61  ;;  %v2513_v21 = vadd.f32 %v2512_v17, %v523_v6 }
  0xeb   :  { %2802 = vmatpush.bf16.msrb.mxu1 %v8575_v26  ;;  %v9020_v1 = vld [vmem:[#allocation2 + $0x968] sm:$0xf0] }
  0xec   :  { %v12065_v2 = vld [vmem:[#allocation2 + $0xb4c] sm:$0xf]  ;;  %v9023_v9 = vor.u32 %v12001_v62, %v9020_v1  ;;  %v2526_v33 = vadd.f32 %v2525_v28, %v2513_v21  ;;  %v11830_v28 = vld [vmem:[#allocation2 + $0x3ec] sm:$0xf0] }
  0xed   :  { %2757 = vmatpush.bf16.msrb.mxu3 %v9115_v34  ;;  %2783 = vmatpush.bf16.msrb.mxu2 %v7839_v39  ;;  %v9276_v3 = vld [vmem:[#allocation2 + $0xb68] sm:$0xf0] }
  0xee   :  { %2841 = vmatpush.bf16.msra.mxu0 %v9343_v46  ;;  %v11865_v4 = vld [vmem:[#allocation2 + $0x50c] sm:$0xf]  ;;  %v9279_v12 = vor.u32 %v12065_v2, %v9276_v3 }
  0xef   :  { %2803 = vmatpush.bf16.msrb.mxu1 %v8543_v47  ;;  %v8476_v5 = vld [vmem:[#allocation2 + $0x528] sm:$0xf0]  ;;  %2797 = vmatmul.bf16.vlgmr.msrb.gmra.mxu0 %v12932_v7 }
  0xf0   :  { %2758 = vmatmul.bf16.vlgmr.msrb.gmra.mxu3 %v12951_v35  ;;  %2784 = vmatmul.bf16.vlgmr.msrb.gmra.mxu2 %v12923_v55  ;;  %v11929_v10 = vld [vmem:[#allocation2 + $0x70c] sm:$0xf]  ;;  %v8479_v13 = vor.u32 %v11865_v4, %v8476_v5  ;;  %v2527_v5 = vpop.f32.mrf.mxu1 }
  0xf1   :  { %2815 = vmatpush.bf16.msra.mxu3 %v8831_v41  ;;  %2828 = vmatpush.bf16.msra.mxu2 %v9087_v42  ;;  %v8732_v11 = vld [vmem:[#allocation2 + $0x728] sm:$0xf0]  ;;  %v2539_v41 = vadd.f32 %v2538_v38, %v2526_v33  ;;  %v2551_v42 = vpop.f32.mrf.mxu3  ;;  %v2514_v52 = vpop.f32.mrf.mxu0  ;;  %v8834_v33 = vld [vmem:[#allocation2 + $0x7d0] sm:$0xf] }
  0xf2   :  { %2842 = vmatpush.bf16.msra.mxu0 %v9311_v63  ;;  %v11993_v14 = vld [vmem:[#allocation2 + $0x90c] sm:$0xf]  ;;  %v8735_v22 = vor.u32 %v11929_v10, %v8732_v11  ;;  %v2540_v10 = vpop.f32.mrf.mxu2  ;;  %v11950_v52 = vld [vmem:[#allocation2 + $0x7ac] sm:$0xf0] }
  0xf3   :  { %2804 = vmatpush.bf16.msrb.mxu1 %v8511_v0  ;;  %v8988_v15 = vld [vmem:[#allocation2 + $0x928] sm:$0xf0]  ;;  %v12976_v53 = vadd.f32 %v2551_v42, %v2539_v41  ;;  %v11758_v41 = vld [vmem:[#allocation2 + $0x1ac] sm:$0xf0] }
  0xf4   :  { %v12057_v16 = vld [vmem:[#allocation2 + $0xb0c] sm:$0xf]  ;;  %v8991_v23 = vor.u32 %v11993_v14, %v8988_v15  ;;  %v11742_v10 = vld [vmem:[#allocation2 + $0x12c] sm:$0xf0] }
  0xf5   :  { %2816 = vmatpush.bf16.msra.mxu3 %v8799_v58  ;;  %2829 = vmatpush.bf16.msra.mxu2 %v9055_v59  ;;  %v9244_v18 = vld [vmem:[#allocation2 + $0xb28] sm:$0xf0] }
  0xf6   :  { %v11857_v19 = vld [vmem:[#allocation2 + $0x4cc] sm:$0xf]  ;;  %2843 = vmatpush.bf16.msra.mxu0 %v9279_v12  ;;  %v9247_v26 = vor.u32 %v12057_v16, %v9244_v18 }
  0xf7   :  { %v8444_v20 = vld [vmem:[#allocation2 + $0x4e8] sm:$0xf0]  ;;  %2805 = vmatpush.bf16.msrb.mxu1 %v8479_v13 }
  0xf8   :  { %v11921_v24 = vld [vmem:[#allocation2 + $0x6cc] sm:$0xf]  ;;  %v8447_v27 = vor.u32 %v11857_v19, %v8444_v20 }
  0xf9   :  { %2817 = vmatpush.bf16.msra.mxu3 %v8767_v8  ;;  %2830 = vmatpush.bf16.msra.mxu2 %v9023_v9  ;;  %v8700_v25 = vld [vmem:[#allocation2 + $0x6e8] sm:$0xf0]  ;;  %v2553_v17 = vpop.f32.mrf.mxu3 }
  0xfa   :  { %v11985_v29 = vld [vmem:[#allocation2 + $0x8cc] sm:$0xf]  ;;  %v8703_v39 = vor.u32 %v11921_v24, %v8700_v25  ;;  %2844 = vmatpush.bf16.msra.mxu0 %v9247_v26  ;;  %v8066_v25 = vld [vmem:[#allocation2 + $0x1d0] sm:$0xf] }
  0xfb   :  { %v8956_v31 = vld [vmem:[#allocation2 + $0x8e8] sm:$0xf0]  ;;  %2806 = vmatpush.bf16.msrb.mxu1 %v8447_v27  ;;  %v11766_v26 = vld [vmem:[#allocation2 + $0x1ec] sm:$0xf0] }
  0xfc   :  { %v12049_v32 = vld [vmem:[#allocation2 + $0xacc] sm:$0xf]  ;;  %v8959_v40 = vor.u32 %v11985_v29, %v8956_v31  ;;  %v8322_v27 = vld [vmem:[#allocation2 + $0x3d0] sm:$0xf]  ;;  %v8067_v38 = vor.u32 %v11766_v26, %v8066_v25 }
  0xfd   :  { %v9212_v34 = vld [vmem:[#allocation2 + $0xae8] sm:$0xf0]  ;;  %2818 = vmatpush.bf16.msra.mxu3 %v8735_v22  ;;  %2831 = vmatpush.bf16.msra.mxu2 %v8991_v23  ;;  %v8578_v29 = vld [vmem:[#allocation2 + $0x5d0] sm:$0xf] }
  0xfe   :  { %v11849_v36 = vld [vmem:[#allocation2 + $0x48c] sm:$0xf]  ;;  %v9215_v46 = vor.u32 %v12049_v32, %v9212_v34  ;;  %v11894_v32 = vld [vmem:[#allocation2 + $0x5ec] sm:$0xf0]  ;;  %v2564_v5 = vpop.f32.mrf.mxu0 }
  0xff   :  { %v8412_v37 = vld [vmem:[#allocation2 + $0x4a8] sm:$0xf0]  ;;  %v11958_v34 = vld [vmem:[#allocation2 + $0x7ec] sm:$0xf0]  ;;  %v8579_v42 = vor.u32 %v11894_v32, %v8578_v29 }
 0x100   :  { %v11913_v43 = vld [vmem:[#allocation2 + $0x68c] sm:$0xf]  ;;  %v8415_v47 = vor.u32 %v11849_v36, %v8412_v37  ;;  %2845 = vmatpush.bf16.msra.mxu0 %v9215_v46  ;;  %v11822_v46 = vld [vmem:[#allocation2 + $0x3ac] sm:$0xf0] }
 0x101   :  { %v8668_v44 = vld [vmem:[#allocation2 + $0x6a8] sm:$0xf0]  ;;  %2819 = vmatpush.bf16.msra.mxu3 %v8703_v39  ;;  %2832 = vmatpush.bf16.msra.mxu2 %v8959_v40  ;;  %v8323_v39 = vor.u32 %v11830_v28, %v8322_v27  ;;  %v8034_v40 = vld [vmem:[#allocation2 + $0x190] sm:$0xf] }
 0x102   :  { %v11977_v48 = vld [vmem:[#allocation2 + $0x88c] sm:$0xf]  ;;  %v8671_v60 = vor.u32 %v11913_v43, %v8668_v44  ;;  %2807 = vmatpush.bf16.msrb.mxu1 %v8415_v47  ;;  %v8835_v43 = vor.u32 %v11958_v34, %v8834_v33  ;;  %v8290_v44 = vld [vmem:[#allocation2 + $0x390] sm:$0xf]  ;;  %v524_v33 = vperm.slane %v12970_v56, 1 }
 0x103   :  { %v8924_v49 = vld [vmem:[#allocation2 + $0x8a8] sm:$0xf0]  ;;  %v8546_v47 = vld [vmem:[#allocation2 + $0x590] sm:$0xf] }
 0x104   :  { %v12041_v50 = vld [vmem:[#allocation2 + $0xa8c] sm:$0xf]  ;;  %v8927_v61 = vor.u32 %v11977_v48, %v8924_v49  ;;  %v2590_v48 = vpop.f32.mrf.mxu2  ;;  %v11886_v49 = vld [vmem:[#allocation2 + $0x5ac] sm:$0xf0] }
 0x105   :  { %v9180_v54 = vld [vmem:[#allocation2 + $0xaa8] sm:$0xf0]  ;;  %2820 = vmatpush.bf16.msra.mxu3 %v8671_v60  ;;  %v11750_v60 = vld [vmem:[#allocation2 + $0x16c] sm:$0xf0] }
 0x106   :  { %v11841_v58 = vld [vmem:[#allocation2 + $0x44c] sm:$0xf]  ;;  %v9183_v0 = vor.u32 %v12041_v50, %v9180_v54  ;;  %2833 = vmatpush.bf16.msra.mxu2 %v8927_v61  ;;  %v8802_v50 = vld [vmem:[#allocation2 + $0x790] sm:$0xf]  ;;  %v8035_v54 = vor.u32 %v11758_v41, %v8034_v40  ;;  %v8547_v61 = vor.u32 %v11886_v49, %v8546_v47 }
 0x107   :  { %v8380_v59 = vld [vmem:[#allocation2 + $0x468] sm:$0xf0]  ;;  %v8482_v17 = vld [vmem:[#allocation2 + $0x510] sm:$0xf] }
 0x108   :  { %v11905_v62 = vld [vmem:[#allocation2 + $0x64c] sm:$0xf]  ;;  %v8383_v1 = vor.u32 %v11841_v58, %v8380_v59  ;;  %2846 = vmatpush.bf16.msra.mxu0 %v9183_v0  ;;  %v8291_v58 = vor.u32 %v11822_v46, %v8290_v44  ;;  %v8002_v59 = vld [vmem:[#allocation2 + $0x150] sm:$0xf] }
 0x109   :  { %v8636_v63 = vld [vmem:[#allocation2 + $0x668] sm:$0xf0]  ;;  %v11814_v0 = vld [vmem:[#allocation2 + $0x36c] sm:$0xf0] }
 0x10a   :  { %v11969_v2 = vld [vmem:[#allocation2 + $0x84c] sm:$0xf]  ;;  %v8639_v13 = vor.u32 %v11905_v62, %v8636_v63  ;;  %2808 = vmatpush.bf16.msrb.mxu1 %v8383_v1  ;;  %v8803_v62 = vor.u32 %v11950_v52, %v8802_v50  ;;  %v8258_v63 = vld [vmem:[#allocation2 + $0x350] sm:$0xf] }
 0x10b   :  { %v8892_v3 = vld [vmem:[#allocation2 + $0x868] sm:$0xf0]  ;;  %v8514_v1 = vld [vmem:[#allocation2 + $0x550] sm:$0xf] }
 0x10c   :  { %v12033_v4 = vld [vmem:[#allocation2 + $0xa4c] sm:$0xf]  ;;  %v8895_v14 = vor.u32 %v11969_v2, %v8892_v3  ;;  %2821 = vmatpush.bf16.msra.mxu3 %v8639_v13  ;;  %v11878_v2 = vld [vmem:[#allocation2 + $0x56c] sm:$0xf0] }
 0x10d   :  { %v9148_v6 = vld [vmem:[#allocation2 + $0xa68] sm:$0xf0]  ;;  %v8770_v3 = vld [vmem:[#allocation2 + $0x750] sm:$0xf] }
 0x10e   :  { %v11833_v8 = vld [vmem:[#allocation2 + $0x40c] sm:$0xf]  ;;  %v9151_v18 = vor.u32 %v12033_v4, %v9148_v6  ;;  %2834 = vmatpush.bf16.msra.mxu2 %v8895_v14  ;;  %v11942_v4 = vld [vmem:[#allocation2 + $0x76c] sm:$0xf0]  ;;  %v8003_v6 = vor.u32 %v11750_v60, %v8002_v59  ;;  %v2577_v14 = vpop.f32.mrf.mxu1 }
 0x10f   :  { %v8348_v9 = vld [vmem:[#allocation2 + $0x428] sm:$0xf0]  ;;  %v8771_v13 = vor.u32 %v11942_v4, %v8770_v3  ;;  %v7938_v25 = vld [vmem:[#allocation2 + $0xd0] sm:$0xf] }
 0x110   :  { %v12089_v11 = vld [vmem:[#allocation2 + $0xc0c] sm:$0xf]  ;;  %v8351_v19 = vor.u32 %v11833_v8, %v8348_v9  ;;  %2847 = vmatpush.bf16.msra.mxu0 %v9151_v18  ;;  %v8259_v8 = vor.u32 %v11814_v0, %v8258_v63  ;;  %v7970_v9 = vld [vmem:[#allocation2 + $0x110] sm:$0xf]  ;;  %v2592_v18 = vpop.f32.mrf.mxu2 }
 0x111   :  { %v9372_v12 = vld [vmem:[#allocation2 + $0xc28] sm:$0xf0]  ;;  %v11734_v26 = vld [vmem:[#allocation2 + $0xec] sm:$0xf0] }
 0x112   :  { %v11897_v15 = vld [vmem:[#allocation2 + $0x60c] sm:$0xf]  ;;  %v9375_v24 = vor.u32 %v12089_v11, %v9372_v12  ;;  %2809 = vmatpush.bf16.msrb.mxu1 %v8351_v19  ;;  %v2565_v11 = vadd.f32 %v2564_v5, %v12976_v53  ;;  %v8515_v12 = vor.u32 %v11878_v2, %v8514_v1  ;;  %v11870_v19 = vld [vmem:[#allocation2 + $0x52c] sm:$0xf0] }
 0x113   :  { %v8604_v16 = vld [vmem:[#allocation2 + $0x628] sm:$0xf0]  ;;  %v8194_v27 = vld [vmem:[#allocation2 + $0x2d0] sm:$0xf]  ;;  %v8483_v28 = vor.u32 %v11870_v19, %v8482_v17 }
 0x114   :  { %v11961_v20 = vld [vmem:[#allocation2 + $0x80c] sm:$0xf]  ;;  %v8607_v31 = vor.u32 %v11897_v15, %v8604_v16  ;;  %v8226_v15 = vld [vmem:[#allocation2 + $0x310] sm:$0xf] }
 0x115   :  { %v8860_v21 = vld [vmem:[#allocation2 + $0x828] sm:$0xf0]  ;;  %2810 = vmatmul.bf16.vlgmr.msrb.gmra.mxu1 %v12921_v51  ;;  %v11806_v16 = vld [vmem:[#allocation2 + $0x32c] sm:$0xf0] }
 0x116   :  { %v12025_v22 = vld [vmem:[#allocation2 + $0xa0c] sm:$0xf]  ;;  %v8863_v36 = vor.u32 %v11961_v20, %v8860_v21  ;;  %2861 = vmatpush.bf16.msra.mxu1 %v9375_v24  ;;  %2822 = vmatpush.bf16.msra.mxu3 %v8607_v31  ;;  %v8738_v20 = vld [vmem:[#allocation2 + $0x710] sm:$0xf]  ;;  %v8227_v24 = vor.u32 %v11806_v16, %v8226_v15  ;;  %v2579_v52 = vpop.f32.mrf.mxu1 }
 0x117   :  { %v9116_v23 = vld [vmem:[#allocation2 + $0xa28] sm:$0xf0]  ;;  %v11934_v21 = vld [vmem:[#allocation2 + $0x72c] sm:$0xf0] }
 0x118   :  { %v9119_v37 = vor.u32 %v12025_v22, %v9116_v23  ;;  %2835 = vmatpush.bf16.msra.mxu2 %v8863_v36  ;;  %v2578_v22 = vadd.f32 %v2577_v14, %v2565_v11  ;;  %v7971_v23 = vor.u32 %v11742_v10, %v7970_v9  ;;  %v8739_v29 = vor.u32 %v11934_v21, %v8738_v20  ;;  %v11798_v31 = vld [vmem:[#allocation2 + $0x2ec] sm:$0xf0]  ;;  %v2616_v60 = vpop.f32.mrf.mxu2 }
 0x119   :  { %2823 = vmatmul.bf16.vlgmr.msra.gmra.mxu3 %v12925_v57  ;;  %v8450_v32 = vld [vmem:[#allocation2 + $0x4d0] sm:$0xf] }
 0x11a   :  { %2848 = vmatpush.bf16.msra.mxu0 %v9119_v37  ;;  %2867 = vmatpush.bf16.msrb.mxu3 %v8067_v38  ;;  %v12983_v53 = vadd.f32 %v2590_v48, %v2578_v22  ;;  %v11862_v34 = vld [vmem:[#allocation2 + $0x4ec] sm:$0xf0]  ;;  %v7939_v38 = vor.u32 %v11734_v26, %v7938_v25 }
 0x11b   :  { %2880 = vmatpush.bf16.msrb.mxu1 %v8323_v39  ;;  %2836 = vmatmul.bf16.vlgmr.msra.gmra.mxu2 %v12949_v30  ;;  %v8706_v36 = vld [vmem:[#allocation2 + $0x6d0] sm:$0xf]  ;;  %v8195_v39 = vor.u32 %v11798_v31, %v8194_v27  ;;  %v8451_v44 = vor.u32 %v11862_v34, %v8450_v32  ;;  %v11762_v32 = vld [vmem:[#allocation2 + $0x1d4] sm:$0xf] }
 0x11c   :  { %2893 = vmatpush.bf16.msrb.mxu2 %v8579_v42  ;;  %v11926_v37 = vld [vmem:[#allocation2 + $0x6ec] sm:$0xf0]  ;;  %v2603_v42 = vpop.f32.mrf.mxu3 }
 0x11d   :  { %2849 = vmatmul.bf16.vlgmr.msra.gmra.mxu0 %v12951_v35  ;;  %v7906_v40 = vld [vmem:[#allocation2 + $0x90] sm:$0xf]  ;;  %v8707_v46 = vor.u32 %v11926_v37, %v8706_v36  ;;  %v2604_v50 = vadd.f32 %v2603_v42, %v524_v33  ;;  %v8068_v33 = vld [vmem:[#allocation2 + $0x1f0] sm:$0xf0] }
 0x11e   :  { %2906 = vmatpush.bf16.msrb.mxu0 %v8835_v43  ;;  %2868 = vmatpush.bf16.msrb.mxu3 %v8035_v54  ;;  %v11726_v41 = vld [vmem:[#allocation2 + $0xac] sm:$0xf0]  ;;  %v2566_v43 = vpop.f32.mrf.mxu0  ;;  %v8324_v42 = vld [vmem:[#allocation2 + $0x3f0] sm:$0xf0] }
 0x11f   :  { %2881 = vmatpush.bf16.msrb.mxu1 %v8291_v58  ;;  %v8162_v47 = vld [vmem:[#allocation2 + $0x290] sm:$0xf]  ;;  %v8071_v43 = vor.u32 %v11762_v32, %v8068_v33  ;;  %v11730_v33 = vld [vmem:[#allocation2 + $0xd4] sm:$0xf] }
 0x120   :  { %2894 = vmatpush.bf16.msrb.mxu2 %v8547_v61  ;;  %v11790_v48 = vld [vmem:[#allocation2 + $0x2ac] sm:$0xf0]  ;;  %v12988_v61 = vadd.f32 %v2616_v60, %v2604_v50  ;;  %v2618_v25 = vpop.f32.mrf.mxu2  ;;  %v8036_v50 = vld [vmem:[#allocation2 + $0x1b0] sm:$0xf0] }
 0x121   :  { %v8418_v49 = vld [vmem:[#allocation2 + $0x490] sm:$0xf]  ;;  %v8163_v63 = vor.u32 %v11790_v48, %v8162_v47  ;;  %v8292_v60 = vld [vmem:[#allocation2 + $0x3b0] sm:$0xf0] }
 0x122   :  { %2907 = vmatpush.bf16.msrb.mxu0 %v8803_v62  ;;  %2869 = vmatpush.bf16.msrb.mxu3 %v8003_v6  ;;  %v11854_v54 = vld [vmem:[#allocation2 + $0x4ac] sm:$0xf0]  ;;  %v7907_v62 = vor.u32 %v11726_v41, %v7906_v40  ;;  %v11826_v41 = vld [vmem:[#allocation2 + $0x3d4] sm:$0xf] }
 0x123   :  { %2882 = vmatpush.bf16.msrb.mxu1 %v8259_v8  ;;  %v8674_v58 = vld [vmem:[#allocation2 + $0x690] sm:$0xf]  ;;  %v8419_v2 = vor.u32 %v11854_v54, %v8418_v49  ;;  %v11754_v49 = vld [vmem:[#allocation2 + $0x194] sm:$0xf]  ;;  %v8327_v54 = vor.u32 %v11826_v41, %v8324_v42 }
 0x124   :  { %2895 = vmatpush.bf16.msrb.mxu2 %v8515_v12  ;;  %v11918_v59 = vld [vmem:[#allocation2 + $0x6ac] sm:$0xf0]  ;;  %v2605_v16 = vpop.f32.mrf.mxu3  ;;  %v11802_v25 = vld [vmem:[#allocation2 + $0x314] sm:$0xf] }
 0x125   :  { %9395 = vmatmul.msk.bf16.vlgmr.msra.gmra.mxu1 %vm2499_vm0, %v12939_v45  ;;  %v7874_v0 = vld [vmem:[#allocation2 + $0x50] sm:$0xf]  ;;  %v8675_v3 = vor.u32 %v11918_v59, %v8674_v58  ;;  %v11818_v59 = vld [vmem:[#allocation2 + $0x394] sm:$0xf] }
 0x126   :  { %2908 = vmatpush.bf16.msrb.mxu0 %v8771_v13  ;;  %2870 = vmatpush.bf16.msrb.mxu3 %v7971_v23  ;;  %v11718_v1 = vld [vmem:[#allocation2 + $0x6c] sm:$0xf0]  ;;  %v8196_v41 = vld [vmem:[#allocation2 + $0x2f0] sm:$0xf0] }
 0x127   :  { %2883 = vmatpush.bf16.msrb.mxu1 %v8227_v24  ;;  %v8130_v4 = vld [vmem:[#allocation2 + $0x250] sm:$0xf]  ;;  %v7875_v11 = vor.u32 %v11718_v1, %v7874_v0 }
 0x128   :  { %2896 = vmatpush.bf16.msrb.mxu2 %v8483_v28  ;;  %v11782_v5 = vld [vmem:[#allocation2 + $0x26c] sm:$0xf0] }
 0x129   :  { %v8386_v6 = vld [vmem:[#allocation2 + $0x450] sm:$0xf]  ;;  %v8131_v12 = vor.u32 %v11782_v5, %v8130_v4  ;;  %v11746_v4 = vld [vmem:[#allocation2 + $0x154] sm:$0xf] }
 0x12a   :  { %2909 = vmatpush.bf16.msrb.mxu0 %v8739_v29  ;;  %2871 = vmatpush.bf16.msrb.mxu3 %v7939_v38  ;;  %v11846_v8 = vld [vmem:[#allocation2 + $0x46c] sm:$0xf0]  ;;  %v8004_v5 = vld [vmem:[#allocation2 + $0x170] sm:$0xf0] }
 0x12b   :  { %2884 = vmatpush.bf16.msrb.mxu1 %v8195_v39  ;;  %v8642_v9 = vld [vmem:[#allocation2 + $0x650] sm:$0xf]  ;;  %v8387_v17 = vor.u32 %v11846_v8, %v8386_v6  ;;  %v8295_v6 = vor.u32 %v11818_v59, %v8292_v60  ;;  %v2629_v8 = vpop.f32.mrf.mxu0 }
 0x12c   :  { %2897 = vmatpush.bf16.msrb.mxu2 %v8451_v44  ;;  %v11910_v10 = vld [vmem:[#allocation2 + $0x66c] sm:$0xf0] }
 0x12d   :  { %v7842_v13 = vld [vmem:[#allocation2 + $0x10] sm:$0xf]  ;;  %v8643_v18 = vor.u32 %v11910_v10, %v8642_v9  ;;  %v11810_v10 = vld [vmem:[#allocation2 + $0x354] sm:$0xf] }
 0x12e   :  { %2910 = vmatpush.bf16.msrb.mxu0 %v8707_v46  ;;  %2872 = vmatpush.bf16.msrb.mxu3 %v7907_v62  ;;  %v11710_v14 = vld [vmem:[#allocation2 + $0x2c] sm:$0xf0] }
 0x12f   :  { %2885 = vmatpush.bf16.msrb.mxu1 %v8163_v63  ;;  %v8098_v15 = vld [vmem:[#allocation2 + $0x210] sm:$0xf]  ;;  %v7843_v29 = vor.u32 %v11710_v14, %v7842_v13  ;;  %v8039_v63 = vor.u32 %v11754_v49, %v8036_v50  ;;  %v8007_v14 = vor.u32 %v11746_v4, %v8004_v5 }
 0x130   :  { %2898 = vmatpush.bf16.msrb.mxu2 %v8419_v2  ;;  %v11774_v19 = vld [vmem:[#allocation2 + $0x22c] sm:$0xf0] }
 0x131   :  { %v8354_v20 = vld [vmem:[#allocation2 + $0x410] sm:$0xf]  ;;  %v8099_v31 = vor.u32 %v11774_v19, %v8098_v15 }
 0x132   :  { %2911 = vmatpush.bf16.msrb.mxu0 %v8675_v3  ;;  %v11838_v21 = vld [vmem:[#allocation2 + $0x42c] sm:$0xf0]  ;;  %2873 = vmatpush.bf16.msrb.mxu3 %v7875_v11  ;;  %v8260_v11 = vld [vmem:[#allocation2 + $0x370] sm:$0xf0] }
 0x133   :  { %v8610_v22 = vld [vmem:[#allocation2 + $0x610] sm:$0xf]  ;;  %2886 = vmatpush.bf16.msrb.mxu1 %v8131_v12  ;;  %v8355_v34 = vor.u32 %v11838_v21, %v8354_v20  ;;  %v2630_v12 = vadd.f32 %v2629_v8, %v12988_v61  ;;  %v11738_v20 = vld [vmem:[#allocation2 + $0x114] sm:$0xf]  ;;  %v2631_v42 = vpop.f32.mrf.mxu0  ;;  %v2668_v49 = vpop.f32.mrf.mxu2 }
 0x134   :  { %v11902_v23 = vld [vmem:[#allocation2 + $0x62c] sm:$0xf0]  ;;  %2899 = vmatpush.bf16.msrb.mxu2 %v8387_v17  ;;  %v7972_v21 = vld [vmem:[#allocation2 + $0x130] sm:$0xf0] }
 0x135   :  { %v9090_v24 = vld [vmem:[#allocation2 + $0x9d0] sm:$0xf]  ;;  %v8611_v36 = vor.u32 %v11902_v23, %v8610_v22  ;;  %v8263_v23 = vor.u32 %v11810_v10, %v8260_v11  ;;  %v7975_v61 = vor.u32 %v11738_v20, %v7972_v21  ;;  %v11714_v8 = vld [vmem:[#allocation2 + $0x54] sm:$0xf] }
 0x136   :  { %v12022_v26 = vld [vmem:[#allocation2 + $0x9ec] sm:$0xf0]  ;;  %2912 = vmatpush.bf16.msrb.mxu0 %v8643_v18  ;;  %2874 = vmatpush.bf16.msrb.mxu3 %v7843_v29  ;;  %v2642_v18 = vpop.f32.mrf.mxu1  ;;  %v11706_v21 = vld [vmem:[#allocation2 + $0x14] sm:$0xf] }
 0x137   :  { %v9346_v27 = vld [vmem:[#allocation2 + $0xbd0] sm:$0xf]  ;;  %v9091_v38 = vor.u32 %v12022_v26, %v9090_v24  ;;  %2887 = vmatpush.bf16.msrb.mxu1 %v8099_v31  ;;  %v2643_v22 = vadd.f32 %v2642_v18, %v2630_v12  ;;  %v8228_v26 = vld [vmem:[#allocation2 + $0x330] sm:$0xf0] }
 0x138   :  { %v12086_v28 = vld [vmem:[#allocation2 + $0xbec] sm:$0xf0]  ;;  %2900 = vmatpush.bf16.msrb.mxu2 %v8355_v34  ;;  %v7940_v34 = vld [vmem:[#allocation2 + $0xf0] sm:$0xf0] }
 0x139   :  { %v9378_v37 = vld [vmem:[#allocation2 + $0xc10] sm:$0xf]  ;;  %v9347_v39 = vor.u32 %v12086_v28, %v9346_v27  ;;  %2875 = vmatmul.bf16.vlgmr.msrb.gmra.mxu3 %v12923_v55 }
 0x13a   :  { %v12094_v40 = vld [vmem:[#allocation2 + $0xc2c] sm:$0xf0]  ;;  %2913 = vmatpush.bf16.msrb.mxu0 %v8611_v36  ;;  %2919 = vmatpush.bf16.msra.mxu3 %v9091_v38  ;;  %v2655_v36 = vpop.f32.mrf.mxu3  ;;  %v8231_v38 = vor.u32 %v11802_v25, %v8228_v26  ;;  %v8580_v25 = vld [vmem:[#allocation2 + $0x5f0] sm:$0xf0] }
 0x13b   :  { %v9058_v44 = vld [vmem:[#allocation2 + $0x990] sm:$0xf]  ;;  %v9379_v52 = vor.u32 %v12094_v40, %v9378_v37  ;;  %2932 = vmatpush.bf16.msra.mxu1 %v9347_v39  ;;  %2901 = vmatmul.bf16.vlgmr.msrb.gmra.mxu2 %v12921_v51  ;;  %v2656_v37 = vadd.f32 %v2655_v36, %v2643_v22  ;;  %v11794_v40 = vld [vmem:[#allocation2 + $0x2d4] sm:$0xf] }
 0x13c   :  { %v12014_v46 = vld [vmem:[#allocation2 + $0x9ac] sm:$0xf0]  ;;  %2888 = vmatmul.bf16.vlgmr.msrb.gmra.mxu1 %v12932_v7  ;;  %v8199_v60 = vor.u32 %v11794_v40, %v8196_v41  ;;  %v7844_v22 = vld [vmem:[#allocation2 + $0x30] sm:$0xf0] }
 0x13d   :  { %v9314_v47 = vld [vmem:[#allocation2 + $0xb90] sm:$0xf]  ;;  %v9059_v58 = vor.u32 %v12014_v46, %v9058_v44  ;;  %2952 = vmatpush.bf16.msra.mxu2 %v9379_v52  ;;  %2914 = vmatmul.bf16.vlgmr.msrb.gmra.mxu0 %v12925_v57  ;;  %v7943_v44 = vor.u32 %v11730_v33, %v7940_v34  ;;  %v11722_v52 = vld [vmem:[#allocation2 + $0x94] sm:$0xf]  ;;  %v12995_v59 = vadd.f32 %v2668_v49, %v2656_v37 }
 0x13e   :  { %v12078_v48 = vld [vmem:[#allocation2 + $0xbac] sm:$0xf0]  ;;  %2958 = vmatpush.bf16.msra.mxu0 %v8071_v43  ;;  %v11954_v26 = vld [vmem:[#allocation2 + $0x7d4] sm:$0xf]  ;;  %v7847_v33 = vor.u32 %v11706_v21, %v7844_v22  ;;  %v525_v21 = vperm.slane %v12970_v56, 2 }
 0x13f   :  { %v9315_v62 = vor.u32 %v12078_v48, %v9314_v47  ;;  %v9026_v0 = vld [vmem:[#allocation2 + $0x950] sm:$0xf]  ;;  %2920 = vmatpush.bf16.msra.mxu3 %v9059_v58  ;;  %v2644_v58 = vpop.f32.mrf.mxu1  ;;  %v11770_v34 = vld [vmem:[#allocation2 + $0x214] sm:$0xf] }
 0x140   :  { %v12006_v1 = vld [vmem:[#allocation2 + $0x96c] sm:$0xf0]  ;;  %v8100_v36 = vld [vmem:[#allocation2 + $0x230] sm:$0xf0] }
 0x141   :  { %v9282_v2 = vld [vmem:[#allocation2 + $0xb50] sm:$0xf]  ;;  %2971 = vmatpush.bf16.msrb.mxu2 %v8327_v54  ;;  %v9027_v9 = vor.u32 %v12006_v1, %v9026_v0  ;;  %2933 = vmatpush.bf16.msra.mxu1 %v9315_v62  ;;  %v7908_v54 = vld [vmem:[#allocation2 + $0xb0] sm:$0xf0]  ;;  %v8103_v49 = vor.u32 %v11770_v34, %v8100_v36 }
 0x142   :  { %v12070_v3 = vld [vmem:[#allocation2 + $0xb6c] sm:$0xf0]  ;;  %2959 = vmatpush.bf16.msra.mxu0 %v8039_v63  ;;  %v11786_v63 = vld [vmem:[#allocation2 + $0x294] sm:$0xf]  ;;  %v2657_v10 = vpop.f32.mrf.mxu3 }
 0x143   :  { %v9283_v13 = vor.u32 %v12070_v3, %v9282_v2  ;;  %v8994_v15 = vld [vmem:[#allocation2 + $0x910] sm:$0xf]  ;;  %2921 = vmatpush.bf16.msra.mxu3 %v9027_v9  ;;  %v8164_v0 = vld [vmem:[#allocation2 + $0x2b0] sm:$0xf0]  ;;  %v7911_v2 = vor.u32 %v11722_v52, %v7908_v54 }
 0x144   :  { %v11998_v16 = vld [vmem:[#allocation2 + $0x92c] sm:$0xf0]  ;;  %v7876_v9 = vld [vmem:[#allocation2 + $0x70] sm:$0xf0]  ;;  %v8167_v11 = vor.u32 %v11786_v63, %v8164_v0 }
 0x145   :  { %v9250_v17 = vld [vmem:[#allocation2 + $0xb10] sm:$0xf]  ;;  %2972 = vmatpush.bf16.msrb.mxu2 %v8295_v6  ;;  %v8995_v24 = vor.u32 %v11998_v16, %v8994_v15  ;;  %2934 = vmatpush.bf16.msra.mxu1 %v9283_v13  ;;  %v11778_v13 = vld [vmem:[#allocation2 + $0x254] sm:$0xf] }
 0x146   :  { %v12062_v19 = vld [vmem:[#allocation2 + $0xb2c] sm:$0xf0]  ;;  %2960 = vmatpush.bf16.msra.mxu0 %v8007_v14  ;;  %v8132_v14 = vld [vmem:[#allocation2 + $0x270] sm:$0xf0] }
 0x147   :  { %v9251_v27 = vor.u32 %v12062_v19, %v9250_v17  ;;  %v8962_v28 = vld [vmem:[#allocation2 + $0x8d0] sm:$0xf]  ;;  %2922 = vmatpush.bf16.msra.mxu3 %v8995_v24  ;;  %v7879_v17 = vor.u32 %v11714_v8, %v7876_v9  ;;  %v2670_v24 = vpop.f32.mrf.mxu2  ;;  %v9348_v40 = vld [vmem:[#allocation2 + $0xbf0] sm:$0xf0] }
 0x148   :  { %v11990_v29 = vld [vmem:[#allocation2 + $0x8ec] sm:$0xf0]  ;;  %v11882_v41 = vld [vmem:[#allocation2 + $0x594] sm:$0xf] }
 0x149   :  { %v9218_v31 = vld [vmem:[#allocation2 + $0xad0] sm:$0xf]  ;;  %2973 = vmatpush.bf16.msrb.mxu2 %v8263_v23  ;;  %v8963_v39 = vor.u32 %v11990_v29, %v8962_v28  ;;  %2935 = vmatpush.bf16.msra.mxu1 %v9251_v27  ;;  %v11890_v23 = vld [vmem:[#allocation2 + $0x5d4] sm:$0xf] }
 0x14a   :  { %v12054_v32 = vld [vmem:[#allocation2 + $0xaec] sm:$0xf0]  ;;  %2961 = vmatpush.bf16.msra.mxu0 %v7975_v61  ;;  %v8836_v27 = vld [vmem:[#allocation2 + $0x7f0] sm:$0xf0]  ;;  %v8135_v61 = vor.u32 %v11778_v13, %v8132_v14  ;;  %v8583_v37 = vor.u32 %v11890_v23, %v8580_v25  ;;  %v2694_v23 = vpop.f32.mrf.mxu1 }
 0x14b   :  { %v9219_v43 = vor.u32 %v12054_v32, %v9218_v31  ;;  %v8930_v46 = vld [vmem:[#allocation2 + $0x890] sm:$0xf]  ;;  %2923 = vmatpush.bf16.msra.mxu3 %v8963_v39  ;;  %9396 = vmatmul.msk.bf16.vlgmr.msra.gmra.mxu2 %vm2499_vm0, %v12939_v45  ;;  %v12018_v29 = vld [vmem:[#allocation2 + $0x9d4] sm:$0xf] }
 0x14c   :  { %v11982_v47 = vld [vmem:[#allocation2 + $0x8ac] sm:$0xf0]  ;;  %v9092_v31 = vld [vmem:[#allocation2 + $0x9f0] sm:$0xf0] }
 0x14d   :  { %v9186_v48 = vld [vmem:[#allocation2 + $0xa90] sm:$0xf]  ;;  %2974 = vmatpush.bf16.msrb.mxu2 %v8231_v38  ;;  %v8931_v62 = vor.u32 %v11982_v47, %v8930_v46  ;;  %2936 = vmatpush.bf16.msra.mxu1 %v9219_v43  ;;  %v8839_v38 = vor.u32 %v11954_v26, %v8836_v27  ;;  %v12082_v39 = vld [vmem:[#allocation2 + $0xbd4] sm:$0xf]  ;;  %v9095_v42 = vor.u32 %v12018_v29, %v9092_v31  ;;  %v2681_v43 = vpop.f32.mrf.mxu3 }
 0x14e   :  { %v12046_v50 = vld [vmem:[#allocation2 + $0xaac] sm:$0xf0]  ;;  %2962 = vmatpush.bf16.msra.mxu0 %v7943_v44  ;;  %v8548_v44 = vld [vmem:[#allocation2 + $0x5b0] sm:$0xf0]  ;;  %v9351_v54 = vor.u32 %v12082_v39, %v9348_v40 }
 0x14f   :  { %v9187_v1 = vor.u32 %v12046_v50, %v9186_v48  ;;  %v8898_v3 = vld [vmem:[#allocation2 + $0x850] sm:$0xf]  ;;  %2924 = vmatpush.bf16.msra.mxu3 %v8931_v62  ;;  %v11946_v46 = vld [vmem:[#allocation2 + $0x794] sm:$0xf]  ;;  %v13000_v48 = vadd.f32 %v2681_v43, %v12995_v59  ;;  %v8551_v58 = vor.u32 %v11882_v41, %v8548_v44 }
 0x150   :  { %v11974_v4 = vld [vmem:[#allocation2 + $0x86c] sm:$0xf0]  ;;  %v8804_v47 = vld [vmem:[#allocation2 + $0x7b0] sm:$0xf0] }
 0x151   :  { %v9154_v5 = vld [vmem:[#allocation2 + $0xa50] sm:$0xf]  ;;  %2975 = vmatpush.bf16.msrb.mxu2 %v8199_v60  ;;  %v8899_v12 = vor.u32 %v11974_v4, %v8898_v3  ;;  %2937 = vmatpush.bf16.msra.mxu1 %v9187_v1  ;;  %v12010_v50 = vld [vmem:[#allocation2 + $0x994] sm:$0xf]  ;;  %v8807_v60 = vor.u32 %v11946_v46, %v8804_v47 }
 0x152   :  { %v12038_v6 = vld [vmem:[#allocation2 + $0xa6c] sm:$0xf0]  ;;  %2963 = vmatpush.bf16.msra.mxu0 %v7911_v2  ;;  %v9060_v52 = vld [vmem:[#allocation2 + $0x9b0] sm:$0xf0] }
 0x153   :  { %v8866_v15 = vld [vmem:[#allocation2 + $0x810] sm:$0xf]  ;;  %v9155_v16 = vor.u32 %v12038_v6, %v9154_v5  ;;  %2925 = vmatpush.bf16.msra.mxu3 %v8899_v12  ;;  %v12074_v62 = vld [vmem:[#allocation2 + $0xb94] sm:$0xf]  ;;  %v9063_v1 = vor.u32 %v12010_v50, %v9060_v52  ;;  %v2720_v12 = vpop.f32.mrf.mxu0 }
 0x154   :  { %v11966_v18 = vld [vmem:[#allocation2 + $0x82c] sm:$0xf0]  ;;  %v9316_v63 = vld [vmem:[#allocation2 + $0xbb0] sm:$0xf0] }
 0x155   :  { %v9122_v19 = vld [vmem:[#allocation2 + $0xa10] sm:$0xf]  ;;  %2976 = vmatpush.bf16.msrb.mxu2 %v8167_v11  ;;  %v8867_v28 = vor.u32 %v11966_v18, %v8866_v15  ;;  %2938 = vmatpush.bf16.msra.mxu1 %v9155_v16  ;;  %v11874_v0 = vld [vmem:[#allocation2 + $0x554] sm:$0xf]  ;;  %v9319_v6 = vor.u32 %v12074_v62, %v9316_v63  ;;  %v2683_v15 = vpop.f32.mrf.mxu3  ;;  %v2696_v62 = vpop.f32.mrf.mxu1 }
 0x156   :  { %v12030_v20 = vld [vmem:[#allocation2 + $0xa2c] sm:$0xf0]  ;;  %2964 = vmatpush.bf16.msra.mxu0 %v7879_v17  ;;  %v8516_v2 = vld [vmem:[#allocation2 + $0x570] sm:$0xf0]  ;;  %v8298_v62 = vld [vmem:[#allocation2 + $0x398] sm:$0xf] }
 0x157   :  { %v9123_v32 = vor.u32 %v12030_v20, %v9122_v19  ;;  %2926 = vmatpush.bf16.msra.mxu3 %v8867_v28  ;;  %v11938_v59 = vld [vmem:[#allocation2 + $0x754] sm:$0xf]  ;;  %v8519_v8 = vor.u32 %v11874_v0, %v8516_v2 }
 0x158   :  { %v8772_v3 = vld [vmem:[#allocation2 + $0x770] sm:$0xf0] }
 0x159   :  { %2977 = vmatpush.bf16.msrb.mxu2 %v8135_v61  ;;  %2939 = vmatpush.bf16.msra.mxu1 %v9123_v32  ;;  %v12002_v4 = vld [vmem:[#allocation2 + $0x954] sm:$0xf]  ;;  %v8775_v9 = vor.u32 %v11938_v59, %v8772_v3 }
 0x15a   :  { %2965 = vmatpush.bf16.msra.mxu0 %v7847_v33  ;;  %2927 = vmatmul.bf16.vlgmr.msra.gmra.mxu3 %v12949_v30  ;;  %v9028_v5 = vld [vmem:[#allocation2 + $0x970] sm:$0xf0]  ;;  %v2695_v33 = vadd.f32 %v2694_v23, %v525_v21 }
 0x15b   :  { %2984 = vmatpush.bf16.msrb.mxu3 %v8583_v37  ;;  %v12066_v10 = vld [vmem:[#allocation2 + $0xb54] sm:$0xf]  ;;  %v9031_v14 = vor.u32 %v12002_v4, %v9028_v5  ;;  %v2722_v41 = vpop.f32.mrf.mxu0 }
 0x15c   :  { %2940 = vmatmul.bf16.vlgmr.msra.gmra.mxu1 %v12951_v35  ;;  %v9284_v11 = vld [vmem:[#allocation2 + $0xb70] sm:$0xf0]  ;;  %v11831_v41 = vld [vmem:[#allocation2 + $0x3f4] sm:$0xf0] }
 0x15d   :  { %2997 = vmatpush.bf16.msrb.mxu1 %v8839_v38  ;;  %2978 = vmatpush.bf16.msrb.mxu2 %v8103_v49  ;;  %v11866_v13 = vld [vmem:[#allocation2 + $0x514] sm:$0xf]  ;;  %v9287_v22 = vor.u32 %v12066_v10, %v9284_v11  ;;  %v2707_v44 = vpop.f32.mrf.mxu3 }
 0x15e   :  { %3010 = vmatpush.bf16.msrb.mxu0 %v9095_v42  ;;  %v8484_v16 = vld [vmem:[#allocation2 + $0x530] sm:$0xf0]  ;;  %v2708_v50 = vadd.f32 %v2707_v44, %v2695_v33 }
 0x15f   :  { %2966 = vmatmul.bf16.vlgmr.msra.gmra.mxu0 %v12923_v55  ;;  %2985 = vmatpush.bf16.msrb.mxu3 %v8551_v58  ;;  %v11930_v17 = vld [vmem:[#allocation2 + $0x714] sm:$0xf]  ;;  %v8487_v24 = vor.u32 %v11866_v13, %v8484_v16  ;;  %v2733_v58 = vpop.f32.mrf.mxu2 }
 0x160   :  { %v8740_v18 = vld [vmem:[#allocation2 + $0x730] sm:$0xf0]  ;;  %2979 = vmatmul.bf16.vlgmr.msrb.gmra.mxu2 %v12932_v7 }
 0x161   :  { %3023 = vmatpush.bf16.msra.mxu2 %v9351_v54  ;;  %2998 = vmatpush.bf16.msrb.mxu1 %v8807_v60  ;;  %v11994_v19 = vld [vmem:[#allocation2 + $0x914] sm:$0xf]  ;;  %v8743_v25 = vor.u32 %v11930_v17, %v8740_v18 }
 0x162   :  { %3011 = vmatpush.bf16.msrb.mxu0 %v9063_v1  ;;  %v8996_v20 = vld [vmem:[#allocation2 + $0x930] sm:$0xf0]  ;;  %v2721_v1 = vadd.f32 %v2720_v12, %v2708_v50 }
 0x163   :  { %2986 = vmatpush.bf16.msrb.mxu3 %v8519_v8  ;;  %v12058_v26 = vld [vmem:[#allocation2 + $0xb14] sm:$0xf]  ;;  %v8999_v28 = vor.u32 %v11994_v19, %v8996_v20  ;;  %v13009_v20 = vpop.f32.mrf.mxu0 }
 0x164   :  { %v9252_v27 = vld [vmem:[#allocation2 + $0xb30] sm:$0xf0] }
 0x165   :  { %3024 = vmatpush.bf16.msra.mxu2 %v9319_v6  ;;  %2999 = vmatpush.bf16.msrb.mxu1 %v8775_v9  ;;  %v11858_v61 = vld [vmem:[#allocation2 + $0x4d4] sm:$0xf]  ;;  %v9255_v56 = vor.u32 %v12058_v26, %v9252_v27  ;;  %v13007_v9 = vadd.f32 %v2733_v58, %v2721_v1  ;;  %v8074_v26 = vld [vmem:[#allocation2 + $0x1d8] sm:$0xf] }
 0x166   :  { %3012 = vmatpush.bf16.msrb.mxu0 %v9031_v14  ;;  %v8452_v29 = vld [vmem:[#allocation2 + $0x4f0] sm:$0xf0]  ;;  %v11767_v27 = vld [vmem:[#allocation2 + $0x1f4] sm:$0xf0] }
 0x167   :  { %v11922_v31 = vld [vmem:[#allocation2 + $0x6d4] sm:$0xf]  ;;  %2987 = vmatpush.bf16.msrb.mxu3 %v8487_v24  ;;  %v8455_v37 = vor.u32 %v11858_v61, %v8452_v29  ;;  %v8586_v61 = vld [vmem:[#allocation2 + $0x5d8] sm:$0xf] }
 0x168   :  { %v8708_v32 = vld [vmem:[#allocation2 + $0x6f0] sm:$0xf0]  ;;  %v11823_v1 = vld [vmem:[#allocation2 + $0x3b4] sm:$0xf0] }
 0x169   :  { %v11986_v34 = vld [vmem:[#allocation2 + $0x8d4] sm:$0xf]  ;;  %3025 = vmatpush.bf16.msra.mxu2 %v9287_v22  ;;  %3000 = vmatpush.bf16.msrb.mxu1 %v8743_v25  ;;  %v8711_v38 = vor.u32 %v11922_v31, %v8708_v32  ;;  %v2709_v25 = vpop.f32.mrf.mxu3  ;;  %v11895_v31 = vld [vmem:[#allocation2 + $0x5f4] sm:$0xf0] }
 0x16a   :  { %v8964_v36 = vld [vmem:[#allocation2 + $0x8f0] sm:$0xf0]  ;;  %3013 = vmatpush.bf16.msrb.mxu0 %v8999_v28  ;;  %v2735_v28 = vpop.f32.mrf.mxu2  ;;  %v8587_v44 = vor.u32 %v11895_v31, %v8586_v61  ;;  %v11935_v31 = vld [vmem:[#allocation2 + $0x734] sm:$0xf0] }
 0x16b   :  { %v12050_v39 = vld [vmem:[#allocation2 + $0xad4] sm:$0xf]  ;;  %v8967_v43 = vor.u32 %v11986_v34, %v8964_v36  ;;  %2988 = vmatpush.bf16.msrb.mxu3 %v8455_v37  ;;  %v11807_v28 = vld [vmem:[#allocation2 + $0x334] sm:$0xf0] }
 0x16c   :  { %v9220_v40 = vld [vmem:[#allocation2 + $0xaf0] sm:$0xf0] }
 0x16d   :  { %v11850_v42 = vld [vmem:[#allocation2 + $0x494] sm:$0xf]  ;;  %3026 = vmatpush.bf16.msra.mxu2 %v9255_v56  ;;  %v9223_v60 = vor.u32 %v12050_v39, %v9220_v40  ;;  %3001 = vmatpush.bf16.msrb.mxu1 %v8711_v38  ;;  %v8330_v38 = vld [vmem:[#allocation2 + $0x3d8] sm:$0xf]  ;;  %v8075_v40 = vor.u32 %v11767_v27, %v8074_v26 }
 0x16e   :  { %v8420_v46 = vld [vmem:[#allocation2 + $0x4b0] sm:$0xf0]  ;;  %3014 = vmatpush.bf16.msrb.mxu0 %v8967_v43  ;;  %v11959_v43 = vld [vmem:[#allocation2 + $0x7f4] sm:$0xf0]  ;;  %v8331_v58 = vor.u32 %v11831_v41, %v8330_v38  ;;  %v13016_v41 = vld [vmem:[#allocation4] sm:$0xff] }
 0x16f   :  { %v11914_v47 = vld [vmem:[#allocation2 + $0x694] sm:$0xf]  ;;  %v8423_v63 = vor.u32 %v11850_v42, %v8420_v46  ;;  %v8842_v42 = vld [vmem:[#allocation2 + $0x7d8] sm:$0xf] }
 0x170   :  { %v8676_v49 = vld [vmem:[#allocation2 + $0x6b0] sm:$0xf0]  ;;  %v8234_v27 = vld [vmem:[#allocation2 + $0x318] sm:$0xf] }
 0x171   :  { %v11978_v52 = vld [vmem:[#allocation2 + $0x894] sm:$0xf]  ;;  %v8679_v0 = vor.u32 %v11914_v47, %v8676_v49  ;;  %3027 = vmatpush.bf16.msra.mxu2 %v9223_v60  ;;  %2989 = vmatpush.bf16.msrb.mxu3 %v8423_v63  ;;  %v8042_v47 = vld [vmem:[#allocation2 + $0x198] sm:$0xf]  ;;  %v8843_v60 = vor.u32 %v11959_v43, %v8842_v42  ;;  %v2774_v63 = vpop.f32.mrf.mxu0  ;;  %v526_v42 = vperm.slane %v13016_v41, 3 }
 0x172   :  { %v8932_v54 = vld [vmem:[#allocation2 + $0x8b0] sm:$0xf0]  ;;  %v11759_v49 = vld [vmem:[#allocation2 + $0x1b4] sm:$0xf0] }
 0x173   :  { %v12042_v2 = vld [vmem:[#allocation2 + $0xa94] sm:$0xf]  ;;  %v8935_v4 = vor.u32 %v11978_v52, %v8932_v54  ;;  %3002 = vmatpush.bf16.msrb.mxu1 %v8679_v0  ;;  %v8554_v52 = vld [vmem:[#allocation2 + $0x598] sm:$0xf]  ;;  %v8043_v0 = vor.u32 %v11759_v49, %v8042_v47  ;;  %v2785_v63 = vpop.f32.mrf.mxu2 }
 0x174   :  { %v9188_v59 = vld [vmem:[#allocation2 + $0xab0] sm:$0xf0]  ;;  %v11887_v54 = vld [vmem:[#allocation2 + $0x5b4] sm:$0xf0] }
 0x175   :  { %v11842_v3 = vld [vmem:[#allocation2 + $0x454] sm:$0xf]  ;;  %v9191_v13 = vor.u32 %v12042_v2, %v9188_v59  ;;  %3015 = vmatpush.bf16.msrb.mxu0 %v8935_v4  ;;  %v8810_v2 = vld [vmem:[#allocation2 + $0x798] sm:$0xf] }
 0x176   :  { %v8388_v5 = vld [vmem:[#allocation2 + $0x470] sm:$0xf0]  ;;  %v11951_v59 = vld [vmem:[#allocation2 + $0x7b4] sm:$0xf0] }
 0x177   :  { %v11906_v6 = vld [vmem:[#allocation2 + $0x654] sm:$0xf]  ;;  %v8391_v16 = vor.u32 %v11842_v3, %v8388_v5  ;;  %3028 = vmatpush.bf16.msra.mxu2 %v9191_v13  ;;  %v8555_v3 = vor.u32 %v11887_v54, %v8554_v52  ;;  %v8010_v4 = vld [vmem:[#allocation2 + $0x158] sm:$0xf]  ;;  %v2759_v54 = vpop.f32.mrf.mxu3 }
 0x178   :  { %v8644_v8 = vld [vmem:[#allocation2 + $0x670] sm:$0xf0]  ;;  %v11751_v5 = vld [vmem:[#allocation2 + $0x174] sm:$0xf0] }
 0x179   :  { %v11970_v10 = vld [vmem:[#allocation2 + $0x854] sm:$0xf]  ;;  %v8647_v12 = vor.u32 %v11906_v6, %v8644_v8  ;;  %2990 = vmatpush.bf16.msrb.mxu3 %v8391_v16  ;;  %v8522_v6 = vld [vmem:[#allocation2 + $0x558] sm:$0xf] }
 0x17a   :  { %v8900_v11 = vld [vmem:[#allocation2 + $0x870] sm:$0xf0]  ;;  %v11879_v8 = vld [vmem:[#allocation2 + $0x574] sm:$0xf0] }
 0x17b   :  { %v12034_v14 = vld [vmem:[#allocation2 + $0xa54] sm:$0xf]  ;;  %v8903_v21 = vor.u32 %v11970_v10, %v8900_v11  ;;  %3003 = vmatpush.bf16.msrb.mxu1 %v8647_v12  ;;  %v8299_v10 = vor.u32 %v11823_v1, %v8298_v62  ;;  %v8811_v11 = vor.u32 %v11951_v59, %v8810_v2  ;;  %v8266_v13 = vld [vmem:[#allocation2 + $0x358] sm:$0xf]  ;;  %v2786_v59 = vadd.f32 %v2785_v63, %v526_v42 }
 0x17c   :  { %v9156_v15 = vld [vmem:[#allocation2 + $0xa70] sm:$0xf0]  ;;  %v11815_v16 = vld [vmem:[#allocation2 + $0x374] sm:$0xf0] }
 0x17d   :  { %v11834_v17 = vld [vmem:[#allocation2 + $0x414] sm:$0xf]  ;;  %v9159_v29 = vor.u32 %v12034_v14, %v9156_v15  ;;  %3016 = vmatpush.bf16.msrb.mxu0 %v8903_v21  ;;  %v2746_v14 = vpop.f32.mrf.mxu1  ;;  %v8011_v15 = vor.u32 %v11751_v5, %v8010_v4  ;;  %v8778_v12 = vld [vmem:[#allocation2 + $0x758] sm:$0xf]  ;;  %v8267_v25 = vor.u32 %v11815_v16, %v8266_v13 }
 0x17e   :  { %v8356_v18 = vld [vmem:[#allocation2 + $0x430] sm:$0xf0]  ;;  %v7978_v21 = vld [vmem:[#allocation2 + $0x118] sm:$0xf] }
 0x17f   :  { %v11898_v19 = vld [vmem:[#allocation2 + $0x614] sm:$0xf]  ;;  %v8359_v34 = vor.u32 %v11834_v17, %v8356_v18  ;;  %3029 = vmatpush.bf16.msra.mxu2 %v9159_v29  ;;  %v11943_v17 = vld [vmem:[#allocation2 + $0x774] sm:$0xf0]  ;;  %v2747_v18 = vadd.f32 %v2746_v14, %v13007_v9 }
 0x180   :  { %v8612_v22 = vld [vmem:[#allocation2 + $0x630] sm:$0xf0]  ;;  %v8779_v26 = vor.u32 %v11943_v17, %v8778_v12  ;;  %v8746_v29 = vld [vmem:[#allocation2 + $0x718] sm:$0xf] }
 0x181   :  { %v11962_v23 = vld [vmem:[#allocation2 + $0x814] sm:$0xf]  ;;  %v8615_v36 = vor.u32 %v11898_v19, %v8612_v22  ;;  %2991 = vmatpush.bf16.msrb.mxu3 %v8359_v34  ;;  %v8523_v19 = vor.u32 %v11879_v8, %v8522_v6  ;;  %v11743_v22 = vld [vmem:[#allocation2 + $0x134] sm:$0xf0]  ;;  %v2798_v34 = vpop.f32.mrf.mxu0  ;;  %v8747_v38 = vor.u32 %v11935_v31, %v8746_v29  ;;  %v2761_v31 = vpop.f32.mrf.mxu3 }
 0x182   :  { %v8868_v24 = vld [vmem:[#allocation2 + $0x830] sm:$0xf0]  ;;  %v7979_v61 = vor.u32 %v11743_v22, %v7978_v21  ;;  %v11727_v52 = vld [vmem:[#allocation2 + $0xb4] sm:$0xf0]  ;;  %v13022_v14 = vadd.f32 %v2798_v34, %v2786_v59 }
 0x183   :  { %v12090_v32 = vld [vmem:[#allocation2 + $0xc14] sm:$0xf]  ;;  %v8871_v39 = vor.u32 %v11962_v23, %v8868_v24  ;;  %3004 = vmatpush.bf16.msrb.mxu1 %v8615_v36  ;;  %v8490_v23 = vld [vmem:[#allocation2 + $0x518] sm:$0xf] }
 0x184   :  { %v9380_v33 = vld [vmem:[#allocation2 + $0xc30] sm:$0xf0]  ;;  %2992 = vmatmul.bf16.vlgmr.msrb.gmra.mxu3 %v12921_v51  ;;  %v11871_v24 = vld [vmem:[#allocation2 + $0x534] sm:$0xf0] }
 0x185   :  { %v12026_v56 = vld [vmem:[#allocation2 + $0xa14] sm:$0xf]  ;;  %v9383_v46 = vor.u32 %v12090_v32, %v9380_v33  ;;  %3017 = vmatpush.bf16.msrb.mxu0 %v8871_v39  ;;  %v8491_v9 = vor.u32 %v11871_v24, %v8490_v23  ;;  %v7946_v32 = vld [vmem:[#allocation2 + $0xd8] sm:$0xf]  ;;  %v2748_v47 = vpop.f32.mrf.mxu1 }
 0x186   :  { %v9124_v37 = vld [vmem:[#allocation2 + $0xa30] sm:$0xf0]  ;;  %3005 = vmatmul.bf16.vlgmr.msrb.gmra.mxu1 %v12925_v57  ;;  %v11735_v33 = vld [vmem:[#allocation2 + $0xf4] sm:$0xf0]  ;;  %v11763_v47 = vld [vmem:[#allocation2 + $0x1dc] sm:$0xf] }
 0x187   :  { %v9127_v50 = vor.u32 %v12026_v56, %v9124_v37  ;;  %3049 = vmatpush.bf16.msra.mxu1 %v8075_v40  ;;  %3043 = vmatpush.bf16.msra.mxu3 %v9383_v46  ;;  %v8458_v36 = vld [vmem:[#allocation2 + $0x4d8] sm:$0xf]  ;;  %v8235_v37 = vor.u32 %v11807_v28, %v8234_v27  ;;  %v7947_v43 = vor.u32 %v11735_v33, %v7946_v32 }
 0x188   :  { %3018 = vmatmul.bf16.vlgmr.msrb.gmra.mxu0 %v12949_v30  ;;  %v11863_v56 = vld [vmem:[#allocation2 + $0x4f4] sm:$0xf0] }
 0x189   :  { %3075 = vmatpush.bf16.msra.mxu0 %v8587_v44  ;;  %3030 = vmatpush.bf16.msra.mxu2 %v9127_v50  ;;  %v8202_v39 = vld [vmem:[#allocation2 + $0x2d8] sm:$0xf]  ;;  %v8459_v49 = vor.u32 %v11863_v56, %v8458_v36 }
 0x18a   :  { %v11799_v40 = vld [vmem:[#allocation2 + $0x2f4] sm:$0xf0] }
 0x18b   :  { %3062 = vmatpush.bf16.msrb.mxu3 %v8331_v58  ;;  %3050 = vmatpush.bf16.msra.mxu1 %v8043_v0  ;;  %v8714_v44 = vld [vmem:[#allocation2 + $0x6d8] sm:$0xf]  ;;  %v8203_v58 = vor.u32 %v11799_v40, %v8202_v39  ;;  %v2760_v0 = vadd.f32 %v2759_v54, %v2747_v18  ;;  %v8332_v54 = vld [vmem:[#allocation2 + $0x3f8] sm:$0xf0] }
 0x18c   :  { %3031 = vmatmul.bf16.vlgmr.msra.gmra.mxu2 %v12951_v35  ;;  %v11927_v46 = vld [vmem:[#allocation2 + $0x6f4] sm:$0xf0] }
 0x18d   :  { %3088 = vmatpush.bf16.msrb.mxu2 %v8843_v60  ;;  %3076 = vmatpush.bf16.msra.mxu0 %v8555_v3  ;;  %v7914_v50 = vld [vmem:[#allocation2 + $0x98] sm:$0xf]  ;;  %v8715_v1 = vor.u32 %v11927_v46, %v8714_v44  ;;  %v13020_v8 = vadd.f32 %v13009_v20, %v2760_v0 }
 0x18e   :  { %v8426_v60 = vld [vmem:[#allocation2 + $0x498] sm:$0xf]  ;;  %v7915_v3 = vor.u32 %v11727_v52, %v7914_v50  ;;  %v8076_v50 = vld [vmem:[#allocation2 + $0x1f8] sm:$0xf0] }
 0x18f   :  { %3063 = vmatpush.bf16.msrb.mxu3 %v8299_v10  ;;  %3051 = vmatpush.bf16.msra.mxu1 %v8011_v15  ;;  %v11855_v62 = vld [vmem:[#allocation2 + $0x4b4] sm:$0xf0]  ;;  %v2800_v15 = vpop.f32.mrf.mxu0  ;;  %v11827_v52 = vld [vmem:[#allocation2 + $0x3dc] sm:$0xf] }
 0x190   :  { %v8170_v2 = vld [vmem:[#allocation2 + $0x298] sm:$0xf]  ;;  %v8427_v10 = vor.u32 %v11855_v62, %v8426_v60 }
 0x191   :  { %3089 = vmatpush.bf16.msrb.mxu2 %v8811_v11  ;;  %3077 = vmatpush.bf16.msra.mxu0 %v8523_v19  ;;  %v11791_v4 = vld [vmem:[#allocation2 + $0x2b4] sm:$0xf0] }
 0x192   :  { %v8682_v5 = vld [vmem:[#allocation2 + $0x698] sm:$0xf]  ;;  %v8171_v17 = vor.u32 %v11791_v4, %v8170_v2  ;;  %v8335_v2 = vor.u32 %v11827_v52, %v8332_v54  ;;  %v11755_v4 = vld [vmem:[#allocation2 + $0x19c] sm:$0xf] }
 0x193   :  { %3064 = vmatpush.bf16.msrb.mxu3 %v8267_v25  ;;  %3052 = vmatpush.bf16.msra.mxu1 %v7979_v61  ;;  %v11919_v6 = vld [vmem:[#allocation2 + $0x6b4] sm:$0xf0]  ;;  %v7948_v52 = vld [vmem:[#allocation2 + $0xf8] sm:$0xf0] }
 0x194   :  { %v7882_v11 = vld [vmem:[#allocation2 + $0x58] sm:$0xf]  ;;  %9397 = vmatmul.msk.bf16.vlgmr.msra.gmra.mxu3 %vm2499_vm0, %v12939_v45  ;;  %v8683_v18 = vor.u32 %v11919_v6, %v8682_v5  ;;  %v8044_v6 = vld [vmem:[#allocation2 + $0x1b8] sm:$0xf0] }
 0x195   :  { %3090 = vmatpush.bf16.msrb.mxu2 %v8779_v26  ;;  %3078 = vmatpush.bf16.msra.mxu0 %v8491_v9  ;;  %v11719_v13 = vld [vmem:[#allocation2 + $0x74] sm:$0xf0]  ;;  %v2787_v9 = vpop.f32.mrf.mxu2  ;;  %v11795_v54 = vld [vmem:[#allocation2 + $0x2dc] sm:$0xf] }
 0x196   :  { %v8394_v16 = vld [vmem:[#allocation2 + $0x458] sm:$0xf]  ;;  %v7883_v21 = vor.u32 %v11719_v13, %v7882_v11  ;;  %v8300_v11 = vld [vmem:[#allocation2 + $0x3b8] sm:$0xf0] }
 0x197   :  { %3065 = vmatpush.bf16.msrb.mxu3 %v8235_v37  ;;  %3053 = vmatpush.bf16.msra.mxu1 %v7947_v43  ;;  %v11847_v12 = vld [vmem:[#allocation2 + $0x474] sm:$0xf0] }
 0x198   :  { %v8138_v19 = vld [vmem:[#allocation2 + $0x258] sm:$0xf]  ;;  %v8395_v24 = vor.u32 %v11847_v12, %v8394_v16  ;;  %v8047_v12 = vor.u32 %v11755_v4, %v8044_v6  ;;  %v11723_v6 = vld [vmem:[#allocation2 + $0x9c] sm:$0xf] }
 0x199   :  { %3091 = vmatpush.bf16.msrb.mxu2 %v8747_v38  ;;  %3079 = vmatpush.bf16.msra.mxu0 %v8459_v49  ;;  %v11783_v20 = vld [vmem:[#allocation2 + $0x274] sm:$0xf0] }
 0x19a   :  { %v8650_v22 = vld [vmem:[#allocation2 + $0x658] sm:$0xf]  ;;  %v8139_v32 = vor.u32 %v11783_v20, %v8138_v19  ;;  %v2811_v20 = vpop.f32.mrf.mxu1 }
 0x19b   :  { %3066 = vmatpush.bf16.msrb.mxu3 %v8203_v58  ;;  %3054 = vmatpush.bf16.msra.mxu1 %v7915_v3  ;;  %v11911_v23 = vld [vmem:[#allocation2 + $0x674] sm:$0xf0] }
 0x19c   :  { %v7850_v25 = vld [vmem:[#allocation2 + $0x18] sm:$0xf]  ;;  %v8651_v33 = vor.u32 %v11911_v23, %v8650_v22  ;;  %v8012_v23 = vld [vmem:[#allocation2 + $0x178] sm:$0xf0] }
 0x19d   :  { %3092 = vmatpush.bf16.msrb.mxu2 %v8715_v1  ;;  %3080 = vmatpush.bf16.msra.mxu0 %v8427_v10  ;;  %v11711_v26 = vld [vmem:[#allocation2 + $0x34] sm:$0xf0]  ;;  %v8079_v1 = vor.u32 %v11763_v47, %v8076_v50  ;;  %v11819_v10 = vld [vmem:[#allocation2 + $0x39c] sm:$0xf] }
 0x19e   :  { %v8362_v27 = vld [vmem:[#allocation2 + $0x418] sm:$0xf]  ;;  %v7851_v37 = vor.u32 %v11711_v26, %v7850_v25  ;;  %v8268_v25 = vld [vmem:[#allocation2 + $0x378] sm:$0xf0]  ;;  %v2812_v26 = vadd.f32 %v2811_v20, %v13022_v14 }
 0x19f   :  { %v11839_v61 = vld [vmem:[#allocation2 + $0x434] sm:$0xf0]  ;;  %3067 = vmatpush.bf16.msrb.mxu3 %v8171_v17  ;;  %3055 = vmatpush.bf16.msra.mxu1 %v7883_v21  ;;  %v8303_v17 = vor.u32 %v11819_v10, %v8300_v11  ;;  %v11747_v21 = vld [vmem:[#allocation2 + $0x15c] sm:$0xf] }
 0x1a0   :  { %v9098_v28 = vld [vmem:[#allocation2 + $0x9d8] sm:$0xf]  ;;  %v8363_v42 = vor.u32 %v11839_v61, %v8362_v27  ;;  %v8236_v14 = vld [vmem:[#allocation2 + $0x338] sm:$0xf0] }
 0x1a1   :  { %v12023_v29 = vld [vmem:[#allocation2 + $0x9f4] sm:$0xf0]  ;;  %3093 = vmatpush.bf16.msrb.mxu2 %v8683_v18  ;;  %3081 = vmatpush.bf16.msra.mxu0 %v8395_v24  ;;  %v11811_v24 = vld [vmem:[#allocation2 + $0x35c] sm:$0xf] }
 0x1a2   :  { %v8106_v34 = vld [vmem:[#allocation2 + $0x218] sm:$0xf]  ;;  %v9099_v43 = vor.u32 %v12023_v29, %v9098_v28  ;;  %v8015_v29 = vor.u32 %v11747_v21, %v8012_v23  ;;  %v8271_v31 = vor.u32 %v11811_v24, %v8268_v25  ;;  %v11731_v47 = vld [vmem:[#allocation2 + $0xdc] sm:$0xf] }
 0x1a3   :  { %v9386_v36 = vld [vmem:[#allocation2 + $0xc18] sm:$0xf]  ;;  %3068 = vmatpush.bf16.msrb.mxu3 %v8139_v32  ;;  %3056 = vmatpush.bf16.msra.mxu1 %v7851_v37  ;;  %v7916_v11 = vld [vmem:[#allocation2 + $0xb8] sm:$0xf0] }
 0x1a4   :  { %v12095_v56 = vld [vmem:[#allocation2 + $0xc34] sm:$0xf0]  ;;  %v7919_v20 = vor.u32 %v11723_v6, %v7916_v11  ;;  %v11715_v25 = vld [vmem:[#allocation2 + $0x5c] sm:$0xf] }
 0x1a5   :  { %v11775_v38 = vld [vmem:[#allocation2 + $0x234] sm:$0xf0]  ;;  %v9387_v49 = vor.u32 %v12095_v56, %v9386_v36  ;;  %3094 = vmatpush.bf16.msrb.mxu2 %v8651_v33  ;;  %3082 = vmatpush.bf16.msra.mxu0 %v8363_v42  ;;  %v11739_v33 = vld [vmem:[#allocation2 + $0x11c] sm:$0xf] }
 0x1a6   :  { %v8618_v39 = vld [vmem:[#allocation2 + $0x618] sm:$0xf]  ;;  %v8107_v58 = vor.u32 %v11775_v38, %v8106_v34  ;;  %3057 = vmatmul.bf16.vlgmr.msra.gmra.mxu1 %v12923_v55  ;;  %v7980_v36 = vld [vmem:[#allocation2 + $0x138] sm:$0xf0] }
 0x1a7   :  { %v11903_v40 = vld [vmem:[#allocation2 + $0x634] sm:$0xf0]  ;;  %3101 = vmatpush.bf16.msrb.mxu1 %v9099_v43  ;;  %v11803_v56 = vld [vmem:[#allocation2 + $0x31c] sm:$0xf]  ;;  %v7983_v42 = vor.u32 %v11739_v33, %v7980_v36 }
 0x1a8   :  { %v9354_v44 = vld [vmem:[#allocation2 + $0xbd8] sm:$0xf]  ;;  %v8619_v60 = vor.u32 %v11903_v40, %v8618_v39  ;;  %3069 = vmatpush.bf16.msrb.mxu3 %v8107_v58  ;;  %3083 = vmatmul.bf16.vlgmr.msra.gmra.mxu0 %v12921_v51  ;;  %v2850_v39 = vpop.f32.mrf.mxu0  ;;  %v8239_v43 = vor.u32 %v11803_v56, %v8236_v14  ;;  %v8204_v58 = vld [vmem:[#allocation2 + $0x2f8] sm:$0xf0] }
 0x1a9   :  { %v12087_v46 = vld [vmem:[#allocation2 + $0xbf4] sm:$0xf0]  ;;  %3134 = vmatpush.bf16.msrb.mxu0 %v9387_v49  ;;  %v2813_v49 = vpop.f32.mrf.mxu1  ;;  %v8588_v36 = vld [vmem:[#allocation2 + $0x5f8] sm:$0xf0] }
 0x1aa   :  { %v9066_v62 = vld [vmem:[#allocation2 + $0x998] sm:$0xf]  ;;  %v9355_v0 = vor.u32 %v12087_v46, %v9354_v44  ;;  %3095 = vmatpush.bf16.msrb.mxu2 %v8619_v60  ;;  %v8812_v11 = vld [vmem:[#allocation2 + $0x7b8] sm:$0xf0] }
 0x1ab   :  { %v12015_v63 = vld [vmem:[#allocation2 + $0x9b4] sm:$0xf0]  ;;  %3070 = vmatmul.bf16.vlgmr.msrb.gmra.mxu3 %v12932_v7 }
 0x1ac   :  { %v9322_v59 = vld [vmem:[#allocation2 + $0xb98] sm:$0xf]  ;;  %v9067_v5 = vor.u32 %v12015_v63, %v9066_v62  ;;  %3114 = vmatpush.bf16.msra.mxu3 %v9355_v0  ;;  %v2824_v63 = vpop.f32.mrf.mxu3  ;;  %v2837_v0 = vpop.f32.mrf.mxu2 }
 0x1ad   :  { %v12079_v3 = vld [vmem:[#allocation2 + $0xbb4] sm:$0xf0]  ;;  %3153 = vmatpush.bf16.msra.mxu0 %v8335_v2  ;;  %3096 = vmatmul.bf16.vlgmr.msrb.gmra.mxu2 %v12925_v57  ;;  %v2825_v2 = vadd.f32 %v2824_v63, %v2812_v26  ;;  %v9356_v63 = vld [vmem:[#allocation2 + $0xbf8] sm:$0xf0] }
 0x1ae   :  { %v9034_v13 = vld [vmem:[#allocation2 + $0x958] sm:$0xf]  ;;  %v9323_v16 = vor.u32 %v12079_v3, %v9322_v59  ;;  %3140 = vmatpush.bf16.msra.mxu2 %v8079_v1  ;;  %3102 = vmatpush.bf16.msrb.mxu1 %v9067_v5  ;;  %v7951_v59 = vor.u32 %v11731_v47, %v7948_v52  ;;  %v8207_v3 = vor.u32 %v11795_v54, %v8204_v58  ;;  %v8108_v47 = vld [vmem:[#allocation2 + $0x238] sm:$0xf0] }
 0x1af   :  { %v12007_v15 = vld [vmem:[#allocation2 + $0x974] sm:$0xf0]  ;;  %v8844_v52 = vld [vmem:[#allocation2 + $0x7f8] sm:$0xf0] }
 0x1b0   :  { %v9290_v18 = vld [vmem:[#allocation2 + $0xb58] sm:$0xf]  ;;  %v9035_v22 = vor.u32 %v12007_v15, %v9034_v13  ;;  %3115 = vmatpush.bf16.msra.mxu3 %v9323_v16  ;;  %v11787_v13 = vld [vmem:[#allocation2 + $0x29c] sm:$0xf]  ;;  %v2838_v16 = vadd.f32 %v2837_v0, %v2825_v2 }
 0x1b1   :  { %v12071_v19 = vld [vmem:[#allocation2 + $0xb74] sm:$0xf0]  ;;  %3154 = vmatpush.bf16.msra.mxu0 %v8303_v17  ;;  %v8172_v15 = vld [vmem:[#allocation2 + $0x2b8] sm:$0xf0]  ;;  %v2863_v26 = vpop.f32.mrf.mxu1 }
 0x1b2   :  { %v9002_v27 = vld [vmem:[#allocation2 + $0x918] sm:$0xf]  ;;  %v9291_v28 = vor.u32 %v12071_v19, %v9290_v18  ;;  %3141 = vmatpush.bf16.msra.mxu2 %v8047_v12  ;;  %3103 = vmatpush.bf16.msrb.mxu1 %v9035_v22  ;;  %v2852_v18 = vpop.f32.mrf.mxu0  ;;  %v2851_v21 = vadd.f32 %v2850_v39, %v2838_v16  ;;  %v8175_v22 = vor.u32 %v11787_v13, %v8172_v15  ;;  %v12019_v54 = vld [vmem:[#allocation2 + $0x9dc] sm:$0xf] }
 0x1b3   :  { %v11999_v61 = vld [vmem:[#allocation2 + $0x934] sm:$0xf0]  ;;  %v8556_v2 = vld [vmem:[#allocation2 + $0x5b8] sm:$0xf0] }
 0x1b4   :  { %v9258_v9 = vld [vmem:[#allocation2 + $0xb18] sm:$0xf]  ;;  %v9003_v34 = vor.u32 %v11999_v61, %v9002_v27  ;;  %3116 = vmatpush.bf16.msra.mxu3 %v9291_v28  ;;  %v7884_v61 = vld [vmem:[#allocation2 + $0x78] sm:$0xf0]  ;;  %v2839_v56 = vpop.f32.mrf.mxu2  ;;  %v2826_v14 = vpop.f32.mrf.mxu3 }
 0x1b5   :  { %v12063_v32 = vld [vmem:[#allocation2 + $0xb34] sm:$0xf0]  ;;  %3155 = vmatpush.bf16.msra.mxu0 %v8271_v31  ;;  %v11779_v28 = vld [vmem:[#allocation2 + $0x25c] sm:$0xf]  ;;  %v13033_v31 = vadd.f32 %v2863_v26, %v2851_v21 }
 0x1b6   :  { %v8970_v37 = vld [vmem:[#allocation2 + $0x8d8] sm:$0xf]  ;;  %v9259_v40 = vor.u32 %v12063_v32, %v9258_v9  ;;  %3142 = vmatpush.bf16.msra.mxu2 %v8015_v29  ;;  %3104 = vmatpush.bf16.msrb.mxu1 %v9003_v34  ;;  %v8140_v29 = vld [vmem:[#allocation2 + $0x278] sm:$0xf0] }
 0x1b7   :  { %v11991_v38 = vld [vmem:[#allocation2 + $0x8f4] sm:$0xf0]  ;;  %v11891_v34 = vld [vmem:[#allocation2 + $0x5dc] sm:$0xf] }
 0x1b8   :  { %v9226_v44 = vld [vmem:[#allocation2 + $0xad8] sm:$0xf]  ;;  %v8971_v50 = vor.u32 %v11991_v38, %v8970_v37  ;;  %3117 = vmatpush.bf16.msra.mxu3 %v9259_v40  ;;  %9398 = vmatmul.msk.bf16.vlgmr.msrb.gmra.mxu0 %vm2499_vm0, %v12939_v45  ;;  %v7887_v37 = vor.u32 %v11715_v25, %v7884_v61  ;;  %v8143_v38 = vor.u32 %v11779_v28, %v8140_v29  ;;  %v12011_v13 = vld [vmem:[#allocation2 + $0x99c] sm:$0xf] }
 0x1b9   :  { %v12055_v46 = vld [vmem:[#allocation2 + $0xaf4] sm:$0xf0]  ;;  %3156 = vmatpush.bf16.msra.mxu0 %v8239_v43  ;;  %v8591_v49 = vor.u32 %v11891_v34, %v8588_v36  ;;  %v9068_v16 = vld [vmem:[#allocation2 + $0x9b8] sm:$0xf0] }
 0x1ba   :  { %v8938_v60 = vld [vmem:[#allocation2 + $0x898] sm:$0xf]  ;;  %v9227_v1 = vor.u32 %v12055_v46, %v9226_v44  ;;  %3143 = vmatpush.bf16.msra.mxu2 %v7983_v42  ;;  %3105 = vmatpush.bf16.msrb.mxu1 %v8971_v50  ;;  %v11707_v42 = vld [vmem:[#allocation2 + $0x1c] sm:$0xf] }
 0x1bb   :  { %v11983_v62 = vld [vmem:[#allocation2 + $0x8b4] sm:$0xf0]  ;;  %v7852_v44 = vld [vmem:[#allocation2 + $0x38] sm:$0xf0] }
 0x1bc   :  { %v9194_v4 = vld [vmem:[#allocation2 + $0xa98] sm:$0xf]  ;;  %v8939_v10 = vor.u32 %v11983_v62, %v8938_v60  ;;  %3118 = vmatpush.bf16.msra.mxu3 %v9227_v1  ;;  %v11771_v46 = vld [vmem:[#allocation2 + $0x21c] sm:$0xf]  ;;  %v7855_v0 = vor.u32 %v11707_v42, %v7852_v44 }
 0x1bd   :  { %v12047_v5 = vld [vmem:[#allocation2 + $0xab4] sm:$0xf0]  ;;  %3157 = vmatpush.bf16.msra.mxu0 %v8207_v3  ;;  %v11955_v50 = vld [vmem:[#allocation2 + $0x7dc] sm:$0xf] }
 0x1be   :  { %v8906_v12 = vld [vmem:[#allocation2 + $0x858] sm:$0xf]  ;;  %v9195_v19 = vor.u32 %v12047_v5, %v9194_v4  ;;  %3144 = vmatpush.bf16.msra.mxu2 %v7951_v59  ;;  %3106 = vmatpush.bf16.msrb.mxu1 %v8939_v10  ;;  %v9100_v60 = vld [vmem:[#allocation2 + $0x9f8] sm:$0xf0]  ;;  %v8111_v59 = vor.u32 %v11771_v46, %v8108_v47  ;;  %v8847_v3 = vor.u32 %v11955_v50, %v8844_v52  ;;  %v2865_v4 = vpop.f32.mrf.mxu1  ;;  %v527_v46 = vperm.slane %v13016_v41, 4 }
 0x1bf   :  { %v11975_v17 = vld [vmem:[#allocation2 + $0x874] sm:$0xf0]  ;;  %v12083_v62 = vld [vmem:[#allocation2 + $0xbdc] sm:$0xf]  ;;  %v9103_v5 = vor.u32 %v12019_v54, %v9100_v60 }
 0x1c0   :  { %v9162_v23 = vld [vmem:[#allocation2 + $0xa58] sm:$0xf]  ;;  %v8907_v27 = vor.u32 %v11975_v17, %v8906_v12  ;;  %3119 = vmatpush.bf16.msra.mxu3 %v9195_v19  ;;  %v11883_v1 = vld [vmem:[#allocation2 + $0x59c] sm:$0xf]  ;;  %v9359_v6 = vor.u32 %v12083_v62, %v9356_v63 }
 0x1c1   :  { %v12039_v24 = vld [vmem:[#allocation2 + $0xa74] sm:$0xf0]  ;;  %3158 = vmatpush.bf16.msra.mxu0 %v8175_v22  ;;  %v11947_v10 = vld [vmem:[#allocation2 + $0x79c] sm:$0xf]  ;;  %v8559_v15 = vor.u32 %v11883_v1, %v8556_v2 }
 0x1c2   :  { %v8874_v9 = vld [vmem:[#allocation2 + $0x818] sm:$0xf]  ;;  %v9163_v33 = vor.u32 %v12039_v24, %v9162_v23  ;;  %3145 = vmatpush.bf16.msra.mxu2 %v7919_v20  ;;  %3107 = vmatpush.bf16.msrb.mxu1 %v8907_v27  ;;  %v12075_v12 = vld [vmem:[#allocation2 + $0xb9c] sm:$0xf]  ;;  %v8815_v21 = vor.u32 %v11947_v10, %v8812_v11  ;;  %v9071_v20 = vor.u32 %v12011_v13, %v9068_v16 }
 0x1c3   :  { %v11967_v32 = vld [vmem:[#allocation2 + $0x834] sm:$0xf0]  ;;  %v9324_v17 = vld [vmem:[#allocation2 + $0xbb8] sm:$0xf0] }
 0x1c4   :  { %v9130_v39 = vld [vmem:[#allocation2 + $0xa18] sm:$0xf]  ;;  %v8875_v43 = vor.u32 %v11967_v32, %v8874_v9  ;;  %3120 = vmatpush.bf16.msra.mxu3 %v9163_v33  ;;  %v11875_v18 = vld [vmem:[#allocation2 + $0x55c] sm:$0xf]  ;;  %v9327_v22 = vor.u32 %v12075_v12, %v9324_v17 }
 0x1c5   :  { %v12031_v40 = vld [vmem:[#allocation2 + $0xa34] sm:$0xf0]  ;;  %3159 = vmatpush.bf16.msra.mxu0 %v8143_v38  ;;  %v8524_v19 = vld [vmem:[#allocation2 + $0x578] sm:$0xf0] }
 0x1c6   :  { %v9131_v58 = vor.u32 %v12031_v40, %v9130_v39  ;;  %3146 = vmatpush.bf16.msra.mxu2 %v7887_v37  ;;  %3108 = vmatpush.bf16.msrb.mxu1 %v8875_v43  ;;  %v11939_v23 = vld [vmem:[#allocation2 + $0x75c] sm:$0xf]  ;;  %v8527_v26 = vor.u32 %v11875_v18, %v8524_v19  ;;  %v2889_v42 = vpop.f32.mrf.mxu1 }
 0x1c7   :  { %v8780_v24 = vld [vmem:[#allocation2 + $0x778] sm:$0xf0] }
 0x1c8   :  { %3121 = vmatpush.bf16.msra.mxu3 %v9131_v58  ;;  %v12003_v25 = vld [vmem:[#allocation2 + $0x95c] sm:$0xf]  ;;  %v8783_v32 = vor.u32 %v11939_v23, %v8780_v24 }
 0x1c9   :  { %3109 = vmatmul.bf16.vlgmr.msrb.gmra.mxu1 %v12949_v30  ;;  %3160 = vmatpush.bf16.msra.mxu0 %v8111_v59  ;;  %v9036_v27 = vld [vmem:[#allocation2 + $0x978] sm:$0xf0] }
 0x1ca   :  { %3166 = vmatpush.bf16.msra.mxu1 %v8591_v49  ;;  %3147 = vmatpush.bf16.msra.mxu2 %v7855_v0  ;;  %v12067_v61 = vld [vmem:[#allocation2 + $0xb5c] sm:$0xf]  ;;  %v9039_v33 = vor.u32 %v12003_v25, %v9036_v27  ;;  %v2876_v0 = vpop.f32.mrf.mxu3 }
 0x1cb   :  { %3122 = vmatmul.bf16.vlgmr.msra.gmra.mxu3 %v12951_v35  ;;  %v9292_v28 = vld [vmem:[#allocation2 + $0xb78] sm:$0xf0]  ;;  %v2877_v59 = vadd.f32 %v2876_v0, %v527_v46  ;;  %v12284_v0 = vld [vmem:[#allocation6 + $0x5dc] sm:$0xf0] }
 0x1cc   :  { %3179 = vmatpush.bf16.msrb.mxu3 %v8847_v3  ;;  %v11867_v29 = vld [vmem:[#allocation2 + $0x51c] sm:$0xf]  ;;  %3161 = vmatmul.bf16.vlgmr.msra.gmra.mxu0 %v12932_v7  ;;  %v9295_v34 = vor.u32 %v12067_v61, %v9292_v28  ;;  %v2902_v3 = vpop.f32.mrf.mxu2 }
 0x1cd   :  { %3205 = vmatpush.bf16.msrb.mxu0 %v9359_v6  ;;  %v8492_v9 = vld [vmem:[#allocation2 + $0x538] sm:$0xf0]  ;;  %3148 = vmatmul.bf16.vlgmr.msra.gmra.mxu2 %v12923_v55  ;;  %v2915_v55 = vpop.f32.mrf.mxu0  ;;  %v2890_v13 = vadd.f32 %v2889_v42, %v2877_v59  ;;  %v12348_v59 = vld [vmem:[#allocation6 + $0x7dc] sm:$0xf0] }
 0x1ce   :  { %3192 = vmatpush.bf16.msrb.mxu2 %v9103_v5  ;;  %3167 = vmatpush.bf16.msra.mxu1 %v8559_v15  ;;  %v11931_v36 = vld [vmem:[#allocation2 + $0x71c] sm:$0xf]  ;;  %v8495_v37 = vor.u32 %v11867_v29, %v8492_v9  ;;  %v2891_v18 = vpop.f32.mrf.mxu1 }
 0x1cf   :  { %v8748_v56 = vld [vmem:[#allocation2 + $0x738] sm:$0xf0]  ;;  %v10362_v18 = vld [vmem:[#allocation6 + $0x780] sm:$0xf] }
 0x1d0   :  { %3180 = vmatpush.bf16.msrb.mxu3 %v8815_v21  ;;  %v11995_v14 = vld [vmem:[#allocation2 + $0x91c] sm:$0xf]  ;;  %v8751_v7 = vor.u32 %v11931_v36, %v8748_v56 }
 0x1d1   :  { %3206 = vmatpush.bf16.msrb.mxu0 %v9327_v22  ;;  %v9004_v38 = vld [vmem:[#allocation2 + $0x938] sm:$0xf0]  ;;  %v2903_v22 = vadd.f32 %v2902_v3, %v2890_v13 }
 0x1d2   :  { %3193 = vmatpush.bf16.msrb.mxu2 %v9071_v20  ;;  %3168 = vmatpush.bf16.msra.mxu1 %v8527_v26  ;;  %v12059_v39 = vld [vmem:[#allocation2 + $0xb1c] sm:$0xf]  ;;  %v9007_v47 = vor.u32 %v11995_v14, %v9004_v38  ;;  %v2878_v56 = vpop.f32.mrf.mxu3 }
 0x1d3   :  { %v9260_v40 = vld [vmem:[#allocation2 + $0xb38] sm:$0xf0]  ;;  %v13040_v28 = vadd.f32 %v2915_v55, %v2903_v22  ;;  %v12132_v56 = vld [vmem:[#allocation6 + $0x11c] sm:$0xf0] }
 0x1d4   :  { %v11859_v43 = vld [vmem:[#allocation2 + $0x4dc] sm:$0xf]  ;;  %3181 = vmatpush.bf16.msrb.mxu3 %v8783_v32  ;;  %v9263_v49 = vor.u32 %v12059_v39, %v9260_v40  ;;  %v2904_v14 = vpop.f32.mrf.mxu2 }
 0x1d5   :  { %v8460_v44 = vld [vmem:[#allocation2 + $0x4f8] sm:$0xf0]  ;;  %3207 = vmatpush.bf16.msrb.mxu0 %v9295_v34  ;;  %v2917_v20 = vpop.f32.mrf.mxu0  ;;  %v9786_v14 = vld [vmem:[#allocation6 + $0x300] sm:$0xf] }
 0x1d6   :  { %3194 = vmatpush.bf16.msrb.mxu2 %v9039_v33  ;;  %v11923_v50 = vld [vmem:[#allocation2 + $0x6dc] sm:$0xf]  ;;  %3169 = vmatpush.bf16.msra.mxu1 %v8495_v37  ;;  %v8463_v58 = vor.u32 %v11859_v43, %v8460_v44 }
 0x1d7   :  { %v8716_v52 = vld [vmem:[#allocation2 + $0x6f8] sm:$0xf0] }
 0x1d8   :  { %v11987_v54 = vld [vmem:[#allocation2 + $0x8dc] sm:$0xf]  ;;  %3182 = vmatpush.bf16.msrb.mxu3 %v8751_v7  ;;  %v8719_v4 = vor.u32 %v11923_v50, %v8716_v52  ;;  %v9626_v52 = vld [vmem:[#allocation6 + $0x1c0] sm:$0xf] }
 0x1d9   :  { %v8972_v60 = vld [vmem:[#allocation2 + $0x8f8] sm:$0xf0]  ;;  %3208 = vmatpush.bf16.msrb.mxu0 %v9263_v49 }
 0x1da   :  { %v12051_v62 = vld [vmem:[#allocation2 + $0xadc] sm:$0xf]  ;;  %3195 = vmatpush.bf16.msrb.mxu2 %v9007_v47  ;;  %v8975_v41 = vor.u32 %v11987_v54, %v8972_v60  ;;  %3170 = vmatpush.bf16.msra.mxu1 %v8463_v58  ;;  %v12156_v54 = vld [vmem:[#allocation6 + $0x1dc] sm:$0xf0] }
 0x1db   :  { %v9228_v63 = vld [vmem:[#allocation2 + $0xaf8] sm:$0xf0]  ;;  %v9882_v58 = vld [vmem:[#allocation6 + $0x3c0] sm:$0xf] }
 0x1dc   :  { %v11851_v1 = vld [vmem:[#allocation2 + $0x49c] sm:$0xf]  ;;  %v9231_v5 = vor.u32 %v12051_v62, %v9228_v63  ;;  %3183 = vmatpush.bf16.msrb.mxu3 %v8719_v4  ;;  %v12220_v62 = vld [vmem:[#allocation6 + $0x3dc] sm:$0xf0]  ;;  %v9627_v4 = vor.u32 %v12156_v54, %v9626_v52 }
 0x1dd   :  { %v8428_v2 = vld [vmem:[#allocation2 + $0x4b8] sm:$0xf0]  ;;  %v10138_v63 = vld [vmem:[#allocation6 + $0x5c0] sm:$0xf] }
 0x1de   :  { %v11915_v6 = vld [vmem:[#allocation2 + $0x69c] sm:$0xf]  ;;  %v8431_v15 = vor.u32 %v11851_v1, %v8428_v2  ;;  %3196 = vmatpush.bf16.msrb.mxu2 %v8975_v41  ;;  %3209 = vmatpush.bf16.msrb.mxu0 %v9231_v5  ;;  %v10394_v2 = vld [vmem:[#allocation6 + $0x7c0] sm:$0xf]  ;;  %v9883_v41 = vor.u32 %v12220_v62, %v9882_v58  ;;  %v10139_v5 = vor.u32 %v12284_v0, %v10138_v63 }
 0x1df   :  { %v8684_v10 = vld [vmem:[#allocation2 + $0x6b8] sm:$0xf0]  ;;  %v10395_v13 = vor.u32 %v12348_v59, %v10394_v2  ;;  %v12188_v52 = vld [vmem:[#allocation6 + $0x2dc] sm:$0xf0] }
 0x1e0   :  { %v11979_v11 = vld [vmem:[#allocation2 + $0x89c] sm:$0xf]  ;;  %v8687_v23 = vor.u32 %v11915_v6, %v8684_v10  ;;  %3171 = vmatpush.bf16.msra.mxu1 %v8431_v15  ;;  %v9594_v6 = vld [vmem:[#allocation6 + $0x180] sm:$0xf] }
 0x1e1   :  { %v8940_v16 = vld [vmem:[#allocation2 + $0x8b8] sm:$0xf0]  ;;  %v12148_v10 = vld [vmem:[#allocation6 + $0x19c] sm:$0xf0] }
 0x1e2   :  { %v12043_v12 = vld [vmem:[#allocation2 + $0xa9c] sm:$0xf]  ;;  %v8943_v24 = vor.u32 %v11979_v11, %v8940_v16  ;;  %3184 = vmatpush.bf16.msrb.mxu3 %v8687_v23  ;;  %v9850_v11 = vld [vmem:[#allocation6 + $0x380] sm:$0xf] }
 0x1e3   :  { %v9196_v17 = vld [vmem:[#allocation2 + $0xab8] sm:$0xf0]  ;;  %v12212_v15 = vld [vmem:[#allocation6 + $0x39c] sm:$0xf0] }
 0x1e4   :  { %v11843_v19 = vld [vmem:[#allocation2 + $0x45c] sm:$0xf]  ;;  %v9199_v25 = vor.u32 %v12043_v12, %v9196_v17  ;;  %3197 = vmatpush.bf16.msrb.mxu2 %v8943_v24  ;;  %v10106_v16 = vld [vmem:[#allocation6 + $0x580] sm:$0xf]  ;;  %v13042_v17 = vpop.f32.mrf.mxu2  ;;  %v9851_v20 = vor.u32 %v12212_v15, %v9850_v11 }
 0x1e5   :  { %v8396_v21 = vld [vmem:[#allocation2 + $0x478] sm:$0xf0]  ;;  %v12276_v12 = vld [vmem:[#allocation6 + $0x59c] sm:$0xf0] }
 0x1e6   :  { %v11907_v26 = vld [vmem:[#allocation2 + $0x65c] sm:$0xf]  ;;  %v8399_v29 = vor.u32 %v11843_v19, %v8396_v21  ;;  %3210 = vmatpush.bf16.msrb.mxu0 %v9199_v25  ;;  %v12340_v19 = vld [vmem:[#allocation6 + $0x79c] sm:$0xf0]  ;;  %v9595_v21 = vor.u32 %v12148_v10, %v9594_v6  ;;  %v10107_v22 = vor.u32 %v12276_v12, %v10106_v16 }
 0x1e7   :  { %v8652_v27 = vld [vmem:[#allocation2 + $0x678] sm:$0xf0]  ;;  %v9562_v23 = vld [vmem:[#allocation6 + $0x140] sm:$0xf] }
 0x1e8   :  { %v11971_v61 = vld [vmem:[#allocation2 + $0x85c] sm:$0xf]  ;;  %v8655_v37 = vor.u32 %v11907_v26, %v8652_v27  ;;  %3172 = vmatpush.bf16.msra.mxu1 %v8399_v29  ;;  %v12140_v24 = vld [vmem:[#allocation6 + $0x15c] sm:$0xf0]  ;;  %v10363_v26 = vor.u32 %v12340_v19, %v10362_v18 }
 0x1e9   :  { %v8908_v9 = vld [vmem:[#allocation2 + $0x878] sm:$0xf0]  ;;  %v9818_v25 = vld [vmem:[#allocation6 + $0x340] sm:$0xf] }
 0x1ea   :  { %v12035_v32 = vld [vmem:[#allocation2 + $0xa5c] sm:$0xf]  ;;  %v8911_v40 = vor.u32 %v11971_v61, %v8908_v9  ;;  %3185 = vmatpush.bf16.msrb.mxu3 %v8655_v37  ;;  %v12204_v27 = vld [vmem:[#allocation6 + $0x35c] sm:$0xf0] }
 0x1eb   :  { %v9164_v33 = vld [vmem:[#allocation2 + $0xa78] sm:$0xf0]  ;;  %v10074_v61 = vld [vmem:[#allocation6 + $0x540] sm:$0xf] }
 0x1ec   :  { %v11835_v34 = vld [vmem:[#allocation2 + $0x41c] sm:$0xf]  ;;  %v9167_v42 = vor.u32 %v12035_v32, %v9164_v33  ;;  %3198 = vmatpush.bf16.msrb.mxu2 %v8911_v40  ;;  %v10330_v29 = vld [vmem:[#allocation6 + $0x740] sm:$0xf]  ;;  %v9563_v32 = vor.u32 %v12140_v24, %v9562_v23  ;;  %v9819_v33 = vor.u32 %v12204_v27, %v9818_v25  ;;  %v13048_v40 = vpop.f32.mrf.mxu1 }
 0x1ed   :  { %v8364_v36 = vld [vmem:[#allocation2 + $0x438] sm:$0xf0]  ;;  %v12332_v9 = vld [vmem:[#allocation6 + $0x75c] sm:$0xf0] }
 0x1ee   :  { %v12091_v38 = vld [vmem:[#allocation2 + $0xc1c] sm:$0xf]  ;;  %v8367_v7 = vor.u32 %v11835_v34, %v8364_v36  ;;  %3211 = vmatpush.bf16.msrb.mxu0 %v9167_v42  ;;  %v9530_v36 = vld [vmem:[#allocation6 + $0x100] sm:$0xf] }
 0x1ef   :  { %v9388_v39 = vld [vmem:[#allocation2 + $0xc38] sm:$0xf0]  ;;  %v12196_v37 = vld [vmem:[#allocation6 + $0x31c] sm:$0xf0] }
 0x1f0   :  { %v11899_v43 = vld [vmem:[#allocation2 + $0x61c] sm:$0xf]  ;;  %v9391_v50 = vor.u32 %v12091_v38, %v9388_v39  ;;  %3173 = vmatpush.bf16.msra.mxu1 %v8367_v7  ;;  %v10042_v38 = vld [vmem:[#allocation6 + $0x500] sm:$0xf] }
 0x1f1   :  { %v8620_v44 = vld [vmem:[#allocation2 + $0x638] sm:$0xf0]  ;;  %v12260_v39 = vld [vmem:[#allocation6 + $0x51c] sm:$0xf0] }
 0x1f2   :  { %v11963_v55 = vld [vmem:[#allocation2 + $0x81c] sm:$0xf]  ;;  %v8623_v60 = vor.u32 %v11899_v43, %v8620_v44  ;;  %v12324_v42 = vld [vmem:[#allocation6 + $0x71c] sm:$0xf0]  ;;  %v13050_v43 = vpop.f32.mrf.mxu0  ;;  %v9531_v44 = vor.u32 %v12132_v56, %v9530_v36  ;;  %v10043_v7 = vor.u32 %v12260_v39, %v10042_v38 }
 0x1f3   :  { %v8876_v46 = vld [vmem:[#allocation2 + $0x838] sm:$0xf0]  ;;  %3174 = vmatmul.bf16.vlgmr.msra.gmra.mxu1 %v12921_v51  ;;  %v12268_v51 = vld [vmem:[#allocation6 + $0x55c] sm:$0xf0] }
 0x1f4   :  { %v12027_v47 = vld [vmem:[#allocation2 + $0xa1c] sm:$0xf]  ;;  %v8879_v1 = vor.u32 %v11963_v55, %v8876_v46  ;;  %3225 = vmatpush.bf16.msrb.mxu1 %v9391_v50  ;;  %3186 = vmatpush.bf16.msrb.mxu3 %v8623_v60  ;;  %v10075_v34 = vor.u32 %v12268_v51, %v10074_v61  ;;  %v9787_v55 = vor.u32 %v12196_v37, %v9786_v14  ;;  %v9498_v46 = vld [vmem:[#allocation6 + $0xc0] sm:$0xf]  ;;  %v13052_v60 = vpop.f32.mrf.mxu3  ;;  %v2943_v11 = vpop.f32.mrf.mxu1 }
 0x1f5   :  { %v9132_v49 = vld [vmem:[#allocation2 + $0xa38] sm:$0xf0]  ;;  %v10010_v54 = vld [vmem:[#allocation6 + $0x4c0] sm:$0xf] }
 0x1f6   :  { %v9135_v3 = vor.u32 %v12027_v47, %v9132_v49  ;;  %3199 = vmatpush.bf16.msrb.mxu2 %v8879_v1  ;;  %v12124_v47 = vld [vmem:[#allocation6 + $0xdc] sm:$0xf0] }
 0x1f7   :  { %3187 = vmatmul.bf16.vlgmr.msrb.gmra.mxu3 %v12925_v57  ;;  %v10331_v57 = vor.u32 %v12332_v9, %v10330_v29  ;;  %v9754_v49 = vld [vmem:[#allocation6 + $0x2c0] sm:$0xf]  ;;  %v9499_v0 = vor.u32 %v12124_v47, %v9498_v46  ;;  %v3231_v46 = vmax.f32 %v12983_v53, 0.0 }
 0x1f8   :  { %3212 = vmatpush.bf16.msrb.mxu0 %v9135_v3  ;;  %6337 = vmatpush.bf16.msra.mxu3 %v9627_v4  ;;  %v12252_v58 = vld [vmem:[#allocation6 + $0x4dc] sm:$0xf0]  ;;  %v9755_v1 = vor.u32 %v12188_v52, %v9754_v49  ;;  %v3233_v52 = vmax.f32 %v13020_v8, 0.0 }
 0x1f9   :  { %6350 = vmatpush.bf16.msra.mxu1 %v9883_v41  ;;  %3200 = vmatmul.bf16.vlgmr.msrb.gmra.mxu2 %v12949_v30  ;;  %v2956_v30 = vpop.f32.mrf.mxu2  ;;  %v10266_v62 = vld [vmem:[#allocation6 + $0x6c0] sm:$0xf]  ;;  %v10011_v2 = vor.u32 %v12252_v58, %v10010_v54 }
 0x1fa   :  { %6363 = vmatpush.bf16.msra.mxu2 %v10139_v5  ;;  %v12316_v63 = vld [vmem:[#allocation6 + $0x6dc] sm:$0xf0]  ;;  %v2969_v12 = vpop.f32.mrf.mxu0  ;;  %v13066_v8 = vpack.c.bf16 %v3233_v52, %v3233_v52 }
 0x1fb   :  { %3213 = vmatmul.bf16.vlgmr.msrb.gmra.mxu0 %v12951_v35  ;;  %v10298_v35 = vld [vmem:[#allocation6 + $0x700] sm:$0xf]  ;;  %v10267_v41 = vor.u32 %v12316_v63, %v10266_v62  ;;  %v13073_v12 = vld [vmem:[#allocation4] sm:$0xff] }
 0x1fc   :  { %6376 = vmatpush.bf16.msra.mxu0 %v10395_v13  ;;  %6338 = vmatpush.bf16.msra.mxu3 %v9595_v21  ;;  %v10299_v50 = vor.u32 %v12324_v42, %v10298_v35  ;;  %v9466_v59 = vld [vmem:[#allocation6 + $0x80] sm:$0xf]  ;;  %v2930_v51 = vpop.f32.mrf.mxu3 }
 0x1fd   :  { %6351 = vmatpush.bf16.msra.mxu1 %v9851_v20  ;;  %v12116_v3 = vld [vmem:[#allocation6 + $0x9c] sm:$0xf0] }
 0x1fe   :  { %6364 = vmatpush.bf16.msra.mxu2 %v10107_v22  ;;  %v9722_v4 = vld [vmem:[#allocation6 + $0x280] sm:$0xf]  ;;  %v9467_v18 = vor.u32 %v12116_v3, %v9466_v59 }
 0x1ff   :  { %v12180_v5 = vld [vmem:[#allocation6 + $0x29c] sm:$0xf0] }
 0x200   :  { %6377 = vmatpush.bf16.msra.mxu0 %v10363_v26  ;;  %6339 = vmatpush.bf16.msra.mxu3 %v9563_v32  ;;  %v9978_v6 = vld [vmem:[#allocation6 + $0x480] sm:$0xf]  ;;  %v9723_v19 = vor.u32 %v12180_v5, %v9722_v4  ;;  %v13062_v4 = vpack.c.bf16 %v3231_v46, %v3231_v46 }
 0x201   :  { %6352 = vmatpush.bf16.msra.mxu1 %v9819_v33  ;;  %v12244_v10 = vld [vmem:[#allocation6 + $0x49c] sm:$0xf0]  ;;  %v13056_v16 = vpop.f32.mrf.mxu2 }
 0x202   :  { %6365 = vmatpush.bf16.msra.mxu2 %v10075_v34  ;;  %v10234_v13 = vld [vmem:[#allocation6 + $0x680] sm:$0xf]  ;;  %v9979_v21 = vor.u32 %v12244_v10, %v9978_v6 }
 0x203   :  { %9399 = vmatmul.msk.bf16.vlgmr.msrb.gmra.mxu1 %vm2499_vm0, %v12939_v45  ;;  %v12308_v15 = vld [vmem:[#allocation6 + $0x69c] sm:$0xf0] }
 0x204   :  { %6378 = vmatpush.bf16.msra.mxu0 %v10331_v57  ;;  %6340 = vmatpush.bf16.msra.mxu3 %v9531_v44  ;;  %v9434_v20 = vld [vmem:[#allocation6 + $0x40] sm:$0xf]  ;;  %v10235_v24 = vor.u32 %v12308_v15, %v10234_v13 }
 0x205   :  { %6353 = vmatpush.bf16.msra.mxu1 %v9787_v55  ;;  %v12108_v22 = vld [vmem:[#allocation6 + $0x5c] sm:$0xf0] }
 0x206   :  { %6366 = vmatpush.bf16.msra.mxu2 %v10043_v7  ;;  %v9690_v23 = vld [vmem:[#allocation6 + $0x240] sm:$0xf]  ;;  %v9435_v29 = vor.u32 %v12108_v22, %v9434_v20 }
 0x207   :  { %v12172_v25 = vld [vmem:[#allocation6 + $0x25c] sm:$0xf0] }
 0x208   :  { %6379 = vmatpush.bf16.msra.mxu0 %v10299_v50  ;;  %6341 = vmatpush.bf16.msra.mxu3 %v9499_v0  ;;  %v9946_v26 = vld [vmem:[#allocation6 + $0x440] sm:$0xf]  ;;  %v9691_v32 = vor.u32 %v12172_v25, %v9690_v23  ;;  %v3232_v50 = vmax.f32 %v13000_v48, 0.0  ;;  %v3234_v0 = vmax.f32 %v13033_v31, 0.0 }
 0x209   :  { %6354 = vmatpush.bf16.msra.mxu1 %v9755_v1  ;;  %v12236_v27 = vld [vmem:[#allocation6 + $0x45c] sm:$0xf0]  ;;  %v2982_v42 = vpop.f32.mrf.mxu2 }
 0x20a   :  { %6367 = vmatpush.bf16.msra.mxu2 %v10011_v2  ;;  %v10202_v45 = vld [vmem:[#allocation6 + $0x640] sm:$0xf]  ;;  %v9947_v33 = vor.u32 %v12236_v27, %v9946_v26  ;;  %v13068_v10 = vpack.c.bf16 %v3234_v0, %v3234_v0 }
 0x20b   :  { %v12300_v61 = vld [vmem:[#allocation6 + $0x65c] sm:$0xf0] }
 0x20c   :  { %6380 = vmatpush.bf16.msra.mxu0 %v10267_v41  ;;  %6342 = vmatpush.bf16.msra.mxu3 %v9467_v18  ;;  %v9402_v9 = vld [vmem:[#allocation6] sm:$0xf]  ;;  %v10203_v14 = vor.u32 %v12300_v61, %v10202_v45  ;;  %v13064_v41 = vpack.c.bf16 %v3232_v50, %v3232_v50  ;;  %v528_v18 = vperm.slane %v13073_v12, 5 }
 0x20d   :  { %6355 = vmatpush.bf16.msra.mxu1 %v9723_v19  ;;  %v12100_v34 = vld [vmem:[#allocation6 + $0x1c] sm:$0xf0] }
 0x20e   :  { %6368 = vmatpush.bf16.msra.mxu2 %v9979_v21  ;;  %v9658_v36 = vld [vmem:[#allocation6 + $0x200] sm:$0xf]  ;;  %v9403_v44 = vor.u32 %v12100_v34, %v9402_v9  ;;  %v2968_v45 = vadd.f32 %v13050_v43, %v528_v18 }
 0x20f   :  { %v12164_v56 = vld [vmem:[#allocation6 + $0x21c] sm:$0xf0] }
 0x210   :  { %6381 = vmatpush.bf16.msra.mxu0 %v10235_v24  ;;  %v9914_v57 = vld [vmem:[#allocation6 + $0x400] sm:$0xf]  ;;  %6343 = vmatpush.bf16.msra.mxu3 %v9435_v29  ;;  %v9659_v47 = vor.u32 %v12164_v56, %v9658_v36  ;;  %v3019_v29 = vpop.f32.mrf.mxu0 }
 0x211   :  { %v12228_v37 = vld [vmem:[#allocation6 + $0x41c] sm:$0xf0]  ;;  %6356 = vmatpush.bf16.msra.mxu1 %v9691_v32 }
 0x212   :  { %v10170_v38 = vld [vmem:[#allocation6 + $0x600] sm:$0xf]  ;;  %6369 = vmatpush.bf16.msra.mxu2 %v9947_v33  ;;  %v9915_v49 = vor.u32 %v12228_v37, %v9914_v57  ;;  %v3006_v57 = vpop.f32.mrf.mxu1  ;;  %v2981_v37 = vadd.f32 %v13056_v16, %v2968_v45  ;;  %v3032_v16 = vpop.f32.mrf.mxu2 }
 0x213   :  { %v12292_v39 = vld [vmem:[#allocation6 + $0x61c] sm:$0xf0] }
 0x214   :  { %v10650_v30 = vld [vmem:[#allocation6 + $0x9c0] sm:$0xf]  ;;  %6382 = vmatpush.bf16.msra.mxu0 %v10203_v14  ;;  %v10171_v54 = vor.u32 %v12292_v39, %v10170_v38  ;;  %6344 = vmatpush.bf16.msra.mxu3 %v9403_v44 }
 0x215   :  { %v12412_v35 = vld [vmem:[#allocation6 + $0x9dc] sm:$0xf0]  ;;  %6357 = vmatpush.bf16.msra.mxu1 %v9659_v47 }
 0x216   :  { %v10906_v55 = vld [vmem:[#allocation6 + $0xbc0] sm:$0xf]  ;;  %v10651_v58 = vor.u32 %v12412_v35, %v10650_v30  ;;  %6370 = vmatpush.bf16.msra.mxu2 %v9915_v49  ;;  %v2993_v30 = vpop.f32.mrf.mxu3  ;;  %v2929_v35 = vadd.f32 %v13052_v60, %v13040_v28 }
 0x217   :  { %v12476_v7 = vld [vmem:[#allocation6 + $0xbdc] sm:$0xf0]  ;;  %6345 = vmatmul.bf16.vlgmr.msra.gmra.mxu3 %v13062_v4  ;;  %v2994_v49 = vadd.f32 %v2993_v30, %v2981_v37  ;;  %v12208_v30 = vld [vmem:[#allocation6 + $0x384] sm:$0xf] }
 0x218   :  { %v11162_v62 = vld [vmem:[#allocation6 + $0xdc0] sm:$0xf]  ;;  %v10907_v1 = vor.u32 %v12476_v7, %v10906_v55  ;;  %6383 = vmatpush.bf16.msra.mxu0 %v10171_v54  ;;  %6389 = vmatpush.bf16.msrb.mxu3 %v10651_v58  ;;  %v3021_v54 = vpop.f32.mrf.mxu0 }
 0x219   :  { %v12540_v63 = vld [vmem:[#allocation6 + $0xddc] sm:$0xf0]  ;;  %6358 = vmatmul.bf16.vlgmr.msra.gmra.mxu1 %v13064_v41  ;;  %6371 = vmatmul.bf16.vlgmr.msra.gmra.mxu2 %v13066_v8 }
 0x21a   :  { %v10618_v2 = vld [vmem:[#allocation6 + $0x980] sm:$0xf]  ;;  %v11163_v48 = vor.u32 %v12540_v63, %v11162_v62  ;;  %6402 = vmatpush.bf16.msrb.mxu1 %v10907_v1  ;;  %v2942_v62 = vadd.f32 %v13048_v40, %v2929_v35 }
 0x21b   :  { %v12404_v59 = vld [vmem:[#allocation6 + $0x99c] sm:$0xf0]  ;;  %6384 = vmatmul.bf16.vlgmr.msra.gmra.mxu0 %v13068_v10 }
 0x21c   :  { %v10874_v53 = vld [vmem:[#allocation6 + $0xb80] sm:$0xf]  ;;  %v10619_v5 = vor.u32 %v12404_v59, %v10618_v2  ;;  %6415 = vmatpush.bf16.msrb.mxu2 %v11163_v48  ;;  %v3008_v59 = vpop.f32.mrf.mxu1 }
 0x21d   :  { %v12468_v3 = vld [vmem:[#allocation6 + $0xb9c] sm:$0xf0]  ;;  %v12128_v59 = vld [vmem:[#allocation6 + $0x104] sm:$0xf] }
 0x21e   :  { %v11130_v6 = vld [vmem:[#allocation6 + $0xd80] sm:$0xf]  ;;  %v10875_v11 = vor.u32 %v12468_v3, %v10874_v53  ;;  %6390 = vmatpush.bf16.msrb.mxu3 %v10619_v5  ;;  %v3007_v53 = vadd.f32 %v3006_v57, %v2994_v49  ;;  %v2995_v5 = vpop.f32.mrf.mxu3  ;;  %v9596_v57 = vld [vmem:[#allocation6 + $0x1a0] sm:$0xf0] }
 0x21f   :  { %v12532_v31 = vld [vmem:[#allocation6 + $0xd9c] sm:$0xf0]  ;;  %v9564_v49 = vld [vmem:[#allocation6 + $0x160] sm:$0xf0] }
 0x220   :  { %v10586_v13 = vld [vmem:[#allocation6 + $0x940] sm:$0xf]  ;;  %v11131_v20 = vor.u32 %v12532_v31, %v11130_v6  ;;  %6403 = vmatpush.bf16.msrb.mxu1 %v10875_v11  ;;  %v2955_v31 = vadd.f32 %v13042_v17, %v2942_v62  ;;  %v9532_v5 = vld [vmem:[#allocation6 + $0x120] sm:$0xf0] }
 0x221   :  { %v12396_v15 = vld [vmem:[#allocation6 + $0x95c] sm:$0xf0] }
 0x222   :  { %v10842_v19 = vld [vmem:[#allocation6 + $0xb40] sm:$0xf]  ;;  %v10587_v22 = vor.u32 %v12396_v15, %v10586_v13  ;;  %6416 = vmatpush.bf16.msrb.mxu2 %v11131_v20  ;;  %v3020_v20 = vadd.f32 %v3019_v29, %v3007_v53  ;;  %v12264_v53 = vld [vmem:[#allocation6 + $0x544] sm:$0xf] }
 0x223   :  { %v12460_v21 = vld [vmem:[#allocation6 + $0xb5c] sm:$0xf0] }
 0x224   :  { %v11098_v23 = vld [vmem:[#allocation6 + $0xd40] sm:$0xf]  ;;  %v10843_v25 = vor.u32 %v12460_v21, %v10842_v19  ;;  %6391 = vmatpush.bf16.msrb.mxu3 %v10587_v22  ;;  %v3033_v29 = vadd.f32 %v3032_v16, %v3020_v20  ;;  %v12120_v20 = vld [vmem:[#allocation6 + $0xc4] sm:$0xf] }
 0x225   :  { %v12524_v24 = vld [vmem:[#allocation6 + $0xd5c] sm:$0xf0] }
 0x226   :  { %v10554_v26 = vld [vmem:[#allocation6 + $0x900] sm:$0xf]  ;;  %v11099_v9 = vor.u32 %v12524_v24, %v11098_v23  ;;  %6404 = vmatpush.bf16.msrb.mxu1 %v10843_v25  ;;  %v12152_v23 = vld [vmem:[#allocation6 + $0x1c4] sm:$0xf]  ;;  %v3034_v25 = vpop.f32.mrf.mxu2 }
 0x227   :  { %v12388_v27 = vld [vmem:[#allocation6 + $0x91c] sm:$0xf0]  ;;  %v9628_v24 = vld [vmem:[#allocation6 + $0x1e0] sm:$0xf0]  ;;  %v13091_v25 = vpop.f32.mrf.mxu1 }
 0x228   :  { %v10810_v61 = vld [vmem:[#allocation6 + $0xb00] sm:$0xf]  ;;  %v10555_v32 = vor.u32 %v12388_v27, %v10554_v26  ;;  %6417 = vmatpush.bf16.msrb.mxu2 %v11099_v9  ;;  %v12216_v26 = vld [vmem:[#allocation6 + $0x3c4] sm:$0xf] }
 0x229   :  { %v12452_v51 = vld [vmem:[#allocation6 + $0xb1c] sm:$0xf0]  ;;  %v9884_v27 = vld [vmem:[#allocation6 + $0x3e0] sm:$0xf0] }
 0x22a   :  { %v11066_v33 = vld [vmem:[#allocation6 + $0xd00] sm:$0xf]  ;;  %v10811_v36 = vor.u32 %v12452_v51, %v10810_v61  ;;  %6392 = vmatpush.bf16.msrb.mxu3 %v10555_v32  ;;  %v3235_v61 = vmax.f32 %v2955_v31, 0.0 }
 0x22b   :  { %v12516_v34 = vld [vmem:[#allocation6 + $0xd1c] sm:$0xf0] }
 0x22c   :  { %v10522_v56 = vld [vmem:[#allocation6 + $0x8c0] sm:$0xf]  ;;  %v11067_v43 = vor.u32 %v12516_v34, %v11066_v33  ;;  %6405 = vmatpush.bf16.msrb.mxu1 %v10811_v36  ;;  %v9631_v33 = vor.u32 %v12152_v23, %v9628_v24  ;;  %v12144_v34 = vld [vmem:[#allocation6 + $0x184] sm:$0xf] }
 0x22d   :  { %v12380_v14 = vld [vmem:[#allocation6 + $0x8dc] sm:$0xf0]  ;;  %v12280_v36 = vld [vmem:[#allocation6 + $0x5c4] sm:$0xf] }
 0x22e   :  { %v10778_v38 = vld [vmem:[#allocation6 + $0xac0] sm:$0xf]  ;;  %v10523_v42 = vor.u32 %v12380_v14, %v10522_v56  ;;  %6418 = vmatpush.bf16.msrb.mxu2 %v11067_v43  ;;  %v10140_v56 = vld [vmem:[#allocation6 + $0x5e0] sm:$0xf0]  ;;  %v9887_v14 = vor.u32 %v12216_v26, %v9884_v27 }
 0x22f   :  { %v12444_v39 = vld [vmem:[#allocation6 + $0xadc] sm:$0xf0]  ;;  %v9852_v43 = vld [vmem:[#allocation6 + $0x3a0] sm:$0xf0] }
 0x230   :  { %v11034_v44 = vld [vmem:[#allocation6 + $0xcc0] sm:$0xf]  ;;  %v10779_v7 = vor.u32 %v12444_v39, %v10778_v38  ;;  %6393 = vmatpush.bf16.msrb.mxu3 %v10523_v42  ;;  %v3045_v39 = vpop.f32.mrf.mxu3  ;;  %v9855_v54 = vor.u32 %v12208_v30, %v9852_v43  ;;  %v10044_v23 = vld [vmem:[#allocation6 + $0x520] sm:$0xf0] }
 0x231   :  { %v12508_v55 = vld [vmem:[#allocation6 + $0xcdc] sm:$0xf0]  ;;  %v9500_v26 = vld [vmem:[#allocation6 + $0xe0] sm:$0xf0] }
 0x232   :  { %v10490_v46 = vld [vmem:[#allocation6 + $0x880] sm:$0xf]  ;;  %v11035_v58 = vor.u32 %v12508_v55, %v11034_v44  ;;  %6406 = vmatpush.bf16.msrb.mxu1 %v10779_v7  ;;  %v3046_v44 = vadd.f32 %v3045_v39, %v3033_v29  ;;  %v12136_v55 = vld [vmem:[#allocation6 + $0x144] sm:$0xf]  ;;  %v10143_v7 = vor.u32 %v12280_v36, %v10140_v56 }
 0x233   :  { %v12372_v47 = vld [vmem:[#allocation6 + $0x89c] sm:$0xf0]  ;;  %v10012_v36 = vld [vmem:[#allocation6 + $0x4e0] sm:$0xf0] }
 0x234   :  { %v10746_v50 = vld [vmem:[#allocation6 + $0xa80] sm:$0xf]  ;;  %v10491_v63 = vor.u32 %v12372_v47, %v10490_v46  ;;  %6419 = vmatpush.bf16.msrb.mxu2 %v11035_v58  ;;  %v13083_v46 = vpack.c.bf16 %v3235_v61, %v3235_v61  ;;  %v9599_v47 = vor.u32 %v12144_v34, %v9596_v57  ;;  %v3236_v16 = vmax.f32 %v3046_v44, 0.0  ;;  %v12184_v61 = vld [vmem:[#allocation6 + $0x2c4] sm:$0xf] }
 0x235   :  { %v12436_v52 = vld [vmem:[#allocation6 + $0xa9c] sm:$0xf0]  ;;  %v12248_v34 = vld [vmem:[#allocation6 + $0x4c4] sm:$0xf] }
 0x236   :  { %v11002_v28 = vld [vmem:[#allocation6 + $0xc80] sm:$0xf]  ;;  %v10747_v0 = vor.u32 %v12436_v52, %v10746_v50  ;;  %6394 = vmatpush.bf16.msrb.mxu3 %v10491_v63  ;;  %v12272_v50 = vld [vmem:[#allocation6 + $0x584] sm:$0xf] }
 0x237   :  { %v12500_v60 = vld [vmem:[#allocation6 + $0xc9c] sm:$0xf0]  ;;  %v10108_v52 = vld [vmem:[#allocation6 + $0x5a0] sm:$0xf0] }
 0x238   :  { %v10458_v1 = vld [vmem:[#allocation6 + $0x840] sm:$0xf]  ;;  %v11003_v6 = vor.u32 %v12500_v60, %v11002_v28  ;;  %6407 = vmatpush.bf16.msrb.mxu1 %v10747_v0  ;;  %v12200_v63 = vld [vmem:[#allocation6 + $0x344] sm:$0xf]  ;;  %v13086_v0 = vpack.c.bf16 %v3236_v16, %v3236_v16 }
 0x239   :  { %v12364_v2 = vld [vmem:[#allocation6 + $0x85c] sm:$0xf0]  ;;  %v9820_v28 = vld [vmem:[#allocation6 + $0x360] sm:$0xf0] }
 0x23a   :  { %v10714_v3 = vld [vmem:[#allocation6 + $0xa40] sm:$0xf]  ;;  %v10459_v11 = vor.u32 %v12364_v2, %v10458_v1  ;;  %6420 = vmatpush.bf16.msrb.mxu2 %v11003_v6  ;;  %v10111_v1 = vor.u32 %v12272_v50, %v10108_v52  ;;  %v9567_v2 = vor.u32 %v12136_v55, %v9564_v49  ;;  %v9468_v29 = vld [vmem:[#allocation6 + $0xa0] sm:$0xf0]  ;;  %v3060_v52 = vpop.f32.mrf.mxu1 }
 0x23b   :  { %v12428_v48 = vld [vmem:[#allocation6 + $0xa5c] sm:$0xf0]  ;;  %v12176_v39 = vld [vmem:[#allocation6 + $0x284] sm:$0xf] }
 0x23c   :  { %v10970_v40 = vld [vmem:[#allocation6 + $0xc40] sm:$0xf]  ;;  %v10715_v15 = vor.u32 %v12428_v48, %v10714_v3  ;;  %6395 = vmatpush.bf16.msrb.mxu3 %v10459_v11  ;;  %v10076_v3 = vld [vmem:[#allocation6 + $0x560] sm:$0xf0]  ;;  %v9823_v48 = vor.u32 %v12200_v63, %v9820_v28  ;;  %v3047_v11 = vpop.f32.mrf.mxu3 }
 0x23d   :  { %v12492_v13 = vld [vmem:[#allocation6 + $0xc5c] sm:$0xf0]  ;;  %v9724_v30 = vld [vmem:[#allocation6 + $0x2a0] sm:$0xf0] }
 0x23e   :  { %v10426_v18 = vld [vmem:[#allocation6 + $0x800] sm:$0xf]  ;;  %v10971_v45 = vor.u32 %v12492_v13, %v10970_v40  ;;  %6408 = vmatpush.bf16.msrb.mxu1 %v10715_v15  ;;  %v13089_v40 = vpop.f32.mrf.mxu0  ;;  %v12192_v13 = vld [vmem:[#allocation6 + $0x304] sm:$0xf]  ;;  %v9727_v49 = vor.u32 %v12176_v39, %v9724_v30 }
 0x23f   :  { %v12356_v19 = vld [vmem:[#allocation6 + $0x81c] sm:$0xf0]  ;;  %v9788_v15 = vld [vmem:[#allocation6 + $0x320] sm:$0xf0] }
 0x240   :  { %v10682_v21 = vld [vmem:[#allocation6 + $0xa00] sm:$0xf]  ;;  %v10427_v17 = vor.u32 %v12356_v19, %v10426_v18  ;;  %6421 = vmatpush.bf16.msrb.mxu2 %v10971_v45  ;;  %v10079_v19 = vor.u32 %v12264_v53, %v10076_v3  ;;  %v9791_v24 = vor.u32 %v12192_v13, %v9788_v15  ;;  %v12104_v55 = vld [vmem:[#allocation6 + $0x44] sm:$0xf] }
 0x241   :  { %v12420_v22 = vld [vmem:[#allocation6 + $0xa1c] sm:$0xf0]  ;;  %v9436_v50 = vld [vmem:[#allocation6 + $0x60] sm:$0xf0] }
 0x242   :  { %v10938_v51 = vld [vmem:[#allocation6 + $0xc00] sm:$0xf]  ;;  %v10683_v32 = vor.u32 %v12420_v22, %v10682_v21  ;;  %6396 = vmatpush.bf16.msrb.mxu3 %v10427_v17  ;;  %v9535_v21 = vor.u32 %v12128_v59, %v9532_v5  ;;  %v12256_v22 = vld [vmem:[#allocation6 + $0x504] sm:$0xf] }
 0x243   :  { %v12484_v9 = vld [vmem:[#allocation6 + $0xc1c] sm:$0xf0]  ;;  %v9756_v17 = vld [vmem:[#allocation6 + $0x2e0] sm:$0xf0] }
 0x244   :  { %v11418_v37 = vld [vmem:[#allocation6 + $0xfc0] sm:$0xf]  ;;  %v10939_v35 = vor.u32 %v12484_v9, %v10938_v51  ;;  %6409 = vmatpush.bf16.msrb.mxu1 %v10683_v32  ;;  %v10047_v9 = vor.u32 %v12256_v22, %v10044_v23  ;;  %v9503_v32 = vor.u32 %v12120_v20, %v9500_v26  ;;  %v9759_v56 = vor.u32 %v12184_v61, %v9756_v17  ;;  %v12096_v28 = vld [vmem:[#allocation6 + $0x4] sm:$0xf] }
 0x245   :  { %v12604_v38 = vld [vmem:[#allocation6 + $0xfdc] sm:$0xf0]  ;;  %6397 = vmatmul.bf16.vlgmr.msrb.gmra.mxu3 %v13083_v46  ;;  %v12232_v59 = vld [vmem:[#allocation6 + $0x444] sm:$0xf] }
 0x246   :  { %v11419_v42 = vor.u32 %v12604_v38, %v11418_v37  ;;  %6441 = vmatpush.bf16.msra.mxu3 %v9631_v33  ;;  %v11386_v58 = vld [vmem:[#allocation6 + $0xf80] sm:$0xf]  ;;  %6422 = vmatpush.bf16.msrb.mxu2 %v10939_v35  ;;  %v12112_v33 = vld [vmem:[#allocation6 + $0x84] sm:$0xf]  ;;  %v13093_v37 = vpop.f32.mrf.mxu3  ;;  %v3086_v38 = vpop.f32.mrf.mxu0 }
 0x247   :  { %v12596_v62 = vld [vmem:[#allocation6 + $0xf9c] sm:$0xf0]  ;;  %6410 = vmatmul.bf16.vlgmr.msrb.gmra.mxu1 %v13086_v0  ;;  %v13095_v35 = vpop.f32.mrf.mxu2  ;;  %v9471_v44 = vor.u32 %v12112_v33, %v9468_v29  ;;  %v9948_v53 = vld [vmem:[#allocation6 + $0x460] sm:$0xf0] }
 0x248   :  { %6454 = vmatpush.bf16.msra.mxu1 %v9887_v14  ;;  %6428 = vmatpush.bf16.msrb.mxu0 %v11419_v42  ;;  %v11387_v60 = vor.u32 %v12596_v62, %v11386_v58  ;;  %v11354_v6 = vld [vmem:[#allocation6 + $0xf40] sm:$0xf]  ;;  %v10015_v42 = vor.u32 %v12248_v34, %v10012_v36  ;;  %v12168_v58 = vld [vmem:[#allocation6 + $0x244] sm:$0xf]  ;;  %v9951_v23 = vor.u32 %v12232_v59, %v9948_v53 }
 0x249   :  { %v12588_v31 = vld [vmem:[#allocation6 + $0xf5c] sm:$0xf0]  ;;  %v9692_v62 = vld [vmem:[#allocation6 + $0x260] sm:$0xf0] }
 0x24a   :  { %6467 = vmatpush.bf16.msra.mxu2 %v10143_v7  ;;  %6442 = vmatpush.bf16.msra.mxu3 %v9599_v47  ;;  %v11355_v18 = vor.u32 %v12588_v31, %v11354_v6  ;;  %v11322_v27 = vld [vmem:[#allocation6 + $0xf00] sm:$0xf]  ;;  %v12240_v7 = vld [vmem:[#allocation6 + $0x484] sm:$0xf]  ;;  %v9695_v3 = vor.u32 %v12168_v58, %v9692_v62 }
 0x24b   :  { %v12580_v45 = vld [vmem:[#allocation6 + $0xf1c] sm:$0xf0]  ;;  %v9980_v47 = vld [vmem:[#allocation6 + $0x4a0] sm:$0xf0] }
 0x24c   :  { %6455 = vmatpush.bf16.msra.mxu1 %v9855_v54  ;;  %6429 = vmatpush.bf16.msrb.mxu0 %v11387_v60  ;;  %v11323_v51 = vor.u32 %v12580_v45, %v11322_v27  ;;  %v11290_v14 = vld [vmem:[#allocation6 + $0xec0] sm:$0xf]  ;;  %v9983_v60 = vor.u32 %v12240_v7, %v9980_v47  ;;  %v9660_v31 = vld [vmem:[#allocation6 + $0x220] sm:$0xf0]  ;;  %v529_v45 = vperm.slane %v13073_v12, 6 }
 0x24d   :  { %v12572_v57 = vld [vmem:[#allocation6 + $0xedc] sm:$0xf0]  ;;  %v12408_v11 = vld [vmem:[#allocation6 + $0x9c4] sm:$0xf] }
 0x24e   :  { %6468 = vmatpush.bf16.msra.mxu2 %v10111_v1  ;;  %6443 = vmatpush.bf16.msra.mxu3 %v9567_v2  ;;  %v11291_v43 = vor.u32 %v12572_v57, %v11290_v14  ;;  %v11258_v16 = vld [vmem:[#allocation6 + $0xe80] sm:$0xf]  ;;  %v9439_v1 = vor.u32 %v12104_v55, %v9436_v50  ;;  %v9404_v2 = vld [vmem:[#allocation6 + $0x20] sm:$0xf0]  ;;  %v3073_v15 = vpop.f32.mrf.mxu3  ;;  %v3059_v30 = vadd.f32 %v13091_v25, %v529_v45 }
 0x24f   :  { %v12564_v54 = vld [vmem:[#allocation6 + $0xe9c] sm:$0xf0]  ;;  %v10652_v13 = vld [vmem:[#allocation6 + $0x9e0] sm:$0xf0]  ;;  %v3099_v22 = vpop.f32.mrf.mxu2 }
 0x250   :  { %6456 = vmatpush.bf16.msra.mxu1 %v9823_v48  ;;  %6430 = vmatpush.bf16.msrb.mxu0 %v11355_v18  ;;  %v11259_v63 = vor.u32 %v12564_v54, %v11258_v16  ;;  %v12160_v48 = vld [vmem:[#allocation6 + $0x204] sm:$0xf]  ;;  %v11226_v5 = vld [vmem:[#allocation6 + $0xe40] sm:$0xf]  ;;  %v13097_v18 = vpop.f32.mrf.mxu0  ;;  %v10655_v17 = vor.u32 %v12408_v11, %v10652_v13  ;;  %v3072_v16 = vadd.f32 %v13093_v37, %v3059_v30 }
 0x251   :  { %v12556_v6 = vld [vmem:[#allocation6 + $0xe5c] sm:$0xf0]  ;;  %v10908_v20 = vld [vmem:[#allocation6 + $0xbe0] sm:$0xf0]  ;;  %v9663_v61 = vor.u32 %v12160_v48, %v9660_v31 }
 0x252   :  { %6469 = vmatpush.bf16.msra.mxu2 %v10079_v19  ;;  %6444 = vmatpush.bf16.msra.mxu3 %v9535_v21  ;;  %v11227_v19 = vor.u32 %v12556_v6, %v11226_v5  ;;  %v12472_v21 = vld [vmem:[#allocation6 + $0xbc4] sm:$0xf] }
 0x253   :  { %v12224_v26 = vld [vmem:[#allocation6 + $0x404] sm:$0xf] }
 0x254   :  { %6457 = vmatpush.bf16.msra.mxu1 %v9791_v24  ;;  %6431 = vmatpush.bf16.msrb.mxu0 %v11323_v51  ;;  %v9407_v24 = vor.u32 %v12096_v28, %v9404_v2  ;;  %v9916_v27 = vld [vmem:[#allocation6 + $0x420] sm:$0xf0]  ;;  %v11194_v51 = vld [vmem:[#allocation6 + $0xe00] sm:$0xf] }
 0x255   :  { %v12400_v33 = vld [vmem:[#allocation6 + $0x984] sm:$0xf]  ;;  %v9919_v57 = vor.u32 %v12224_v26, %v9916_v27 }
 0x256   :  { %6470 = vmatpush.bf16.msra.mxu2 %v10047_v9  ;;  %6445 = vmatpush.bf16.msra.mxu3 %v9503_v32  ;;  %v12548_v9 = vld [vmem:[#allocation6 + $0xe1c] sm:$0xf0]  ;;  %v10911_v32 = vor.u32 %v12472_v21, %v10908_v20  ;;  %v10620_v34 = vld [vmem:[#allocation6 + $0x9a0] sm:$0xf0] }
 0x257   :  { %v11195_v36 = vor.u32 %v12548_v9, %v11194_v51  ;;  %v12464_v29 = vld [vmem:[#allocation6 + $0xb84] sm:$0xf]  ;;  %v3123_v9 = vpop.f32.mrf.mxu3 }
 0x258   :  { %6458 = vmatpush.bf16.msra.mxu1 %v9759_v56  ;;  %6432 = vmatpush.bf16.msrb.mxu0 %v11291_v43  ;;  %v12344_v56 = vld [vmem:[#allocation6 + $0x7c4] sm:$0xf]  ;;  %v10623_v43 = vor.u32 %v12400_v33, %v10620_v34  ;;  %v3138_v7 = vpop.f32.mrf.mxu0 }
 0x259   :  { %v10876_v14 = vld [vmem:[#allocation6 + $0xba0] sm:$0xf0] }
 0x25a   :  { %6471 = vmatpush.bf16.msra.mxu2 %v10015_v42  ;;  %6446 = vmatpush.bf16.msra.mxu3 %v9471_v44  ;;  %v10396_v38 = vld [vmem:[#allocation6 + $0x7e0] sm:$0xf0]  ;;  %v10879_v44 = vor.u32 %v12464_v29, %v10876_v14 }
 0x25b   :  { %v10399_v39 = vor.u32 %v12344_v56, %v10396_v38  ;;  %v12392_v42 = vld [vmem:[#allocation6 + $0x944] sm:$0xf]  ;;  %v13108_v56 = vpop.f32.mrf.mxu2 }
 0x25c   :  { %6459 = vmatpush.bf16.msra.mxu1 %v9727_v49  ;;  %6433 = vmatpush.bf16.msrb.mxu0 %v11259_v63  ;;  %v10588_v55 = vld [vmem:[#allocation6 + $0x960] sm:$0xf0] }
 0x25d   :  { %v12336_v47 = vld [vmem:[#allocation6 + $0x784] sm:$0xf]  ;;  %v10591_v54 = vor.u32 %v12392_v42, %v10588_v55 }
 0x25e   :  { %6472 = vmatpush.bf16.msra.mxu2 %v9983_v60  ;;  %6447 = vmatpush.bf16.msra.mxu3 %v9439_v1  ;;  %v10364_v49 = vld [vmem:[#allocation6 + $0x7a0] sm:$0xf0]  ;;  %v3110_v1 = vpop.f32.mrf.mxu1 }
 0x25f   :  { %v12456_v50 = vld [vmem:[#allocation6 + $0xb44] sm:$0xf]  ;;  %v10367_v25 = vor.u32 %v12336_v47, %v10364_v49 }
 0x260   :  { %6460 = vmatpush.bf16.msra.mxu1 %v9695_v3  ;;  %6434 = vmatpush.bf16.msrb.mxu0 %v11227_v19  ;;  %v10844_v52 = vld [vmem:[#allocation6 + $0xb60] sm:$0xf0]  ;;  %v3085_v3 = vadd.f32 %v13089_v40, %v3072_v16  ;;  %v13105_v19 = vpop.f32.mrf.mxu0 }
 0x261   :  { %v12384_v58 = vld [vmem:[#allocation6 + $0x904] sm:$0xf]  ;;  %v10847_v62 = vor.u32 %v12456_v50, %v10844_v52 }
 0x262   :  { %6473 = vmatpush.bf16.msra.mxu2 %v9951_v23  ;;  %6448 = vmatpush.bf16.msra.mxu3 %v9407_v24  ;;  %v10556_v63 = vld [vmem:[#allocation6 + $0x920] sm:$0xf0]  ;;  %v3098_v20 = vadd.f32 %v13095_v35, %v3085_v3 }
 0x263   :  { %v12328_v28 = vld [vmem:[#allocation6 + $0x744] sm:$0xf]  ;;  %v10559_v48 = vor.u32 %v12384_v58, %v10556_v63 }
 0x264   :  { %6461 = vmatpush.bf16.msra.mxu1 %v9663_v61  ;;  %6435 = vmatpush.bf16.msrb.mxu0 %v11195_v36  ;;  %v10332_v60 = vld [vmem:[#allocation6 + $0x760] sm:$0xf0]  ;;  %v3111_v45 = vadd.f32 %v3110_v1, %v3098_v20  ;;  %v12221_v1 = vld [vmem:[#allocation6 + $0x3e4] sm:$0xf0] }
 0x265   :  { %6449 = vmatmul.bf16.vlgmr.msra.gmra.mxu3 %v13062_v4  ;;  %v12448_v2 = vld [vmem:[#allocation6 + $0xb04] sm:$0xf]  ;;  %v10335_v53 = vor.u32 %v12328_v28, %v10332_v60  ;;  %v12157_v28 = vld [vmem:[#allocation6 + $0x1e4] sm:$0xf0] }
 0x266   :  { %6493 = vmatpush.bf16.msrb.mxu3 %v10655_v17  ;;  %6474 = vmatpush.bf16.msra.mxu2 %v9919_v57  ;;  %v10812_v59 = vld [vmem:[#allocation6 + $0xb20] sm:$0xf0]  ;;  %v3112_v51 = vpop.f32.mrf.mxu1  ;;  %v3124_v33 = vadd.f32 %v3123_v9, %v3111_v45  ;;  %v9890_v60 = vld [vmem:[#allocation6 + $0x3c8] sm:$0xf] }
 0x267   :  { %6462 = vmatmul.bf16.vlgmr.msra.gmra.mxu1 %v13064_v41  ;;  %v12376_v5 = vld [vmem:[#allocation6 + $0x8c4] sm:$0xf]  ;;  %v10815_v37 = vor.u32 %v12448_v2, %v10812_v59  ;;  %v9858_v20 = vld [vmem:[#allocation6 + $0x388] sm:$0xf] }
 0x268   :  { %6506 = vmatpush.bf16.msrb.mxu1 %v10911_v32  ;;  %6480 = vmatpush.bf16.msra.mxu0 %v10399_v39  ;;  %v10524_v6 = vld [vmem:[#allocation6 + $0x8e0] sm:$0xf0]  ;;  %v3137_v39 = vadd.f32 %v13097_v18, %v3124_v33  ;;  %v9634_v18 = vld [vmem:[#allocation6 + $0x1c8] sm:$0xf] }
 0x269   :  { %v12320_v31 = vld [vmem:[#allocation6 + $0x704] sm:$0xf]  ;;  %v10527_v22 = vor.u32 %v12376_v5, %v10524_v6  ;;  %v3151_v5 = vpop.f32.mrf.mxu2  ;;  %v9635_v6 = vor.u32 %v12157_v28, %v9634_v18  ;;  %v12141_v51 = vld [vmem:[#allocation6 + $0x164] sm:$0xf0] }
 0x26a   :  { %6494 = vmatpush.bf16.msrb.mxu3 %v10623_v43  ;;  %v10300_v11 = vld [vmem:[#allocation6 + $0x720] sm:$0xf0]  ;;  %v3237_v47 = vmax.f32 %v3137_v39, 0.0  ;;  %v9826_v9 = vld [vmem:[#allocation6 + $0x348] sm:$0xf] }
 0x26b   :  { %v12440_v13 = vld [vmem:[#allocation6 + $0xac4] sm:$0xf]  ;;  %v10303_v21 = vor.u32 %v12320_v31, %v10300_v11  ;;  %v9602_v31 = vld [vmem:[#allocation6 + $0x188] sm:$0xf] }
 0x26c   :  { %6507 = vmatpush.bf16.msrb.mxu1 %v10879_v44  ;;  %6481 = vmatpush.bf16.msra.mxu0 %v10367_v25  ;;  %v10780_v15 = vld [vmem:[#allocation6 + $0xae0] sm:$0xf0]  ;;  %v3164_v44 = vpop.f32.mrf.mxu0  ;;  %v13111_v63 = vpack.c.bf16 %v3237_v47, %v3237_v47  ;;  %v9794_v39 = vld [vmem:[#allocation6 + $0x308] sm:$0xf] }
 0x26d   :  { %v12368_v23 = vld [vmem:[#allocation6 + $0x884] sm:$0xf]  ;;  %v10783_v40 = vor.u32 %v12440_v13, %v10780_v15  ;;  %v9891_v13 = vor.u32 %v12221_v1, %v9890_v60  ;;  %v9474_v60 = vld [vmem:[#allocation6 + $0x88] sm:$0xf] }
 0x26e   :  { %6495 = vmatpush.bf16.msrb.mxu3 %v10591_v54  ;;  %v10492_v24 = vld [vmem:[#allocation6 + $0x8a0] sm:$0xf0]  ;;  %6423 = vmatmul.bf16.vlgmr.msrb.gmra.mxu2 %v13111_v63  ;;  %v12117_v1 = vld [vmem:[#allocation6 + $0xa4] sm:$0xf0] }
 0x26f   :  { %v12312_v26 = vld [vmem:[#allocation6 + $0x6c4] sm:$0xf]  ;;  %v10495_v34 = vor.u32 %v12368_v23, %v10492_v24  ;;  %v12213_v23 = vld [vmem:[#allocation6 + $0x3a4] sm:$0xf0] }
 0x270   :  { %6508 = vmatpush.bf16.msrb.mxu1 %v10847_v62  ;;  %6482 = vmatpush.bf16.msra.mxu0 %v10335_v53  ;;  %v10268_v27 = vld [vmem:[#allocation6 + $0x6e0] sm:$0xf0]  ;;  %v3125_v53 = vpop.f32.mrf.mxu3  ;;  %v9859_v45 = vor.u32 %v12213_v23, %v9858_v20  ;;  %v9698_v20 = vld [vmem:[#allocation6 + $0x248] sm:$0xf] }
 0x271   :  { %v12432_v61 = vld [vmem:[#allocation6 + $0xa84] sm:$0xf]  ;;  %v10271_v32 = vor.u32 %v12312_v26, %v10268_v27 }
 0x272   :  { %6496 = vmatpush.bf16.msrb.mxu3 %v10559_v48  ;;  %v10748_v17 = vld [vmem:[#allocation6 + $0xaa0] sm:$0xf0] }
 0x273   :  { %v12360_v36 = vld [vmem:[#allocation6 + $0x844] sm:$0xf]  ;;  %v10751_v29 = vor.u32 %v12432_v61, %v10748_v17  ;;  %v9570_v17 = vld [vmem:[#allocation6 + $0x148] sm:$0xf] }
 0x274   :  { %6509 = vmatpush.bf16.msrb.mxu1 %v10815_v37  ;;  %6483 = vmatpush.bf16.msra.mxu0 %v10303_v21  ;;  %v10460_v35 = vld [vmem:[#allocation6 + $0x860] sm:$0xf0]  ;;  %v12149_v21 = vld [vmem:[#allocation6 + $0x1a4] sm:$0xf0] }
 0x275   :  { %v12424_v14 = vld [vmem:[#allocation6 + $0xa44] sm:$0xf]  ;;  %v10463_v49 = vor.u32 %v12360_v36, %v10460_v35  ;;  %v9603_v27 = vor.u32 %v12149_v21, %v9602_v31  ;;  %v530_v36 = vperm.slane %v13073_v12, 7  ;;  %v9571_v35 = vor.u32 %v12141_v51, %v9570_v17  ;;  %v12109_v21 = vld [vmem:[#allocation6 + $0x64] sm:$0xf0] }
 0x276   :  { %6497 = vmatpush.bf16.msrb.mxu3 %v10527_v22  ;;  %v12304_v57 = vld [vmem:[#allocation6 + $0x684] sm:$0xf]  ;;  %v9410_v17 = vld [vmem:[#allocation6 + $0x8] sm:$0xf] }
 0x277   :  { %v10236_v38 = vld [vmem:[#allocation6 + $0x6a0] sm:$0xf0]  ;;  %v3150_v44 = vadd.f32 %v13108_v56, %v530_v36  ;;  %v12165_v36 = vld [vmem:[#allocation6 + $0x224] sm:$0xf0] }
 0x278   :  { %6510 = vmatpush.bf16.msrb.mxu1 %v10783_v40  ;;  %v10716_v30 = vld [vmem:[#allocation6 + $0xa60] sm:$0xf0]  ;;  %6484 = vmatpush.bf16.msra.mxu0 %v10271_v32  ;;  %v10239_v7 = vor.u32 %v12304_v57, %v10236_v38  ;;  %v12205_v32 = vld [vmem:[#allocation6 + $0x364] sm:$0xf0] }
 0x279   :  { %v12536_v43 = vld [vmem:[#allocation6 + $0xdc4] sm:$0xf]  ;;  %v10719_v25 = vor.u32 %v12424_v14, %v10716_v30  ;;  %v9538_v57 = vld [vmem:[#allocation6 + $0x108] sm:$0xf] }
 0x27a   :  { %v11164_v42 = vld [vmem:[#allocation6 + $0xde0] sm:$0xf0]  ;;  %6498 = vmatpush.bf16.msrb.mxu3 %v10495_v34  ;;  %v12133_v38 = vld [vmem:[#allocation6 + $0x124] sm:$0xf0] }
 0x27b   :  { %v12352_v55 = vld [vmem:[#allocation6 + $0x804] sm:$0xf]  ;;  %v11167_v16 = vor.u32 %v12536_v43, %v11164_v42  ;;  %v12197_v30 = vld [vmem:[#allocation6 + $0x324] sm:$0xf0] }
 0x27c   :  { %v10428_v50 = vld [vmem:[#allocation6 + $0x820] sm:$0xf0]  ;;  %6511 = vmatpush.bf16.msrb.mxu1 %v10751_v29  ;;  %6485 = vmatpush.bf16.msra.mxu0 %v10239_v7  ;;  %v9827_v29 = vor.u32 %v12205_v32, %v9826_v9  ;;  %v9539_v7 = vor.u32 %v12133_v38, %v9538_v57  ;;  %v9795_v12 = vor.u32 %v12197_v30, %v9794_v39  ;;  %v3201_v31 = vpop.f32.mrf.mxu2  ;;  %v10914_v57 = vld [vmem:[#allocation6 + $0xbc8] sm:$0xf] }
 0x27d   :  { %v12416_v52 = vld [vmem:[#allocation6 + $0xa04] sm:$0xf]  ;;  %v10431_v48 = vor.u32 %v12352_v55, %v10428_v50  ;;  %6519 = vmatpush.bf16.msrb.mxu2 %v11167_v16  ;;  %v3175_v55 = vpop.f32.mrf.mxu1  ;;  %v12125_v50 = vld [vmem:[#allocation6 + $0xe4] sm:$0xf0] }
 0x27e   :  { %v10684_v54 = vld [vmem:[#allocation6 + $0xa20] sm:$0xf0]  ;;  %6499 = vmatpush.bf16.msrb.mxu3 %v10463_v49  ;;  %v9506_v49 = vld [vmem:[#allocation6 + $0xc8] sm:$0xf]  ;;  %6475 = vmatmul.bf16.vlgmr.msra.gmra.mxu2 %v13066_v8 }
 0x27f   :  { %v12296_v58 = vld [vmem:[#allocation6 + $0x644] sm:$0xf]  ;;  %v10687_v37 = vor.u32 %v12416_v52, %v10684_v54  ;;  %v9762_v52 = vld [vmem:[#allocation6 + $0x2c8] sm:$0xf]  ;;  %v9507_v56 = vor.u32 %v12125_v50, %v9506_v49 }
 0x280   :  { %v10204_v62 = vld [vmem:[#allocation6 + $0x660] sm:$0xf0]  ;;  %6512 = vmatpush.bf16.msrb.mxu1 %v10719_v25  ;;  %v12189_v25 = vld [vmem:[#allocation6 + $0x2e4] sm:$0xf0] }
 0x281   :  { %v12528_v2 = vld [vmem:[#allocation6 + $0xd84] sm:$0xf]  ;;  %v10207_v3 = vor.u32 %v12296_v58, %v10204_v62  ;;  %v3163_v58 = vadd.f32 %v13105_v19, %v3150_v44  ;;  %v3214_v62 = vpop.f32.mrf.mxu0  ;;  %v9763_v18 = vor.u32 %v12189_v25, %v9762_v52  ;;  %v9475_v19 = vor.u32 %v12117_v1, %v9474_v60  ;;  %v12477_v39 = vld [vmem:[#allocation6 + $0xbe4] sm:$0xf0] }
 0x282   :  { %v11132_v59 = vld [vmem:[#allocation6 + $0xda0] sm:$0xf0]  ;;  %6500 = vmatpush.bf16.msrb.mxu3 %v10431_v48  ;;  %v10114_v30 = vld [vmem:[#allocation6 + $0x588] sm:$0xf] }
 0x283   :  { %v12288_v11 = vld [vmem:[#allocation6 + $0x604] sm:$0xf]  ;;  %v11135_v15 = vor.u32 %v12528_v2, %v11132_v59  ;;  %6486 = vmatpush.bf16.msra.mxu0 %v10207_v3  ;;  %v9730_v2 = vld [vmem:[#allocation6 + $0x288] sm:$0xf]  ;;  %v3176_v48 = vadd.f32 %v3175_v55, %v3163_v58 }
 0x284   :  { %v10172_v22 = vld [vmem:[#allocation6 + $0x620] sm:$0xf0]  ;;  %6513 = vmatpush.bf16.msrb.mxu1 %v10687_v37  ;;  %v12181_v59 = vld [vmem:[#allocation6 + $0x2a4] sm:$0xf0]  ;;  %v3188_v37 = vpop.f32.mrf.mxu3 }
 0x285   :  { %v12520_v40 = vld [vmem:[#allocation6 + $0xd44] sm:$0xf]  ;;  %v10175_v26 = vor.u32 %v12288_v11, %v10172_v22  ;;  %6520 = vmatpush.bf16.msrb.mxu2 %v11135_v15  ;;  %6501 = vmatmul.bf16.vlgmr.msrb.gmra.mxu3 %v13083_v46  ;;  %v3177_v5 = vpop.f32.mrf.mxu1  ;;  %v9731_v11 = vor.u32 %v12181_v59, %v9730_v2  ;;  %v9442_v15 = vld [vmem:[#allocation6 + $0x48] sm:$0xf] }
 0x286   :  { %v11100_v24 = vld [vmem:[#allocation6 + $0xd60] sm:$0xf0]  ;;  %6545 = vmatpush.bf16.msra.mxu3 %v9635_v6  ;;  %v3189_v6 = vadd.f32 %v3188_v37, %v3176_v48  ;;  %v12173_v22 = vld [vmem:[#allocation6 + $0x264] sm:$0xf0] }
 0x287   :  { %v11103_v61 = vor.u32 %v12520_v40, %v11100_v24  ;;  %v12512_v33 = vld [vmem:[#allocation6 + $0xd04] sm:$0xf]  ;;  %6487 = vmatpush.bf16.msra.mxu0 %v10175_v26  ;;  %6514 = vmatmul.bf16.vlgmr.msrb.gmra.mxu1 %v13086_v0  ;;  %v9699_v9 = vor.u32 %v12173_v22, %v9698_v20  ;;  %v10626_v52 = vld [vmem:[#allocation6 + $0x988] sm:$0xf] }
 0x288   :  { %6558 = vmatpush.bf16.msra.mxu1 %v9891_v13  ;;  %v11068_v34 = vld [vmem:[#allocation6 + $0xd20] sm:$0xf0]  ;;  %v3202_v24 = vadd.f32 %v3201_v31, %v3189_v6  ;;  %v12405_v58 = vld [vmem:[#allocation6 + $0x9a4] sm:$0xf0] }
 0x289   :  { %6521 = vmatpush.bf16.msrb.mxu2 %v11103_v61  ;;  %v11071_v14 = vor.u32 %v12512_v33, %v11068_v34  ;;  %v12504_v43 = vld [vmem:[#allocation6 + $0xcc4] sm:$0xf]  ;;  %v3216_v26 = vpop.f32.mrf.mxu0  ;;  %v9443_v61 = vor.u32 %v12109_v21, %v9442_v15  ;;  %v12101_v33 = vld [vmem:[#allocation6 + $0x24] sm:$0xf0]  ;;  %v10627_v2 = vor.u32 %v12405_v58, %v10626_v52 }
 0x28a   :  { %6546 = vmatpush.bf16.msra.mxu3 %v9603_v27  ;;  %v11036_v42 = vld [vmem:[#allocation6 + $0xce0] sm:$0xf0]  ;;  %v10146_v27 = vld [vmem:[#allocation6 + $0x5c8] sm:$0xf]  ;;  %v3215_v51 = vadd.f32 %v3214_v62, %v3202_v24  ;;  %v9411_v55 = vor.u32 %v12101_v33, %v9410_v17 }
 0x28b   :  { %v11039_v47 = vor.u32 %v12504_v43, %v11036_v42  ;;  %v12496_v16 = vld [vmem:[#allocation6 + $0xc84] sm:$0xf]  ;;  %v9666_v34 = vld [vmem:[#allocation6 + $0x208] sm:$0xf] }
 0x28c   :  { %6559 = vmatpush.bf16.msra.mxu1 %v9859_v45  ;;  %v11004_v54 = vld [vmem:[#allocation6 + $0xca0] sm:$0xf0]  ;;  %v12285_v45 = vld [vmem:[#allocation6 + $0x5e4] sm:$0xf0]  ;;  %v3190_v44 = vpop.f32.mrf.mxu3 }
 0x28d   :  { %6522 = vmatpush.bf16.msrb.mxu2 %v11071_v14  ;;  %v11007_v28 = vor.u32 %v12496_v16, %v11004_v54  ;;  %v12488_v53 = vld [vmem:[#allocation6 + $0xc44] sm:$0xf]  ;;  %v12413_v14 = vld [vmem:[#allocation6 + $0x9e4] sm:$0xf0]  ;;  %v3227_v38 = vpop.f32.mrf.mxu1  ;;  %v10915_v16 = vor.u32 %v12477_v39, %v10914_v57 }
 0x28e   :  { %6547 = vmatpush.bf16.msra.mxu3 %v9571_v35  ;;  %v10972_v3 = vld [vmem:[#allocation6 + $0xc60] sm:$0xf0]  ;;  %v10147_v35 = vor.u32 %v12285_v45, %v10146_v27  ;;  %v12277_v43 = vld [vmem:[#allocation6 + $0x5a4] sm:$0xf0]  ;;  %v3228_v42 = vadd.f32 %v3227_v38, %v3215_v51 }
 0x28f   :  { %v10975_v13 = vor.u32 %v12488_v53, %v10972_v3  ;;  %v12480_v23 = vld [vmem:[#allocation6 + $0xc04] sm:$0xf]  ;;  %v10115_v54 = vor.u32 %v12277_v43, %v10114_v30  ;;  %v10882_v62 = vld [vmem:[#allocation6 + $0xb88] sm:$0xf] }
 0x290   :  { %6560 = vmatpush.bf16.msra.mxu1 %v9827_v29  ;;  %v10940_v40 = vld [vmem:[#allocation6 + $0xc20] sm:$0xf0]  ;;  %v10658_v29 = vld [vmem:[#allocation6 + $0x9c8] sm:$0xf]  ;;  %v3238_v25 = vmax.f32 %v3228_v42, 0.0 }
 0x291   :  { %6523 = vmatpush.bf16.msrb.mxu2 %v11039_v47  ;;  %v10943_v32 = vor.u32 %v12480_v23, %v10940_v40  ;;  %v10659_v47 = vor.u32 %v12413_v14, %v10658_v29  ;;  %v12600_v49 = vld [vmem:[#allocation6 + $0xfc4] sm:$0xf]  ;;  %v10594_v5 = vld [vmem:[#allocation6 + $0x948] sm:$0xf] }
 0x292   :  { %6548 = vmatpush.bf16.msra.mxu3 %v9539_v7  ;;  %v3203_v7 = vpop.f32.mrf.mxu2  ;;  %v11420_v50 = vld [vmem:[#allocation6 + $0xfe0] sm:$0xf0]  ;;  %v13120_v60 = vpack.c.bf16 %v3238_v25, %v3238_v25  ;;  %v12397_v37 = vld [vmem:[#allocation6 + $0x964] sm:$0xf0] }
 0x293   :  { %v11423_v1 = vor.u32 %v12600_v49, %v11420_v50  ;;  %v12592_v59 = vld [vmem:[#allocation6 + $0xf84] sm:$0xf]  ;;  %v12461_v31 = vld [vmem:[#allocation6 + $0xb64] sm:$0xf0]  ;;  %v10595_v21 = vor.u32 %v12397_v37, %v10594_v5 }
 0x294   :  { %6561 = vmatpush.bf16.msra.mxu1 %v9795_v12  ;;  %v9667_v12 = vor.u32 %v12165_v36, %v9666_v34  ;;  %v11388_v53 = vld [vmem:[#allocation6 + $0xfa0] sm:$0xf0]  ;;  %6436 = vmatmul.bf16.vlgmr.msrb.gmra.mxu0 %v13120_v60  ;;  %v10562_v24 = vld [vmem:[#allocation6 + $0x908] sm:$0xf] }
 0x295   :  { %6524 = vmatpush.bf16.msrb.mxu2 %v11007_v28  ;;  %v12269_v28 = vld [vmem:[#allocation6 + $0x564] sm:$0xf0]  ;;  %v3229_v6 = vpop.f32.mrf.mxu1  ;;  %6532 = vmatpush.bf16.msrb.mxu0 %v11423_v1  ;;  %v11391_v15 = vor.u32 %v12592_v59, %v11388_v53  ;;  %v12584_v20 = vld [vmem:[#allocation6 + $0xf44] sm:$0xf] }
 0x296   :  { %6549 = vmatpush.bf16.msra.mxu3 %v9507_v56  ;;  %v12469_v56 = vld [vmem:[#allocation6 + $0xba4] sm:$0xf0]  ;;  %v11356_v22 = vld [vmem:[#allocation6 + $0xf60] sm:$0xf0] }
 0x297   :  { %v10883_v3 = vor.u32 %v12469_v56, %v10882_v62  ;;  %v12389_v26 = vld [vmem:[#allocation6 + $0x924] sm:$0xf0]  ;;  %v11359_v51 = vor.u32 %v12584_v20, %v11356_v22  ;;  %v11324_v33 = vld [vmem:[#allocation6 + $0xf20] sm:$0xf0] }
 0x298   :  { %6562 = vmatpush.bf16.msra.mxu1 %v9763_v18  ;;  %v10082_v18 = vld [vmem:[#allocation6 + $0x548] sm:$0xf]  ;;  %v13126_v57 = vld [vmem:[#allocation7] sm:$0xff]  ;;  %v13128_v44 = vpop.f32.mrf.mxu0 }
 0x299   :  { %6525 = vmatpush.bf16.msrb.mxu2 %v10975_v13  ;;  %v10083_v48 = vor.u32 %v12269_v28, %v10082_v18  ;;  %v12261_v13 = vld [vmem:[#allocation6 + $0x524] sm:$0xf0]  ;;  %6533 = vmatpush.bf16.msrb.mxu0 %v11391_v15  ;;  %v3761_v7 = vperm.slane %v13126_v57, 0  ;;  %v12560_v1 = vld [vmem:[#allocation6 + $0xe84] sm:$0xf] }
 0x29a   :  { %6550 = vmatpush.bf16.msra.mxu3 %v9475_v19  ;;  %v10850_v19 = vld [vmem:[#allocation6 + $0xb48] sm:$0xf]  ;;  %v6346_v18 = vpop.f32.mrf.mxu3 }
 0x29b   :  { %v10851_v23 = vor.u32 %v12461_v31, %v10850_v19  ;;  %v10818_v27 = vld [vmem:[#allocation6 + $0xb08] sm:$0xf]  ;;  %v6347_v59 = vadd.f32 %v6346_v18, %v3761_v7  ;;  %v11196_v7 = vld [vmem:[#allocation6 + $0xe20] sm:$0xf0] }
 0x29c   :  { %6563 = vmatpush.bf16.msra.mxu1 %v9731_v11  ;;  %v10050_v11 = vld [vmem:[#allocation6 + $0x508] sm:$0xf]  ;;  %v6372_v53 = vpop.f32.mrf.mxu2 }
 0x29d   :  { %6526 = vmatpush.bf16.msrb.mxu2 %v10943_v32  ;;  %v10051_v40 = vor.u32 %v12261_v13, %v10050_v11  ;;  %v12453_v45 = vld [vmem:[#allocation6 + $0xb24] sm:$0xf0]  ;;  %v12576_v32 = vld [vmem:[#allocation6 + $0xf04] sm:$0xf]  ;;  %6534 = vmatpush.bf16.msrb.mxu0 %v11359_v51  ;;  %v6359_v43 = vpop.f32.mrf.mxu1 }
 0x29e   :  { %6551 = vmatpush.bf16.msra.mxu3 %v9443_v61  ;;  %v10018_v61 = vld [vmem:[#allocation6 + $0x4c8] sm:$0xf]  ;;  %v10819_v36 = vor.u32 %v12453_v45, %v10818_v27  ;;  %v11327_v42 = vor.u32 %v12576_v32, %v11324_v33  ;;  %v6360_v13 = vadd.f32 %v6359_v43, %v6347_v59 }
 0x29f   :  { %v12253_v17 = vld [vmem:[#allocation6 + $0x4e4] sm:$0xf0] }
 0x2a0   :  { %6564 = vmatpush.bf16.msra.mxu1 %v9699_v9  ;;  %6527 = vmatmul.bf16.vlgmr.msrb.gmra.mxu2 %v13111_v63  ;;  %v10563_v9 = vor.u32 %v12389_v26, %v10562_v24  ;;  %v10530_v34 = vld [vmem:[#allocation6 + $0x8c8] sm:$0xf]  ;;  %v12552_v24 = vld [vmem:[#allocation6 + $0xe44] sm:$0xf]  ;;  %v6373_v45 = vadd.f32 %v6372_v53, %v6360_v13 }
 0x2a1   :  { %6571 = vmatpush.bf16.msra.mxu2 %v10147_v35  ;;  %v10019_v35 = vor.u32 %v12253_v17, %v10018_v61  ;;  %v12381_v29 = vld [vmem:[#allocation6 + $0x8e4] sm:$0xf0]  ;;  %6535 = vmatpush.bf16.msrb.mxu0 %v11327_v42  ;;  %v11228_v26 = vld [vmem:[#allocation6 + $0xe60] sm:$0xf0] }
 0x2a2   :  { %6552 = vmatpush.bf16.msra.mxu3 %v9411_v55  ;;  %v10786_v14 = vld [vmem:[#allocation6 + $0xac8] sm:$0xf]  ;;  %v10531_v55 = vor.u32 %v12381_v29, %v10530_v34  ;;  %v12153_v34 = vld [vmem:[#allocation6 + $0x1cc] sm:$0xf]  ;;  %v11231_v29 = vor.u32 %v12552_v24, %v11228_v26  ;;  %v6348_v43 = vpop.f32.mrf.mxu3 }
 0x2a3   :  { %v12445_v38 = vld [vmem:[#allocation6 + $0xae4] sm:$0xf0]  ;;  %v12193_v26 = vld [vmem:[#allocation6 + $0x30c] sm:$0xf] }
 0x2a4   :  { %6565 = vmatpush.bf16.msra.mxu1 %v9667_v12  ;;  %v9986_v39 = vld [vmem:[#allocation6 + $0x488] sm:$0xf]  ;;  %v12568_v12 = vld [vmem:[#allocation6 + $0xec4] sm:$0xf]  ;;  %v10787_v49 = vor.u32 %v12445_v38, %v10786_v14  ;;  %6488 = vmatmul.bf16.vlgmr.msra.gmra.mxu0 %v13068_v10  ;;  %v9892_v14 = vld [vmem:[#allocation6 + $0x3e8] sm:$0xf0] }
 0x2a5   :  { %6572 = vmatpush.bf16.msra.mxu2 %v10115_v54  ;;  %6553 = vmatmul.bf16.vlgmr.msra.gmra.mxu3 %v13062_v4  ;;  %v12245_v30 = vld [vmem:[#allocation6 + $0x4a4] sm:$0xf0]  ;;  %v6361_v15 = vpop.f32.mrf.mxu1 }
 0x2a6   :  { %6597 = vmatpush.bf16.msrb.mxu3 %v10659_v47  ;;  %v11292_v47 = vld [vmem:[#allocation6 + $0xee0] sm:$0xf0]  ;;  %v9987_v50 = vor.u32 %v12245_v30, %v9986_v39  ;;  %v10498_v52 = vld [vmem:[#allocation6 + $0x888] sm:$0xf]  ;;  %v13133_v30 = vadd.f32 %v13128_v44, %v6373_v45 }
 0x2a7   :  { %6566 = vmatmul.bf16.vlgmr.msra.gmra.mxu1 %v13064_v41  ;;  %v12373_v25 = vld [vmem:[#allocation6 + $0x8a4] sm:$0xf0]  ;;  %v11295_v56 = vor.u32 %v12568_v12, %v11292_v47  ;;  %v6374_v12 = vpop.f32.mrf.mxu2 }
 0x2a8   :  { %6610 = vmatpush.bf16.msrb.mxu1 %v10915_v16  ;;  %v10754_v16 = vld [vmem:[#allocation6 + $0xa88] sm:$0xf]  ;;  %v10499_v28 = vor.u32 %v12373_v25, %v10498_v52 }
 0x2a9   :  { %6573 = vmatpush.bf16.msra.mxu2 %v10083_v48  ;;  %v12437_v54 = vld [vmem:[#allocation6 + $0xaa4] sm:$0xf0]  ;;  %6536 = vmatpush.bf16.msrb.mxu0 %v11295_v56  ;;  %v9860_v56 = vld [vmem:[#allocation6 + $0x3a8] sm:$0xf0] }
 0x2aa   :  { %6598 = vmatpush.bf16.msrb.mxu3 %v10627_v2  ;;  %v9954_v58 = vld [vmem:[#allocation6 + $0x448] sm:$0xf]  ;;  %v11260_v2 = vld [vmem:[#allocation6 + $0xea0] sm:$0xf0] }
 0x2ab   :  { %v12237_v62 = vld [vmem:[#allocation6 + $0x464] sm:$0xf0] }
 0x2ac   :  { %6611 = vmatpush.bf16.msrb.mxu1 %v10883_v3  ;;  %v10755_v3 = vor.u32 %v12437_v54, %v10754_v16  ;;  %v9955_v48 = vor.u32 %v12237_v62, %v9954_v58  ;;  %v10466_v5 = vld [vmem:[#allocation6 + $0x848] sm:$0xf]  ;;  %v12145_v54 = vld [vmem:[#allocation6 + $0x18c] sm:$0xf] }
 0x2ad   :  { %6574 = vmatpush.bf16.msra.mxu2 %v10051_v40  ;;  %v12365_v37 = vld [vmem:[#allocation6 + $0x864] sm:$0xf0]  ;;  %v9604_v58 = vld [vmem:[#allocation6 + $0x1a8] sm:$0xf0] }
 0x2ae   :  { %6599 = vmatpush.bf16.msrb.mxu3 %v10595_v21  ;;  %v10722_v19 = vld [vmem:[#allocation6 + $0xa48] sm:$0xf]  ;;  %v11263_v21 = vor.u32 %v12560_v1, %v11260_v2  ;;  %v10467_v40 = vor.u32 %v12365_v37, %v10466_v5  ;;  %v12209_v62 = vld [vmem:[#allocation6 + $0x38c] sm:$0xf]  ;;  %v9607_v2 = vor.u32 %v12145_v54, %v9604_v58 }
 0x2af   :  { %v12429_v6 = vld [vmem:[#allocation6 + $0xa64] sm:$0xf0]  ;;  %v9572_v5 = vld [vmem:[#allocation6 + $0x168] sm:$0xf0] }
 0x2b0   :  { %6612 = vmatpush.bf16.msrb.mxu1 %v10851_v23  ;;  %v9922_v31 = vld [vmem:[#allocation6 + $0x408] sm:$0xf]  ;;  %v6387_v23 = vpop.f32.mrf.mxu0  ;;  %v10723_v61 = vor.u32 %v12429_v6, %v10722_v19  ;;  %6537 = vmatpush.bf16.msrb.mxu0 %v11263_v21  ;;  %v12201_v19 = vld [vmem:[#allocation6 + $0x34c] sm:$0xf] }
 0x2b1   :  { %6575 = vmatpush.bf16.msra.mxu2 %v10019_v35  ;;  %v12229_v11 = vld [vmem:[#allocation6 + $0x424] sm:$0xf0]  ;;  %v12217_v35 = vld [vmem:[#allocation6 + $0x3cc] sm:$0xf] }
 0x2b2   :  { %6600 = vmatpush.bf16.msrb.mxu3 %v10563_v9  ;;  %v11170_v20 = vld [vmem:[#allocation6 + $0xdc8] sm:$0xf]  ;;  %v9923_v17 = vor.u32 %v12229_v11, %v9922_v31  ;;  %v9895_v25 = vor.u32 %v12217_v35, %v9892_v14  ;;  %v9828_v6 = vld [vmem:[#allocation6 + $0x368] sm:$0xf0] }
 0x2b3   :  { %v12541_v22 = vld [vmem:[#allocation6 + $0xde4] sm:$0xf0]  ;;  %v12129_v23 = vld [vmem:[#allocation6 + $0x10c] sm:$0xf] }
 0x2b4   :  { %6613 = vmatpush.bf16.msrb.mxu1 %v10819_v36  ;;  %v10434_v27 = vld [vmem:[#allocation6 + $0x808] sm:$0xf]  ;;  %v11171_v33 = vor.u32 %v12541_v22, %v11170_v20  ;;  %v9636_v36 = vld [vmem:[#allocation6 + $0x1e8] sm:$0xf0]  ;;  %6538 = vmatpush.bf16.msrb.mxu0 %v11231_v29  ;;  %v9831_v22 = vor.u32 %v12201_v19, %v9828_v6 }
 0x2b5   :  { %6576 = vmatpush.bf16.msra.mxu2 %v9987_v50  ;;  %v12357_v51 = vld [vmem:[#allocation6 + $0x824] sm:$0xf0]  ;;  %v12185_v29 = vld [vmem:[#allocation6 + $0x2cc] sm:$0xf] }
 0x2b6   :  { %6601 = vmatpush.bf16.msrb.mxu3 %v10531_v55  ;;  %v10690_v9 = vld [vmem:[#allocation6 + $0xa08] sm:$0xf]  ;;  %v10435_v42 = vor.u32 %v12357_v51, %v10434_v27  ;;  %v12544_v55 = vld [vmem:[#allocation6 + $0xe04] sm:$0xf]  ;;  %v9796_v27 = vld [vmem:[#allocation6 + $0x328] sm:$0xf0] }
 0x2b7   :  { %v12421_v32 = vld [vmem:[#allocation6 + $0xa24] sm:$0xf0]  ;;  %v11199_v44 = vor.u32 %v12544_v55, %v11196_v7  ;;  %v9764_v14 = vld [vmem:[#allocation6 + $0x2e8] sm:$0xf0] }
 0x2b8   :  { %6614 = vmatpush.bf16.msrb.mxu1 %v10787_v49  ;;  %v11138_v38 = vld [vmem:[#allocation6 + $0xd88] sm:$0xf]  ;;  %v10691_v47 = vor.u32 %v12421_v32, %v10690_v9  ;;  %v9639_v49 = vor.u32 %v12153_v34, %v9636_v36  ;;  %v12121_v34 = vld [vmem:[#allocation6 + $0xcc] sm:$0xf]  ;;  %v9767_v12 = vor.u32 %v12185_v29, %v9764_v14 }
 0x2b9   :  { %6577 = vmatpush.bf16.msra.mxu2 %v9955_v48  ;;  %v12533_v39 = vld [vmem:[#allocation6 + $0xda4] sm:$0xf0]  ;;  %v12137_v48 = vld [vmem:[#allocation6 + $0x14c] sm:$0xf]  ;;  %6539 = vmatpush.bf16.msrb.mxu0 %v11199_v44 }
 0x2ba   :  { %6602 = vmatpush.bf16.msrb.mxu3 %v10499_v28  ;;  %v10402_v50 = vld [vmem:[#allocation6 + $0x7c8] sm:$0xf]  ;;  %v11139_v16 = vor.u32 %v12533_v39, %v11138_v38  ;;  %v9575_v15 = vor.u32 %v12137_v48, %v9572_v5  ;;  %v9508_v36 = vld [vmem:[#allocation6 + $0xe8] sm:$0xf0] }
 0x2bb   :  { %v12349_v52 = vld [vmem:[#allocation6 + $0x7e4] sm:$0xf0]  ;;  %v12169_v48 = vld [vmem:[#allocation6 + $0x24c] sm:$0xf] }
 0x2bc   :  { %6615 = vmatpush.bf16.msrb.mxu1 %v10755_v3  ;;  %v10403_v18 = vor.u32 %v12349_v52, %v10402_v50  ;;  %v11106_v28 = vld [vmem:[#allocation6 + $0xd48] sm:$0xf]  ;;  %v9863_v3 = vor.u32 %v12209_v62, %v9860_v56  ;;  %6540 = vmatmul.bf16.vlgmr.msrb.gmra.mxu0 %v13120_v60  ;;  %v12177_v52 = vld [vmem:[#allocation6 + $0x28c] sm:$0xf] }
 0x2bd   :  { %6578 = vmatpush.bf16.msra.mxu2 %v9923_v17  ;;  %v12525_v1 = vld [vmem:[#allocation6 + $0xd64] sm:$0xf0]  ;;  %v9700_v5 = vld [vmem:[#allocation6 + $0x268] sm:$0xf0] }
 0x2be   :  { %6603 = vmatpush.bf16.msrb.mxu3 %v10467_v40  ;;  %v10370_v59 = vld [vmem:[#allocation6 + $0x788] sm:$0xf]  ;;  %v11107_v37 = vor.u32 %v12525_v1, %v11106_v28  ;;  %6584 = vmatpush.bf16.msra.mxu0 %v10403_v18  ;;  %v9540_v40 = vld [vmem:[#allocation6 + $0x128] sm:$0xf0] }
 0x2bf   :  { %v12341_v53 = vld [vmem:[#allocation6 + $0x7a4] sm:$0xf0]  ;;  %v9543_v51 = vor.u32 %v12129_v23, %v9540_v40  ;;  %v12097_v23 = vld [vmem:[#allocation6 + $0xc] sm:$0xf] }
 0x2c0   :  { %6616 = vmatpush.bf16.msrb.mxu1 %v10723_v61  ;;  %6579 = vmatmul.bf16.vlgmr.msra.gmra.mxu2 %v13066_v8  ;;  %v10371_v31 = vor.u32 %v12341_v53, %v10370_v59  ;;  %v11074_v11 = vld [vmem:[#allocation6 + $0xd08] sm:$0xf]  ;;  %v9444_v59 = vld [vmem:[#allocation6 + $0x68] sm:$0xf0] }
 0x2c1   :  { %6623 = vmatpush.bf16.msrb.mxu2 %v11171_v33  ;;  %v12517_v13 = vld [vmem:[#allocation6 + $0xd24] sm:$0xf0]  ;;  %v9799_v33 = vor.u32 %v12193_v26, %v9796_v27  ;;  %v12161_v40 = vld [vmem:[#allocation6 + $0x20c] sm:$0xf] }
 0x2c2   :  { %6604 = vmatpush.bf16.msrb.mxu3 %v10435_v42  ;;  %v10338_v21 = vld [vmem:[#allocation6 + $0x748] sm:$0xf]  ;;  %v11075_v24 = vor.u32 %v12517_v13, %v11074_v11  ;;  %6585 = vmatpush.bf16.msra.mxu0 %v10371_v31  ;;  %v9511_v42 = vor.u32 %v12121_v34, %v9508_v36  ;;  %v9668_v26 = vld [vmem:[#allocation6 + $0x228] sm:$0xf0] }
 0x2c3   :  { %v12333_v20 = vld [vmem:[#allocation6 + $0x764] sm:$0xf0]  ;;  %v12409_v27 = vld [vmem:[#allocation6 + $0x9cc] sm:$0xf] }
 0x2c4   :  { %6617 = vmatpush.bf16.msrb.mxu1 %v10691_v47  ;;  %v10339_v45 = vor.u32 %v12333_v20, %v10338_v21  ;;  %v11042_v61 = vld [vmem:[#allocation6 + $0xcc8] sm:$0xf]  ;;  %v12113_v47 = vld [vmem:[#allocation6 + $0x8c] sm:$0xf] }
 0x2c5   :  { %6624 = vmatpush.bf16.msrb.mxu2 %v11139_v16  ;;  %6605 = vmatmul.bf16.vlgmr.msrb.gmra.mxu3 %v13083_v46  ;;  %v12509_v17 = vld [vmem:[#allocation6 + $0xce4] sm:$0xf0]  ;;  %v6411_v16 = vpop.f32.mrf.mxu1  ;;  %v12281_v21 = vld [vmem:[#allocation6 + $0x5cc] sm:$0xf] }
 0x2c6   :  { %6649 = vmatpush.bf16.msra.mxu3 %v9639_v49  ;;  %v10306_v9 = vld [vmem:[#allocation6 + $0x708] sm:$0xf]  ;;  %v11043_v35 = vor.u32 %v12509_v17, %v11042_v61  ;;  %6586 = vmatpush.bf16.msra.mxu0 %v10339_v45  ;;  %v9476_v49 = vld [vmem:[#allocation6 + $0xa8] sm:$0xf0] }
 0x2c7   :  { %6618 = vmatmul.bf16.vlgmr.msrb.gmra.mxu1 %v13086_v0  ;;  %v12325_v32 = vld [vmem:[#allocation6 + $0x724] sm:$0xf0]  ;;  %v9479_v62 = vor.u32 %v12113_v47, %v9476_v49  ;;  %v10148_v20 = vld [vmem:[#allocation6 + $0x5e8] sm:$0xf0] }
 0x2c8   :  { %6662 = vmatpush.bf16.msra.mxu1 %v9895_v25  ;;  %v10307_v38 = vor.u32 %v12325_v32, %v10306_v9  ;;  %v11010_v39 = vld [vmem:[#allocation6 + $0xc88] sm:$0xf]  ;;  %v9732_v25 = vld [vmem:[#allocation6 + $0x2a8] sm:$0xf0]  ;;  %v6398_v28 = vpop.f32.mrf.mxu3 }
 0x2c9   :  { %6625 = vmatpush.bf16.msrb.mxu2 %v11107_v37  ;;  %v12501_v43 = vld [vmem:[#allocation6 + $0xca4] sm:$0xf0]  ;;  %v9735_v1 = vor.u32 %v12177_v52, %v9732_v25  ;;  %v6399_v53 = vadd.f32 %v6398_v28, %v13133_v30  ;;  %v9412_v30 = vld [vmem:[#allocation6 + $0x28] sm:$0xf0] }
 0x2ca   :  { %6650 = vmatpush.bf16.msra.mxu3 %v9607_v2  ;;  %v10274_v55 = vld [vmem:[#allocation6 + $0x6c8] sm:$0xf]  ;;  %v11011_v50 = vor.u32 %v12501_v43, %v11010_v39  ;;  %6587 = vmatpush.bf16.msra.mxu0 %v10307_v38  ;;  %v12105_v2 = vld [vmem:[#allocation6 + $0x4c] sm:$0xf]  ;;  %v9415_v34 = vor.u32 %v12097_v23, %v9412_v30  ;;  %v9671_v38 = vor.u32 %v12161_v40, %v9668_v26 }
 0x2cb   :  { %v12317_v7 = vld [vmem:[#allocation6 + $0x6e4] sm:$0xf0]  ;;  %v13140_v11 = vadd.f32 %v6411_v16, %v6399_v53  ;;  %v9447_v13 = vor.u32 %v12105_v2, %v9444_v59  ;;  %v10660_v45 = vld [vmem:[#allocation6 + $0x9e8] sm:$0xf0] }
 0x2cc   :  { %6663 = vmatpush.bf16.msra.mxu1 %v9863_v3  ;;  %v10275_v54 = vor.u32 %v12317_v7, %v10274_v55  ;;  %v10978_v58 = vld [vmem:[#allocation6 + $0xc48] sm:$0xf]  ;;  %v12473_v9 = vld [vmem:[#allocation6 + $0xbcc] sm:$0xf] }
 0x2cd   :  { %6626 = vmatpush.bf16.msrb.mxu2 %v11075_v24  ;;  %v12493_v44 = vld [vmem:[#allocation6 + $0xc64] sm:$0xf0]  ;;  %v6413_v61 = vpop.f32.mrf.mxu1  ;;  %v10916_v32 = vld [vmem:[#allocation6 + $0xbe8] sm:$0xf0] }
 0x2ce   :  { %6651 = vmatpush.bf16.msra.mxu3 %v9575_v15  ;;  %v10242_v56 = vld [vmem:[#allocation6 + $0x688] sm:$0xf]  ;;  %v10979_v3 = vor.u32 %v12493_v44, %v10978_v58  ;;  %6588 = vmatpush.bf16.msra.mxu0 %v10275_v54  ;;  %v10116_v29 = vld [vmem:[#allocation6 + $0x5a8] sm:$0xf0]  ;;  %v10919_v55 = vor.u32 %v12473_v9, %v10916_v32 }
 0x2cf   :  { %v12309_v18 = vld [vmem:[#allocation6 + $0x6a4] sm:$0xf0]  ;;  %v12401_v47 = vld [vmem:[#allocation6 + $0x98c] sm:$0xf] }
 0x2d0   :  { %6664 = vmatpush.bf16.msra.mxu1 %v9831_v22  ;;  %v10243_v37 = vor.u32 %v12309_v18, %v10242_v56  ;;  %v10946_v19 = vld [vmem:[#allocation6 + $0xc08] sm:$0xf]  ;;  %v9703_v22 = vor.u32 %v12169_v48, %v9700_v5  ;;  %v6400_v14 = vpop.f32.mrf.mxu3  ;;  %v10628_v49 = vld [vmem:[#allocation6 + $0x9a8] sm:$0xf0] }
 0x2d1   :  { %6627 = vmatpush.bf16.msrb.mxu2 %v11043_v35  ;;  %v12485_v6 = vld [vmem:[#allocation6 + $0xc24] sm:$0xf0]  ;;  %v12273_v35 = vld [vmem:[#allocation6 + $0x58c] sm:$0xf] }
 0x2d2   :  { %6652 = vmatpush.bf16.msra.mxu3 %v9543_v51  ;;  %v10210_v31 = vld [vmem:[#allocation6 + $0x648] sm:$0xf]  ;;  %v10947_v24 = vor.u32 %v12485_v6, %v10946_v19  ;;  %6589 = vmatpush.bf16.msra.mxu0 %v10243_v37  ;;  %v10151_v51 = vor.u32 %v12281_v21, %v10148_v20  ;;  %v10884_v25 = vld [vmem:[#allocation6 + $0xba8] sm:$0xf0] }
 0x2d3   :  { %v12301_v15 = vld [vmem:[#allocation6 + $0x664] sm:$0xf0]  ;;  %v12265_v16 = vld [vmem:[#allocation6 + $0x54c] sm:$0xf] }
 0x2d4   :  { %6665 = vmatpush.bf16.msra.mxu1 %v9799_v33  ;;  %v10211_v17 = vor.u32 %v12301_v15, %v10210_v31  ;;  %v10178_v33 = vld [vmem:[#allocation6 + $0x608] sm:$0xf]  ;;  %v10084_v54 = vld [vmem:[#allocation6 + $0x568] sm:$0xf0] }
 0x2d5   :  { %6628 = vmatpush.bf16.msrb.mxu2 %v11011_v50  ;;  %v12293_v36 = vld [vmem:[#allocation6 + $0x624] sm:$0xf0]  ;;  %v12465_v50 = vld [vmem:[#allocation6 + $0xb8c] sm:$0xf]  ;;  %v10087_v18 = vor.u32 %v12265_v16, %v10084_v54 }
 0x2d6   :  { %6653 = vmatpush.bf16.msra.mxu3 %v9511_v42  ;;  %v11426_v39 = vld [vmem:[#allocation6 + $0xfc8] sm:$0xf]  ;;  %v10663_v42 = vor.u32 %v12409_v27, %v10660_v45  ;;  %6590 = vmatpush.bf16.msra.mxu0 %v10211_v17  ;;  %v10179_v7 = vor.u32 %v12293_v36, %v10178_v33  ;;  %v10887_v56 = vor.u32 %v12465_v50, %v10884_v25  ;;  %v12393_v28 = vld [vmem:[#allocation6 + $0x94c] sm:$0xf] }
 0x2d7   :  { %v12605_v43 = vld [vmem:[#allocation6 + $0xfe4] sm:$0xf0]  ;;  %v12457_v2 = vld [vmem:[#allocation6 + $0xb4c] sm:$0xf] }
 0x2d8   :  { %6666 = vmatpush.bf16.msra.mxu1 %v9767_v12  ;;  %v10119_v12 = vor.u32 %v12273_v35, %v10116_v29  ;;  %v11427_v52 = vor.u32 %v12605_v43, %v11426_v39  ;;  %v11394_v58 = vld [vmem:[#allocation6 + $0xf88] sm:$0xf]  ;;  %v10852_v53 = vld [vmem:[#allocation6 + $0xb68] sm:$0xf0] }
 0x2d9   :  { %6629 = vmatpush.bf16.msrb.mxu2 %v10979_v3  ;;  %v12597_v44 = vld [vmem:[#allocation6 + $0xfa4] sm:$0xf0]  ;;  %v12257_v3 = vld [vmem:[#allocation6 + $0x50c] sm:$0xf]  ;;  %v10855_v6 = vor.u32 %v12457_v2, %v10852_v53 }
 0x2da   :  { %6654 = vmatpush.bf16.msra.mxu3 %v9479_v62  ;;  %v10631_v62 = vor.u32 %v12401_v47, %v10628_v49  ;;  %6591 = vmatpush.bf16.msra.mxu0 %v10179_v7  ;;  %v11395_v59 = vor.u32 %v12597_v44, %v11394_v58  ;;  %v10052_v48 = vld [vmem:[#allocation6 + $0x528] sm:$0xf0]  ;;  %v11362_v5 = vld [vmem:[#allocation6 + $0xf48] sm:$0xf] }
 0x2db   :  { %v12589_v37 = vld [vmem:[#allocation6 + $0xf64] sm:$0xf0]  ;;  %v10055_v31 = vor.u32 %v12257_v3, %v10052_v48  ;;  %v10564_v15 = vld [vmem:[#allocation6 + $0x928] sm:$0xf0] }
 0x2dc   :  { %6667 = vmatpush.bf16.msra.mxu1 %v9735_v1  ;;  %v10596_v1 = vld [vmem:[#allocation6 + $0x968] sm:$0xf0]  ;;  %v11363_v20 = vor.u32 %v12589_v37, %v11362_v5  ;;  %v11330_v40 = vld [vmem:[#allocation6 + $0xf08] sm:$0xf] }
 0x2dd   :  { %6630 = vmatpush.bf16.msrb.mxu2 %v10947_v24  ;;  %6592 = vmatmul.bf16.vlgmr.msra.gmra.mxu0 %v13068_v10  ;;  %v10599_v19 = vor.u32 %v12393_v28, %v10596_v1  ;;  %v12449_v21 = vld [vmem:[#allocation6 + $0xb0c] sm:$0xf]  ;;  %v12581_v24 = vld [vmem:[#allocation6 + $0xf24] sm:$0xf0] }
 0x2de   :  { %6655 = vmatpush.bf16.msra.mxu3 %v9447_v13  ;;  %6636 = vmatpush.bf16.msrb.mxu0 %v11427_v52  ;;  %v12385_v13 = vld [vmem:[#allocation6 + $0x90c] sm:$0xf]  ;;  %v11331_v9 = vor.u32 %v12581_v24, %v11330_v40  ;;  %v11298_v35 = vld [vmem:[#allocation6 + $0xec8] sm:$0xf]  ;;  %v12158_v24 = vld [vmem:[#allocation6 + $0x1ec] sm:$0xf0] }
 0x2df   :  { %v12249_v23 = vld [vmem:[#allocation6 + $0x4cc] sm:$0xf]  ;;  %v10567_v26 = vor.u32 %v12385_v13, %v10564_v15  ;;  %v12573_v29 = vld [vmem:[#allocation6 + $0xee4] sm:$0xf0] }
 0x2e0   :  { %6668 = vmatpush.bf16.msra.mxu1 %v9703_v22  ;;  %6631 = vmatmul.bf16.vlgmr.msrb.gmra.mxu2 %v13111_v63  ;;  %v10820_v22 = vld [vmem:[#allocation6 + $0xb28] sm:$0xf0]  ;;  %v11266_v52 = vld [vmem:[#allocation6 + $0xe88] sm:$0xf] }
 0x2e1   :  { %6675 = vmatpush.bf16.msra.mxu2 %v10151_v51  ;;  %v10020_v30 = vld [vmem:[#allocation6 + $0x4e8] sm:$0xf0]  ;;  %v10823_v27 = vor.u32 %v12449_v21, %v10820_v22  ;;  %v12565_v25 = vld [vmem:[#allocation6 + $0xea4] sm:$0xf0] }
 0x2e2   :  { %6656 = vmatpush.bf16.msra.mxu3 %v9415_v34  ;;  %6637 = vmatpush.bf16.msrb.mxu0 %v11395_v59  ;;  %v10023_v45 = vor.u32 %v12249_v23, %v10020_v30  ;;  %v12377_v61 = vld [vmem:[#allocation6 + $0x8cc] sm:$0xf]  ;;  %v11267_v1 = vor.u32 %v12565_v25, %v11266_v52  ;;  %v11234_v53 = vld [vmem:[#allocation6 + $0xe48] sm:$0xf]  ;;  %v9642_v23 = vld [vmem:[#allocation6 + $0x1d0] sm:$0xf] }
 0x2e3   :  { %v10532_v17 = vld [vmem:[#allocation6 + $0x8e8] sm:$0xf0]  ;;  %v12557_v48 = vld [vmem:[#allocation6 + $0xe64] sm:$0xf0] }
 0x2e4   :  { %6669 = vmatpush.bf16.msra.mxu1 %v9671_v38  ;;  %v12441_v51 = vld [vmem:[#allocation6 + $0xacc] sm:$0xf]  ;;  %v6463_v36 = vpop.f32.mrf.mxu1  ;;  %v10535_v14 = vor.u32 %v12377_v61, %v10532_v17  ;;  %v3762_v38 = vperm.slane %v13126_v57, 1  ;;  %v11235_v30 = vor.u32 %v12557_v48, %v11234_v53  ;;  %v12549_v61 = vld [vmem:[#allocation6 + $0xe24] sm:$0xf0] }
 0x2e5   :  { %6676 = vmatpush.bf16.msra.mxu2 %v10119_v12  ;;  %6657 = vmatmul.bf16.vlgmr.msra.gmra.mxu3 %v13062_v4  ;;  %v10788_v32 = vld [vmem:[#allocation6 + $0xae8] sm:$0xf0]  ;;  %v11299_v12 = vor.u32 %v12573_v29, %v11298_v35  ;;  %v9643_v35 = vor.u32 %v12158_v24, %v9642_v23  ;;  %v9546_v53 = vld [vmem:[#allocation6 + $0x110] sm:$0xf] }
 0x2e6   :  { %6701 = vmatpush.bf16.msrb.mxu3 %v10663_v42  ;;  %6638 = vmatpush.bf16.msrb.mxu0 %v11363_v20  ;;  %v12241_v33 = vld [vmem:[#allocation6 + $0x48c] sm:$0xf]  ;;  %v10791_v39 = vor.u32 %v12441_v51, %v10788_v32 }
 0x2e7   :  { %6670 = vmatmul.bf16.vlgmr.msra.gmra.mxu1 %v13064_v41  ;;  %v9988_v34 = vld [vmem:[#allocation6 + $0x4a8] sm:$0xf0] }
 0x2e8   :  { %6714 = vmatpush.bf16.msrb.mxu1 %v10919_v55  ;;  %v9991_v43 = vor.u32 %v12241_v33, %v9988_v34  ;;  %v12369_v42 = vld [vmem:[#allocation6 + $0x88c] sm:$0xf]  ;;  %v6450_v16 = vpop.f32.mrf.mxu3 }
 0x2e9   :  { %6677 = vmatpush.bf16.msra.mxu2 %v10087_v18  ;;  %v10500_v55 = vld [vmem:[#allocation6 + $0x8a8] sm:$0xf0]  ;;  %v6451_v57 = vadd.f32 %v6450_v16, %v3762_v38  ;;  %v9610_v38 = vld [vmem:[#allocation6 + $0x190] sm:$0xf] }
 0x2ea   :  { %6702 = vmatpush.bf16.msrb.mxu3 %v10631_v62  ;;  %v12433_v7 = vld [vmem:[#allocation6 + $0xa8c] sm:$0xf]  ;;  %6639 = vmatpush.bf16.msrb.mxu0 %v11331_v9  ;;  %v10503_v54 = vor.u32 %v12369_v42, %v10500_v55  ;;  %v9866_v55 = vld [vmem:[#allocation6 + $0x390] sm:$0xf] }
 0x2eb   :  { %v10756_v47 = vld [vmem:[#allocation6 + $0xaa8] sm:$0xf0]  ;;  %v9578_v16 = vld [vmem:[#allocation6 + $0x150] sm:$0xf] }
 0x2ec   :  { %6715 = vmatpush.bf16.msrb.mxu1 %v10887_v56  ;;  %v12233_v49 = vld [vmem:[#allocation6 + $0x44c] sm:$0xf]  ;;  %v10759_v44 = vor.u32 %v12433_v7, %v10756_v47  ;;  %v6465_v3 = vpop.f32.mrf.mxu1  ;;  %v12214_v7 = vld [vmem:[#allocation6 + $0x3ac] sm:$0xf0] }
 0x2ed   :  { %6678 = vmatpush.bf16.msra.mxu2 %v10055_v31  ;;  %v9956_v50 = vld [vmem:[#allocation6 + $0x468] sm:$0xf0]  ;;  %v9867_v25 = vor.u32 %v12214_v7, %v9866_v55  ;;  %v12134_v3 = vld [vmem:[#allocation6 + $0x12c] sm:$0xf0] }
 0x2ee   :  { %6703 = vmatpush.bf16.msrb.mxu3 %v10599_v19  ;;  %v12361_v58 = vld [vmem:[#allocation6 + $0x84c] sm:$0xf]  ;;  %v9959_v62 = vor.u32 %v12233_v49, %v9956_v50  ;;  %6640 = vmatpush.bf16.msrb.mxu0 %v11299_v12  ;;  %v13147_v19 = vadd.f32 %v6463_v36, %v6451_v57 }
 0x2ef   :  { %v10468_v56 = vld [vmem:[#allocation6 + $0x868] sm:$0xf0] }
 0x2f0   :  { %6716 = vmatpush.bf16.msrb.mxu1 %v10855_v6  ;;  %v12425_v18 = vld [vmem:[#allocation6 + $0xa4c] sm:$0xf]  ;;  %v10471_v6 = vor.u32 %v12361_v58, %v10468_v56  ;;  %v6452_v51 = vpop.f32.mrf.mxu3 }
 0x2f1   :  { %6679 = vmatpush.bf16.msra.mxu2 %v10023_v45  ;;  %v10724_v28 = vld [vmem:[#allocation6 + $0xa68] sm:$0xf0]  ;;  %v11202_v45 = vld [vmem:[#allocation6 + $0xe08] sm:$0xf] }
 0x2f2   :  { %6704 = vmatpush.bf16.msrb.mxu3 %v10567_v26  ;;  %v12225_v2 = vld [vmem:[#allocation6 + $0x40c] sm:$0xf]  ;;  %v10727_v15 = vor.u32 %v12425_v18, %v10724_v28  ;;  %6641 = vmatpush.bf16.msrb.mxu0 %v11267_v1  ;;  %v9898_v26 = vld [vmem:[#allocation6 + $0x3d0] sm:$0xf] }
 0x2f3   :  { %v9924_v59 = vld [vmem:[#allocation6 + $0x428] sm:$0xf0] }
 0x2f4   :  { %6717 = vmatpush.bf16.msrb.mxu1 %v10823_v27  ;;  %v12537_v5 = vld [vmem:[#allocation6 + $0xdcc] sm:$0xf]  ;;  %v9927_v21 = vor.u32 %v12225_v2, %v9924_v59  ;;  %v12222_v27 = vld [vmem:[#allocation6 + $0x3ec] sm:$0xf0] }
 0x2f5   :  { %6680 = vmatpush.bf16.msra.mxu2 %v9991_v43  ;;  %v11172_v37 = vld [vmem:[#allocation6 + $0xde8] sm:$0xf0]  ;;  %v9899_v29 = vor.u32 %v12222_v27, %v9898_v26 }
 0x2f6   :  { %6705 = vmatpush.bf16.msrb.mxu3 %v10535_v14  ;;  %v12353_v31 = vld [vmem:[#allocation6 + $0x80c] sm:$0xf]  ;;  %v11175_v40 = vor.u32 %v12537_v5, %v11172_v37  ;;  %6642 = vmatpush.bf16.msrb.mxu0 %v11235_v30  ;;  %v11203_v14 = vor.u32 %v12549_v61, %v11202_v45  ;;  %v9802_v37 = vld [vmem:[#allocation6 + $0x310] sm:$0xf] }
 0x2f7   :  { %v10436_v13 = vld [vmem:[#allocation6 + $0x828] sm:$0xf0]  ;;  %v9514_v30 = vld [vmem:[#allocation6 + $0xd0] sm:$0xf] }
 0x2f8   :  { %6718 = vmatpush.bf16.msrb.mxu1 %v10791_v39  ;;  %v12417_v20 = vld [vmem:[#allocation6 + $0xa0c] sm:$0xf]  ;;  %v10439_v9 = vor.u32 %v12353_v31, %v10436_v13  ;;  %v12150_v39 = vld [vmem:[#allocation6 + $0x1ac] sm:$0xf0] }
 0x2f9   :  { %6681 = vmatpush.bf16.msra.mxu2 %v9959_v62  ;;  %v10692_v22 = vld [vmem:[#allocation6 + $0xa28] sm:$0xf0]  ;;  %v9611_v52 = vor.u32 %v12150_v39, %v9610_v38  ;;  %v12206_v62 = vld [vmem:[#allocation6 + $0x36c] sm:$0xf0] }
 0x2fa   :  { %6706 = vmatpush.bf16.msrb.mxu3 %v10503_v54  ;;  %v12529_v17 = vld [vmem:[#allocation6 + $0xd8c] sm:$0xf]  ;;  %v10695_v36 = vor.u32 %v12417_v20, %v10692_v22  ;;  %6643 = vmatpush.bf16.msrb.mxu0 %v11203_v14  ;;  %v12142_v54 = vld [vmem:[#allocation6 + $0x16c] sm:$0xf0]  ;;  %v9547_v20 = vor.u32 %v12134_v3, %v9546_v53  ;;  %v6424_v22 = vpop.f32.mrf.mxu2 }
 0x2fb   :  { %v11140_v32 = vld [vmem:[#allocation6 + $0xda8] sm:$0xf0]  ;;  %v9579_v2 = vor.u32 %v12142_v54, %v9578_v16  ;;  %v13154_v24 = vadd.f32 %v6424_v22, %v13140_v11  ;;  %v9770_v45 = vld [vmem:[#allocation6 + $0x2d0] sm:$0xf] }
 0x2fc   :  { %6719 = vmatpush.bf16.msrb.mxu1 %v10759_v44  ;;  %v12345_v33 = vld [vmem:[#allocation6 + $0x7cc] sm:$0xf]  ;;  %v11143_v43 = vor.u32 %v12529_v17, %v11140_v32  ;;  %v9834_v44 = vld [vmem:[#allocation6 + $0x350] sm:$0xf] }
 0x2fd   :  { %v10404_v34 = vld [vmem:[#allocation6 + $0x7e8] sm:$0xf0]  ;;  %6682 = vmatpush.bf16.msra.mxu2 %v9927_v21  ;;  %6644 = vmatmul.bf16.vlgmr.msrb.gmra.mxu0 %v13120_v60  ;;  %v9835_v59 = vor.u32 %v12206_v62, %v9834_v44  ;;  %v12190_v61 = vld [vmem:[#allocation6 + $0x2ec] sm:$0xf0] }
 0x2fe   :  { %6707 = vmatpush.bf16.msrb.mxu3 %v10471_v6  ;;  %v10407_v42 = vor.u32 %v12345_v33, %v10404_v34  ;;  %v12521_v12 = vld [vmem:[#allocation6 + $0xd4c] sm:$0xf]  ;;  %v12198_v6 = vld [vmem:[#allocation6 + $0x32c] sm:$0xf0] }
 0x2ff   :  { %v11108_v47 = vld [vmem:[#allocation6 + $0xd68] sm:$0xf0]  ;;  %v9803_v23 = vor.u32 %v12198_v6, %v9802_v37  ;;  %v9738_v38 = vld [vmem:[#allocation6 + $0x290] sm:$0xf] }
 0x300   :  { %6720 = vmatpush.bf16.msrb.mxu1 %v10727_v15  ;;  %6683 = vmatmul.bf16.vlgmr.msra.gmra.mxu2 %v13066_v8  ;;  %v12337_v49 = vld [vmem:[#allocation6 + $0x78c] sm:$0xf]  ;;  %v11111_v58 = vor.u32 %v12521_v12, %v11108_v47  ;;  %v12182_v39 = vld [vmem:[#allocation6 + $0x2ac] sm:$0xf0] }
 0x301   :  { %6727 = vmatpush.bf16.msrb.mxu2 %v11175_v40  ;;  %v10372_v50 = vld [vmem:[#allocation6 + $0x7a8] sm:$0xf0]  ;;  %6688 = vmatpush.bf16.msra.mxu0 %v10407_v42  ;;  %v12126_v40 = vld [vmem:[#allocation6 + $0xec] sm:$0xf0] }
 0x302   :  { %6708 = vmatpush.bf16.msrb.mxu3 %v10439_v9  ;;  %v10375_v57 = vor.u32 %v12337_v49, %v10372_v50  ;;  %v12513_v56 = vld [vmem:[#allocation6 + $0xd0c] sm:$0xf]  ;;  %v9515_v34 = vor.u32 %v12126_v40, %v9514_v30  ;;  %v6426_v49 = vpop.f32.mrf.mxu2  ;;  %v9739_v50 = vor.u32 %v12182_v39, %v9738_v38  ;;  %v9418_v3 = vld [vmem:[#allocation6 + $0x10] sm:$0xf] }
 0x303   :  { %v11076_v18 = vld [vmem:[#allocation6 + $0xd28] sm:$0xf0]  ;;  %v12478_v22 = vld [vmem:[#allocation6 + $0xbec] sm:$0xf0] }
 0x304   :  { %6721 = vmatpush.bf16.msrb.mxu1 %v10695_v36  ;;  %v12329_v28 = vld [vmem:[#allocation6 + $0x74c] sm:$0xf]  ;;  %v11079_v48 = vor.u32 %v12513_v56, %v11076_v18  ;;  %v13156_v51 = vpop.f32.mrf.mxu1  ;;  %v9771_v36 = vor.u32 %v12190_v61, %v9770_v45  ;;  %v12278_v45 = vld [vmem:[#allocation6 + $0x5ac] sm:$0xf0] }
 0x305   :  { %6728 = vmatpush.bf16.msrb.mxu2 %v11143_v43  ;;  %6709 = vmatmul.bf16.vlgmr.msrb.gmra.mxu3 %v13083_v46  ;;  %v10340_v1 = vld [vmem:[#allocation6 + $0x768] sm:$0xf0]  ;;  %v10890_v38 = vld [vmem:[#allocation6 + $0xb90] sm:$0xf] }
 0x306   :  { %6753 = vmatpush.bf16.msra.mxu3 %v9643_v35  ;;  %6689 = vmatpush.bf16.msra.mxu0 %v10375_v57  ;;  %v10343_v5 = vor.u32 %v12329_v28, %v10340_v1  ;;  %v12505_v31 = vld [vmem:[#allocation6 + $0xccc] sm:$0xf]  ;;  %v9482_v35 = vld [vmem:[#allocation6 + $0x90] sm:$0xf] }
 0x307   :  { %6722 = vmatmul.bf16.vlgmr.msrb.gmra.mxu1 %v13086_v0  ;;  %v11044_v13 = vld [vmem:[#allocation6 + $0xce8] sm:$0xf0]  ;;  %v12174_v57 = vld [vmem:[#allocation6 + $0x26c] sm:$0xf0] }
 0x308   :  { %6766 = vmatpush.bf16.msra.mxu1 %v9899_v29  ;;  %v12321_v15 = vld [vmem:[#allocation6 + $0x70c] sm:$0xf]  ;;  %v11047_v26 = vor.u32 %v12505_v31, %v11044_v13  ;;  %v12118_v29 = vld [vmem:[#allocation6 + $0xac] sm:$0xf0]  ;;  %v13158_v12 = vpop.f32.mrf.mxu3 }
 0x309   :  { %6729 = vmatpush.bf16.msrb.mxu2 %v11111_v58  ;;  %v10308_v21 = vld [vmem:[#allocation6 + $0x728] sm:$0xf0]  ;;  %v9483_v47 = vor.u32 %v12118_v29, %v9482_v35  ;;  %v9706_v58 = vld [vmem:[#allocation6 + $0x250] sm:$0xf] }
 0x30a   :  { %6754 = vmatpush.bf16.msra.mxu3 %v9611_v52  ;;  %6690 = vmatpush.bf16.msra.mxu0 %v10343_v5  ;;  %v10311_v27 = vor.u32 %v12321_v15, %v10308_v21  ;;  %v12497_v17 = vld [vmem:[#allocation6 + $0xc8c] sm:$0xf]  ;;  %v9450_v52 = vld [vmem:[#allocation6 + $0x50] sm:$0xf]  ;;  %v9707_v53 = vor.u32 %v12174_v57, %v9706_v58  ;;  %v6476_v61 = vpop.f32.mrf.mxu2 }
 0x30b   :  { %v11012_v9 = vld [vmem:[#allocation6 + $0xca8] sm:$0xf0]  ;;  %v9674_v5 = vld [vmem:[#allocation6 + $0x210] sm:$0xf] }
 0x30c   :  { %6767 = vmatpush.bf16.msra.mxu1 %v9867_v25  ;;  %v12313_v32 = vld [vmem:[#allocation6 + $0x6cc] sm:$0xf]  ;;  %v11015_v11 = vor.u32 %v12497_v17, %v11012_v9  ;;  %v12110_v25 = vld [vmem:[#allocation6 + $0x6c] sm:$0xf0]  ;;  %v6517_v62 = vpop.f32.mrf.mxu1 }
 0x30d   :  { %6730 = vmatpush.bf16.msrb.mxu2 %v11079_v48  ;;  %v10276_v33 = vld [vmem:[#allocation6 + $0x6e8] sm:$0xf0]  ;;  %v9451_v1 = vor.u32 %v12110_v25, %v9450_v52  ;;  %v12102_v48 = vld [vmem:[#allocation6 + $0x2c] sm:$0xf0] }
 0x30e   :  { %6755 = vmatpush.bf16.msra.mxu3 %v9579_v2  ;;  %6691 = vmatpush.bf16.msra.mxu0 %v10311_v27  ;;  %v10279_v14 = vor.u32 %v12313_v32, %v10276_v33  ;;  %v12489_v43 = vld [vmem:[#allocation6 + $0xc4c] sm:$0xf]  ;;  %v10154_v2 = vld [vmem:[#allocation6 + $0x5d0] sm:$0xf]  ;;  %v9419_v40 = vor.u32 %v12102_v48, %v9418_v3  ;;  %v13161_v33 = vadd.f32 %v6476_v61, %v13147_v19 }
 0x30f   :  { %v10980_v42 = vld [vmem:[#allocation6 + $0xc68] sm:$0xf0]  ;;  %v12166_v31 = vld [vmem:[#allocation6 + $0x22c] sm:$0xf0] }
 0x310   :  { %6768 = vmatpush.bf16.msra.mxu1 %v9835_v59  ;;  %v12305_v55 = vld [vmem:[#allocation6 + $0x68c] sm:$0xf]  ;;  %v10983_v16 = vor.u32 %v12489_v43, %v10980_v42  ;;  %v12286_v59 = vld [vmem:[#allocation6 + $0x5ec] sm:$0xf0]  ;;  %v6504_v30 = vpop.f32.mrf.mxu3  ;;  %v9675_v17 = vor.u32 %v12166_v31, %v9674_v5 }
 0x311   :  { %6731 = vmatpush.bf16.msrb.mxu2 %v11047_v26  ;;  %v10244_v7 = vld [vmem:[#allocation6 + $0x6a8] sm:$0xf0]  ;;  %v10666_v13 = vld [vmem:[#allocation6 + $0x9d0] sm:$0xf]  ;;  %v10155_v21 = vor.u32 %v12286_v59, %v10154_v2 }
 0x312   :  { %6756 = vmatpush.bf16.msra.mxu3 %v9547_v20  ;;  %6692 = vmatpush.bf16.msra.mxu0 %v10279_v14  ;;  %v10247_v54 = vor.u32 %v12305_v55, %v10244_v7  ;;  %v12481_v44 = vld [vmem:[#allocation6 + $0xc0c] sm:$0xf]  ;;  %v12414_v15 = vld [vmem:[#allocation6 + $0x9ec] sm:$0xf0]  ;;  %v6478_v62 = vpop.f32.mrf.mxu2 }
 0x313   :  { %v10948_v56 = vld [vmem:[#allocation6 + $0xc28] sm:$0xf0]  ;;  %v10922_v20 = vld [vmem:[#allocation6 + $0xbd0] sm:$0xf] }
 0x314   :  { %6769 = vmatpush.bf16.msra.mxu1 %v9803_v23  ;;  %v12297_v18 = vld [vmem:[#allocation6 + $0x64c] sm:$0xf]  ;;  %v10951_v37 = vor.u32 %v12481_v44, %v10948_v56  ;;  %v10122_v27 = vld [vmem:[#allocation6 + $0x590] sm:$0xf] }
 0x315   :  { %6732 = vmatpush.bf16.msrb.mxu2 %v11015_v11  ;;  %v10212_v28 = vld [vmem:[#allocation6 + $0x668] sm:$0xf0]  ;;  %v10123_v29 = vor.u32 %v12278_v45, %v10122_v27  ;;  %v10634_v11 = vld [vmem:[#allocation6 + $0x990] sm:$0xf] }
 0x316   :  { %6757 = vmatpush.bf16.msra.mxu3 %v9515_v34  ;;  %6693 = vmatpush.bf16.msra.mxu0 %v10247_v54  ;;  %v10215_v6 = vor.u32 %v12297_v18, %v10212_v28  ;;  %v12289_v23 = vld [vmem:[#allocation6 + $0x60c] sm:$0xf]  ;;  %v10667_v34 = vor.u32 %v12414_v15, %v10666_v13  ;;  %v12406_v14 = vld [vmem:[#allocation6 + $0x9ac] sm:$0xf0] }
 0x317   :  { %v10180_v26 = vld [vmem:[#allocation6 + $0x628] sm:$0xf0]  ;;  %v12470_v43 = vld [vmem:[#allocation6 + $0xbac] sm:$0xf0]  ;;  %v10635_v19 = vor.u32 %v12406_v14, %v10634_v11 }
 0x318   :  { %6770 = vmatpush.bf16.msra.mxu1 %v9771_v36  ;;  %v12601_v9 = vld [vmem:[#allocation6 + $0xfcc] sm:$0xf]  ;;  %v10923_v36 = vor.u32 %v12478_v22, %v10922_v20  ;;  %v10183_v35 = vor.u32 %v12289_v23, %v10180_v26  ;;  %v10090_v42 = vld [vmem:[#allocation6 + $0x550] sm:$0xf]  ;;  %v10891_v49 = vor.u32 %v12470_v43, %v10890_v38 }
 0x319   :  { %6733 = vmatpush.bf16.msrb.mxu2 %v10983_v16  ;;  %v11428_v32 = vld [vmem:[#allocation6 + $0xfe8] sm:$0xf0]  ;;  %v12270_v55 = vld [vmem:[#allocation6 + $0x56c] sm:$0xf0] }
 0x31a   :  { %6758 = vmatpush.bf16.msra.mxu3 %v9483_v47  ;;  %6694 = vmatpush.bf16.msra.mxu0 %v10215_v6  ;;  %v11431_v39 = vor.u32 %v12601_v9, %v11428_v32  ;;  %v12593_v7 = vld [vmem:[#allocation6 + $0xf8c] sm:$0xf]  ;;  %v10602_v52 = vld [vmem:[#allocation6 + $0x950] sm:$0xf] }
 0x31b   :  { %v11396_v47 = vld [vmem:[#allocation6 + $0xfa8] sm:$0xf0]  ;;  %v12398_v25 = vld [vmem:[#allocation6 + $0x96c] sm:$0xf0] }
 0x31c   :  { %6771 = vmatpush.bf16.msra.mxu1 %v9739_v50  ;;  %v10091_v50 = vor.u32 %v12270_v55, %v10090_v42  ;;  %v10858_v16 = vld [vmem:[#allocation6 + $0xb50] sm:$0xf]  ;;  %v11399_v54 = vor.u32 %v12593_v7, %v11396_v47  ;;  %v12585_v56 = vld [vmem:[#allocation6 + $0xf4c] sm:$0xf]  ;;  %v10603_v28 = vor.u32 %v12398_v25, %v10602_v52 }
 0x31d   :  { %6734 = vmatpush.bf16.msrb.mxu2 %v10951_v37  ;;  %v12462_v58 = vld [vmem:[#allocation6 + $0xb6c] sm:$0xf0]  ;;  %v11364_v18 = vld [vmem:[#allocation6 + $0xf68] sm:$0xf0] }
 0x31e   :  { %6759 = vmatpush.bf16.msra.mxu3 %v9451_v1  ;;  %6695 = vmatpush.bf16.msra.mxu0 %v10183_v35  ;;  %v10058_v57 = vld [vmem:[#allocation6 + $0x510] sm:$0xf]  ;;  %v10859_v1 = vor.u32 %v12462_v58, %v10858_v16  ;;  %v11367_v48 = vor.u32 %v12585_v56, %v11364_v18  ;;  %v12577_v31 = vld [vmem:[#allocation6 + $0xf0c] sm:$0xf] }
 0x31f   :  { %v12262_v44 = vld [vmem:[#allocation6 + $0x52c] sm:$0xf0]  ;;  %v11332_v13 = vld [vmem:[#allocation6 + $0xf28] sm:$0xf0] }
 0x320   :  { %6772 = vmatpush.bf16.msra.mxu1 %v9707_v53  ;;  %6735 = vmatmul.bf16.vlgmr.msrb.gmra.mxu2 %v13111_v63  ;;  %v10059_v2 = vor.u32 %v12262_v44, %v10058_v57  ;;  %v10570_v59 = vld [vmem:[#allocation6 + $0x910] sm:$0xf]  ;;  %v11335_v45 = vor.u32 %v12577_v31, %v11332_v13  ;;  %v12569_v32 = vld [vmem:[#allocation6 + $0xecc] sm:$0xf] }
 0x321   :  { %6779 = vmatpush.bf16.msra.mxu2 %v10155_v21  ;;  %6696 = vmatmul.bf16.vlgmr.msra.gmra.mxu0 %v13068_v10  ;;  %v12390_v53 = vld [vmem:[#allocation6 + $0x92c] sm:$0xf0]  ;;  %v6437_v21 = vpop.f32.mrf.mxu0 }
 0x322   :  { %6760 = vmatpush.bf16.msra.mxu3 %v9419_v40  ;;  %6740 = vmatpush.bf16.msrb.mxu0 %v11431_v39  ;;  %v10826_v3 = vld [vmem:[#allocation6 + $0xb10] sm:$0xf]  ;;  %v10571_v15 = vor.u32 %v12390_v53, %v10570_v59  ;;  %v13168_v26 = vadd.f32 %v6437_v21, %v13154_v24  ;;  %v12553_v59 = vld [vmem:[#allocation6 + $0xe4c] sm:$0xf] }
 0x323   :  { %v12454_v5 = vld [vmem:[#allocation6 + $0xb2c] sm:$0xf0] }
 0x324   :  { %6773 = vmatpush.bf16.msra.mxu1 %v9675_v17  ;;  %v10026_v37 = vld [vmem:[#allocation6 + $0x4d0] sm:$0xf]  ;;  %v10827_v20 = vor.u32 %v12454_v5, %v10826_v3  ;;  %v6567_v27 = vpop.f32.mrf.mxu1  ;;  %v11236_v3 = vld [vmem:[#allocation6 + $0xe68] sm:$0xf0] }
 0x325   :  { %6780 = vmatpush.bf16.msra.mxu2 %v10123_v29  ;;  %6761 = vmatmul.bf16.vlgmr.msra.gmra.mxu3 %v13062_v4  ;;  %v12254_v6 = vld [vmem:[#allocation6 + $0x4ec] sm:$0xf0]  ;;  %v13172_v29 = vld [vmem:[#allocation7] sm:$0xff] }
 0x326   :  { %6805 = vmatpush.bf16.msrb.mxu3 %v10667_v34  ;;  %6741 = vmatpush.bf16.msrb.mxu0 %v11399_v54  ;;  %v10027_v22 = vor.u32 %v12254_v6, %v10026_v37  ;;  %v10538_v23 = vld [vmem:[#allocation6 + $0x8d0] sm:$0xf]  ;;  %v11300_v34 = vld [vmem:[#allocation6 + $0xee8] sm:$0xf0]  ;;  %v3763_v11 = vperm.slane %v13172_v29, 2 }
 0x327   :  { %6774 = vmatmul.bf16.vlgmr.msra.gmra.mxu1 %v13064_v41  ;;  %v12382_v30 = vld [vmem:[#allocation6 + $0x8ec] sm:$0xf0]  ;;  %v11303_v42 = vor.u32 %v12569_v32, %v11300_v34  ;;  %v11204_v32 = vld [vmem:[#allocation6 + $0xe28] sm:$0xf0] }
 0x328   :  { %6818 = vmatpush.bf16.msrb.mxu1 %v10923_v36  ;;  %v10794_v40 = vld [vmem:[#allocation6 + $0xad0] sm:$0xf]  ;;  %v13170_v36 = vpop.f32.mrf.mxu2  ;;  %v10539_v35 = vor.u32 %v12382_v30, %v10538_v23  ;;  %v12154_v23 = vld [vmem:[#allocation6 + $0x1d4] sm:$0xf]  ;;  %v11239_v30 = vor.u32 %v12553_v59, %v11236_v3 }
 0x329   :  { %6781 = vmatpush.bf16.msra.mxu2 %v10091_v50  ;;  %v12446_v61 = vld [vmem:[#allocation6 + $0xaec] sm:$0xf0]  ;;  %v11268_v50 = vld [vmem:[#allocation6 + $0xea8] sm:$0xf0]  ;;  %v6439_v54 = vpop.f32.mrf.mxu0  ;;  %v9836_v59 = vld [vmem:[#allocation6 + $0x370] sm:$0xf0] }
 0x32a   :  { %6806 = vmatpush.bf16.msrb.mxu3 %v10635_v19  ;;  %6742 = vmatpush.bf16.msrb.mxu0 %v11367_v48  ;;  %v9994_v17 = vld [vmem:[#allocation6 + $0x490] sm:$0xf]  ;;  %v10795_v14 = vor.u32 %v12446_v61, %v10794_v40  ;;  %v6554_v19 = vpop.f32.mrf.mxu3  ;;  %v9900_v61 = vld [vmem:[#allocation6 + $0x3f0] sm:$0xf0] }
 0x32b   :  { %v12246_v9 = vld [vmem:[#allocation6 + $0x4ac] sm:$0xf0]  ;;  %v6555_v52 = vadd.f32 %v6554_v19, %v3763_v11  ;;  %v9612_v19 = vld [vmem:[#allocation6 + $0x1b0] sm:$0xf0] }
 0x32c   :  { %6819 = vmatpush.bf16.msrb.mxu1 %v10891_v49  ;;  %v9995_v24 = vor.u32 %v12246_v9, %v9994_v17  ;;  %v10506_v38 = vld [vmem:[#allocation6 + $0x890] sm:$0xf]  ;;  %v12561_v49 = vld [vmem:[#allocation6 + $0xe8c] sm:$0xf]  ;;  %v6569_v18 = vpop.f32.mrf.mxu1 }
 0x32d   :  { %6782 = vmatpush.bf16.msra.mxu2 %v10059_v2  ;;  %v12374_v39 = vld [vmem:[#allocation6 + $0x8ac] sm:$0xf0]  ;;  %v13175_v53 = vadd.f32 %v6567_v27, %v6555_v52  ;;  %v9644_v27 = vld [vmem:[#allocation6 + $0x1f0] sm:$0xf0]  ;;  %v12545_v9 = vld [vmem:[#allocation6 + $0xe0c] sm:$0xf] }
 0x32e   :  { %6807 = vmatpush.bf16.msrb.mxu3 %v10603_v28  ;;  %v10762_v43 = vld [vmem:[#allocation6 + $0xa90] sm:$0xf]  ;;  %6743 = vmatpush.bf16.msrb.mxu0 %v11335_v45  ;;  %v10507_v25 = vor.u32 %v12374_v39, %v10506_v38  ;;  %v11271_v28 = vor.u32 %v12561_v49, %v11268_v50  ;;  %v12218_v45 = vld [vmem:[#allocation6 + $0x3d4] sm:$0xf] }
 0x32f   :  { %v12438_v55 = vld [vmem:[#allocation6 + $0xaac] sm:$0xf0]  ;;  %v12210_v52 = vld [vmem:[#allocation6 + $0x394] sm:$0xf] }
 0x330   :  { %6820 = vmatpush.bf16.msrb.mxu1 %v10859_v1  ;;  %v9962_v7 = vld [vmem:[#allocation6 + $0x450] sm:$0xf]  ;;  %v10763_v58 = vor.u32 %v12438_v55, %v10762_v43  ;;  %v6530_v37 = vpop.f32.mrf.mxu2  ;;  %v9647_v43 = vor.u32 %v12154_v23, %v9644_v27  ;;  %v9903_v55 = vor.u32 %v12218_v45, %v9900_v61  ;;  %v9580_v18 = vld [vmem:[#allocation6 + $0x170] sm:$0xf0] }
 0x331   :  { %6783 = vmatpush.bf16.msra.mxu2 %v10027_v22  ;;  %v12238_v47 = vld [vmem:[#allocation6 + $0x46c] sm:$0xf0]  ;;  %v6489_v38 = vpop.f32.mrf.mxu0  ;;  %v12194_v23 = vld [vmem:[#allocation6 + $0x314] sm:$0xf] }
 0x332   :  { %6808 = vmatpush.bf16.msrb.mxu3 %v10571_v15  ;;  %v10474_v16 = vld [vmem:[#allocation6 + $0x850] sm:$0xf]  ;;  %v9963_v57 = vor.u32 %v12238_v47, %v9962_v7  ;;  %6744 = vmatpush.bf16.msrb.mxu0 %v11303_v42  ;;  %v6556_v17 = vpop.f32.mrf.mxu3  ;;  %v6490_v42 = vadd.f32 %v6489_v38, %v13161_v33  ;;  %v11207_v7 = vor.u32 %v12545_v9, %v11204_v32  ;;  %v12146_v47 = vld [vmem:[#allocation6 + $0x194] sm:$0xf] }
 0x333   :  { %v12366_v44 = vld [vmem:[#allocation6 + $0x86c] sm:$0xf0]  ;;  %v9615_v33 = vor.u32 %v12146_v47, %v9612_v19  ;;  %v12122_v9 = vld [vmem:[#allocation6 + $0xd4] sm:$0xf] }
 0x334   :  { %6821 = vmatpush.bf16.msrb.mxu1 %v10827_v20  ;;  %v10730_v62 = vld [vmem:[#allocation6 + $0xa50] sm:$0xf]  ;;  %v10475_v6 = vor.u32 %v12366_v44, %v10474_v16  ;;  %v6503_v54 = vadd.f32 %v13158_v12, %v6490_v42  ;;  %v9516_v32 = vld [vmem:[#allocation6 + $0xf0] sm:$0xf0] }
 0x335   :  { %6784 = vmatpush.bf16.msra.mxu2 %v9995_v24  ;;  %v12430_v56 = vld [vmem:[#allocation6 + $0xa6c] sm:$0xf0]  ;;  %v9519_v47 = vor.u32 %v12122_v9, %v9516_v32  ;;  %v10668_v9 = vld [vmem:[#allocation6 + $0x9f0] sm:$0xf0] }
 0x336   :  { %6809 = vmatpush.bf16.msrb.mxu3 %v10539_v35  ;;  %v9930_v1 = vld [vmem:[#allocation6 + $0x410] sm:$0xf]  ;;  %v10731_v15 = vor.u32 %v12430_v56, %v10730_v62  ;;  %6745 = vmatpush.bf16.msrb.mxu0 %v11271_v28  ;;  %v12138_v56 = vld [vmem:[#allocation6 + $0x154] sm:$0xf]  ;;  %v6516_v28 = vadd.f32 %v13156_v51, %v6503_v54 }
 0x337   :  { %v12230_v2 = vld [vmem:[#allocation6 + $0x42c] sm:$0xf0] }
 0x338   :  { %6822 = vmatpush.bf16.msrb.mxu1 %v10795_v14  ;;  %v11178_v48 = vld [vmem:[#allocation6 + $0xdd0] sm:$0xf]  ;;  %v9931_v21 = vor.u32 %v12230_v2, %v9930_v1  ;;  %v12202_v2 = vld [vmem:[#allocation6 + $0x354] sm:$0xf] }
 0x339   :  { %v12542_v5 = vld [vmem:[#allocation6 + $0xdec] sm:$0xf0]  ;;  %6785 = vmatpush.bf16.msra.mxu2 %v9963_v57  ;;  %v6491_v51 = vpop.f32.mrf.mxu0 }
 0x33a   :  { %6810 = vmatpush.bf16.msrb.mxu3 %v10507_v25  ;;  %v10442_v31 = vld [vmem:[#allocation6 + $0x810] sm:$0xf]  ;;  %v11179_v40 = vor.u32 %v12542_v5, %v11178_v48  ;;  %6746 = vmatpush.bf16.msrb.mxu0 %v11239_v30  ;;  %v9868_v25 = vld [vmem:[#allocation6 + $0x3b0] sm:$0xf0] }
 0x33b   :  { %v12358_v13 = vld [vmem:[#allocation6 + $0x82c] sm:$0xf0]  ;;  %v9871_v62 = vor.u32 %v12210_v52, %v9868_v25  ;;  %v9804_v30 = vld [vmem:[#allocation6 + $0x330] sm:$0xf0] }
 0x33c   :  { %6823 = vmatpush.bf16.msrb.mxu1 %v10763_v58  ;;  %v10698_v20 = vld [vmem:[#allocation6 + $0xa10] sm:$0xf]  ;;  %v10443_v35 = vor.u32 %v12358_v13, %v10442_v31  ;;  %v9583_v31 = vor.u32 %v12138_v56, %v9580_v18  ;;  %v9839_v13 = vor.u32 %v12202_v2, %v9836_v59  ;;  %v9807_v17 = vor.u32 %v12194_v23, %v9804_v30  ;;  %v12114_v52 = vld [vmem:[#allocation6 + $0x94] sm:$0xf] }
 0x33d   :  { %v12422_v22 = vld [vmem:[#allocation6 + $0xa2c] sm:$0xf0]  ;;  %6786 = vmatpush.bf16.msra.mxu2 %v9931_v21  ;;  %v9548_v21 = vld [vmem:[#allocation6 + $0x130] sm:$0xf0] }
 0x33e   :  { %v11146_v34 = vld [vmem:[#allocation6 + $0xd90] sm:$0xf]  ;;  %6811 = vmatpush.bf16.msrb.mxu3 %v10475_v6  ;;  %v10699_v39 = vor.u32 %v12422_v22, %v10698_v20  ;;  %6747 = vmatpush.bf16.msrb.mxu0 %v11207_v7  ;;  %v6529_v6 = vadd.f32 %v13170_v36, %v6516_v28  ;;  %v9484_v25 = vld [vmem:[#allocation6 + $0xb0] sm:$0xf0] }
 0x33f   :  { %v12534_v11 = vld [vmem:[#allocation6 + $0xdac] sm:$0xf0]  ;;  %v9487_v28 = vor.u32 %v12114_v52, %v9484_v25  ;;  %v12098_v30 = vld [vmem:[#allocation6 + $0x14] sm:$0xf] }
 0x340   :  { %v10410_v14 = vld [vmem:[#allocation6 + $0x7d0] sm:$0xf]  ;;  %6824 = vmatpush.bf16.msrb.mxu1 %v10731_v15  ;;  %v11147_v49 = vor.u32 %v12534_v11, %v11146_v34  ;;  %6787 = vmatmul.bf16.vlgmr.msra.gmra.mxu2 %v13066_v8  ;;  %v12130_v15 = vld [vmem:[#allocation6 + $0x114] sm:$0xf] }
 0x341   :  { %v12350_v24 = vld [vmem:[#allocation6 + $0x7ec] sm:$0xf0]  ;;  %6831 = vmatpush.bf16.msrb.mxu2 %v11179_v40  ;;  %6748 = vmatmul.bf16.vlgmr.msrb.gmra.mxu0 %v13120_v60  ;;  %v9551_v36 = vor.u32 %v12130_v15, %v9548_v21 }
 0x342   :  { %v10411_v50 = vor.u32 %v12350_v24, %v10410_v14  ;;  %v11114_v16 = vld [vmem:[#allocation6 + $0xd50] sm:$0xf]  ;;  %6812 = vmatpush.bf16.msrb.mxu3 %v10443_v35  ;;  %v12186_v14 = vld [vmem:[#allocation6 + $0x2d4] sm:$0xf] }
 0x343   :  { %v12526_v58 = vld [vmem:[#allocation6 + $0xd6c] sm:$0xf0]  ;;  %v9772_v24 = vld [vmem:[#allocation6 + $0x2f0] sm:$0xf0]  ;;  %v6580_v7 = vpop.f32.mrf.mxu2 }
 0x344   :  { %v10378_v57 = vld [vmem:[#allocation6 + $0x790] sm:$0xf]  ;;  %6825 = vmatpush.bf16.msrb.mxu1 %v10699_v39  ;;  %6792 = vmatpush.bf16.msra.mxu0 %v10411_v50  ;;  %v11115_v1 = vor.u32 %v12526_v58, %v11114_v16  ;;  %v13185_v34 = vpop.f32.mrf.mxu1  ;;  %v9775_v50 = vor.u32 %v12186_v14, %v9772_v24  ;;  %v12178_v58 = vld [vmem:[#allocation6 + $0x294] sm:$0xf] }
 0x345   :  { %v12342_v44 = vld [vmem:[#allocation6 + $0x7ac] sm:$0xf0]  ;;  %6832 = vmatpush.bf16.msrb.mxu2 %v11147_v49  ;;  %6813 = vmatmul.bf16.vlgmr.msrb.gmra.mxu3 %v13083_v46  ;;  %v13190_v49 = vadd.f32 %v6580_v7, %v13175_v53  ;;  %v10924_v14 = vld [vmem:[#allocation6 + $0xbf0] sm:$0xf0] }
 0x346   :  { %6857 = vmatpush.bf16.msra.mxu3 %v9647_v43  ;;  %v10379_v12 = vor.u32 %v12342_v44, %v10378_v57  ;;  %v11082_v3 = vld [vmem:[#allocation6 + $0xd10] sm:$0xf]  ;;  %v9740_v57 = vld [vmem:[#allocation6 + $0x2b0] sm:$0xf0] }
 0x347   :  { %6826 = vmatmul.bf16.vlgmr.msrb.gmra.mxu1 %v13086_v0  ;;  %v12518_v48 = vld [vmem:[#allocation6 + $0xd2c] sm:$0xf0]  ;;  %v9743_v53 = vor.u32 %v12178_v58, %v9740_v57  ;;  %v10636_v58 = vld [vmem:[#allocation6 + $0x9b0] sm:$0xf0] }
 0x348   :  { %6870 = vmatpush.bf16.msra.mxu1 %v9903_v55  ;;  %v10346_v5 = vld [vmem:[#allocation6 + $0x750] sm:$0xf]  ;;  %6793 = vmatpush.bf16.msra.mxu0 %v10379_v12  ;;  %v11083_v20 = vor.u32 %v12518_v48, %v11082_v3  ;;  %v6541_v55 = vpop.f32.mrf.mxu0  ;;  %v9452_v12 = vld [vmem:[#allocation6 + $0x70] sm:$0xf0] }
 0x349   :  { %v12334_v37 = vld [vmem:[#allocation6 + $0x76c] sm:$0xf0]  ;;  %6833 = vmatpush.bf16.msrb.mxu2 %v11115_v1  ;;  %v13187_v19 = vadd.f32 %v6541_v55, %v6529_v6  ;;  %v12106_v1 = vld [vmem:[#allocation6 + $0x54] sm:$0xf] }
 0x34a   :  { %6858 = vmatpush.bf16.msra.mxu3 %v9615_v33  ;;  %v10347_v22 = vor.u32 %v12334_v37, %v10346_v5  ;;  %v11050_v40 = vld [vmem:[#allocation6 + $0xcd0] sm:$0xf]  ;;  %v13192_v33 = vpop.f32.mrf.mxu3  ;;  %v12170_v48 = vld [vmem:[#allocation6 + $0x254] sm:$0xf]  ;;  %v9455_v21 = vor.u32 %v12106_v1, %v9452_v12 }
 0x34b   :  { %v12510_v27 = vld [vmem:[#allocation6 + $0xcec] sm:$0xf0]  ;;  %v9708_v5 = vld [vmem:[#allocation6 + $0x270] sm:$0xf0]  ;;  %v6582_v15 = vpop.f32.mrf.mxu2 }
 0x34c   :  { %6871 = vmatpush.bf16.msra.mxu1 %v9871_v62  ;;  %v10314_v45 = vld [vmem:[#allocation6 + $0x710] sm:$0xf]  ;;  %6794 = vmatpush.bf16.msra.mxu0 %v10347_v22  ;;  %v11051_v35 = vor.u32 %v12510_v27, %v11050_v40  ;;  %v6621_v2 = vpop.f32.mrf.mxu1  ;;  %v10156_v22 = vld [vmem:[#allocation6 + $0x5f0] sm:$0xf0]  ;;  %v9711_v23 = vor.u32 %v12170_v48, %v9708_v5 }
 0x34d   :  { %v12326_v61 = vld [vmem:[#allocation6 + $0x72c] sm:$0xf0]  ;;  %6834 = vmatpush.bf16.msrb.mxu2 %v11083_v20  ;;  %v12282_v20 = vld [vmem:[#allocation6 + $0x5d4] sm:$0xf] }
 0x34e   :  { %6859 = vmatpush.bf16.msra.mxu3 %v9583_v31  ;;  %v10315_v11 = vor.u32 %v12326_v61, %v10314_v45  ;;  %v11018_v38 = vld [vmem:[#allocation6 + $0xc90] sm:$0xf]  ;;  %v9420_v40 = vld [vmem:[#allocation6 + $0x30] sm:$0xf0] }
 0x34f   :  { %v12502_v39 = vld [vmem:[#allocation6 + $0xcac] sm:$0xf0]  ;;  %v12162_v27 = vld [vmem:[#allocation6 + $0x214] sm:$0xf] }
 0x350   :  { %6872 = vmatpush.bf16.msra.mxu1 %v9839_v13  ;;  %v10282_v43 = vld [vmem:[#allocation6 + $0x6d0] sm:$0xf]  ;;  %6795 = vmatpush.bf16.msra.mxu0 %v10315_v11  ;;  %v11019_v16 = vor.u32 %v12502_v39, %v11018_v38  ;;  %v6543_v13 = vpop.f32.mrf.mxu0  ;;  %v12474_v11 = vld [vmem:[#allocation6 + $0xbd4] sm:$0xf]  ;;  %v9423_v38 = vor.u32 %v12098_v30, %v9420_v40 }
 0x351   :  { %v12318_v42 = vld [vmem:[#allocation6 + $0x6ec] sm:$0xf0]  ;;  %6835 = vmatpush.bf16.msrb.mxu2 %v11051_v35  ;;  %v10159_v35 = vor.u32 %v12282_v20, %v10156_v22  ;;  %v10927_v52 = vor.u32 %v12474_v11, %v10924_v14  ;;  %v12466_v57 = vld [vmem:[#allocation6 + $0xb94] sm:$0xf] }
 0x352   :  { %6860 = vmatpush.bf16.msra.mxu3 %v9551_v36  ;;  %v10283_v54 = vor.u32 %v12318_v42, %v10282_v43  ;;  %v10986_v44 = vld [vmem:[#allocation6 + $0xc50] sm:$0xf]  ;;  %v9676_v36 = vld [vmem:[#allocation6 + $0x230] sm:$0xf0]  ;;  %v6608_v32 = vpop.f32.mrf.mxu3 }
 0x353   :  { %v12494_v62 = vld [vmem:[#allocation6 + $0xc6c] sm:$0xf0]  ;;  %v12274_v43 = vld [vmem:[#allocation6 + $0x594] sm:$0xf]  ;;  %v9679_v55 = vor.u32 %v12162_v27, %v9676_v36 }
 0x354   :  { %6873 = vmatpush.bf16.msra.mxu1 %v9807_v17  ;;  %v10250_v56 = vld [vmem:[#allocation6 + $0x690] sm:$0xf]  ;;  %6796 = vmatpush.bf16.msra.mxu0 %v10283_v54  ;;  %v10987_v59 = vor.u32 %v12494_v62, %v10986_v44  ;;  %v12410_v17 = vld [vmem:[#allocation6 + $0x9d4] sm:$0xf] }
 0x355   :  { %v12310_v18 = vld [vmem:[#allocation6 + $0x6ac] sm:$0xf0]  ;;  %6836 = vmatpush.bf16.msrb.mxu2 %v11019_v16  ;;  %v10124_v42 = vld [vmem:[#allocation6 + $0x5b0] sm:$0xf0] }
 0x356   :  { %6861 = vmatpush.bf16.msra.mxu3 %v9519_v47  ;;  %v10251_v3 = vor.u32 %v12310_v18, %v10250_v56  ;;  %v10954_v37 = vld [vmem:[#allocation6 + $0xc10] sm:$0xf]  ;;  %v10127_v16 = vor.u32 %v12274_v43, %v10124_v42  ;;  %v12402_v54 = vld [vmem:[#allocation6 + $0x994] sm:$0xf] }
 0x357   :  { %v12486_v6 = vld [vmem:[#allocation6 + $0xc2c] sm:$0xf0]  ;;  %v10892_v62 = vld [vmem:[#allocation6 + $0xbb0] sm:$0xf0]  ;;  %v10639_v1 = vor.u32 %v12402_v54, %v10636_v58  ;;  %v3764_v54 = vperm.slane %v13172_v29, 3 }
 0x358   :  { %6874 = vmatpush.bf16.msra.mxu1 %v9775_v50  ;;  %v10218_v51 = vld [vmem:[#allocation6 + $0x650] sm:$0xf]  ;;  %6797 = vmatpush.bf16.msra.mxu0 %v10251_v3  ;;  %v10955_v45 = vor.u32 %v12486_v6, %v10954_v37  ;;  %v10671_v50 = vor.u32 %v12410_v17, %v10668_v9  ;;  %v12266_v56 = vld [vmem:[#allocation6 + $0x554] sm:$0xf]  ;;  %v10895_v12 = vor.u32 %v12466_v57, %v10892_v62 }
 0x359   :  { %v12302_v31 = vld [vmem:[#allocation6 + $0x66c] sm:$0xf0]  ;;  %6837 = vmatpush.bf16.msrb.mxu2 %v10987_v59  ;;  %v10092_v18 = vld [vmem:[#allocation6 + $0x570] sm:$0xf0] }
 0x35a   :  { %6862 = vmatpush.bf16.msra.mxu3 %v9487_v28  ;;  %v10219_v61 = vor.u32 %v12302_v31, %v10218_v51  ;;  %v10186_v24 = vld [vmem:[#allocation6 + $0x610] sm:$0xf]  ;;  %v10095_v2 = vor.u32 %v12266_v56, %v10092_v18  ;;  %v12394_v59 = vld [vmem:[#allocation6 + $0x954] sm:$0xf] }
 0x35b   :  { %v12294_v39 = vld [vmem:[#allocation6 + $0x62c] sm:$0xf0]  ;;  %v10604_v3 = vld [vmem:[#allocation6 + $0x970] sm:$0xf0] }
 0x35c   :  { %6875 = vmatpush.bf16.msra.mxu1 %v9743_v53  ;;  %v11434_v7 = vld [vmem:[#allocation6 + $0xfd0] sm:$0xf]  ;;  %6798 = vmatpush.bf16.msra.mxu0 %v10219_v61  ;;  %v10187_v25 = vor.u32 %v12294_v39, %v10186_v24  ;;  %v12458_v48 = vld [vmem:[#allocation6 + $0xb54] sm:$0xf]  ;;  %v10607_v15 = vor.u32 %v12394_v59, %v10604_v3 }
 0x35d   :  { %v12606_v47 = vld [vmem:[#allocation6 + $0xfec] sm:$0xf0]  ;;  %6838 = vmatpush.bf16.msrb.mxu2 %v10955_v45  ;;  %v10860_v37 = vld [vmem:[#allocation6 + $0xb70] sm:$0xf0] }
 0x35e   :  { %6863 = vmatpush.bf16.msra.mxu3 %v9455_v21  ;;  %v11435_v44 = vor.u32 %v12606_v47, %v11434_v7  ;;  %v11402_v28 = vld [vmem:[#allocation6 + $0xf90] sm:$0xf]  ;;  %v12258_v6 = vld [vmem:[#allocation6 + $0x514] sm:$0xf]  ;;  %v10863_v21 = vor.u32 %v12458_v48, %v10860_v37  ;;  %v6593_v7 = vpop.f32.mrf.mxu0 }
 0x35f   :  { %v12598_v53 = vld [vmem:[#allocation6 + $0xfac] sm:$0xf0]  ;;  %v10060_v51 = vld [vmem:[#allocation6 + $0x530] sm:$0xf0] }
 0x360   :  { %6876 = vmatpush.bf16.msra.mxu1 %v9711_v23  ;;  %6839 = vmatmul.bf16.vlgmr.msrb.gmra.mxu2 %v13111_v63  ;;  %v11403_v5 = vor.u32 %v12598_v53, %v11402_v28  ;;  %v11370_v31 = vld [vmem:[#allocation6 + $0xf50] sm:$0xf]  ;;  %v10063_v20 = vor.u32 %v12258_v6, %v10060_v51  ;;  %v12386_v22 = vld [vmem:[#allocation6 + $0x914] sm:$0xf] }
 0x361   :  { %6883 = vmatpush.bf16.msra.mxu2 %v10159_v35  ;;  %6799 = vmatpush.bf16.msra.mxu0 %v10187_v25  ;;  %v12590_v13 = vld [vmem:[#allocation6 + $0xf6c] sm:$0xf0]  ;;  %v10572_v23 = vld [vmem:[#allocation6 + $0x930] sm:$0xf0] }
 0x362   :  { %6864 = vmatpush.bf16.msra.mxu3 %v9423_v38  ;;  %v12450_v30 = vld [vmem:[#allocation6 + $0xb14] sm:$0xf]  ;;  %v11371_v40 = vor.u32 %v12590_v13, %v11370_v31  ;;  %v11338_v36 = vld [vmem:[#allocation6 + $0xf10] sm:$0xf]  ;;  %v10575_v9 = vor.u32 %v12386_v22, %v10572_v23 }
 0x363   :  { %v10828_v27 = vld [vmem:[#allocation6 + $0xb30] sm:$0xf0]  ;;  %v12582_v17 = vld [vmem:[#allocation6 + $0xf2c] sm:$0xf0]  ;;  %v6632_v25 = vpop.f32.mrf.mxu2 }
 0x364   :  { %6877 = vmatpush.bf16.msra.mxu1 %v9679_v55  ;;  %6800 = vmatmul.bf16.vlgmr.msra.gmra.mxu0 %v13068_v10  ;;  %v12250_v45 = vld [vmem:[#allocation6 + $0x4d4] sm:$0xf]  ;;  %v10831_v32 = vor.u32 %v12450_v30, %v10828_v27  ;;  %v6671_v38 = vpop.f32.mrf.mxu1  ;;  %v11339_v39 = vor.u32 %v12582_v17, %v11338_v36  ;;  %v11306_v47 = vld [vmem:[#allocation6 + $0xed0] sm:$0xf] }
 0x365   :  { %6884 = vmatpush.bf16.msra.mxu2 %v10127_v16  ;;  %6844 = vmatpush.bf16.msrb.mxu0 %v11435_v44  ;;  %v10028_v61 = vld [vmem:[#allocation6 + $0x4f0] sm:$0xf0]  ;;  %v12566_v59 = vld [vmem:[#allocation6 + $0xeac] sm:$0xf0] }
 0x366   :  { %6909 = vmatpush.bf16.msrb.mxu3 %v10671_v50  ;;  %v10031_v35 = vor.u32 %v12250_v45, %v10028_v61  ;;  %v12378_v11 = vld [vmem:[#allocation6 + $0x8d4] sm:$0xf]  ;;  %v12574_v50 = vld [vmem:[#allocation6 + $0xeec] sm:$0xf0]  ;;  %v6595_v30 = vpop.f32.mrf.mxu0 }
 0x367   :  { %6865 = vmatmul.bf16.vlgmr.msra.gmra.mxu3 %v13062_v4  ;;  %6878 = vmatmul.bf16.vlgmr.msra.gmra.mxu1 %v13064_v41  ;;  %v10540_v14 = vld [vmem:[#allocation6 + $0x8f0] sm:$0xf0]  ;;  %v11307_v28 = vor.u32 %v12574_v50, %v11306_v47  ;;  %v11242_v23 = vld [vmem:[#allocation6 + $0xe50] sm:$0xf] }
 0x368   :  { %6922 = vmatpush.bf16.msrb.mxu1 %v10927_v52  ;;  %v12442_v24 = vld [vmem:[#allocation6 + $0xad4] sm:$0xf]  ;;  %v6594_v52 = vadd.f32 %v6593_v7, %v13190_v49  ;;  %v10543_v16 = vor.u32 %v12378_v11, %v10540_v14  ;;  %v11274_v49 = vld [vmem:[#allocation6 + $0xe90] sm:$0xf] }
 0x369   :  { %6885 = vmatpush.bf16.msra.mxu2 %v10095_v2  ;;  %6845 = vmatpush.bf16.msrb.mxu0 %v11403_v5  ;;  %v10796_v43 = vld [vmem:[#allocation6 + $0xaf0] sm:$0xf0]  ;;  %v6658_v2 = vpop.f32.mrf.mxu3  ;;  %v11210_v47 = vld [vmem:[#allocation6 + $0xe10] sm:$0xf] }
 0x36a   :  { %6910 = vmatpush.bf16.msrb.mxu3 %v10639_v1  ;;  %v12242_v42 = vld [vmem:[#allocation6 + $0x494] sm:$0xf]  ;;  %v10799_v58 = vor.u32 %v12442_v24, %v10796_v43  ;;  %v6607_v18 = vadd.f32 %v13192_v33, %v6594_v52  ;;  %v6659_v29 = vadd.f32 %v6658_v2, %v3764_v54  ;;  %v9650_v24 = vld [vmem:[#allocation6 + $0x1d8] sm:$0xf]  ;;  %v12550_v50 = vld [vmem:[#allocation6 + $0xe2c] sm:$0xf0] }
 0x36b   :  { %v9996_v55 = vld [vmem:[#allocation6 + $0x4b0] sm:$0xf0]  ;;  %v6634_v61 = vpop.f32.mrf.mxu2  ;;  %v12159_v43 = vld [vmem:[#allocation6 + $0x1f4] sm:$0xf0] }
 0x36c   :  { %6923 = vmatpush.bf16.msrb.mxu1 %v10895_v12  ;;  %v9999_v57 = vor.u32 %v12242_v42, %v9996_v55  ;;  %v12370_v44 = vld [vmem:[#allocation6 + $0x894] sm:$0xf]  ;;  %v6620_v3 = vadd.f32 %v13185_v34, %v6607_v18  ;;  %v13204_v34 = vadd.f32 %v6671_v38, %v6659_v29  ;;  %v9906_v42 = vld [vmem:[#allocation6 + $0x3d8] sm:$0xf] }
 0x36d   :  { %6886 = vmatpush.bf16.msra.mxu2 %v10063_v20  ;;  %6846 = vmatpush.bf16.msrb.mxu0 %v11371_v40  ;;  %v10508_v62 = vld [vmem:[#allocation6 + $0x8b0] sm:$0xf0]  ;;  %v12558_v40 = vld [vmem:[#allocation6 + $0xe6c] sm:$0xf0]  ;;  %v12223_v55 = vld [vmem:[#allocation6 + $0x3f4] sm:$0xf0] }
 0x36e   :  { %6911 = vmatpush.bf16.msrb.mxu3 %v10607_v15  ;;  %v12434_v56 = vld [vmem:[#allocation6 + $0xa94] sm:$0xf]  ;;  %v10511_v48 = vor.u32 %v12370_v44, %v10508_v62  ;;  %v13202_v13 = vadd.f32 %v6632_v25, %v6620_v3  ;;  %v6673_v15 = vpop.f32.mrf.mxu1  ;;  %v9651_v44 = vor.u32 %v12159_v43, %v9650_v24  ;;  %v9907_v62 = vor.u32 %v12223_v55, %v9906_v42  ;;  %v9618_v18 = vld [vmem:[#allocation6 + $0x198] sm:$0xf] }
 0x36f   :  { %v10764_v53 = vld [vmem:[#allocation6 + $0xab0] sm:$0xf0]  ;;  %v12215_v2 = vld [vmem:[#allocation6 + $0x3b4] sm:$0xf0] }
 0x370   :  { %6924 = vmatpush.bf16.msrb.mxu1 %v10863_v21  ;;  %v12234_v1 = vld [vmem:[#allocation6 + $0x454] sm:$0xf]  ;;  %v10767_v37 = vor.u32 %v12434_v56, %v10764_v53  ;;  %v11275_v21 = vor.u32 %v12566_v59, %v11274_v49  ;;  %v11211_v56 = vor.u32 %v12550_v50, %v11210_v47  ;;  %v12207_v15 = vld [vmem:[#allocation6 + $0x374] sm:$0xf0] }
 0x371   :  { %6887 = vmatpush.bf16.msra.mxu2 %v10031_v35  ;;  %6847 = vmatpush.bf16.msrb.mxu0 %v11339_v39  ;;  %v9964_v12 = vld [vmem:[#allocation6 + $0x470] sm:$0xf0]  ;;  %v11243_v39 = vor.u32 %v12558_v40, %v11242_v23  ;;  %v6660_v7 = vpop.f32.mrf.mxu3  ;;  %v12127_v43 = vld [vmem:[#allocation6 + $0xf4] sm:$0xf0] }
 0x372   :  { %6912 = vmatpush.bf16.msrb.mxu3 %v10575_v9  ;;  %v12362_v5 = vld [vmem:[#allocation6 + $0x854] sm:$0xf]  ;;  %v9967_v6 = vor.u32 %v12234_v1, %v9964_v12  ;;  %v9874_v12 = vld [vmem:[#allocation6 + $0x398] sm:$0xf] }
 0x373   :  { %v10476_v51 = vld [vmem:[#allocation6 + $0x870] sm:$0xf0]  ;;  %v9778_v47 = vld [vmem:[#allocation6 + $0x2d8] sm:$0xf] }
 0x374   :  { %6925 = vmatpush.bf16.msrb.mxu1 %v10831_v32  ;;  %v12426_v33 = vld [vmem:[#allocation6 + $0xa54] sm:$0xf]  ;;  %v10479_v36 = vor.u32 %v12362_v5, %v10476_v51  ;;  %v9875_v5 = vor.u32 %v12215_v2, %v9874_v12  ;;  %v12191_v50 = vld [vmem:[#allocation6 + $0x2f4] sm:$0xf0] }
 0x375   :  { %6888 = vmatpush.bf16.msra.mxu2 %v9999_v57  ;;  %v10732_v31 = vld [vmem:[#allocation6 + $0xa70] sm:$0xf0]  ;;  %6848 = vmatpush.bf16.msrb.mxu0 %v11307_v28  ;;  %v12151_v28 = vld [vmem:[#allocation6 + $0x1b4] sm:$0xf0] }
 0x376   :  { %6913 = vmatpush.bf16.msrb.mxu3 %v10543_v16  ;;  %v12226_v20 = vld [vmem:[#allocation6 + $0x414] sm:$0xf]  ;;  %v10735_v32 = vor.u32 %v12426_v33, %v10732_v31  ;;  %v9842_v31 = vld [vmem:[#allocation6 + $0x358] sm:$0xf] }
 0x377   :  { %v9932_v22 = vld [vmem:[#allocation6 + $0x430] sm:$0xf0]  ;;  %v9843_v40 = vor.u32 %v12207_v15, %v9842_v31  ;;  %v9746_v2 = vld [vmem:[#allocation6 + $0x298] sm:$0xf] }
 0x378   :  { %6926 = vmatpush.bf16.msrb.mxu1 %v10799_v58  ;;  %v12538_v27 = vld [vmem:[#allocation6 + $0xdd4] sm:$0xf]  ;;  %v9935_v35 = vor.u32 %v12226_v20, %v9932_v22  ;;  %v9714_v15 = vld [vmem:[#allocation6 + $0x258] sm:$0xf] }
 0x379   :  { %v11180_v45 = vld [vmem:[#allocation6 + $0xdf0] sm:$0xf0]  ;;  %6889 = vmatpush.bf16.msra.mxu2 %v9967_v6  ;;  %6849 = vmatpush.bf16.msrb.mxu0 %v11275_v21  ;;  %v12143_v6 = vld [vmem:[#allocation6 + $0x174] sm:$0xf0] }
 0x37a   :  { %6914 = vmatpush.bf16.msrb.mxu3 %v10511_v48  ;;  %v12354_v17 = vld [vmem:[#allocation6 + $0x814] sm:$0xf]  ;;  %v11183_v38 = vor.u32 %v12538_v27, %v11180_v45  ;;  %v9619_v48 = vor.u32 %v12151_v28, %v9618_v18  ;;  %v9554_v27 = vld [vmem:[#allocation6 + $0x118] sm:$0xf]  ;;  %v9779_v18 = vor.u32 %v12191_v50, %v9778_v47 }
 0x37b   :  { %v10444_v9 = vld [vmem:[#allocation6 + $0x830] sm:$0xf0]  ;;  %v12135_v45 = vld [vmem:[#allocation6 + $0x134] sm:$0xf0] }
 0x37c   :  { %6927 = vmatpush.bf16.msrb.mxu1 %v10767_v37  ;;  %v12418_v11 = vld [vmem:[#allocation6 + $0xa14] sm:$0xf]  ;;  %v10447_v25 = vor.u32 %v12354_v17, %v10444_v9  ;;  %v9586_v37 = vld [vmem:[#allocation6 + $0x158] sm:$0xf]  ;;  %v9555_v24 = vor.u32 %v12135_v45, %v9554_v27 }
 0x37d   :  { %v10700_v14 = vld [vmem:[#allocation6 + $0xa30] sm:$0xf0]  ;;  %6890 = vmatpush.bf16.msra.mxu2 %v9935_v35  ;;  %6850 = vmatpush.bf16.msrb.mxu0 %v11243_v39  ;;  %v9587_v30 = vor.u32 %v12143_v6, %v9586_v37  ;;  %v9810_v17 = vld [vmem:[#allocation6 + $0x318] sm:$0xf] }
 0x37e   :  { %v12530_v52 = vld [vmem:[#allocation6 + $0xd94] sm:$0xf]  ;;  %6915 = vmatpush.bf16.msrb.mxu3 %v10479_v36  ;;  %v10703_v57 = vor.u32 %v12418_v11, %v10700_v14  ;;  %v12199_v9 = vld [vmem:[#allocation6 + $0x334] sm:$0xf0] }
 0x37f   :  { %v11148_v16 = vld [vmem:[#allocation6 + $0xdb0] sm:$0xf0]  ;;  %v9811_v39 = vor.u32 %v12199_v9, %v9810_v17  ;;  %v9490_v28 = vld [vmem:[#allocation6 + $0x98] sm:$0xf] }
 0x380   :  { %v12346_v54 = vld [vmem:[#allocation6 + $0x7d4] sm:$0xf]  ;;  %6928 = vmatpush.bf16.msrb.mxu1 %v10735_v32  ;;  %v11151_v53 = vor.u32 %v12530_v52, %v11148_v16  ;;  %6891 = vmatmul.bf16.vlgmr.msra.gmra.mxu2 %v13066_v8  ;;  %v9458_v37 = vld [vmem:[#allocation6 + $0x58] sm:$0xf] }
 0x381   :  { %v10412_v58 = vld [vmem:[#allocation6 + $0x7f0] sm:$0xf0]  ;;  %6935 = vmatpush.bf16.msrb.mxu2 %v11183_v38  ;;  %6851 = vmatpush.bf16.msrb.mxu0 %v11211_v56  ;;  %v9522_v38 = vld [vmem:[#allocation6 + $0xd8] sm:$0xf] }
 0x382   :  { %v10415_v1 = vor.u32 %v12346_v54, %v10412_v58  ;;  %v12522_v49 = vld [vmem:[#allocation6 + $0xd54] sm:$0xf]  ;;  %6916 = vmatpush.bf16.msrb.mxu3 %v10447_v25  ;;  %v6645_v25 = vpop.f32.mrf.mxu0  ;;  %v12111_v6 = vld [vmem:[#allocation6 + $0x74] sm:$0xf0] }
 0x383   :  { %v11116_v59 = vld [vmem:[#allocation6 + $0xd70] sm:$0xf0]  ;;  %v9459_v45 = vor.u32 %v12111_v6, %v9458_v37  ;;  %v9426_v9 = vld [vmem:[#allocation6 + $0x18] sm:$0xf] }
 0x384   :  { %v12338_v3 = vld [vmem:[#allocation6 + $0x794] sm:$0xf]  ;;  %6929 = vmatpush.bf16.msrb.mxu1 %v10703_v57  ;;  %v11119_v51 = vor.u32 %v12522_v49, %v11116_v59  ;;  %6852 = vmatmul.bf16.vlgmr.msrb.gmra.mxu0 %v13120_v60  ;;  %v13210_v42 = vpop.f32.mrf.mxu1  ;;  %v13213_v57 = vadd.f32 %v6645_v25, %v13202_v13  ;;  %v12183_v49 = vld [vmem:[#allocation6 + $0x2b4] sm:$0xf0] }
 0x385   :  { %v10380_v29 = vld [vmem:[#allocation6 + $0x7b0] sm:$0xf0]  ;;  %6936 = vmatpush.bf16.msrb.mxu2 %v11151_v53  ;;  %6896 = vmatpush.bf16.msra.mxu0 %v10415_v1  ;;  %v12119_v53 = vld [vmem:[#allocation6 + $0xb4] sm:$0xf0] }
 0x386   :  { %6961 = vmatpush.bf16.msra.mxu3 %v9651_v44  ;;  %v10383_v33 = vor.u32 %v12338_v3, %v10380_v29  ;;  %v12514_v21 = vld [vmem:[#allocation6 + $0xd14] sm:$0xf]  ;;  %v6684_v44 = vpop.f32.mrf.mxu2 }
 0x387   :  { %6917 = vmatmul.bf16.vlgmr.msrb.gmra.mxu3 %v13083_v46  ;;  %6930 = vmatmul.bf16.vlgmr.msrb.gmra.mxu1 %v13086_v0  ;;  %v11084_v20 = vld [vmem:[#allocation6 + $0xd30] sm:$0xf0]  ;;  %v13216_v56 = vadd.f32 %v6684_v44, %v13204_v34  ;;  %v9747_v34 = vor.u32 %v12183_v49, %v9746_v2  ;;  %v12407_v2 = vld [vmem:[#allocation6 + $0x9b4] sm:$0xf0] }
 0x388   :  { %6974 = vmatpush.bf16.msra.mxu1 %v9907_v62  ;;  %v12330_v22 = vld [vmem:[#allocation6 + $0x754] sm:$0xf]  ;;  %v11087_v61 = vor.u32 %v12514_v21, %v11084_v20  ;;  %v9523_v62 = vor.u32 %v12127_v43, %v9522_v38  ;;  %v12175_v21 = vld [vmem:[#allocation6 + $0x274] sm:$0xf0] }
 0x389   :  { %v10348_v23 = vld [vmem:[#allocation6 + $0x770] sm:$0xf0]  ;;  %6937 = vmatpush.bf16.msrb.mxu2 %v11119_v51  ;;  %6897 = vmatpush.bf16.msra.mxu0 %v10383_v33  ;;  %v9715_v17 = vor.u32 %v12175_v21, %v9714_v15  ;;  %v12415_v38 = vld [vmem:[#allocation6 + $0x9f4] sm:$0xf0] }
 0x38a   :  { %6962 = vmatpush.bf16.msra.mxu3 %v9619_v48  ;;  %v10351_v36 = vor.u32 %v12330_v22, %v10348_v23  ;;  %v12506_v32 = vld [vmem:[#allocation6 + $0xcd4] sm:$0xf]  ;;  %v13218_v48 = vpop.f32.mrf.mxu3  ;;  %v6647_v22 = vpop.f32.mrf.mxu0  ;;  %v10898_v49 = vld [vmem:[#allocation6 + $0xb98] sm:$0xf] }
 0x38b   :  { %v11052_v35 = vld [vmem:[#allocation6 + $0xcf0] sm:$0xf0]  ;;  %v10866_v15 = vld [vmem:[#allocation6 + $0xb58] sm:$0xf] }
 0x38c   :  { %6975 = vmatpush.bf16.msra.mxu1 %v9875_v5  ;;  %v12322_v11 = vld [vmem:[#allocation6 + $0x714] sm:$0xf]  ;;  %v11055_v55 = vor.u32 %v12506_v32, %v11052_v35  ;;  %v9491_v5 = vor.u32 %v12119_v53, %v9490_v28  ;;  %v6725_v51 = vpop.f32.mrf.mxu1  ;;  %v12103_v32 = vld [vmem:[#allocation6 + $0x34] sm:$0xf0] }
 0x38d   :  { %v10316_v14 = vld [vmem:[#allocation6 + $0x730] sm:$0xf0]  ;;  %6938 = vmatpush.bf16.msrb.mxu2 %v11087_v61  ;;  %6898 = vmatpush.bf16.msra.mxu0 %v10351_v36  ;;  %v10162_v61 = vld [vmem:[#allocation6 + $0x5d8] sm:$0xf] }
 0x38e   :  { %6963 = vmatpush.bf16.msra.mxu3 %v9587_v30  ;;  %v10319_v7 = vor.u32 %v12322_v11, %v10316_v14  ;;  %v12498_v52 = vld [vmem:[#allocation6 + $0xc94] sm:$0xf]  ;;  %v6686_v27 = vpop.f32.mrf.mxu2  ;;  %v12287_v36 = vld [vmem:[#allocation6 + $0x5f4] sm:$0xf0] }
 0x38f   :  { %v11020_v16 = vld [vmem:[#allocation6 + $0xcb0] sm:$0xf0]  ;;  %v9682_v35 = vld [vmem:[#allocation6 + $0x218] sm:$0xf]  ;;  %v10163_v43 = vor.u32 %v12287_v36, %v10162_v61 }
 0x390   :  { %6976 = vmatpush.bf16.msra.mxu1 %v9843_v40  ;;  %v12314_v54 = vld [vmem:[#allocation6 + $0x6d4] sm:$0xf]  ;;  %v11023_v1 = vor.u32 %v12498_v52, %v11020_v16  ;;  %v9427_v52 = vor.u32 %v12103_v32, %v9426_v9  ;;  %v10130_v16 = vld [vmem:[#allocation6 + $0x598] sm:$0xf] }
 0x391   :  { %v10284_v58 = vld [vmem:[#allocation6 + $0x6f0] sm:$0xf0]  ;;  %6939 = vmatpush.bf16.msrb.mxu2 %v11055_v55  ;;  %6899 = vmatpush.bf16.msra.mxu0 %v10319_v7  ;;  %v10930_v55 = vld [vmem:[#allocation6 + $0xbd8] sm:$0xf] }
 0x392   :  { %6964 = vmatpush.bf16.msra.mxu3 %v9555_v24  ;;  %v10287_v12 = vor.u32 %v12314_v54, %v10284_v58  ;;  %v12490_v59 = vld [vmem:[#allocation6 + $0xc54] sm:$0xf]  ;;  %v12167_v24 = vld [vmem:[#allocation6 + $0x234] sm:$0xf0]  ;;  %v6712_v50 = vpop.f32.mrf.mxu3 }
 0x393   :  { %v10988_v3 = vld [vmem:[#allocation6 + $0xc70] sm:$0xf0]  ;;  %v12479_v7 = vld [vmem:[#allocation6 + $0xbf4] sm:$0xf0]  ;;  %v9683_v58 = vor.u32 %v12167_v24, %v9682_v35 }
 0x394   :  { %6977 = vmatpush.bf16.msra.mxu1 %v9811_v39  ;;  %v12306_v29 = vld [vmem:[#allocation6 + $0x694] sm:$0xf]  ;;  %v10991_v33 = vor.u32 %v12490_v59, %v10988_v3  ;;  %v10674_v39 = vld [vmem:[#allocation6 + $0x9d8] sm:$0xf]  ;;  %v10931_v28 = vor.u32 %v12479_v7, %v10930_v55 }
 0x395   :  { %v10252_v13 = vld [vmem:[#allocation6 + $0x6b0] sm:$0xf0]  ;;  %6940 = vmatpush.bf16.msrb.mxu2 %v11023_v1  ;;  %6900 = vmatpush.bf16.msra.mxu0 %v10287_v12  ;;  %v12279_v54 = vld [vmem:[#allocation6 + $0x5b4] sm:$0xf0] }
 0x396   :  { %6965 = vmatpush.bf16.msra.mxu3 %v9523_v62  ;;  %v10255_v31 = vor.u32 %v12306_v29, %v10252_v13  ;;  %v12482_v20 = vld [vmem:[#allocation6 + $0xc14] sm:$0xf]  ;;  %v10131_v1 = vor.u32 %v12279_v54, %v10130_v16  ;;  %v10642_v12 = vld [vmem:[#allocation6 + $0x998] sm:$0xf] }
 0x397   :  { %v10956_v23 = vld [vmem:[#allocation6 + $0xc30] sm:$0xf0]  ;;  %v12471_v3 = vld [vmem:[#allocation6 + $0xbb4] sm:$0xf0]  ;;  %v10643_v37 = vor.u32 %v12407_v2, %v10642_v12  ;;  %v13225_v12 = vld [vmem:[#allocation7] sm:$0xff] }
 0x398   :  { %6978 = vmatpush.bf16.msra.mxu1 %v9779_v18  ;;  %v12298_v30 = vld [vmem:[#allocation6 + $0x654] sm:$0xf]  ;;  %v10959_v11 = vor.u32 %v12482_v20, %v10956_v23  ;;  %v10675_v18 = vor.u32 %v12415_v38, %v10674_v39  ;;  %v10098_v29 = vld [vmem:[#allocation6 + $0x558] sm:$0xf]  ;;  %v10899_v6 = vor.u32 %v12471_v3, %v10898_v49  ;;  %v3765_v2 = vperm.slane %v13225_v12, 4 }
 0x399   :  { %v10220_v40 = vld [vmem:[#allocation6 + $0x670] sm:$0xf0]  ;;  %6941 = vmatpush.bf16.msrb.mxu2 %v10991_v33  ;;  %6901 = vmatpush.bf16.msra.mxu0 %v10255_v31  ;;  %v12271_v13 = vld [vmem:[#allocation6 + $0x574] sm:$0xf0] }
 0x39a   :  { %6966 = vmatpush.bf16.msra.mxu3 %v9491_v5  ;;  %v10223_v14 = vor.u32 %v12298_v30, %v10220_v40  ;;  %v12290_v47 = vld [vmem:[#allocation6 + $0x614] sm:$0xf]  ;;  %v10099_v51 = vor.u32 %v12271_v13, %v10098_v29  ;;  %v10610_v33 = vld [vmem:[#allocation6 + $0x958] sm:$0xf] }
 0x39b   :  { %v10188_v25 = vld [vmem:[#allocation6 + $0x630] sm:$0xf0]  ;;  %v12399_v31 = vld [vmem:[#allocation6 + $0x974] sm:$0xf0] }
 0x39c   :  { %6979 = vmatpush.bf16.msra.mxu1 %v9747_v34  ;;  %v12602_v44 = vld [vmem:[#allocation6 + $0xfd4] sm:$0xf]  ;;  %v10191_v53 = vor.u32 %v12290_v47, %v10188_v25  ;;  %v12463_v20 = vld [vmem:[#allocation6 + $0xb74] sm:$0xf0]  ;;  %v10611_v27 = vor.u32 %v12399_v31, %v10610_v33 }
 0x39d   :  { %v11436_v62 = vld [vmem:[#allocation6 + $0xff0] sm:$0xf0]  ;;  %6942 = vmatpush.bf16.msrb.mxu2 %v10959_v11  ;;  %6902 = vmatpush.bf16.msra.mxu0 %v10223_v14  ;;  %v10066_v22 = vld [vmem:[#allocation6 + $0x518] sm:$0xf] }
 0x39e   :  { %6967 = vmatpush.bf16.msra.mxu3 %v9459_v45  ;;  %v11439_v59 = vor.u32 %v12602_v44, %v11436_v62  ;;  %v12594_v5 = vld [vmem:[#allocation6 + $0xf94] sm:$0xf]  ;;  %v12263_v23 = vld [vmem:[#allocation6 + $0x534] sm:$0xf0]  ;;  %v10867_v45 = vor.u32 %v12463_v20, %v10866_v15  ;;  %v6697_v44 = vpop.f32.mrf.mxu0 }
 0x39f   :  { %v11404_v34 = vld [vmem:[#allocation6 + $0xfb0] sm:$0xf0]  ;;  %v10067_v61 = vor.u32 %v12263_v23, %v10066_v22  ;;  %v10578_v36 = vld [vmem:[#allocation6 + $0x918] sm:$0xf] }
 0x3a0   :  { %6980 = vmatpush.bf16.msra.mxu1 %v9715_v17  ;;  %6943 = vmatmul.bf16.vlgmr.msrb.gmra.mxu2 %v13111_v63  ;;  %v11407_v21 = vor.u32 %v12594_v5, %v11404_v34  ;;  %v12586_v30 = vld [vmem:[#allocation6 + $0xf54] sm:$0xf]  ;;  %v12391_v17 = vld [vmem:[#allocation6 + $0x934] sm:$0xf0] }
 0x3a1   :  { %6987 = vmatpush.bf16.msra.mxu2 %v10163_v43  ;;  %6903 = vmatpush.bf16.msra.mxu0 %v10191_v53  ;;  %v11372_v40 = vld [vmem:[#allocation6 + $0xf70] sm:$0xf0]  ;;  %v10834_v9 = vld [vmem:[#allocation6 + $0xb18] sm:$0xf]  ;;  %v10579_v38 = vor.u32 %v12391_v17, %v10578_v36 }
 0x3a2   :  { %6968 = vmatpush.bf16.msra.mxu3 %v9427_v52  ;;  %v11375_v32 = vor.u32 %v12586_v30, %v11372_v40  ;;  %v12455_v35 = vld [vmem:[#allocation6 + $0xb34] sm:$0xf0]  ;;  %v12578_v24 = vld [vmem:[#allocation6 + $0xf14] sm:$0xf] }
 0x3a3   :  { %v10034_v11 = vld [vmem:[#allocation6 + $0x4d8] sm:$0xf]  ;;  %v11340_v39 = vld [vmem:[#allocation6 + $0xf30] sm:$0xf0]  ;;  %v10835_v43 = vor.u32 %v12455_v35, %v10834_v9  ;;  %v6736_v53 = vpop.f32.mrf.mxu2 }
 0x3a4   :  { %6981 = vmatpush.bf16.msra.mxu1 %v9683_v58  ;;  %6904 = vmatmul.bf16.vlgmr.msra.gmra.mxu0 %v13068_v10  ;;  %v12255_v14 = vld [vmem:[#allocation6 + $0x4f4] sm:$0xf0]  ;;  %v6775_v52 = vpop.f32.mrf.mxu1  ;;  %v11343_v25 = vor.u32 %v12578_v24, %v11340_v39  ;;  %v12570_v62 = vld [vmem:[#allocation6 + $0xed4] sm:$0xf] }
 0x3a5   :  { %6988 = vmatpush.bf16.msra.mxu2 %v10131_v1  ;;  %6948 = vmatpush.bf16.msrb.mxu0 %v11439_v59  ;;  %v10035_v55 = vor.u32 %v12255_v14, %v10034_v11  ;;  %v10546_v7 = vld [vmem:[#allocation6 + $0x8d8] sm:$0xf]  ;;  %v12562_v33 = vld [vmem:[#allocation6 + $0xe94] sm:$0xf] }
 0x3a6   :  { %7013 = vmatpush.bf16.msrb.mxu3 %v10675_v18  ;;  %v12383_v47 = vld [vmem:[#allocation6 + $0x8f4] sm:$0xf0]  ;;  %v11308_v18 = vld [vmem:[#allocation6 + $0xef0] sm:$0xf0]  ;;  %v6699_v35 = vpop.f32.mrf.mxu0 }
 0x3a7   :  { %6969 = vmatmul.bf16.vlgmr.msra.gmra.mxu3 %v13062_v4  ;;  %6982 = vmatmul.bf16.vlgmr.msra.gmra.mxu1 %v13064_v41  ;;  %v10802_v50 = vld [vmem:[#allocation6 + $0xad8] sm:$0xf]  ;;  %v10547_v1 = vor.u32 %v12383_v47, %v10546_v7  ;;  %v11311_v34 = vor.u32 %v12570_v62, %v11308_v18  ;;  %v11276_v31 = vld [vmem:[#allocation6 + $0xeb0] sm:$0xf0]  ;;  %v9908_v62 = vld [vmem:[#allocation6 + $0x3f8] sm:$0xf0] }
 0x3a8   :  { %7026 = vmatpush.bf16.msrb.mxu1 %v10931_v28  ;;  %v12447_v16 = vld [vmem:[#allocation6 + $0xaf4] sm:$0xf0]  ;;  %v6698_v28 = vadd.f32 %v6697_v44, %v13216_v56  ;;  %v11279_v36 = vor.u32 %v12562_v33, %v11276_v31  ;;  %v11244_v11 = vld [vmem:[#allocation6 + $0xe70] sm:$0xf0]  ;;  %v12219_v44 = vld [vmem:[#allocation6 + $0x3dc] sm:$0xf] }
 0x3a9   :  { %6989 = vmatpush.bf16.msra.mxu2 %v10099_v51  ;;  %6949 = vmatpush.bf16.msrb.mxu0 %v11407_v21  ;;  %v10002_v54 = vld [vmem:[#allocation6 + $0x498] sm:$0xf]  ;;  %v10803_v49 = vor.u32 %v12447_v16, %v10802_v50  ;;  %v6762_v51 = vpop.f32.mrf.mxu3  ;;  %v12155_v16 = vld [vmem:[#allocation6 + $0x1dc] sm:$0xf] }
 0x3aa   :  { %7014 = vmatpush.bf16.msrb.mxu3 %v10643_v37  ;;  %v12247_v58 = vld [vmem:[#allocation6 + $0x4b4] sm:$0xf0]  ;;  %v6711_v5 = vadd.f32 %v13218_v48, %v6698_v28  ;;  %v6763_v21 = vadd.f32 %v6762_v51, %v3765_v2  ;;  %v12546_v28 = vld [vmem:[#allocation6 + $0xe14] sm:$0xf]  ;;  %v12211_v33 = vld [vmem:[#allocation6 + $0x39c] sm:$0xf] }
 0x3ab   :  { %v10003_v59 = vor.u32 %v12247_v58, %v10002_v54  ;;  %v10514_v3 = vld [vmem:[#allocation6 + $0x898] sm:$0xf]  ;;  %v6738_v39 = vpop.f32.mrf.mxu2  ;;  %v9652_v58 = vld [vmem:[#allocation6 + $0x1f8] sm:$0xf0] }
 0x3ac   :  { %7027 = vmatpush.bf16.msrb.mxu1 %v10899_v6  ;;  %v12375_v29 = vld [vmem:[#allocation6 + $0x8b4] sm:$0xf0]  ;;  %v6724_v15 = vadd.f32 %v13210_v42, %v6711_v5  ;;  %v13232_v42 = vadd.f32 %v6775_v52, %v6763_v21  ;;  %v9911_v5 = vor.u32 %v12219_v44, %v9908_v62  ;;  %v9876_v31 = vld [vmem:[#allocation6 + $0x3b8] sm:$0xf0] }
 0x3ad   :  { %6990 = vmatpush.bf16.msra.mxu2 %v10067_v61  ;;  %6950 = vmatpush.bf16.msrb.mxu0 %v11375_v32  ;;  %v10770_v13 = vld [vmem:[#allocation6 + $0xa98] sm:$0xf]  ;;  %v10515_v20 = vor.u32 %v12375_v29, %v10514_v3  ;;  %v6777_v61 = vpop.f32.mrf.mxu1  ;;  %v12554_v32 = vld [vmem:[#allocation6 + $0xe54] sm:$0xf]  ;;  %v12131_v39 = vld [vmem:[#allocation6 + $0x11c] sm:$0xf] }
 0x3ae   :  { %7015 = vmatpush.bf16.msrb.mxu3 %v10611_v27  ;;  %v12439_v37 = vld [vmem:[#allocation6 + $0xab4] sm:$0xf0]  ;;  %v11247_v54 = vor.u32 %v12554_v32, %v11244_v11  ;;  %v12123_v44 = vld [vmem:[#allocation6 + $0xdc] sm:$0xf] }
 0x3af   :  { %v9970_v6 = vld [vmem:[#allocation6 + $0x458] sm:$0xf]  ;;  %v10771_v23 = vor.u32 %v12439_v37, %v10770_v13  ;;  %v9655_v13 = vor.u32 %v12155_v16, %v9652_v58  ;;  %v12147_v37 = vld [vmem:[#allocation6 + $0x19c] sm:$0xf] }
 0x3b0   :  { %7028 = vmatpush.bf16.msrb.mxu1 %v10867_v45  ;;  %v12239_v56 = vld [vmem:[#allocation6 + $0x474] sm:$0xf0]  ;;  %v13230_v45 = vadd.f32 %v6736_v53, %v6724_v15  ;;  %v11212_v53 = vld [vmem:[#allocation6 + $0xe30] sm:$0xf0]  ;;  %v9524_v62 = vld [vmem:[#allocation6 + $0xf8] sm:$0xf0] }
 0x3b1   :  { %6991 = vmatpush.bf16.msra.mxu2 %v10035_v55  ;;  %6951 = vmatpush.bf16.msrb.mxu0 %v11343_v25  ;;  %v10482_v22 = vld [vmem:[#allocation6 + $0x858] sm:$0xf]  ;;  %v9971_v30 = vor.u32 %v12239_v56, %v9970_v6  ;;  %v6764_v18 = vpop.f32.mrf.mxu3  ;;  %v9620_v6 = vld [vmem:[#allocation6 + $0x1b8] sm:$0xf0] }
 0x3b2   :  { %7016 = vmatpush.bf16.msrb.mxu3 %v10579_v38  ;;  %v12367_v40 = vld [vmem:[#allocation6 + $0x874] sm:$0xf0] }
 0x3b3   :  { %v10738_v48 = vld [vmem:[#allocation6 + $0xa58] sm:$0xf]  ;;  %v10483_v38 = vor.u32 %v12367_v40, %v10482_v22  ;;  %v12139_v40 = vld [vmem:[#allocation6 + $0x15c] sm:$0xf] }
 0x3b4   :  { %7029 = vmatpush.bf16.msrb.mxu1 %v10835_v43  ;;  %v12431_v27 = vld [vmem:[#allocation6 + $0xa74] sm:$0xf0] }
 0x3b5   :  { %6992 = vmatpush.bf16.msra.mxu2 %v10003_v59  ;;  %6952 = vmatpush.bf16.msrb.mxu0 %v11311_v34  ;;  %v9938_v17 = vld [vmem:[#allocation6 + $0x418] sm:$0xf]  ;;  %v10739_v7 = vor.u32 %v12431_v27, %v10738_v48  ;;  %v11215_v34 = vor.u32 %v12546_v28, %v11212_v53  ;;  %v9588_v48 = vld [vmem:[#allocation6 + $0x178] sm:$0xf0] }
 0x3b6   :  { %7017 = vmatpush.bf16.msrb.mxu3 %v10547_v1  ;;  %v12231_v9 = vld [vmem:[#allocation6 + $0x434] sm:$0xf0] }
 0x3b7   :  { %v11186_v14 = vld [vmem:[#allocation6 + $0xdd8] sm:$0xf]  ;;  %v9939_v47 = vor.u32 %v12231_v9, %v9938_v17  ;;  %v9844_v17 = vld [vmem:[#allocation6 + $0x378] sm:$0xf0] }
 0x3b8   :  { %7030 = vmatpush.bf16.msrb.mxu1 %v10803_v49  ;;  %v12543_v24 = vld [vmem:[#allocation6 + $0xdf4] sm:$0xf0] }
 0x3b9   :  { %v10450_v43 = vld [vmem:[#allocation6 + $0x818] sm:$0xf]  ;;  %6993 = vmatpush.bf16.msra.mxu2 %v9971_v30  ;;  %6953 = vmatpush.bf16.msrb.mxu0 %v11279_v36  ;;  %v11187_v52 = vor.u32 %v12543_v24, %v11186_v14  ;;  %v9879_v30 = vor.u32 %v12211_v33, %v9876_v31  ;;  %v12203_v36 = vld [vmem:[#allocation6 + $0x35c] sm:$0xf]  ;;  %v9591_v14 = vor.u32 %v12139_v40, %v9588_v48 }
 0x3ba   :  { %7018 = vmatpush.bf16.msrb.mxu3 %v10515_v20  ;;  %v12359_v55 = vld [vmem:[#allocation6 + $0x834] sm:$0xf0]  ;;  %v9847_v24 = vor.u32 %v12203_v36, %v9844_v17  ;;  %v9492_v33 = vld [vmem:[#allocation6 + $0xb8] sm:$0xf0] }
 0x3bb   :  { %v10706_v50 = vld [vmem:[#allocation6 + $0xa18] sm:$0xf]  ;;  %v10451_v2 = vor.u32 %v12359_v55, %v10450_v43 }
 0x3bc   :  { %7031 = vmatpush.bf16.msrb.mxu1 %v10771_v23  ;;  %v12423_v25 = vld [vmem:[#allocation6 + $0xa34] sm:$0xf0]  ;;  %v9623_v23 = vor.u32 %v12147_v37, %v9620_v6  ;;  %v9527_v37 = vor.u32 %v12123_v44, %v9524_v62  ;;  %v9684_v44 = vld [vmem:[#allocation6 + $0x238] sm:$0xf0] }
 0x3bd   :  { %v11154_v1 = vld [vmem:[#allocation6 + $0xd98] sm:$0xf]  ;;  %6994 = vmatpush.bf16.msra.mxu2 %v9939_v47  ;;  %v10707_v29 = vor.u32 %v12423_v25, %v10706_v50  ;;  %6954 = vmatpush.bf16.msrb.mxu0 %v11247_v54  ;;  %v9812_v47 = vld [vmem:[#allocation6 + $0x338] sm:$0xf0] }
 0x3be   :  { %7019 = vmatpush.bf16.msrb.mxu3 %v10483_v38  ;;  %v12535_v49 = vld [vmem:[#allocation6 + $0xdb4] sm:$0xf0]  ;;  %v9556_v38 = vld [vmem:[#allocation6 + $0x138] sm:$0xf0] }
 0x3bf   :  { %v10418_v59 = vld [vmem:[#allocation6 + $0x7d8] sm:$0xf]  ;;  %v11155_v56 = vor.u32 %v12535_v49, %v11154_v1  ;;  %v12187_v1 = vld [vmem:[#allocation6 + $0x2dc] sm:$0xf] }
 0x3c0   :  { %v12351_v3 = vld [vmem:[#allocation6 + $0x7f4] sm:$0xf0]  ;;  %7032 = vmatpush.bf16.msrb.mxu1 %v10739_v7  ;;  %6995 = vmatmul.bf16.vlgmr.msra.gmra.mxu2 %v13066_v8  ;;  %v12195_v7 = vld [vmem:[#allocation6 + $0x31c] sm:$0xf] }
 0x3c1   :  { %7039 = vmatpush.bf16.msrb.mxu2 %v11187_v52  ;;  %v10419_v51 = vor.u32 %v12351_v3, %v10418_v59  ;;  %v11122_v15 = vld [vmem:[#allocation6 + $0xd58] sm:$0xf]  ;;  %6955 = vmatpush.bf16.msrb.mxu0 %v11215_v34  ;;  %v9559_v52 = vor.u32 %v12131_v39, %v9556_v38  ;;  %v9815_v58 = vor.u32 %v12195_v7, %v9812_v47  ;;  %v6749_v59 = vpop.f32.mrf.mxu0  ;;  %v12283_v7 = vld [vmem:[#allocation6 + $0x5dc] sm:$0xf] }
 0x3c2   :  { %7020 = vmatpush.bf16.msrb.mxu3 %v10451_v2  ;;  %v12527_v21 = vld [vmem:[#allocation6 + $0xd74] sm:$0xf0]  ;;  %v9780_v2 = vld [vmem:[#allocation6 + $0x2f8] sm:$0xf0] }
 0x3c3   :  { %v10386_v20 = vld [vmem:[#allocation6 + $0x798] sm:$0xf]  ;;  %v11123_v27 = vor.u32 %v12527_v21, %v11122_v15  ;;  %v6788_v34 = vpop.f32.mrf.mxu2  ;;  %v12179_v21 = vld [vmem:[#allocation6 + $0x29c] sm:$0xf] }
 0x3c4   :  { %v12343_v22 = vld [vmem:[#allocation6 + $0x7b4] sm:$0xf0]  ;;  %7033 = vmatpush.bf16.msrb.mxu1 %v10707_v29  ;;  %6956 = vmatmul.bf16.vlgmr.msrb.gmra.mxu0 %v13120_v60  ;;  %v13238_v18 = vpop.f32.mrf.mxu1  ;;  %v13244_v6 = vadd.f32 %v6788_v34, %v13232_v42  ;;  %v10164_v47 = vld [vmem:[#allocation6 + $0x5f8] sm:$0xf0] }
 0x3c5   :  { %7040 = vmatpush.bf16.msrb.mxu2 %v11155_v56  ;;  %7000 = vmatpush.bf16.msra.mxu0 %v10419_v51  ;;  %v10387_v61 = vor.u32 %v12343_v22, %v10386_v20  ;;  %v11090_v9 = vld [vmem:[#allocation6 + $0xd18] sm:$0xf]  ;;  %v9783_v56 = vor.u32 %v12187_v1, %v9780_v2  ;;  %v12115_v51 = vld [vmem:[#allocation6 + $0x9c] sm:$0xf] }
 0x3c6   :  { %7065 = vmatpush.bf16.msra.mxu3 %v9655_v13  ;;  %v12519_v32 = vld [vmem:[#allocation6 + $0xd34] sm:$0xf0]  ;;  %v9748_v20 = vld [vmem:[#allocation6 + $0x2b8] sm:$0xf0]  ;;  %v9495_v48 = vor.u32 %v12115_v51, %v9492_v33 }
 0x3c7   :  { %7021 = vmatmul.bf16.vlgmr.msrb.gmra.mxu3 %v13083_v46  ;;  %7034 = vmatmul.bf16.vlgmr.msrb.gmra.mxu1 %v13086_v0  ;;  %v10354_v35 = vld [vmem:[#allocation6 + $0x758] sm:$0xf]  ;;  %v11091_v43 = vor.u32 %v12519_v32, %v11090_v9  ;;  %v9751_v42 = vor.u32 %v12179_v21, %v9748_v20  ;;  %v12171_v32 = vld [vmem:[#allocation6 + $0x25c] sm:$0xf] }
 0x3c8   :  { %7078 = vmatpush.bf16.msra.mxu1 %v9911_v5  ;;  %v12335_v11 = vld [vmem:[#allocation6 + $0x774] sm:$0xf0]  ;;  %v13241_v5 = vadd.f32 %v6749_v59, %v13230_v45  ;;  %v13246_v40 = vpop.f32.mrf.mxu3  ;;  %v12411_v62 = vld [vmem:[#allocation6 + $0x9dc] sm:$0xf] }
 0x3c9   :  { %7041 = vmatpush.bf16.msrb.mxu2 %v11123_v27  ;;  %7001 = vmatpush.bf16.msra.mxu0 %v10387_v61  ;;  %v10355_v55 = vor.u32 %v12335_v11, %v10354_v35  ;;  %v11058_v50 = vld [vmem:[#allocation6 + $0xcd8] sm:$0xf]  ;;  %v12107_v27 = vld [vmem:[#allocation6 + $0x5c] sm:$0xf] }
 0x3ca   :  { %7066 = vmatpush.bf16.msra.mxu3 %v9623_v23  ;;  %v12511_v25 = vld [vmem:[#allocation6 + $0xcf4] sm:$0xf0]  ;;  %v9460_v61 = vld [vmem:[#allocation6 + $0x78] sm:$0xf0] }
 0x3cb   :  { %v10322_v16 = vld [vmem:[#allocation6 + $0x718] sm:$0xf]  ;;  %v11059_v28 = vor.u32 %v12511_v25, %v11058_v50  ;;  %v9716_v35 = vld [vmem:[#allocation6 + $0x278] sm:$0xf0] }
 0x3cc   :  { %7079 = vmatpush.bf16.msra.mxu1 %v9879_v30  ;;  %v12327_v54 = vld [vmem:[#allocation6 + $0x734] sm:$0xf0]  ;;  %v6829_v36 = vpop.f32.mrf.mxu1  ;;  %v9719_v50 = vor.u32 %v12171_v32, %v9716_v35  ;;  %v12099_v25 = vld [vmem:[#allocation6 + $0x1c] sm:$0xf] }
 0x3cd   :  { %7042 = vmatpush.bf16.msrb.mxu2 %v11091_v43  ;;  %7002 = vmatpush.bf16.msra.mxu0 %v10355_v55  ;;  %v10323_v53 = vor.u32 %v12327_v54, %v10322_v16  ;;  %v11026_v49 = vld [vmem:[#allocation6 + $0xc98] sm:$0xf]  ;;  %v6790_v43 = vpop.f32.mrf.mxu2  ;;  %v9463_v55 = vor.u32 %v12107_v27, %v9460_v61  ;;  %v9428_v16 = vld [vmem:[#allocation6 + $0x38] sm:$0xf0] }
 0x3ce   :  { %7067 = vmatpush.bf16.msra.mxu3 %v9591_v14  ;;  %v12503_v3 = vld [vmem:[#allocation6 + $0xcb4] sm:$0xf0]  ;;  %v6751_v14 = vpop.f32.mrf.mxu0  ;;  %v12163_v54 = vld [vmem:[#allocation6 + $0x21c] sm:$0xf] }
 0x3cf   :  { %v10290_v29 = vld [vmem:[#allocation6 + $0x6d8] sm:$0xf]  ;;  %v11027_v31 = vor.u32 %v12503_v3, %v11026_v49  ;;  %v12475_v1 = vld [vmem:[#allocation6 + $0xbdc] sm:$0xf]  ;;  %v9431_v3 = vor.u32 %v12099_v25, %v9428_v16 }
 0x3d0   :  { %7080 = vmatpush.bf16.msra.mxu1 %v9847_v24  ;;  %v12319_v13 = vld [vmem:[#allocation6 + $0x6f4] sm:$0xf0]  ;;  %v10932_v2 = vld [vmem:[#allocation6 + $0xbf8] sm:$0xf0]  ;;  %v6816_v59 = vpop.f32.mrf.mxu3 }
 0x3d1   :  { %7043 = vmatpush.bf16.msrb.mxu2 %v11059_v28  ;;  %7003 = vmatpush.bf16.msra.mxu0 %v10323_v53  ;;  %v10291_v15 = vor.u32 %v12319_v13, %v10290_v29  ;;  %v10994_v22 = vld [vmem:[#allocation6 + $0xc58] sm:$0xf]  ;;  %v10676_v28 = vld [vmem:[#allocation6 + $0x9f8] sm:$0xf0]  ;;  %v10167_v53 = vor.u32 %v12283_v7, %v10164_v47 }
 0x3d2   :  { %7068 = vmatpush.bf16.msra.mxu3 %v9559_v52  ;;  %v12495_v23 = vld [vmem:[#allocation6 + $0xc74] sm:$0xf0]  ;;  %v12275_v13 = vld [vmem:[#allocation6 + $0x59c] sm:$0xf]  ;;  %v10679_v33 = vor.u32 %v12411_v62, %v10676_v28 }
 0x3d3   :  { %v10258_v30 = vld [vmem:[#allocation6 + $0x698] sm:$0xf]  ;;  %v10995_v17 = vor.u32 %v12495_v23, %v10994_v22  ;;  %v10132_v34 = vld [vmem:[#allocation6 + $0x5b8] sm:$0xf0] }
 0x3d4   :  { %7081 = vmatpush.bf16.msra.mxu1 %v9815_v58  ;;  %v12311_v45 = vld [vmem:[#allocation6 + $0x6b4] sm:$0xf0]  ;;  %v10135_v21 = vor.u32 %v12275_v13, %v10132_v34  ;;  %v12403_v20 = vld [vmem:[#allocation6 + $0x99c] sm:$0xf] }
 0x3d5   :  { %7044 = vmatpush.bf16.msrb.mxu2 %v11027_v31  ;;  %7004 = vmatpush.bf16.msra.mxu0 %v10291_v15  ;;  %v10259_v9 = vor.u32 %v12311_v45, %v10258_v30  ;;  %v10962_v11 = vld [vmem:[#allocation6 + $0xc18] sm:$0xf]  ;;  %v10935_v31 = vor.u32 %v12475_v1, %v10932_v2  ;;  %v10644_v22 = vld [vmem:[#allocation6 + $0x9b8] sm:$0xf0] }
 0x3d6   :  { %7069 = vmatpush.bf16.msra.mxu3 %v9527_v37  ;;  %v12487_v24 = vld [vmem:[#allocation6 + $0xc34] sm:$0xf0]  ;;  %v9687_v37 = vor.u32 %v12163_v54, %v9684_v44  ;;  %v12467_v23 = vld [vmem:[#allocation6 + $0xb9c] sm:$0xf]  ;;  %v10647_v36 = vor.u32 %v12403_v20, %v10644_v22  ;;  %v3766_v20 = vperm.slane %v13225_v12, 5 }
 0x3d7   :  { %v10226_v39 = vld [vmem:[#allocation6 + $0x658] sm:$0xf]  ;;  %v10963_v52 = vor.u32 %v12487_v24, %v10962_v11  ;;  %v10900_v45 = vld [vmem:[#allocation6 + $0xbb8] sm:$0xf0] }
 0x3d8   :  { %7082 = vmatpush.bf16.msra.mxu1 %v9783_v56  ;;  %v12303_v38 = vld [vmem:[#allocation6 + $0x674] sm:$0xf0]  ;;  %v12395_v32 = vld [vmem:[#allocation6 + $0x95c] sm:$0xf] }
 0x3d9   :  { %7045 = vmatpush.bf16.msrb.mxu2 %v10995_v17  ;;  %7005 = vmatpush.bf16.msra.mxu0 %v10259_v9  ;;  %v10227_v58 = vor.u32 %v12303_v38, %v10226_v39  ;;  %v10194_v49 = vld [vmem:[#allocation6 + $0x618] sm:$0xf]  ;;  %v10903_v17 = vor.u32 %v12467_v23, %v10900_v45  ;;  %v10612_v35 = vld [vmem:[#allocation6 + $0x978] sm:$0xf0] }
 0x3da   :  { %7070 = vmatpush.bf16.msra.mxu3 %v9495_v48  ;;  %v12295_v29 = vld [vmem:[#allocation6 + $0x634] sm:$0xf0]  ;;  %v12267_v48 = vld [vmem:[#allocation6 + $0x55c] sm:$0xf]  ;;  %v10615_v7 = vor.u32 %v12395_v32, %v10612_v35 }
 0x3db   :  { %v11442_v56 = vld [vmem:[#allocation6 + $0xfd8] sm:$0xf]  ;;  %v10195_v15 = vor.u32 %v12295_v29, %v10194_v49  ;;  %v12459_v11 = vld [vmem:[#allocation6 + $0xb5c] sm:$0xf] }
 0x3dc   :  { %7083 = vmatpush.bf16.msra.mxu1 %v9751_v42  ;;  %v12607_v51 = vld [vmem:[#allocation6 + $0xff4] sm:$0xf0]  ;;  %v10100_v42 = vld [vmem:[#allocation6 + $0x578] sm:$0xf0] }
 0x3dd   :  { %7046 = vmatpush.bf16.msrb.mxu2 %v10963_v52  ;;  %7006 = vmatpush.bf16.msra.mxu0 %v10227_v58  ;;  %v11443_v30 = vor.u32 %v12607_v51, %v11442_v56  ;;  %v11410_v27 = vld [vmem:[#allocation6 + $0xf98] sm:$0xf]  ;;  %v10103_v9 = vor.u32 %v12267_v48, %v10100_v42  ;;  %v10868_v24 = vld [vmem:[#allocation6 + $0xb78] sm:$0xf0] }
 0x3de   :  { %7071 = vmatpush.bf16.msra.mxu3 %v9463_v55  ;;  %v12599_v61 = vld [vmem:[#allocation6 + $0xfb4] sm:$0xf0]  ;;  %v12259_v39 = vld [vmem:[#allocation6 + $0x51c] sm:$0xf]  ;;  %v10871_v47 = vor.u32 %v12459_v11, %v10868_v24 }
 0x3df   :  { %v11411_v14 = vor.u32 %v12599_v61, %v11410_v27  ;;  %v10068_v38 = vld [vmem:[#allocation6 + $0x538] sm:$0xf0]  ;;  %v11378_v43 = vld [vmem:[#allocation6 + $0xf58] sm:$0xf] }
 0x3e0   :  { %7084 = vmatpush.bf16.msra.mxu1 %v9719_v50  ;;  %7047 = vmatmul.bf16.vlgmr.msrb.gmra.mxu2 %v13111_v63  ;;  %v12591_v55 = vld [vmem:[#allocation6 + $0xf74] sm:$0xf0]  ;;  %v10071_v50 = vor.u32 %v12259_v39, %v10068_v38  ;;  %v12387_v25 = vld [vmem:[#allocation6 + $0x91c] sm:$0xf] }
 0x3e1   :  { %7091 = vmatpush.bf16.msra.mxu2 %v10167_v53  ;;  %7007 = vmatpush.bf16.msra.mxu0 %v10195_v15  ;;  %v10580_v16 = vld [vmem:[#allocation6 + $0x938] sm:$0xf0]  ;;  %v11346_v62 = vld [vmem:[#allocation6 + $0xf18] sm:$0xf]  ;;  %v6801_v56 = vpop.f32.mrf.mxu0 }
 0x3e2   :  { %7072 = vmatpush.bf16.msra.mxu3 %v9431_v3  ;;  %v12451_v54 = vld [vmem:[#allocation6 + $0xb1c] sm:$0xf]  ;;  %v10583_v28 = vor.u32 %v12387_v25, %v10580_v16  ;;  %v11314_v51 = vld [vmem:[#allocation6 + $0xed8] sm:$0xf] }
 0x3e3   :  { %v10836_v52 = vld [vmem:[#allocation6 + $0xb38] sm:$0xf0]  ;;  %v6840_v15 = vpop.f32.mrf.mxu2  ;;  %v12567_v32 = vld [vmem:[#allocation6 + $0xeb4] sm:$0xf0] }
 0x3e4   :  { %7085 = vmatpush.bf16.msra.mxu1 %v9687_v37  ;;  %7008 = vmatmul.bf16.vlgmr.msra.gmra.mxu0 %v13068_v10  ;;  %v12251_v58 = vld [vmem:[#allocation6 + $0x4dc] sm:$0xf]  ;;  %v10839_v53 = vor.u32 %v12451_v54, %v10836_v52  ;;  %v6879_v3 = vpop.f32.mrf.mxu1  ;;  %v11250_v16 = vld [vmem:[#allocation6 + $0xe58] sm:$0xf] }
 0x3e5   :  { %7092 = vmatpush.bf16.msra.mxu2 %v10135_v21  ;;  %7052 = vmatpush.bf16.msrb.mxu0 %v11443_v30  ;;  %v10036_v44 = vld [vmem:[#allocation6 + $0x4f8] sm:$0xf0] }
 0x3e6   :  { %7117 = vmatpush.bf16.msrb.mxu3 %v10679_v33  ;;  %v10039_v1 = vor.u32 %v12251_v58, %v10036_v44  ;;  %v12379_v2 = vld [vmem:[#allocation6 + $0x8dc] sm:$0xf]  ;;  %v12575_v33 = vld [vmem:[#allocation6 + $0xef4] sm:$0xf0] }
 0x3e7   :  { %7073 = vmatmul.bf16.vlgmr.msra.gmra.mxu3 %v13062_v4  ;;  %7086 = vmatmul.bf16.vlgmr.msra.gmra.mxu1 %v13064_v41  ;;  %v11379_v4 = vor.u32 %v12591_v55, %v11378_v43  ;;  %v12583_v41 = vld [vmem:[#allocation6 + $0xf34] sm:$0xf0]  ;;  %v10548_v49 = vld [vmem:[#allocation6 + $0x8f8] sm:$0xf0]  ;;  %v11315_v27 = vor.u32 %v12575_v33, %v11314_v51 }
 0x3e8   :  { %7130 = vmatpush.bf16.msrb.mxu1 %v10935_v31  ;;  %v12443_v59 = vld [vmem:[#allocation6 + $0xadc] sm:$0xf]  ;;  %v11347_v29 = vor.u32 %v12583_v41, %v11346_v62  ;;  %v6802_v31 = vadd.f32 %v6801_v56, %v13244_v6  ;;  %v10551_v21 = vor.u32 %v12379_v2, %v10548_v49  ;;  %v11282_v6 = vld [vmem:[#allocation6 + $0xe98] sm:$0xf] }
 0x3e9   :  { %7093 = vmatpush.bf16.msra.mxu2 %v10103_v9  ;;  %7053 = vmatpush.bf16.msrb.mxu0 %v11411_v14  ;;  %v10804_v13 = vld [vmem:[#allocation6 + $0xaf8] sm:$0xf0]  ;;  %v6803_v54 = vpop.f32.mrf.mxu0 }
 0x3ea   :  { %7118 = vmatpush.bf16.msrb.mxu3 %v10647_v36  ;;  %v12243_v34 = vld [vmem:[#allocation6 + $0x49c] sm:$0xf]  ;;  %v10807_v22 = vor.u32 %v12443_v59, %v10804_v13  ;;  %v6815_v42 = vadd.f32 %v13246_v40, %v6802_v31  ;;  %v6866_v9 = vpop.f32.mrf.mxu3  ;;  %v11218_v13 = vld [vmem:[#allocation6 + $0xe18] sm:$0xf] }
 0x3eb   :  { %v10004_v37 = vld [vmem:[#allocation6 + $0x4b8] sm:$0xf0]  ;;  %v6867_v12 = vadd.f32 %v6866_v9, %v3766_v20  ;;  %v6842_v44 = vpop.f32.mrf.mxu2  ;;  %v12623_v20 = vld [vmem:[#allocation9 + $0x78] sm:$0xff] }
 0x3ec   :  { %7131 = vmatpush.bf16.msrb.mxu1 %v10903_v17  ;;  %v10007_v23 = vor.u32 %v12243_v34, %v10004_v37  ;;  %v12371_v30 = vld [vmem:[#allocation6 + $0x89c] sm:$0xf]  ;;  %v6828_v35 = vadd.f32 %v13238_v18, %v6815_v42  ;;  %v12551_v34 = vld [vmem:[#allocation6 + $0xe34] sm:$0xf0]  ;;  %v12611_v44 = vld [vmem:[#allocation9 + $0x18] sm:$0xff] }
 0x3ed   :  { %7094 = vmatpush.bf16.msra.mxu2 %v10071_v50  ;;  %7054 = vmatpush.bf16.msrb.mxu0 %v11379_v4  ;;  %v10516_v45 = vld [vmem:[#allocation6 + $0x8b8] sm:$0xf0]  ;;  %v13258_v18 = vadd.f32 %v6879_v3, %v6867_v12  ;;  %v12559_v4 = vld [vmem:[#allocation6 + $0xe74] sm:$0xf0]  ;;  %v12613_v12 = vld [vmem:[#allocation9 + $0x28] sm:$0xff] }
 0x3ee   :  { %7119 = vmatpush.bf16.msrb.mxu3 %v10615_v7  ;;  %v12435_v48 = vld [vmem:[#allocation6 + $0xa9c] sm:$0xf]  ;;  %v10519_v11 = vor.u32 %v12371_v30, %v10516_v45  ;;  %v13256_v55 = vadd.f32 %v6840_v15, %v6828_v35  ;;  %v6881_v7 = vpop.f32.mrf.mxu1  ;;  %v11251_v2 = vor.u32 %v12559_v4, %v11250_v16 }
 0x3ef   :  { %v10772_v61 = vld [vmem:[#allocation6 + $0xab8] sm:$0xf0] }
 0x3f0   :  { %7132 = vmatpush.bf16.msrb.mxu1 %v10871_v47  ;;  %v12235_v36 = vld [vmem:[#allocation6 + $0x45c] sm:$0xf]  ;;  %v10775_v24 = vor.u32 %v12435_v48, %v10772_v61  ;;  %v11283_v47 = vor.u32 %v12567_v32, %v11282_v6 }
 0x3f1   :  { %7095 = vmatpush.bf16.msra.mxu2 %v10039_v1  ;;  %7055 = vmatpush.bf16.msrb.mxu0 %v11347_v29  ;;  %v9972_v17 = vld [vmem:[#allocation6 + $0x478] sm:$0xf0] }
 0x3f2   :  { %7120 = vmatpush.bf16.msrb.mxu3 %v10583_v28  ;;  %v12363_v14 = vld [vmem:[#allocation6 + $0x85c] sm:$0xf]  ;;  %v9975_v39 = vor.u32 %v12235_v36, %v9972_v17  ;;  %v6868_v3 = vpop.f32.mrf.mxu3 }
 0x3f3   :  { %v10484_v38 = vld [vmem:[#allocation6 + $0x878] sm:$0xf0] }
 0x3f4   :  { %7133 = vmatpush.bf16.msrb.mxu1 %v10839_v53  ;;  %v12427_v40 = vld [vmem:[#allocation6 + $0xa5c] sm:$0xf]  ;;  %v10487_v62 = vor.u32 %v12363_v14, %v10484_v38 }
 0x3f5   :  { %7096 = vmatpush.bf16.msra.mxu2 %v10007_v23  ;;  %v10740_v43 = vld [vmem:[#allocation6 + $0xa78] sm:$0xf0]  ;;  %7056 = vmatpush.bf16.msrb.mxu0 %v11315_v27 }
 0x3f6   :  { %7121 = vmatpush.bf16.msrb.mxu3 %v10551_v21  ;;  %v12227_v50 = vld [vmem:[#allocation6 + $0x41c] sm:$0xf]  ;;  %v10743_v41 = vor.u32 %v12427_v40, %v10740_v43  ;;  %v12615_v21 = vld [vmem:[#allocation9 + $0x38] sm:$0xff] }
 0x3f7   :  { %v9940_v25 = vld [vmem:[#allocation6 + $0x438] sm:$0xf0] }
 0x3f8   :  { %7134 = vmatpush.bf16.msrb.mxu1 %v10807_v22  ;;  %v12539_v52 = vld [vmem:[#allocation6 + $0xddc] sm:$0xf]  ;;  %v9943_v28 = vor.u32 %v12227_v50, %v9940_v25  ;;  %v11219_v22 = vor.u32 %v12551_v34, %v11218_v13 }
 0x3f9   :  { %v11188_v58 = vld [vmem:[#allocation6 + $0xdf8] sm:$0xf0]  ;;  %7097 = vmatpush.bf16.msra.mxu2 %v9975_v39  ;;  %7057 = vmatpush.bf16.msrb.mxu0 %v11283_v47 }
 0x3fa   :  { %7122 = vmatpush.bf16.msrb.mxu3 %v10519_v11  ;;  %v12355_v53 = vld [vmem:[#allocation6 + $0x81c] sm:$0xf]  ;;  %v11191_v49 = vor.u32 %v12539_v52, %v11188_v58  ;;  %v12621_v11 = vld [vmem:[#allocation9 + $0x68] sm:$0xff] }
 0x3fb   :  { %v10452_v1 = vld [vmem:[#allocation6 + $0x838] sm:$0xf0] }
 0x3fc   :  { %7135 = vmatpush.bf16.msrb.mxu1 %v10775_v24  ;;  %v12419_v59 = vld [vmem:[#allocation6 + $0xa1c] sm:$0xf]  ;;  %v10455_v56 = vor.u32 %v12355_v53, %v10452_v1 }
 0x3fd   :  { %v10708_v29 = vld [vmem:[#allocation6 + $0xa38] sm:$0xf0]  ;;  %7098 = vmatpush.bf16.msra.mxu2 %v9943_v28  ;;  %7058 = vmatpush.bf16.msrb.mxu0 %v11251_v2 }
 0x3fe   :  { %v12531_v37 = vld [vmem:[#allocation6 + $0xd9c] sm:$0xf]  ;;  %7123 = vmatpush.bf16.msrb.mxu3 %v10487_v62  ;;  %v10711_v15 = vor.u32 %v12419_v59, %v10708_v29  ;;  %v12619_v62 = vld [vmem:[#allocation9 + $0x58] sm:$0xff] }
 0x3ff   :  { %v11156_v51 = vld [vmem:[#allocation6 + $0xdb8] sm:$0xf0] }
 0x400   :  { %v12347_v33 = vld [vmem:[#allocation6 + $0x7dc] sm:$0xf]  ;;  %7136 = vmatpush.bf16.msrb.mxu1 %v10743_v41  ;;  %v11159_v23 = vor.u32 %v12531_v37, %v11156_v51  ;;  %7099 = vmatmul.bf16.vlgmr.msra.gmra.mxu2 %v13066_v8 }
 0x401   :  { %v10420_v31 = vld [vmem:[#allocation6 + $0x7f8] sm:$0xf0]  ;;  %7143 = vmatpush.bf16.msrb.mxu2 %v11191_v49  ;;  %7059 = vmatpush.bf16.msrb.mxu0 %v11219_v22  ;;  %v13266_v16 = vpop.f32.mrf.mxu0  ;;  %v12617_v22 = vld [vmem:[#allocation9 + $0x48] sm:$0xff] }
 0x402   :  { %v10423_v30 = vor.u32 %v12347_v33, %v10420_v31  ;;  %v12523_v45 = vld [vmem:[#allocation6 + $0xd5c] sm:$0xf]  ;;  %7124 = vmatpush.bf16.msrb.mxu3 %v10455_v56 }
 0x403   :  { %v11124_v48 = vld [vmem:[#allocation6 + $0xd78] sm:$0xf0]  ;;  %v13268_v58 = vpop.f32.mrf.mxu2 }
 0x404   :  { %v12339_v42 = vld [vmem:[#allocation6 + $0x79c] sm:$0xf]  ;;  %7137 = vmatpush.bf16.msrb.mxu1 %v10711_v15  ;;  %v11127_v17 = vor.u32 %v12523_v45, %v11124_v48  ;;  %7060 = vmatmul.bf16.vlgmr.msrb.gmra.mxu0 %v13120_v60  ;;  %v13264_v7 = vpop.f32.mrf.mxu1  ;;  %v12631_v45 = vld [vmem:[#allocation9 + $0xb8] sm:$0xff] }
 0x405   :  { %v10388_v27 = vld [vmem:[#allocation6 + $0x7b8] sm:$0xf0]  ;;  %7144 = vmatpush.bf16.msrb.mxu2 %v11159_v23  ;;  %7104 = vmatpush.bf16.msra.mxu0 %v10423_v30 }
 0x406   :  { %7701 = vmatpush.bf16.msra.mxu3 %v12615_v21  ;;  %v12614_v61 = vld [vmem:[#allocation9 + $0x30] sm:$0xff]  ;;  %v10391_v9 = vor.u32 %v12339_v42, %v10388_v27 }
 0x407   :  { %v12622_v36 = vld [vmem:[#allocation9 + $0x70] sm:$0xff]  ;;  %7125 = vmatmul.bf16.vlgmr.msrb.gmra.mxu3 %v13083_v46  ;;  %7138 = vmatmul.bf16.vlgmr.msrb.gmra.mxu1 %v13086_v0  ;;  %v12612_v46 = vld [vmem:[#allocation9 + $0x20] sm:$0xff] }
 0x408   :  { %7714 = vmatpush.bf16.msra.mxu1 %v12623_v20  ;;  %v12515_v6 = vld [vmem:[#allocation6 + $0xd1c] sm:$0xf]  ;;  %v12620_v0 = vld [vmem:[#allocation9 + $0x60] sm:$0xff]  ;;  %v12609_v20 = vld [vmem:[#allocation9 + $0x8] sm:$0xff] }
 0x409   :  { %v11092_v8 = vld [vmem:[#allocation6 + $0xd38] sm:$0xf0]  ;;  %7145 = vmatpush.bf16.msrb.mxu2 %v11127_v17  ;;  %7105 = vmatpush.bf16.msra.mxu0 %v10391_v9  ;;  %v6855_v51 = vpop.f32.mrf.mxu0  ;;  %v12616_v9 = vld [vmem:[#allocation9 + $0x40] sm:$0xff] }
 0x40a   :  { %v12331_v32 = vld [vmem:[#allocation6 + $0x75c] sm:$0xf]  ;;  %7702 = vmatpush.bf16.msra.mxu3 %v12614_v61  ;;  %v11095_v14 = vor.u32 %v12515_v6, %v11092_v8  ;;  %v13270_v59 = vpop.f32.mrf.mxu3  ;;  %v12608_v61 = vld [vmem:[#allocation9] sm:$0xff]  ;;  %v7169_v6 = vmax.f32 %v13168_v26, 0.0  ;;  %v7170_v8 = vmax.f32 %v13187_v19, 0.0  ;;  %v12629_v19 = vld [vmem:[#allocation9 + $0xa8] sm:$0xff] }
 0x40b   :  { %v10356_v35 = vld [vmem:[#allocation6 + $0x778] sm:$0xf0]  ;;  %v6894_v21 = vpop.f32.mrf.mxu2 }
 0x40c   :  { %7715 = vmatpush.bf16.msra.mxu1 %v12622_v36  ;;  %v10359_v24 = vor.u32 %v12331_v32, %v10356_v35  ;;  %v12507_v39 = vld [vmem:[#allocation6 + $0xcdc] sm:$0xf]  ;;  %v6933_v13 = vpop.f32.mrf.mxu1  ;;  %v12647_v32 = vld [vmem:[#allocation9 + $0x138] sm:$0xff] }
 0x40d   :  { %v11060_v38 = vld [vmem:[#allocation6 + $0xcf8] sm:$0xf0]  ;;  %7146 = vmatpush.bf16.msrb.mxu2 %v11095_v14 }
 0x40e   :  { %v12323_v40 = vld [vmem:[#allocation6 + $0x71c] sm:$0xf]  ;;  %7703 = vmatpush.bf16.msra.mxu3 %v12613_v12  ;;  %7106 = vmatpush.bf16.msra.mxu0 %v10359_v24  ;;  %v11063_v47 = vor.u32 %v12507_v39, %v11060_v38  ;;  %v12655_v39 = vld [vmem:[#allocation9 + $0x178] sm:$0xff]  ;;  %v7177_v38 = vpack.c.bf16 %v7169_v6, %v7169_v6 }
 0x40f   :  { %v10324_v43 = vld [vmem:[#allocation6 + $0x738] sm:$0xf0] }
 0x410   :  { %7716 = vmatpush.bf16.msra.mxu1 %v12621_v11  ;;  %v10327_v50 = vor.u32 %v12323_v40, %v10324_v43  ;;  %v12499_v25 = vld [vmem:[#allocation6 + $0xc9c] sm:$0xf]  ;;  %v7178_v40 = vpack.c.bf16 %v7170_v8, %v7170_v8  ;;  %v7171_v8 = vmax.f32 %v13213_v57, 0.0 }
 0x411   :  { %v11028_v54 = vld [vmem:[#allocation6 + $0xcb8] sm:$0xf0]  ;;  %7147 = vmatpush.bf16.msrb.mxu2 %v11063_v47 }
 0x412   :  { %v12315_v4 = vld [vmem:[#allocation6 + $0x6dc] sm:$0xf]  ;;  %7704 = vmatpush.bf16.msra.mxu3 %v12612_v46  ;;  %7107 = vmatpush.bf16.msra.mxu0 %v10327_v50  ;;  %v11031_v41 = vor.u32 %v12499_v25, %v11028_v54  ;;  %v6920_v27 = vpop.f32.mrf.mxu3  ;;  %v12628_v50 = vld [vmem:[#allocation9 + $0xa0] sm:$0xff] }
 0x413   :  { %v10292_v52 = vld [vmem:[#allocation6 + $0x6f8] sm:$0xf0] }
 0x414   :  { %7717 = vmatpush.bf16.msra.mxu1 %v12620_v0  ;;  %v10295_v28 = vor.u32 %v12315_v4, %v10292_v52  ;;  %v12491_v53 = vld [vmem:[#allocation6 + $0xc5c] sm:$0xf]  ;;  %v12653_v52 = vld [vmem:[#allocation9 + $0x168] sm:$0xff] }
 0x415   :  { %v10996_v1 = vld [vmem:[#allocation6 + $0xc78] sm:$0xf0]  ;;  %7148 = vmatpush.bf16.msrb.mxu2 %v11031_v41 }
 0x416   :  { %v12307_v2 = vld [vmem:[#allocation6 + $0x69c] sm:$0xf]  ;;  %7705 = vmatpush.bf16.msra.mxu3 %v12611_v44  ;;  %7108 = vmatpush.bf16.msra.mxu0 %v10295_v28  ;;  %v10999_v34 = vor.u32 %v12491_v53, %v10996_v1  ;;  %v12644_v44 = vld [vmem:[#allocation9 + $0x120] sm:$0xff] }
 0x417   :  { %v10260_v49 = vld [vmem:[#allocation6 + $0x6b8] sm:$0xf0] }
 0x418   :  { %v12610_v29 = vld [vmem:[#allocation9 + $0x10] sm:$0xff]  ;;  %7718 = vmatpush.bf16.msra.mxu1 %v12619_v62  ;;  %v10263_v37 = vor.u32 %v12307_v2, %v10260_v49  ;;  %v12627_v62 = vld [vmem:[#allocation9 + $0x98] sm:$0xff]  ;;  %v12652_v2 = vld [vmem:[#allocation9 + $0x160] sm:$0xff] }
 0x419   :  { %v12618_v3 = vld [vmem:[#allocation9 + $0x50] sm:$0xff]  ;;  %7149 = vmatpush.bf16.msrb.mxu2 %v10999_v34 }
 0x41a   :  { %v12483_v56 = vld [vmem:[#allocation6 + $0xc1c] sm:$0xf]  ;;  %7706 = vmatpush.bf16.msra.mxu3 %v12610_v29  ;;  %7109 = vmatpush.bf16.msra.mxu0 %v10263_v37  ;;  %v12643_v29 = vld [vmem:[#allocation9 + $0x118] sm:$0xff] }
 0x41b   :  { %v10964_v33 = vld [vmem:[#allocation6 + $0xc38] sm:$0xf0] }
 0x41c   :  { %v12299_v31 = vld [vmem:[#allocation6 + $0x65c] sm:$0xf]  ;;  %7719 = vmatpush.bf16.msra.mxu1 %v12618_v3  ;;  %v10967_v23 = vor.u32 %v12483_v56, %v10964_v33  ;;  %v13278_v3 = vld [vmem:[#allocation7] sm:$0xff] }
 0x41d   :  { %v10228_v15 = vld [vmem:[#allocation6 + $0x678] sm:$0xf0]  ;;  %v3767_v13 = vperm.slane %v13278_v3, 6 }
 0x41e   :  { %v10231_v30 = vor.u32 %v12299_v31, %v10228_v15  ;;  %v12291_v48 = vld [vmem:[#allocation6 + $0x61c] sm:$0xf]  ;;  %7707 = vmatpush.bf16.msra.mxu3 %v12609_v20  ;;  %7150 = vmatpush.bf16.msrb.mxu2 %v10967_v23  ;;  %v12651_v31 = vld [vmem:[#allocation9 + $0x158] sm:$0xff]  ;;  %v12625_v20 = vld [vmem:[#allocation9 + $0x88] sm:$0xff] }
 0x41f   :  { %v10196_v42 = vld [vmem:[#allocation6 + $0x638] sm:$0xf0] }
 0x420   :  { %v12603_v36 = vld [vmem:[#allocation6 + $0xfdc] sm:$0xf]  ;;  %7720 = vmatpush.bf16.msra.mxu1 %v12617_v22  ;;  %7110 = vmatpush.bf16.msra.mxu0 %v10231_v30  ;;  %v10199_v35 = vor.u32 %v12291_v48, %v10196_v42 }
 0x421   :  { %v11444_v17 = vld [vmem:[#allocation6 + $0xff8] sm:$0xf0]  ;;  %7151 = vmatmul.bf16.vlgmr.msrb.gmra.mxu2 %v13111_v63  ;;  %v12645_v63 = vld [vmem:[#allocation9 + $0x128] sm:$0xff]  ;;  %v6905_v1 = vpop.f32.mrf.mxu0 }
 0x422   :  { %7727 = vmatpush.bf16.msra.mxu2 %v12631_v45  ;;  %v12630_v12 = vld [vmem:[#allocation9 + $0xb0] sm:$0xff]  ;;  %v11447_v11 = vor.u32 %v12603_v36, %v11444_v17  ;;  %7708 = vmatpush.bf16.msra.mxu3 %v12608_v61  ;;  %v12641_v36 = vld [vmem:[#allocation9 + $0x108] sm:$0xff]  ;;  %v6854_v17 = vadd.f32 %v13266_v16, %v13256_v55  ;;  %v7179_v16 = vpack.c.bf16 %v7171_v8, %v7171_v8 }
 0x423   :  { %v12595_v14 = vld [vmem:[#allocation6 + $0xf9c] sm:$0xf]  ;;  %v13276_v49 = vpop.f32.mrf.mxu2 }
 0x424   :  { %v11412_v24 = vld [vmem:[#allocation6 + $0xfb8] sm:$0xf0]  ;;  %7721 = vmatpush.bf16.msra.mxu1 %v12616_v9  ;;  %7111 = vmatpush.bf16.msra.mxu0 %v10199_v35  ;;  %v6983_v28 = vpop.f32.mrf.mxu1  ;;  %v12624_v9 = vld [vmem:[#allocation9 + $0x80] sm:$0xff] }
 0x425   :  { %v12646_v26 = vld [vmem:[#allocation9 + $0x130] sm:$0xff]  ;;  %v11415_v43 = vor.u32 %v12595_v14, %v11412_v24  ;;  %7709 = vmatmul.bf16.vlgmr.msra.gmra.mxu3 %v7177_v38  ;;  %v12640_v14 = vld [vmem:[#allocation9 + $0x100] sm:$0xff]  ;;  %v7173_v24 = vmax.f32 %v6854_v17, 0.0  ;;  %v12639_v38 = vld [vmem:[#allocation9 + $0xf8] sm:$0xff] }
 0x426   :  { %7753 = vmatpush.bf16.msrb.mxu3 %v12647_v32  ;;  %7728 = vmatpush.bf16.msra.mxu2 %v12630_v12  ;;  %v12587_v46 = vld [vmem:[#allocation6 + $0xf5c] sm:$0xf] }
 0x427   :  { %7722 = vmatmul.bf16.vlgmr.msra.gmra.mxu1 %v7178_v40  ;;  %v11380_v0 = vld [vmem:[#allocation6 + $0xf78] sm:$0xf0]  ;;  %7112 = vmatmul.bf16.vlgmr.msra.gmra.mxu0 %v13068_v10  ;;  %v7181_v57 = vpack.c.bf16 %v7173_v24, %v7173_v24 }
 0x428   :  { %7156 = vmatpush.bf16.msrb.mxu0 %v11447_v11  ;;  %7766 = vmatpush.bf16.msrb.mxu1 %v12655_v39  ;;  %v12654_v47 = vld [vmem:[#allocation9 + $0x170] sm:$0xff]  ;;  %v11383_v25 = vor.u32 %v12587_v46, %v11380_v0  ;;  %v12649_v11 = vld [vmem:[#allocation9 + $0x148] sm:$0xff]  ;;  %v6893_v39 = vadd.f32 %v13268_v58, %v13258_v18  ;;  %v12636_v46 = vld [vmem:[#allocation9 + $0xe0] sm:$0xff] }
 0x429   :  { %v12579_v54 = vld [vmem:[#allocation6 + $0xf1c] sm:$0xf]  ;;  %v6907_v42 = vpop.f32.mrf.mxu0  ;;  %v12637_v18 = vld [vmem:[#allocation9 + $0xe8] sm:$0xff] }
 0x42a   :  { %7754 = vmatpush.bf16.msrb.mxu3 %v12646_v26  ;;  %7729 = vmatpush.bf16.msra.mxu2 %v12629_v19  ;;  %v11348_v4 = vld [vmem:[#allocation6 + $0xf38] sm:$0xf0]  ;;  %v6970_v33 = vpop.f32.mrf.mxu3  ;;  %v6906_v40 = vadd.f32 %v6905_v1, %v6893_v39  ;;  %v12648_v26 = vld [vmem:[#allocation9 + $0x140] sm:$0xff] }
 0x42b   :  { %v11351_v41 = vor.u32 %v12579_v54, %v11348_v4  ;;  %v12571_v10 = vld [vmem:[#allocation6 + $0xedc] sm:$0xf]  ;;  %v6971_v15 = vadd.f32 %v6970_v33, %v3767_v13  ;;  %v6946_v61 = vpop.f32.mrf.mxu2  ;;  %v12635_v54 = vld [vmem:[#allocation9 + $0xd8] sm:$0xff]  ;;  %v12660_v1 = vld [vmem:[#allocation9 + $0x1a0] sm:$0xff] }
 0x42c   :  { %7157 = vmatpush.bf16.msrb.mxu0 %v11415_v43  ;;  %7767 = vmatpush.bf16.msrb.mxu1 %v12654_v47  ;;  %v11316_v53 = vld [vmem:[#allocation6 + $0xef8] sm:$0xf0]  ;;  %v6985_v23 = vpop.f32.mrf.mxu1  ;;  %v6919_v43 = vadd.f32 %v13270_v59, %v6906_v40  ;;  %v12663_v4 = vld [vmem:[#allocation9 + $0x1b8] sm:$0xff] }
 0x42d   :  { %v12626_v34 = vld [vmem:[#allocation9 + $0x90] sm:$0xff]  ;;  %v11319_v37 = vor.u32 %v12571_v10, %v11316_v53  ;;  %v13281_v48 = vadd.f32 %v6983_v28, %v6971_v15  ;;  %v12633_v10 = vld [vmem:[#allocation9 + $0xc8] sm:$0xff]  ;;  %v12659_v13 = vld [vmem:[#allocation9 + $0x198] sm:$0xff] }
 0x42e   :  { %7755 = vmatpush.bf16.msrb.mxu3 %v12645_v63  ;;  %7730 = vmatpush.bf16.msra.mxu2 %v12628_v50  ;;  %v12563_v56 = vld [vmem:[#allocation6 + $0xe9c] sm:$0xf]  ;;  %v6932_v58 = vadd.f32 %v13264_v7, %v6919_v43  ;;  %v12661_v53 = vld [vmem:[#allocation9 + $0x1a8] sm:$0xff] }
 0x42f   :  { %v11284_v51 = vld [vmem:[#allocation6 + $0xeb8] sm:$0xf0] }
 0x430   :  { %7158 = vmatpush.bf16.msrb.mxu0 %v11383_v25  ;;  %7768 = vmatpush.bf16.msrb.mxu1 %v12653_v52  ;;  %v12642_v21 = vld [vmem:[#allocation9 + $0x110] sm:$0xff]  ;;  %v11287_v22 = vor.u32 %v12563_v56, %v11284_v51  ;;  %v6945_v0 = vadd.f32 %v13276_v49, %v6932_v58  ;;  %v12632_v49 = vld [vmem:[#allocation9 + $0xc0] sm:$0xff]  ;;  %v12657_v56 = vld [vmem:[#allocation9 + $0x188] sm:$0xff] }
 0x431   :  { %v12555_v30 = vld [vmem:[#allocation6 + $0xe5c] sm:$0xf]  ;;  %v12664_v58 = vld [vmem:[#allocation9 + $0x1c0] sm:$0xff] }
 0x432   :  { %7756 = vmatpush.bf16.msrb.mxu3 %v12644_v44  ;;  %7731 = vmatpush.bf16.msra.mxu2 %v12627_v62  ;;  %v11252_v45 = vld [vmem:[#allocation6 + $0xe78] sm:$0xf0]  ;;  %v6972_v12 = vpop.f32.mrf.mxu3 }
 0x433   :  { %v12650_v27 = vld [vmem:[#allocation9 + $0x150] sm:$0xff]  ;;  %v11255_v6 = vor.u32 %v12555_v30, %v11252_v45  ;;  %v12671_v12 = vld [vmem:[#allocation9 + $0x1f8] sm:$0xff] }
 0x434   :  { %7159 = vmatpush.bf16.msrb.mxu0 %v11351_v41  ;;  %7769 = vmatpush.bf16.msrb.mxu1 %v12652_v2  ;;  %v12547_v32 = vld [vmem:[#allocation6 + $0xe1c] sm:$0xf] }
 0x435   :  { %v11220_v35 = vld [vmem:[#allocation6 + $0xe38] sm:$0xf0] }
 0x436   :  { %7757 = vmatpush.bf16.msrb.mxu3 %v12643_v29  ;;  %7732 = vmatpush.bf16.msra.mxu2 %v12626_v34  ;;  %v11223_v55 = vor.u32 %v12547_v32, %v11220_v35  ;;  %v12638_v19 = vld [vmem:[#allocation9 + $0xf0] sm:$0xff]  ;;  %v7172_v29 = vmax.f32 %v13241_v5, 0.0 }
 0x437   :  { %v12662_v62 = vld [vmem:[#allocation9 + $0x1b0] sm:$0xff] }
 0x438   :  { %7160 = vmatpush.bf16.msrb.mxu0 %v11319_v37  ;;  %7770 = vmatpush.bf16.msrb.mxu1 %v12651_v31  ;;  %v7180_v34 = vpack.c.bf16 %v7172_v29, %v7172_v29  ;;  %v12658_v37 = vld [vmem:[#allocation9 + $0x190] sm:$0xff]  ;;  %v12656_v31 = vld [vmem:[#allocation9 + $0x180] sm:$0xff] }
 0x439   :  { %v12670_v24 = vld [vmem:[#allocation9 + $0x1f0] sm:$0xff] }
 0x43a   :  { %7758 = vmatpush.bf16.msrb.mxu3 %v12642_v21  ;;  %7733 = vmatpush.bf16.msra.mxu2 %v12625_v20  ;;  %v3768_v21 = vperm.slane %v13278_v3, 7 }
 0x43c   :  { %7161 = vmatpush.bf16.msrb.mxu0 %v11287_v22  ;;  %7771 = vmatpush.bf16.msrb.mxu1 %v12650_v27 }
 0x43e   :  { %7759 = vmatpush.bf16.msrb.mxu3 %v12641_v36  ;;  %7734 = vmatpush.bf16.msra.mxu2 %v12624_v9 }
 0x440   :  { %7162 = vmatpush.bf16.msrb.mxu0 %v11255_v6  ;;  %7772 = vmatpush.bf16.msrb.mxu1 %v12649_v11 }
 0x441   :  { %7735 = vmatmul.bf16.vlgmr.msra.gmra.mxu2 %v7179_v16  ;;  %v6957_v63 = vpop.f32.mrf.mxu0 }
 0x442   :  { %7760 = vmatpush.bf16.msrb.mxu3 %v12640_v14  ;;  %v6958_v50 = vadd.f32 %v6957_v63, %v6945_v0  ;;  %7779 = vmatpush.bf16.msrb.mxu2 %v12663_v4  ;;  %v12682_v0 = vld [vmem:[#allocation10] ss:$0 sm:$0xff] }
 0x443   :  { %v6996_v25 = vpop.f32.mrf.mxu2 }
 0x444   :  { %7163 = vmatpush.bf16.msrb.mxu0 %v11223_v55  ;;  %7773 = vmatpush.bf16.msrb.mxu1 %v12648_v26  ;;  %v7035_v47 = vpop.f32.mrf.mxu1  ;;  %v7174_v59 = vmax.f32 %v6958_v50, 0.0  ;;  %v6997_v27 = vadd.f32 %v6996_v25, %v13281_v48  ;;  %v12669_v48 = vld [vmem:[#allocation9 + $0x1e8] sm:$0xff]  ;;  %v12667_v26 = vld [vmem:[#allocation9 + $0x1d8] sm:$0xff] }
 0x445   :  { %7761 = vmatmul.bf16.vlgmr.msrb.gmra.mxu3 %v7181_v57  ;;  %v12666_v57 = vld [vmem:[#allocation9 + $0x1d0] sm:$0xff] }
 0x446   :  { %v7182_v52 = vpack.c.bf16 %v7174_v59, %v7174_v59  ;;  %7780 = vmatpush.bf16.msrb.mxu2 %v12662_v62 }
 0x447   :  { %7164 = vmatmul.bf16.vlgmr.msrb.gmra.mxu0 %v13120_v60  ;;  %v12634_v60 = vld [vmem:[#allocation9 + $0xd0] sm:$0xff] }
 0x448   :  { %7740 = vmatpush.bf16.msra.mxu0 %v12639_v38  ;;  %7774 = vmatmul.bf16.vlgmr.msrb.gmra.mxu1 %v7182_v52  ;;  %v12668_v38 = vld [vmem:[#allocation9 + $0x1e0] sm:$0xff] }
 0x449   :  { %v6959_v7 = vpop.f32.mrf.mxu0 }
 0x44a   :  { %v7022_v44 = vpop.f32.mrf.mxu3  ;;  %7781 = vmatpush.bf16.msrb.mxu2 %v12661_v53 }
 0x44b   :  { %v6998_v28 = vpop.f32.mrf.mxu2 }
 0x44c   :  { %7741 = vmatpush.bf16.msra.mxu0 %v12638_v19  ;;  %v7037_v41 = vpop.f32.mrf.mxu1  ;;  %v12665_v19 = vld [vmem:[#allocation9 + $0x1c8] sm:$0xff] }
 0x44e   :  { %7782 = vmatpush.bf16.msrb.mxu2 %v12660_v1 }
 0x450   :  { %7742 = vmatpush.bf16.msra.mxu0 %v12637_v18 }
 0x452   :  { %v7024_v2 = vpop.f32.mrf.mxu3  ;;  %7783 = vmatpush.bf16.msrb.mxu2 %v12659_v13 }
 0x454   :  { %7743 = vmatpush.bf16.msra.mxu0 %v12636_v46 }
 0x456   :  { %7784 = vmatpush.bf16.msrb.mxu2 %v12658_v37 }
 0x458   :  { %7744 = vmatpush.bf16.msra.mxu0 %v12635_v54 }
 0x45a   :  { %7785 = vmatpush.bf16.msrb.mxu2 %v12657_v56 }
 0x45c   :  { %7745 = vmatpush.bf16.msra.mxu0 %v12634_v60 }
 0x45e   :  { %7786 = vmatpush.bf16.msrb.mxu2 %v12656_v31 }
 0x460   :  { %7746 = vmatpush.bf16.msra.mxu0 %v12633_v10 }
 0x461   :  { %v7009_v33 = vpop.f32.mrf.mxu0 }
 0x462   :  { %v7010_v61 = vadd.f32 %v7009_v33, %v6997_v27 }
 0x463   :  { %v7048_v15 = vpop.f32.mrf.mxu2 }
 0x464   :  { %7747 = vmatpush.bf16.msra.mxu0 %v12632_v49  ;;  %v7087_v51 = vpop.f32.mrf.mxu1  ;;  %v7023_v36 = vadd.f32 %v7022_v44, %v7010_v61 }
 0x466   :  { %v7036_v17 = vadd.f32 %v7035_v47, %v7023_v36 }
 0x467   :  { %7748 = vmatmul.bf16.vlgmr.msra.gmra.mxu0 %v7180_v34 }
 0x468   :  { %v7049_v9 = vadd.f32 %v7048_v15, %v7036_v17  ;;  %7792 = vmatpush.bf16.msrb.mxu0 %v12671_v12 }
 0x469   :  { %v7011_v30 = vpop.f32.mrf.mxu0 }
 0x46a   :  { %v7074_v20 = vpop.f32.mrf.mxu3 }
 0x46b   :  { %v7075_v22 = vadd.f32 %v7074_v20, %v3768_v21  ;;  %v7050_v45 = vpop.f32.mrf.mxu2 }
 0x46c   :  { %v7089_v5 = vpop.f32.mrf.mxu1  ;;  %7793 = vmatpush.bf16.msrb.mxu0 %v12670_v24 }
 0x46d   :  { %v7088_v23 = vadd.f32 %v7087_v51, %v7075_v22 }
 0x470   :  { %7794 = vmatpush.bf16.msrb.mxu0 %v12669_v48 }
 0x472   :  { %v7076_v42 = vpop.f32.mrf.mxu3 }
 0x474   :  { %7795 = vmatpush.bf16.msrb.mxu0 %v12668_v38 }
 0x478   :  { %7796 = vmatpush.bf16.msrb.mxu0 %v12667_v26 }
 0x47c   :  { %7797 = vmatpush.bf16.msrb.mxu0 %v12666_v57 }
 0x480   :  { %7798 = vmatpush.bf16.msrb.mxu0 %v12665_v19 }
 0x481   :  { %v7061_v8 = vpop.f32.mrf.mxu0 }
 0x482   :  { %v7062_v32 = vadd.f32 %v7061_v8, %v7049_v9 }
 0x483   :  { %v7100_v35 = vpop.f32.mrf.mxu2 }
 0x484   :  { %v7139_v6 = vpop.f32.mrf.mxu1  ;;  %v7175_v3 = vmax.f32 %v7062_v32, 0.0  ;;  %7799 = vmatpush.bf16.msrb.mxu0 %v12664_v58  ;;  %v7101_v52 = vadd.f32 %v7100_v35, %v7088_v23 }
 0x486   :  { %v7183_v11 = vpack.c.bf16 %v7175_v3, %v7175_v3 }
 0x488   :  { %7787 = vmatmul.bf16.vlgmr.msrb.gmra.mxu2 %v7183_v11 }
 0x489   :  { %v7063_v55 = vpop.f32.mrf.mxu0 }
 0x48a   :  { %v7126_v14 = vpop.f32.mrf.mxu3 }
 0x48b   :  { %v7102_v16 = vpop.f32.mrf.mxu2 }
 0x48c   :  { %v7141_v39 = vpop.f32.mrf.mxu1 }
 0x492   :  { %v7128_v40 = vpop.f32.mrf.mxu3 }
 0x4a4   :  { %v7723_v43 = vpop.f32.mrf.mxu1  ;;  %v7113_v18 = vpop.f32.mrf.mxu0 }
 0x4a5   :  { %v7152_v46 = vpop.f32.mrf.mxu2  ;;  %v7114_v44 = vadd.f32 %v7113_v18, %v7101_v52 }
 0x4a7   :  { %v7127_v60 = vadd.f32 %v7126_v14, %v7114_v44 }
 0x4a8   :  { %v7710_v47 = vpop.f32.mrf.mxu3 }
 0x4a9   :  { %v7711_v63 = vadd.f32 %v12682_v0, %v7710_v47  ;;  %v7140_v62 = vadd.f32 %v7139_v6, %v7127_v60 }
 0x4ab   :  { %v7724_v54 = vadd.f32 %v7723_v43, %v7711_v63  ;;  %v7153_v41 = vadd.f32 %v7152_v46, %v7140_v62 }
 0x4ac   :  { %v7725_v50 = vpop.f32.mrf.mxu1  ;;  %v7115_v25 = vpop.f32.mrf.mxu0 }
 0x4ad   :  { %v7154_v4 = vpop.f32.mrf.mxu2 }
 0x4b0   :  { %v7712_v59 = vpop.f32.mrf.mxu3 }
 0x4c4   :  { %v7165_v7 = vpop.f32.mrf.mxu0  ;;  %v7736_v10 = vpop.f32.mrf.mxu2 }
 0x4c5   :  { %v7166_v28 = vadd.f32 %v7165_v7, %v7153_v41  ;;  %v7737_v1 = vadd.f32 %v7736_v10, %v7724_v54  ;;  %v7775_v37 = vpop.f32.mrf.mxu1 }
 0x4c7   :  { %v7176_v53 = vmax.f32 %v7166_v28, 0.0 }
 0x4c8   :  { %v7762_v49 = vpop.f32.mrf.mxu3 }
 0x4c9   :  { %v7184_v2 = vpack.c.bf16 %v7176_v53, %v7176_v53 }
 0x4cb   :  { %7800 = vmatmul.bf16.vlgmr.msrb.gmra.mxu0 %v7184_v2 }
 0x4cc   :  { %v7167_v29 = vpop.f32.mrf.mxu0  ;;  %v7738_v13 = vpop.f32.mrf.mxu2 }
 0x4cd   :  { %v7777_v56 = vpop.f32.mrf.mxu1 }
 0x4d0   :  { %v7764_v34 = vpop.f32.mrf.mxu3 }
 0x4e4   :  { %v7749_v51 = vpop.f32.mrf.mxu0 }
 0x4e5   :  { %v7750_v33 = vadd.f32 %v7749_v51, %v7737_v1 }
 0x4e7   :  { %v7763_v31 = vadd.f32 %v7762_v49, %v7750_v33 }
 0x4e9   :  { %v7776_v15 = vadd.f32 %v7775_v37, %v7763_v31 }
 0x4ec   :  { %v7751_v21 = vpop.f32.mrf.mxu0 }
 0x50b   :  { %v7788_v20 = vpop.f32.mrf.mxu2 }
 0x50c   :  { %v7789_v5 = vadd.f32 %v7788_v20, %v7776_v15 }
 0x513   :  { %v7790_v22 = vpop.f32.mrf.mxu2 }
 0x548   :  { %v7801_v23 = vpop.f32.mrf.mxu0 }
 0x549   :  { %v7802_v30 = vadd.f32 %v7801_v23, %v7789_v5 }
 0x54b   :  { %7805 = vmax.xlane.f32.xlu0 %v7802_v30 }
 0x550   :  { %v7803_v45 = vpop.f32.mrf.mxu0 }
 0x5be   :  { %v7806_v42 = vpop.xlane.xlu0 %7805 }
 0x5bf   :  { %v7807_v27 = vsub.f32 %v7802_v30, %v7806_v42 }
 0x5c1   :  { %v7808_v61 = vmul.f32 1.442695, %v7807_v27 }
 0x5c3   :  { %12683 = vpow2.f32 %v7808_v61 }
 0x5c9   :  { %v12684_v36 = vpop.eup %12683 }
 0x5ca   :  { %7810 = vadd.xlane.f32.xlu0 %v12684_v36 }
 0x63d   :  { %v7811_v17 = vpop.xlane.xlu0 %7810 }
 0x63e   :  { %12685 = vlog2.f32 %v7811_v17 }
 0x644   :  { %v12686_v9 = vpop.eup %12685 }
 0x645   :  { %v7813_v6 = vmul.f32 0.6931472, %v12686_v9 }
 0x647   :  { %v7814_v8 = vsub.f32 %v7807_v27, %v7813_v6 }
 0x649   :  { %7815 = vst [vmem:[%s13305_s7] sm:$0xff] %v7814_v8 }
 0x64a   :  { %7820 = vsyncpa [#allocation3], 1 }
 0x64b   :  { %7821 = vsyncpa [#allocation5], 1 }
 0x64c   :  { %7822 = vsyncpa [#allocation8], 1 }
 0x64d   :  { %7823 = vsyncpa [#allocation11], 1 }

</bundles_post_ra>
